<compile_context>
chip_gen: v6e
topology: v6e:2x2x1
jax: 0.10.0
libtpu: 0.0.40
codegen_flags: <defaults>
</compile_context>

<pallas_src>
import jax
import jax.numpy as jnp
from jax import lax
from jax.experimental import pallas as pl
from jax.experimental.pallas import tpu as pltpu


# ----------------------------------------------------------------------------
# Fused kernel: one batch element per grid step.
# ----------------------------------------------------------------------------
def _upsampling_fused_kernel(x1_ref, x2_ref, wt_ref, bt_ref, w1_ref, b1_ref,
                             w2_ref, b2_ref, o_ref, cat_ref, h_ref):
    # x1_ref : (1, H,  W,  Cin)        low-res input (NHWC)
    # x2_ref : (1, 2H, 2W, Cx2)        skip connection (Cx2 = Cin // 2)
    # wt_ref : (Cin, 4*Cup)            deconv weight, lane order (ki, kj, c)
    # bt_ref : (1, 4*Cup)              deconv bias tiled per quadrant
    # w1_ref : (9*Ccat, Cmid)          conv1 weight, row order (ki, kj, cin)
    # b1_ref : (1, Cmid)
    # w2_ref : (9*Cmid, Cout)          conv2 weight, row order (ki, kj, cin)
    # b2_ref : (1, Cout)
    # o_ref  : (1, 2H, 2W, Cout)
    # cat_ref: (2H+2, 2W+2, Ccat)      VMEM scratch (padded concat tensor)
    # h_ref  : (2H+2, 2W+2, Cmid)      VMEM scratch (padded conv1 output)
    _, H, W, Cin = x1_ref.shape
    _, H2, W2, Cx2 = x2_ref.shape
    Cup = wt_ref.shape[1] // 4
    Ccat = Cup + Cx2
    Cmid = w1_ref.shape[1]
    Cout = w2_ref.shape[1]

    # ---- ConvTranspose2d(k=2, s=2): one matmul -> 4 quadrant planes --------
    x1 = x1_ref[0].reshape(H * W, Cin)
    y = jnp.dot(x1, wt_ref[...], preferred_element_type=jnp.float32)
    y = y + bt_ref[...]                                   # (H*W, 4*Cup)

    # ---- quadrant scatter into the 2x-upsampled interleaved layout --------
    # y lane order is (ki, kj, c): column (ki*2 + kj)*Cup + c holds the value
    # for output pixel (2i+ki, 2j+kj, c).  Interleave with lane-preserving
    # reshapes + concats only (kept in vregs; never leaves VMEM).
    rows = []
    for ki in range(2):
        cols = []
        for kj in range(2):
            q = ki * 2 + kj
            cols.append(y[:, q * Cup:(q + 1) * Cup].reshape(H, W, 1, Cup))
        # interleave along W: (H, W, 2, Cup) -> (H, 1, 2W, Cup)
        rows.append(jnp.concatenate(cols, axis=2).reshape(H, 1, 2 * W, Cup))
    # interleave along H: (H, 2, 2W, Cup) -> (2H, 2W, Cup)
    up = jnp.concatenate(rows, axis=1).reshape(H2, W2, Cup)

    # ---- channel concat with skip connection (in vregs) --------------------
    cat = jnp.concatenate([up, x2_ref[0]], axis=-1)       # (2H, 2W, Ccat)

    # ---- zero-padded (pad=1) copy kept resident in VMEM scratch ------------
    cat_ref[...] = jnp.zeros_like(cat_ref)
    cat_ref[1:1 + H2, 1:1 + W2, :] = cat

    def conv3x3(src_ref, w_ref, b_ref):
        # im2col: single (2H*2W, 9*C) x (9*C, Co) matmul instead of 9 K=C dots.
        C = src_ref.shape[-1]
        taps = []
        for ki in range(3):
            for kj in range(3):
                taps.append(
                    src_ref[ki:ki + H2, kj:kj + W2, :].reshape(H2 * W2, C))
        patches = jnp.concatenate(taps, axis=-1)          # (2H*2W, 9*C)
        out = jnp.dot(patches, w_ref[...],
                      preferred_element_type=jnp.float32)
        return out + b_ref[...]

    # ---- Conv2d(3x3, pad=1) #1 (no activation, per the PyTorch module) -----
    h = conv3x3(cat_ref, w1_ref, b1_ref)                  # (2H*2W, Cmid)
    h_ref[...] = jnp.zeros_like(h_ref)
    h_ref[1:1 + H2, 1:1 + W2, :] = h.reshape(H2, W2, Cmid)

    # ---- Conv2d(3x3, pad=1) #2 + ReLU --------------------------------------
    out = conv3x3(h_ref, w2_ref, b2_ref)                  # (2H*2W, Cout)
    out = jnp.maximum(out, 0.0)
    o_ref[...] = out.reshape(1, H2, W2, Cout)


# ----------------------------------------------------------------------------
# Wrapper: PyTorch NCHW interface, weight repacking, single pallas_call.
# ----------------------------------------------------------------------------
def upsampling_forward(x1_nchw, x2_nchw, params):
    wt, bt, w1, b1, w2, b2 = params
    B, Cin, H, W = x1_nchw.shape
    Cx2 = x2_nchw.shape[1]
    Cup = wt.shape[1]                    # ConvTranspose2d weight: (Cin, Cup, 2, 2)
    Ccat = Cup + Cx2
    Cmid = w1.shape[0]
    Cout = w2.shape[0]
    H2, W2 = 2 * H, 2 * W

    x1 = jnp.transpose(x1_nchw, (0, 2, 3, 1)).astype(jnp.float32)   # NHWC
    x2 = jnp.transpose(x2_nchw, (0, 2, 3, 1)).astype(jnp.float32)   # NHWC

    # One-time weight repack (tiny, done by XLA outside the kernel).
    wt2 = jnp.transpose(wt, (0, 2, 3, 1)).reshape(Cin, 4 * Cup)      # (ki,kj,c)
    bt4 = jnp.tile(bt.reshape(1, Cup), (1, 4))                       # (q*Cup + c)
    w1r = jnp.transpose(w1, (2, 3, 1, 0)).reshape(9 * Ccat, Cmid)    # (ki,kj,cin)
    w2r = jnp.transpose(w2, (2, 3, 1, 0)).reshape(9 * Cmid, Cout)

    flops = B * (2 * H * W * Cin * 4 * Cup
                 + 2 * H2 * W2 * 9 * Ccat * Cmid
                 + 2 * H2 * W2 * 9 * Cmid * Cout)
    bytes_accessed = 4 * (x1.size + x2.size + wt2.size + bt4.size + w1r.size
                          + b1.size + w2r.size + b2.size + B * H2 * W2 * Cout)

    out = pl.pallas_call(
        _upsampling_fused_kernel,
        out_shape=jax.ShapeDtypeStruct((B, H2, W2, Cout), jnp.float32),
        grid=(B,),
        in_specs=[
            pl.BlockSpec((1, H, W, Cin), lambda b: (b, 0, 0, 0)),
            pl.BlockSpec((1, H2, W2, Cx2), lambda b: (b, 0, 0, 0)),
            pl.BlockSpec((Cin, 4 * Cup), lambda b: (0, 0)),
            pl.BlockSpec((1, 4 * Cup), lambda b: (0, 0)),
            pl.BlockSpec((9 * Ccat, Cmid), lambda b: (0, 0)),
            pl.BlockSpec((1, Cmid), lambda b: (0, 0)),
            pl.BlockSpec((9 * Cmid, Cout), lambda b: (0, 0)),
            pl.BlockSpec((1, Cout), lambda b: (0, 0)),
        ],
        out_specs=pl.BlockSpec((1, H2, W2, Cout), lambda b: (b, 0, 0, 0)),
        scratch_shapes=[
            pltpu.VMEM((H2 + 2, W2 + 2, Ccat), jnp.float32),   # padded concat
            pltpu.VMEM((H2 + 2, W2 + 2, Cmid), jnp.float32),   # padded conv1 out
        ],
        compiler_params=pltpu.CompilerParams(
            dimension_semantics=("parallel",)),
        cost_estimate=pl.CostEstimate(
            flops=flops, transcendentals=0, bytes_accessed=bytes_accessed),
    )(x1, x2, wt2, bt4, w1r, b1.reshape(1, Cmid), w2r, b2.reshape(1, Cout))

    return jnp.transpose(out, (0, 3, 1, 2))                # back to NCHW


# ----------------------------------------------------------------------------
# Pure-JAX reference for verification.
# ----------------------------------------------------------------------------
def upsampling_reference(x1, x2, params):
    wt, bt, w1, b1, w2, b2 = params
    B, Cin, H, W = x1.shape
    Cup = wt.shape[1]
    # ConvTranspose2d(k=2, s=2): out[b,o,2i+ki,2j+kj] = sum_c x[b,c,i,j]*W[c,o,ki,kj]
    t = jnp.einsum('bchw,cokl->bohkwl', x1, wt)            # (B,O,H,2,W,2)
    up = t.reshape(B, Cup, 2 * H, 2 * W) + bt[None, :, None, None]
    cat = jnp.concatenate([up, x2], axis=1)

    def conv(x, w, b):
        y = lax.conv_general_dilated(
            x, w, window_strides=(1, 1), padding=((1, 1), (1, 1)),
            dimension_numbers=('NCHW', 'OIHW', 'NCHW'))
        return y + b[None, :, None, None]

    h = conv(cat, w1, b1)
    return jnp.maximum(conv(h, w2, b2), 0.0)


if __name__ == "__main__":
    B, in_ch, out_ch, H, W = 2, 8, 8, 8, 8   # x1 spatial 8x8, x2 spatial 16x16
    key = jax.random.PRNGKey(0)
    ks = jax.random.split(key, 8)

    x1 = jax.random.normal(ks[0], (B, in_ch, H, W), jnp.float32)
    x2 = jax.random.normal(ks[1], (B, in_ch // 2, 2 * H, 2 * W), jnp.float32)

    # Deterministic parameter init (shapes follow the PyTorch module __init__).
    wt = 0.1 * jax.random.normal(ks[2], (in_ch, in_ch // 2, 2, 2), jnp.float32)
    bt = 0.1 * jax.random.normal(ks[3], (in_ch // 2,), jnp.float32)
    w1 = 0.1 * jax.random.normal(ks[4], (out_ch, in_ch, 3, 3), jnp.float32)
    b1 = 0.1 * jax.random.normal(ks[5], (out_ch,), jnp.float32)
    w2 = 0.1 * jax.random.normal(ks[6], (out_ch, out_ch, 3, 3), jnp.float32)
    b2 = 0.1 * jax.random.normal(ks[7], (out_ch,), jnp.float32)
    params = (wt, bt, w1, b1, w2, b2)

    out = jax.block_until_ready(jax.jit(upsampling_forward)(x1, x2, params))
    ref = jax.block_until_ready(upsampling_reference(x1, x2, params))

    assert out.shape == (B, out_ch, 2 * H, 2 * W)
    assert jnp.allclose(out, ref, atol=2e-4, rtol=2e-4), "mismatch vs reference"

    print("KERNEL_OK")
</pallas_src>

<mosaic_0001>
module attributes {stable_mosaic.version = 11 : i64} {
  func.func @_upsampling_fused_kernel(%arg0: i32, %arg1: memref<1x8x8x8xf32, #tpu.memory_space<vmem>>, %arg2: memref<1x16x16x4xf32, #tpu.memory_space<vmem>>, %arg3: memref<8x16xf32, #tpu.memory_space<vmem>>, %arg4: memref<1x16xf32, #tpu.memory_space<vmem>>, %arg5: memref<72x8xf32, #tpu.memory_space<vmem>>, %arg6: memref<1x8xf32, #tpu.memory_space<vmem>>, %arg7: memref<72x8xf32, #tpu.memory_space<vmem>>, %arg8: memref<1x8xf32, #tpu.memory_space<vmem>>, %arg9: memref<1x16x16x8xf32, #tpu.memory_space<vmem>>, %arg10: memref<18x18x8xf32, #tpu.memory_space<vmem>>, %arg11: memref<18x18x8xf32, #tpu.memory_space<vmem>>) attributes {dimension_semantics = [#tpu.dimension_semantics<parallel>], iteration_bounds = array<i64: 2>, scalar_prefetch = 0 : i64, scratch_operands = 2 : i64, tpu.core_type = #tpu.core_type<tc>, window_params = [{transform_indices = @transform_0, window_bounds = array<i64: 1, 8, 8, 8>}, {transform_indices = @transform_1, window_bounds = array<i64: 1, 16, 16, 4>}, {pipeline_mode = #tpu.pipeline_mode<synchronous>, transform_indices = @transform_2, window_bounds = array<i64: 8, 16>}, {pipeline_mode = #tpu.pipeline_mode<synchronous>, transform_indices = @transform_3, window_bounds = array<i64: 1, 16>}, {pipeline_mode = #tpu.pipeline_mode<synchronous>, transform_indices = @transform_4, window_bounds = array<i64: 72, 8>}, {pipeline_mode = #tpu.pipeline_mode<synchronous>, transform_indices = @transform_5, window_bounds = array<i64: 1, 8>}, {pipeline_mode = #tpu.pipeline_mode<synchronous>, transform_indices = @transform_6, window_bounds = array<i64: 72, 8>}, {pipeline_mode = #tpu.pipeline_mode<synchronous>, transform_indices = @transform_7, window_bounds = array<i64: 1, 8>}, {transform_indices = @transform_8, window_bounds = array<i64: 1, 16, 16, 8>}]} {
    %c0 = arith.constant 0 : index
    %c0_0 = arith.constant 0 : index
    %c0_1 = arith.constant 0 : index
    %c0_2 = arith.constant 0 : index
    %0 = vector.load %arg1[%c0, %c0_0, %c0_1, %c0_2] : memref<1x8x8x8xf32, #tpu.memory_space<vmem>>, vector<1x8x8x8xf32>
    %1 = vector.shape_cast %0 : vector<1x8x8x8xf32> to vector<8x8x8xf32>
    %2 = vector.shape_cast %1 : vector<8x8x8xf32> to vector<64x8xf32>
    %c0_3 = arith.constant 0 : index
    %c0_4 = arith.constant 0 : index
    %3 = vector.load %arg3[%c0_3, %c0_4] : memref<8x16xf32, #tpu.memory_space<vmem>>, vector<8x16xf32>
    %cst = arith.constant dense<0.000000e+00> : vector<64x16xf32>
    %4 = tpu.matmul %2, %3, %cst {dimension_numbers = #tpu.dot_dimension_numbers<[1], [0], [0], [1], [0, 0, 1, 1], [], []>} : vector<64x8xf32>, vector<8x16xf32>, vector<64x16xf32> -> vector<64x16xf32>
    %c0_5 = arith.constant 0 : index
    %c0_6 = arith.constant 0 : index
    %5 = vector.load %arg4[%c0_5, %c0_6] : memref<1x16xf32, #tpu.memory_space<vmem>>, vector<1x16xf32>
    %6 = vector.broadcast %5 : vector<1x16xf32> to vector<64x16xf32>
    %7 = arith.addf %4, %6 : vector<64x16xf32>
    %8 = vector.extract_strided_slice %7 {offsets = [0, 0], sizes = [64, 4], strides = [1, 1]} : vector<64x16xf32> to vector<64x4xf32>
    %9 = vector.shape_cast %8 : vector<64x4xf32> to vector<8x8x1x4xf32>
    %10 = vector.extract_strided_slice %7 {offsets = [0, 4], sizes = [64, 4], strides = [1, 1]} : vector<64x16xf32> to vector<64x4xf32>
    %11 = vector.shape_cast %10 : vector<64x4xf32> to vector<8x8x1x4xf32>
    %12 = tpu.concatenate %9, %11 in 2 : vector<8x8x1x4xf32>, vector<8x8x1x4xf32> -> vector<8x8x2x4xf32>
    %13 = vector.shape_cast %12 : vector<8x8x2x4xf32> to vector<8x1x16x4xf32>
    %14 = vector.extract_strided_slice %7 {offsets = [0, 8], sizes = [64, 4], strides = [1, 1]} : vector<64x16xf32> to vector<64x4xf32>
    %15 = vector.shape_cast %14 : vector<64x4xf32> to vector<8x8x1x4xf32>
    %16 = vector.extract_strided_slice %7 {offsets = [0, 12], sizes = [64, 4], strides = [1, 1]} : vector<64x16xf32> to vector<64x4xf32>
    %17 = vector.shape_cast %16 : vector<64x4xf32> to vector<8x8x1x4xf32>
    %18 = tpu.concatenate %15, %17 in 2 : vector<8x8x1x4xf32>, vector<8x8x1x4xf32> -> vector<8x8x2x4xf32>
    %19 = vector.shape_cast %18 : vector<8x8x2x4xf32> to vector<8x1x16x4xf32>
    %20 = tpu.concatenate %13, %19 in 1 : vector<8x1x16x4xf32>, vector<8x1x16x4xf32> -> vector<8x2x16x4xf32>
    %21 = vector.shape_cast %20 : vector<8x2x16x4xf32> to vector<16x16x4xf32>
    %c0_7 = arith.constant 0 : index
    %c0_8 = arith.constant 0 : index
    %c0_9 = arith.constant 0 : index
    %c0_10 = arith.constant 0 : index
    %22 = vector.load %arg2[%c0_7, %c0_8, %c0_9, %c0_10] : memref<1x16x16x4xf32, #tpu.memory_space<vmem>>, vector<1x16x16x4xf32>
    %23 = vector.shape_cast %22 : vector<1x16x16x4xf32> to vector<16x16x4xf32>
    %24 = tpu.concatenate %21, %23 in 2 : vector<16x16x4xf32>, vector<16x16x4xf32> -> vector<16x16x8xf32>
    %cst_11 = arith.constant 0.000000e+00 : f32
    %25 = vector.broadcast %cst_11 : f32 to vector<18x18x8xf32>
    %c0_12 = arith.constant 0 : index
    %c0_13 = arith.constant 0 : index
    %c0_14 = arith.constant 0 : index
    %26 = vector.load %arg10[%c0_12, %c0_13, %c0_14] : memref<18x18x8xf32, #tpu.memory_space<vmem>>, vector<18x18x8xf32>
    tpu.vector_store %arg10[%c0_12, %c0_13, %c0_14], %25 {strides = array<i32>} : memref<18x18x8xf32, #tpu.memory_space<vmem>>, vector<18x18x8xf32>,
    %c1 = arith.constant 1 : index
    %c1_15 = arith.constant 1 : index
    %c0_16 = arith.constant 0 : index
    %27 = vector.load %arg10[%c1, %c1_15, %c0_16] : memref<18x18x8xf32, #tpu.memory_space<vmem>>, vector<16x16x8xf32>
    tpu.vector_store %arg10[%c1, %c1_15, %c0_16], %24 {strides = array<i32>} : memref<18x18x8xf32, #tpu.memory_space<vmem>>, vector<16x16x8xf32>,
    %c0_17 = arith.constant 0 : index
    %c0_18 = arith.constant 0 : index
    %c0_19 = arith.constant 0 : index
    %28 = vector.load %arg10[%c0_17, %c0_18, %c0_19] : memref<18x18x8xf32, #tpu.memory_space<vmem>>, vector<16x16x8xf32>
    %29 = vector.shape_cast %28 : vector<16x16x8xf32> to vector<256x8xf32>
    %c0_20 = arith.constant 0 : index
    %c1_21 = arith.constant 1 : index
    %c0_22 = arith.constant 0 : index
    %30 = vector.load %arg10[%c0_20, %c1_21, %c0_22] : memref<18x18x8xf32, #tpu.memory_space<vmem>>, vector<16x16x8xf32>
    %31 = vector.shape_cast %30 : vector<16x16x8xf32> to vector<256x8xf32>
    %c0_23 = arith.constant 0 : index
    %c2 = arith.constant 2 : index
    %c0_24 = arith.constant 0 : index
    %32 = vector.load %arg10[%c0_23, %c2, %c0_24] : memref<18x18x8xf32, #tpu.memory_space<vmem>>, vector<16x16x8xf32>
    %33 = vector.shape_cast %32 : vector<16x16x8xf32> to vector<256x8xf32>
    %c1_25 = arith.constant 1 : index
    %c0_26 = arith.constant 0 : index
    %c0_27 = arith.constant 0 : index
    %34 = vector.load %arg10[%c1_25, %c0_26, %c0_27] : memref<18x18x8xf32, #tpu.memory_space<vmem>>, vector<16x16x8xf32>
    %35 = vector.shape_cast %34 : vector<16x16x8xf32> to vector<256x8xf32>
    %c1_28 = arith.constant 1 : index
    %c1_29 = arith.constant 1 : index
    %c0_30 = arith.constant 0 : index
    %36 = vector.load %arg10[%c1_28, %c1_29, %c0_30] : memref<18x18x8xf32, #tpu.memory_space<vmem>>, vector<16x16x8xf32>
    %37 = vector.shape_cast %36 : vector<16x16x8xf32> to vector<256x8xf32>
    %c1_31 = arith.constant 1 : index
    %c2_32 = arith.constant 2 : index
    %c0_33 = arith.constant 0 : index
    %38 = vector.load %arg10[%c1_31, %c2_32, %c0_33] : memref<18x18x8xf32, #tpu.memory_space<vmem>>, vector<16x16x8xf32>
    %39 = vector.shape_cast %38 : vector<16x16x8xf32> to vector<256x8xf32>
    %c2_34 = arith.constant 2 : index
    %c0_35 = arith.constant 0 : index
    %c0_36 = arith.constant 0 : index
    %40 = vector.load %arg10[%c2_34, %c0_35, %c0_36] : memref<18x18x8xf32, #tpu.memory_space<vmem>>, vector<16x16x8xf32>
    %41 = vector.shape_cast %40 : vector<16x16x8xf32> to vector<256x8xf32>
    %c2_37 = arith.constant 2 : index
    %c1_38 = arith.constant 1 : index
    %c0_39 = arith.constant 0 : index
    %42 = vector.load %arg10[%c2_37, %c1_38, %c0_39] : memref<18x18x8xf32, #tpu.memory_space<vmem>>, vector<16x16x8xf32>
    %43 = vector.shape_cast %42 : vector<16x16x8xf32> to vector<256x8xf32>
    %c2_40 = arith.constant 2 : index
    %c2_41 = arith.constant 2 : index
    %c0_42 = arith.constant 0 : index
    %44 = vector.load %arg10[%c2_40, %c2_41, %c0_42] : memref<18x18x8xf32, #tpu.memory_space<vmem>>, vector<16x16x8xf32>
    %45 = vector.shape_cast %44 : vector<16x16x8xf32> to vector<256x8xf32>
    %46 = tpu.concatenate %29, %31, %33, %35, %37, %39, %41, %43, %45 in 1 : vector<256x8xf32>, vector<256x8xf32>, vector<256x8xf32>, vector<256x8xf32>, vector<256x8xf32>, vector<256x8xf32>, vector<256x8xf32>, vector<256x8xf32>, vector<256x8xf32> -> vector<256x72xf32>
    %c0_43 = arith.constant 0 : index
    %c0_44 = arith.constant 0 : index
    %47 = vector.load %arg5[%c0_43, %c0_44] : memref<72x8xf32, #tpu.memory_space<vmem>>, vector<72x8xf32>
    %cst_45 = arith.constant dense<0.000000e+00> : vector<256x8xf32>
    %48 = tpu.matmul %46, %47, %cst_45 {dimension_numbers = #tpu.dot_dimension_numbers<[1], [0], [0], [1], [0, 0, 1, 1], [], []>} : vector<256x72xf32>, vector<72x8xf32>, vector<256x8xf32> -> vector<256x8xf32>
    %c0_46 = arith.constant 0 : index
    %c0_47 = arith.constant 0 : index
    %49 = vector.load %arg6[%c0_46, %c0_47] : memref<1x8xf32, #tpu.memory_space<vmem>>, vector<1x8xf32>
    %50 = vector.broadcast %49 : vector<1x8xf32> to vector<256x8xf32>
    %51 = arith.addf %48, %50 : vector<256x8xf32>
    %cst_48 = arith.constant 0.000000e+00 : f32
    %52 = vector.broadcast %cst_48 : f32 to vector<18x18x8xf32>
    %c0_49 = arith.constant 0 : index
    %c0_50 = arith.constant 0 : index
    %c0_51 = arith.constant 0 : index
    %53 = vector.load %arg11[%c0_49, %c0_50, %c0_51] : memref<18x18x8xf32, #tpu.memory_space<vmem>>, vector<18x18x8xf32>
    tpu.vector_store %arg11[%c0_49, %c0_50, %c0_51], %52 {strides = array<i32>} : memref<18x18x8xf32, #tpu.memory_space<vmem>>, vector<18x18x8xf32>,
    %54 = vector.shape_cast %51 : vector<256x8xf32> to vector<16x16x8xf32>
    %c1_52 = arith.constant 1 : index
    %c1_53 = arith.constant 1 : index
    %c0_54 = arith.constant 0 : index
    %55 = vector.load %arg11[%c1_52, %c1_53, %c0_54] : memref<18x18x8xf32, #tpu.memory_space<vmem>>, vector<16x16x8xf32>
    tpu.vector_store %arg11[%c1_52, %c1_53, %c0_54], %54 {strides = array<i32>} : memref<18x18x8xf32, #tpu.memory_space<vmem>>, vector<16x16x8xf32>,
    %c0_55 = arith.constant 0 : index
    %c0_56 = arith.constant 0 : index
    %c0_57 = arith.constant 0 : index
    %56 = vector.load %arg11[%c0_55, %c0_56, %c0_57] : memref<18x18x8xf32, #tpu.memory_space<vmem>>, vector<16x16x8xf32>
    %57 = vector.shape_cast %56 : vector<16x16x8xf32> to vector<256x8xf32>
    %c0_58 = arith.constant 0 : index
    %c1_59 = arith.constant 1 : index
    %c0_60 = arith.constant 0 : index
    %58 = vector.load %arg11[%c0_58, %c1_59, %c0_60] : memref<18x18x8xf32, #tpu.memory_space<vmem>>, vector<16x16x8xf32>
    %59 = vector.shape_cast %58 : vector<16x16x8xf32> to vector<256x8xf32>
    %c0_61 = arith.constant 0 : index
    %c2_62 = arith.constant 2 : index
    %c0_63 = arith.constant 0 : index
    %60 = vector.load %arg11[%c0_61, %c2_62, %c0_63] : memref<18x18x8xf32, #tpu.memory_space<vmem>>, vector<16x16x8xf32>
    %61 = vector.shape_cast %60 : vector<16x16x8xf32> to vector<256x8xf32>
    %c1_64 = arith.constant 1 : index
    %c0_65 = arith.constant 0 : index
    %c0_66 = arith.constant 0 : index
    %62 = vector.load %arg11[%c1_64, %c0_65, %c0_66] : memref<18x18x8xf32, #tpu.memory_space<vmem>>, vector<16x16x8xf32>
    %63 = vector.shape_cast %62 : vector<16x16x8xf32> to vector<256x8xf32>
    %c1_67 = arith.constant 1 : index
    %c1_68 = arith.constant 1 : index
    %c0_69 = arith.constant 0 : index
    %64 = vector.load %arg11[%c1_67, %c1_68, %c0_69] : memref<18x18x8xf32, #tpu.memory_space<vmem>>, vector<16x16x8xf32>
    %65 = vector.shape_cast %64 : vector<16x16x8xf32> to vector<256x8xf32>
    %c1_70 = arith.constant 1 : index
    %c2_71 = arith.constant 2 : index
    %c0_72 = arith.constant 0 : index
    %66 = vector.load %arg11[%c1_70, %c2_71, %c0_72] : memref<18x18x8xf32, #tpu.memory_space<vmem>>, vector<16x16x8xf32>
    %67 = vector.shape_cast %66 : vector<16x16x8xf32> to vector<256x8xf32>
    %c2_73 = arith.constant 2 : index
    %c0_74 = arith.constant 0 : index
    %c0_75 = arith.constant 0 : index
    %68 = vector.load %arg11[%c2_73, %c0_74, %c0_75] : memref<18x18x8xf32, #tpu.memory_space<vmem>>, vector<16x16x8xf32>
    %69 = vector.shape_cast %68 : vector<16x16x8xf32> to vector<256x8xf32>
    %c2_76 = arith.constant 2 : index
    %c1_77 = arith.constant 1 : index
    %c0_78 = arith.constant 0 : index
    %70 = vector.load %arg11[%c2_76, %c1_77, %c0_78] : memref<18x18x8xf32, #tpu.memory_space<vmem>>, vector<16x16x8xf32>
    %71 = vector.shape_cast %70 : vector<16x16x8xf32> to vector<256x8xf32>
    %c2_79 = arith.constant 2 : index
    %c2_80 = arith.constant 2 : index
    %c0_81 = arith.constant 0 : index
    %72 = vector.load %arg11[%c2_79, %c2_80, %c0_81] : memref<18x18x8xf32, #tpu.memory_space<vmem>>, vector<16x16x8xf32>
    %73 = vector.shape_cast %72 : vector<16x16x8xf32> to vector<256x8xf32>
    %74 = tpu.concatenate %57, %59, %61, %63, %65, %67, %69, %71, %73 in 1 : vector<256x8xf32>, vector<256x8xf32>, vector<256x8xf32>, vector<256x8xf32>, vector<256x8xf32>, vector<256x8xf32>, vector<256x8xf32>, vector<256x8xf32>, vector<256x8xf32> -> vector<256x72xf32>
    %c0_82 = arith.constant 0 : index
    %c0_83 = arith.constant 0 : index
    %75 = vector.load %arg7[%c0_82, %c0_83] : memref<72x8xf32, #tpu.memory_space<vmem>>, vector<72x8xf32>
    %cst_84 = arith.constant dense<0.000000e+00> : vector<256x8xf32>
    %76 = tpu.matmul %74, %75, %cst_84 {dimension_numbers = #tpu.dot_dimension_numbers<[1], [0], [0], [1], [0, 0, 1, 1], [], []>} : vector<256x72xf32>, vector<72x8xf32>, vector<256x8xf32> -> vector<256x8xf32>
    %c0_85 = arith.constant 0 : index
    %c0_86 = arith.constant 0 : index
    %77 = vector.load %arg8[%c0_85, %c0_86] : memref<1x8xf32, #tpu.memory_space<vmem>>, vector<1x8xf32>
    %78 = vector.broadcast %77 : vector<1x8xf32> to vector<256x8xf32>
    %79 = arith.addf %76, %78 : vector<256x8xf32>
    %cst_87 = arith.constant 0.000000e+00 : f32
    %80 = vector.broadcast %cst_87 : f32 to vector<256x8xf32>
    %81 = arith.maximumf %79, %80 : vector<256x8xf32>
    %82 = vector.shape_cast %81 : vector<256x8xf32> to vector<1x16x16x8xf32>
    %c0_88 = arith.constant 0 : index
    %c0_89 = arith.constant 0 : index
    %c0_90 = arith.constant 0 : index
    %c0_91 = arith.constant 0 : index
    %83 = vector.load %arg9[%c0_88, %c0_89, %c0_90, %c0_91] : memref<1x16x16x8xf32, #tpu.memory_space<vmem>>, vector<1x16x16x8xf32>
    tpu.vector_store %arg9[%c0_88, %c0_89, %c0_90, %c0_91], %82 {strides = array<i32>} : memref<1x16x16x8xf32, #tpu.memory_space<vmem>>, vector<1x16x16x8xf32>,
    return
  }
  func.func @transform_0(%arg0: i32) -> (i32, i32, i32, i32) {
    %c0_i32 = arith.constant 0 : i32
    %c0_i32_0 = arith.constant 0 : i32
    %c0_i32_1 = arith.constant 0 : i32
    %c0_i32_2 = arith.constant 0 : i32
    return %arg0, %c0_i32, %c0_i32_0, %c0_i32_1 : i32, i32, i32, i32
  }
  func.func @transform_1(%arg0: i32) -> (i32, i32, i32, i32) {
    %c0_i32 = arith.constant 0 : i32
    %c0_i32_0 = arith.constant 0 : i32
    %c0_i32_1 = arith.constant 0 : i32
    %c0_i32_2 = arith.constant 0 : i32
    return %arg0, %c0_i32, %c0_i32_0, %c0_i32_1 : i32, i32, i32, i32
  }
  func.func @transform_2(%arg0: i32) -> (i32, i32) {
    %c0_i32 = arith.constant 0 : i32
    %c0_i32_0 = arith.constant 0 : i32
    %c0_i32_1 = arith.constant 0 : i32
    return %c0_i32, %c0_i32_0 : i32, i32
  }
  func.func @transform_3(%arg0: i32) -> (i32, i32) {
    %c0_i32 = arith.constant 0 : i32
    %c0_i32_0 = arith.constant 0 : i32
    %c0_i32_1 = arith.constant 0 : i32
    return %c0_i32, %c0_i32_0 : i32, i32
  }
  func.func @transform_4(%arg0: i32) -> (i32, i32) {
    %c0_i32 = arith.constant 0 : i32
    %c0_i32_0 = arith.constant 0 : i32
    %c0_i32_1 = arith.constant 0 : i32
    return %c0_i32, %c0_i32_0 : i32, i32
  }
  func.func @transform_5(%arg0: i32) -> (i32, i32) {
    %c0_i32 = arith.constant 0 : i32
    %c0_i32_0 = arith.constant 0 : i32
    %c0_i32_1 = arith.constant 0 : i32
    return %c0_i32, %c0_i32_0 : i32, i32
  }
  func.func @transform_6(%arg0: i32) -> (i32, i32) {
    %c0_i32 = arith.constant 0 : i32
    %c0_i32_0 = arith.constant 0 : i32
    %c0_i32_1 = arith.constant 0 : i32
    return %c0_i32, %c0_i32_0 : i32, i32
  }
  func.func @transform_7(%arg0: i32) -> (i32, i32) {
    %c0_i32 = arith.constant 0 : i32
    %c0_i32_0 = arith.constant 0 : i32
    %c0_i32_1 = arith.constant 0 : i32
    return %c0_i32, %c0_i32_0 : i32, i32
  }
  func.func @transform_8(%arg0: i32) -> (i32, i32, i32, i32) {
    %c0_i32 = arith.constant 0 : i32
    %c0_i32_0 = arith.constant 0 : i32
    %c0_i32_1 = arith.constant 0 : i32
    %c0_i32_2 = arith.constant 0 : i32
    return %arg0, %c0_i32, %c0_i32_0, %c0_i32_1 : i32, i32, i32, i32
  }
}

</mosaic_0001>

<bundles_post_ra>
// kernel: upsampling_forward.1
= control target key start
LH: loop header
LB: loop body
LE: loop exit
PB: predicated region body
PF: predicated region fallthrough
CT: control target
= control target key end

     0   :  { %s7000_s27 = smov 0   ;;  %s11046_s0 = inlined_call_operand.vmem [shape: f32[2,8,8,8], index: 0, kind: input, shape index: {}]   ;;  %s11047_s1 = inlined_call_operand.vmem [shape: f32[2,16,16,4], index: 1, kind: input, shape index: {}]   ;;  %s11048_s2 = inlined_call_operand.vmem [shape: f32[8,16], index: 2, kind: input, shape index: {}]   ;;  %s11049_s3 = inlined_call_operand.vmem [shape: f32[1,16], index: 3, kind: input, shape index: {}]   ;;  %s11050_s4 = inlined_call_operand.vmem [shape: f32[72,8], index: 4, kind: input, shape index: {}]   ;;  %s11051_s5 = inlined_call_operand.vmem [shape: f32[1,8], index: 5, kind: input, shape index: {}]   ;;  %s11052_s6 = inlined_call_operand.vmem [shape: f32[72,8], index: 6, kind: input, shape index: {}]   ;;  %s11053_s7 = inlined_call_operand.vmem [shape: f32[1,8], index: 7, kind: input, shape index: {}]   ;;  %s11054_s8 = inlined_call_operand.vmem [shape: f32[2,16,16,8], index: 8, kind: output, shape index: {}]  }
   0x1 LB: > { %s6536_s28 = sadd.s32 4294967295, %s6939_s27   ;;  %p6540_p0 = scmp.ge.s32.totalorder %s6939_s27, 1  ;;  %s6939_s27 = sphi %s7000_s27, %s18_s27  }
   0x2   : > { %p272_p1 = scmp.lt.s32.totalorder %s6939_s27, 3 }
   0x4   : > { %p273_p2 = pnand %p6540_p0, %p272_p1 }
   0x6   : > { %276 = sbr.rel (%p273_p2) target bundleno = 2055 (0x807), region = 52 }
   0xb   : > { %v7011_v0 = vld [vmem:[%s11048_s2] sm:$0xff]  ;;  %p7015_p3 = scmp.lt.s32.totalorder %s6536_s28, 1  ;;  %vm342_vm0 = vcmask 64512   ;;  %vm2412_vm1 = vcmask 58368   ;;  %v6941_v1 = vmov 0.0   ;;  %s6942_s18 = smov 4   ;;  %v484_v48 = vlaneseq }
   0xc   : > { %6718 = vmatprep.subr.mxu0 %v7011_v0  ;;  %2410 = vst.msk [vmem:[#allocation2] sm:$0xff] %vm342_vm0, %v6941_v1  ;;  %2411 = vst.msk [vmem:[#allocation2 + $0x8] sm:$0xff] %vm342_vm0, %v6941_v1  ;;  %s6943_s19 = smov 8   ;;  %s6944_s20 = smov 16   ;;  %v6945_v46 = vmov 1966171168  }
   0xd   : > { %2414 = vst.msk [vmem:[#allocation2 + $0x18] sm:$0xff] %vm342_vm0, %v6941_v1  ;;  %2415 = vst.msk [vmem:[#allocation2 + $0x20] sm:$0xff] %vm342_vm0, %v6941_v1  ;;  %6719 = vmatpush3.msra.mxu0 %v7011_v0  ;;  %s11694_s28 = smov (!%p7015_p3, %s6536_s28), 1  ;;  %v482_v47 = vunpack.c.l.s4 %v6945_v46  ;;  %v7331_v50 = vshrl.u32 %v484_v48, 7  ;;  %v7336_v51 = vld [vmem:[%s11049_s3] ss:$0 sm:$0xff] }
   0xe   : > { %2417 = vst.msk [vmem:[#allocation2 + $0x30] sm:$0xff] %vm342_vm0, %v6941_v1  ;;  %2418 = vst.msk [vmem:[#allocation2 + $0x38] sm:$0xff] %vm342_vm0, %v6941_v1  ;;  %s6624_s10 = sshll.u32 %s11694_s28, 6  ;;  %s6625_s11 = sshll.u32 %s11694_s28, 8  ;;  %vm1384_vm2 = vcmask 1040384   ;;  %vm2377_vm3 = vcmask 31744  }
   0xf   : > { %2420 = vst.msk [vmem:[#allocation2 + $0x48] sm:$0xff] %vm342_vm0, %v6941_v1  ;;  %2421 = vst.msk [vmem:[#allocation2 + $0x50] sm:$0xff] %vm342_vm0, %v6941_v1  ;;  %s315_s14 = scalar_lea.vmem %s11046_s0, %s6624_s10  ;;  %s7253_s17 = scalar_lea.vmem %s11047_s1, %s6625_s11  ;;  %v483_v49 = vunpack.c.0.s8 %v482_v47  ;;  %v7345_v58 = vsub.s32 0, %v7331_v50  ;;  %vm3843_vm4 = vcmask 130048   ;;  %vm3876_vm5 = vcmask 195584  }
  0x10   : > { %2423 = vst.msk [vmem:[#allocation2 + $0x60] sm:$0xff] %vm342_vm0, %v6941_v1  ;;  %2424 = vst.msk [vmem:[#allocation2 + $0x68] sm:$0xff] %vm342_vm0, %v6941_v1  ;;  %v326_v2 = vld [vmem:[%s315_s14] sm:$0xff]  ;;  %v327_v3 = vld [vmem:[%s315_s14 + $0x8] sm:$0xff]  ;;  %s6946_s23 = smov 124   ;;  %s6948_s24 = smov 120  }
  0x11   : > { %2426 = vst.msk [vmem:[#allocation2 + $0x78] sm:$0xff] %vm342_vm0, %v6941_v1  ;;  %2427 = vst.msk [vmem:[#allocation2 + $0x80] sm:$0xff] %vm342_vm0, %v6941_v1  ;;  %v328_v4 = vld [vmem:[%s315_s14 + $0x10] sm:$0xff]  ;;  %6720 = vmatprep.mubr.msk.f32.mxu0 %vm342_vm0, %v326_v2  ;;  %v1641_v5 = vld [vmem:[%s7253_s17] sm:$0xff]  ;;  %v7339_v52 = vsub.s32 %v483_v49, %v7331_v50  ;;  %s6949_s25 = smov 24   ;;  %s6950_s26 = smov 32  }
  0x12   : > { %2429 = vst.msk [vmem:[#allocation2 + $0x90] sm:$0xff] %vm342_vm0, %v6941_v1  ;;  %2430 = vst.msk [vmem:[#allocation2 + $0x98] sm:$0xff] %vm342_vm0, %v6941_v1  ;;  %6721 = vmatmul.mubr.msk.f32.vlgmr.msra.gmra.mxu0 %vm342_vm0, %v327_v3  ;;  %v329_v6 = vld [vmem:[%s315_s14 + $0x18] sm:$0xff]  ;;  %2281 = vrot.lane.b32.xlu0 %v1641_v5, %s6942_s18  ;;  %v1642_v7 = vld [vmem:[%s7253_s17 + $0x8] sm:$0xff]  ;;  %s6951_s29 = smov 40   ;;  %s6952_s30 = smov 48  }
  0x13   : > { %2432 = vst.msk [vmem:[#allocation2 + $0xa8] sm:$0xff] %vm342_vm0, %v6941_v1  ;;  %2433 = vst.msk [vmem:[#allocation2 + $0xb0] sm:$0xff] %vm342_vm0, %v6941_v1  ;;  %6723 = vmatprep.mubr.msk.f32.mxu0 %vm342_vm0, %v328_v4  ;;  %v330_v8 = vld [vmem:[%s315_s14 + $0x20] sm:$0xff]  ;;  %2283 = vrot.lane.b32.xlu1 %v1642_v7, %s6942_s18  ;;  %v1643_v9 = vld [vmem:[%s7253_s17 + $0x10] sm:$0xff]  ;;  %s6953_s9 = smov 56   ;;  %vm3909_vm6 = vcmask 261120  }
  0x14   : > { %2435 = vst.msk [vmem:[#allocation2 + $0xc0] sm:$0xff] %vm342_vm0, %v6941_v1  ;;  %2436 = vst.msk [vmem:[#allocation2 + $0xc8] sm:$0xff] %vm342_vm0, %v6941_v1  ;;  %v1644_v10 = vld [vmem:[%s7253_s17 + $0x18] sm:$0xff]  ;;  %v331_v11 = vld [vmem:[%s315_s14 + $0x28] sm:$0xff]  ;;  %vm3942_vm7 = vcmask 326656   ;;  %vm3975_vm8 = vcmask 392192  }
  0x15   : > { %2438 = vst.msk [vmem:[#allocation2 + $0xd8] sm:$0xff] %vm342_vm0, %v6941_v1  ;;  %2439 = vst.msk [vmem:[#allocation2 + $0xe0] sm:$0xff] %vm342_vm0, %v6941_v1  ;;  %v332_v12 = vld [vmem:[%s315_s14 + $0x30] sm:$0xff]  ;;  %v1645_v13 = vld [vmem:[%s7253_s17 + $0x20] sm:$0xff]  ;;  %vm4008_vm9 = vcmask 457728   ;;  %vm4041_vm10 = vcmask 523264  }
  0x16   : > { %2441 = vst.msk [vmem:[#allocation2 + $0xf0] sm:$0xff] %vm342_vm0, %v6941_v1  ;;  %2442 = vst.msk [vmem:[#allocation2 + $0xf8] sm:$0xff] %vm342_vm0, %v6941_v1  ;;  %6724 = vmatmul.mubr.msk.f32.gmra.mxu0 %vm342_vm0, %v329_v6  ;;  %2285 = vrot.lane.b32.xlu0 %v1643_v9, %s6942_s18  ;;  %v1646_v14 = vld [vmem:[%s7253_s17 + $0x28] sm:$0xff]  ;;  %v333_v15 = vld [vmem:[%s315_s14 + $0x38] sm:$0xff]  ;;  %vm4090_vm11 = vcmask 588800  }
  0x17   : > { %2444 = vst.msk [vmem:[#allocation2 + $0x108] sm:$0xff] %vm342_vm0, %v6941_v1  ;;  %2445 = vst.msk [vmem:[#allocation2 + $0x110] sm:$0xff] %vm342_vm0, %v6941_v1  ;;  %6726 = vmatprep.mubr.msk.f32.mxu0 %vm342_vm0, %v330_v8  ;;  %2287 = vrot.lane.b32.xlu1 %v1644_v10, %s6942_s18  ;;  %v1647_v16 = vld [vmem:[%s7253_s17 + $0x30] sm:$0xff]  ;;  %v1648_v17 = vld [vmem:[%s7253_s17 + $0x38] sm:$0xff] }
  0x18   : > { %2447 = vst.msk [vmem:[#allocation2 + $0x120] sm:$0xff] %vm342_vm0, %v6941_v1  ;;  %2448 = vst.msk [vmem:[#allocation2 + $0x128] sm:$0xff] %vm342_vm0, %v6941_v1  ;;  %v1649_v18 = vld [vmem:[%s7253_s17 + $0x40] sm:$0xff]  ;;  %v1650_v19 = vld [vmem:[%s7253_s17 + $0x48] sm:$0xff] }
  0x19   : > { %2450 = vst.msk [vmem:[#allocation2 + $0x138] sm:$0xff] %vm342_vm0, %v6941_v1  ;;  %2451 = vst.msk [vmem:[#allocation2 + $0x140] sm:$0xff] %vm342_vm0, %v6941_v1  ;;  %v1651_v20 = vld [vmem:[%s7253_s17 + $0x50] sm:$0xff]  ;;  %v1652_v21 = vld [vmem:[%s7253_s17 + $0x58] sm:$0xff] }
  0x1a   : > { %2453 = vst.msk [vmem:[#allocation2 + $0x150] sm:$0xff] %vm342_vm0, %v6941_v1  ;;  %2454 = vst.msk [vmem:[#allocation2 + $0x158] sm:$0xff] %vm342_vm0, %v6941_v1  ;;  %6727 = vmatmul.mubr.msk.f32.gmra.mxu0 %vm342_vm0, %v331_v11  ;;  %2289 = vrot.lane.b32.xlu0 %v1645_v13, %s6942_s18  ;;  %v1653_v22 = vld [vmem:[%s7253_s17 + $0x60] sm:$0xff]  ;;  %v1654_v23 = vld [vmem:[%s7253_s17 + $0x68] sm:$0xff] }
  0x1b   : > { %2456 = vst.msk [vmem:[#allocation2 + $0x168] sm:$0xff] %vm342_vm0, %v6941_v1  ;;  %2457 = vst.msk [vmem:[#allocation2 + $0x170] sm:$0xff] %vm342_vm0, %v6941_v1  ;;  %6729 = vmatprep.mubr.msk.f32.mxu0 %vm342_vm0, %v332_v12  ;;  %2291 = vrot.lane.b32.xlu1 %v1646_v14, %s6942_s18  ;;  %v1655_v24 = vld [vmem:[%s7253_s17 + $0x70] sm:$0xff]  ;;  %v1656_v25 = vld [vmem:[%s7253_s17 + $0x78] sm:$0xff] }
  0x1c   : > { %2459 = vst.msk [vmem:[#allocation2 + $0x180] sm:$0xff] %vm342_vm0, %v6941_v1  ;;  %2460 = vst.msk [vmem:[#allocation2 + $0x188] sm:$0xff] %vm342_vm0, %v6941_v1  ;;  %v1657_v26 = vld [vmem:[%s7253_s17 + $0x80] sm:$0xff]  ;;  %v1658_v27 = vld [vmem:[%s7253_s17 + $0x88] sm:$0xff] }
  0x1d   : > { %2462 = vst.msk [vmem:[#allocation2 + $0x198] sm:$0xff] %vm342_vm0, %v6941_v1  ;;  %2463 = vst.msk [vmem:[#allocation2 + $0x1a0] sm:$0xff] %vm342_vm0, %v6941_v1  ;;  %v1659_v28 = vld [vmem:[%s7253_s17 + $0x90] sm:$0xff]  ;;  %v1660_v29 = vld [vmem:[%s7253_s17 + $0x98] sm:$0xff] }
  0x1e   : > { %4412 = vst.msk [vmem:[#allocation3] sm:$0xff] %vm342_vm0, %v6941_v1  ;;  %4413 = vst.msk [vmem:[#allocation3 + $0x8] sm:$0xff] %vm342_vm0, %v6941_v1  ;;  %6730 = vmatmul.mubr.msk.f32.gmra.mxu0 %vm342_vm0, %v333_v15  ;;  %2293 = vrot.lane.b32.xlu0 %v1647_v16, %s6942_s18  ;;  %v1661_v30 = vld [vmem:[%s7253_s17 + $0xa0] sm:$0xff]  ;;  %v1662_v31 = vld [vmem:[%s7253_s17 + $0xa8] sm:$0xff] }
  0x1f   : > { %4415 = vst.msk [vmem:[#allocation3 + $0x18] sm:$0xff] %vm342_vm0, %v6941_v1  ;;  %4416 = vst.msk [vmem:[#allocation3 + $0x20] sm:$0xff] %vm342_vm0, %v6941_v1  ;;  %2295 = vrot.lane.b32.xlu1 %v1648_v17, %s6942_s18  ;;  %v1663_v32 = vld [vmem:[%s7253_s17 + $0xb0] sm:$0xff]  ;;  %v1664_v33 = vld [vmem:[%s7253_s17 + $0xb8] sm:$0xff] }
  0x20   : > { %4418 = vst.msk [vmem:[#allocation3 + $0x30] sm:$0xff] %vm342_vm0, %v6941_v1  ;;  %4419 = vst.msk [vmem:[#allocation3 + $0x38] sm:$0xff] %vm342_vm0, %v6941_v1  ;;  %v1665_v34 = vld [vmem:[%s7253_s17 + $0xc0] sm:$0xff]  ;;  %v1666_v35 = vld [vmem:[%s7253_s17 + $0xc8] sm:$0xff] }
  0x21   : > { %4421 = vst.msk [vmem:[#allocation3 + $0x48] sm:$0xff] %vm342_vm0, %v6941_v1  ;;  %4422 = vst.msk [vmem:[#allocation3 + $0x50] sm:$0xff] %vm342_vm0, %v6941_v1  ;;  %v1667_v36 = vld [vmem:[%s7253_s17 + $0xd0] sm:$0xff]  ;;  %v1668_v37 = vld [vmem:[%s7253_s17 + $0xd8] sm:$0xff] }
  0x22   : > { %4424 = vst.msk [vmem:[#allocation3 + $0x60] sm:$0xff] %vm342_vm0, %v6941_v1  ;;  %4425 = vst.msk [vmem:[#allocation3 + $0x68] sm:$0xff] %vm342_vm0, %v6941_v1  ;;  %2297 = vrot.lane.b32.xlu0 %v1649_v18, %s6942_s18  ;;  %v1669_v38 = vld [vmem:[%s7253_s17 + $0xe0] sm:$0xff]  ;;  %v1670_v39 = vld [vmem:[%s7253_s17 + $0xe8] sm:$0xff] }
  0x23   : > { %4427 = vst.msk [vmem:[#allocation3 + $0x78] sm:$0xff] %vm342_vm0, %v6941_v1  ;;  %4428 = vst.msk [vmem:[#allocation3 + $0x80] sm:$0xff] %vm342_vm0, %v6941_v1  ;;  %2299 = vrot.lane.b32.xlu1 %v1650_v19, %s6942_s18  ;;  %v1671_v40 = vld [vmem:[%s7253_s17 + $0xf0] sm:$0xff]  ;;  %v1672_v41 = vld [vmem:[%s7253_s17 + $0xf8] sm:$0xff]  ;;  %s6954_s17 = smov 64  }
  0x24   : > { %4430 = vst.msk [vmem:[#allocation3 + $0x90] sm:$0xff] %vm342_vm0, %v6941_v1  ;;  %4431 = vst.msk [vmem:[#allocation3 + $0x98] sm:$0xff] %vm342_vm0, %v6941_v1  ;;  %v2530_v42 = vld [vmem:[#allocation2 + $0x1] sm:$0xff] }
  0x25   : > { %4433 = vst.msk [vmem:[#allocation3 + $0xa8] sm:$0xff] %vm342_vm0, %v6941_v1  ;;  %4434 = vst.msk [vmem:[#allocation3 + $0xb0] sm:$0xff] %vm342_vm0, %v6941_v1  ;;  %v2562_v44 = vld [vmem:[#allocation2 + $0x2] sm:$0xff] }
  0x26   : > { %4436 = vst.msk [vmem:[#allocation3 + $0xc0] sm:$0xff] %vm342_vm0, %v6941_v1  ;;  %4437 = vst.msk [vmem:[#allocation3 + $0xc8] sm:$0xff] %vm342_vm0, %v6941_v1  ;;  %2301 = vrot.lane.b32.xlu0 %v1651_v20, %s6942_s18 }
  0x27   : > { %4439 = vst.msk [vmem:[#allocation3 + $0xd8] sm:$0xff] %vm342_vm0, %v6941_v1  ;;  %4440 = vst.msk [vmem:[#allocation3 + $0xe0] sm:$0xff] %vm342_vm0, %v6941_v1  ;;  %2303 = vrot.lane.b32.xlu1 %v1652_v21, %s6942_s18 }
  0x28   : > { %4442 = vst.msk [vmem:[#allocation3 + $0xf0] sm:$0xff] %vm342_vm0, %v6941_v1  ;;  %4443 = vst.msk [vmem:[#allocation3 + $0xf8] sm:$0xff] %vm342_vm0, %v6941_v1 }
  0x29   : > { %4445 = vst.msk [vmem:[#allocation3 + $0x108] sm:$0xff] %vm342_vm0, %v6941_v1  ;;  %4446 = vst.msk [vmem:[#allocation3 + $0x110] sm:$0xff] %vm342_vm0, %v6941_v1 }
  0x2a   : > { %4448 = vst.msk [vmem:[#allocation3 + $0x120] sm:$0xff] %vm342_vm0, %v6941_v1  ;;  %4449 = vst.msk [vmem:[#allocation3 + $0x128] sm:$0xff] %vm342_vm0, %v6941_v1  ;;  %2305 = vrot.lane.b32.xlu0 %v1653_v22, %s6942_s18 }
  0x2b   : > { %4451 = vst.msk [vmem:[#allocation3 + $0x138] sm:$0xff] %vm342_vm0, %v6941_v1  ;;  %4452 = vst.msk [vmem:[#allocation3 + $0x140] sm:$0xff] %vm342_vm0, %v6941_v1  ;;  %2307 = vrot.lane.b32.xlu1 %v1654_v23, %s6942_s18 }
  0x2c   : > { %4454 = vst.msk [vmem:[#allocation3 + $0x150] sm:$0xff] %vm342_vm0, %v6941_v1  ;;  %4455 = vst.msk [vmem:[#allocation3 + $0x158] sm:$0xff] %vm342_vm0, %v6941_v1 }
  0x2d   : > { %4457 = vst.msk [vmem:[#allocation3 + $0x168] sm:$0xff] %vm342_vm0, %v6941_v1  ;;  %4458 = vst.msk [vmem:[#allocation3 + $0x170] sm:$0xff] %vm342_vm0, %v6941_v1 }
  0x2e   : > { %4460 = vst.msk [vmem:[#allocation3 + $0x180] sm:$0xff] %vm342_vm0, %v6941_v1  ;;  %4461 = vst.msk [vmem:[#allocation3 + $0x188] sm:$0xff] %vm342_vm0, %v6941_v1  ;;  %2309 = vrot.lane.b32.xlu0 %v1655_v24, %s6942_s18 }
  0x2f   : > { %4463 = vst.msk [vmem:[#allocation3 + $0x198] sm:$0xff] %vm342_vm0, %v6941_v1  ;;  %4464 = vst.msk [vmem:[#allocation3 + $0x1a0] sm:$0xff] %vm342_vm0, %v6941_v1  ;;  %2311 = vrot.lane.b32.xlu1 %v1656_v25, %s6942_s18 }
  0x30   : > { %2413 = vst.msk [vmem:[#allocation2 + $0x10] sm:$0x3] %vm2412_vm1, %v6941_v1  ;;  %2416 = vst.msk [vmem:[#allocation2 + $0x28] sm:$0x3] %vm2412_vm1, %v6941_v1 }
  0x31   : > { %2419 = vst.msk [vmem:[#allocation2 + $0x40] sm:$0x3] %vm2412_vm1, %v6941_v1  ;;  %2422 = vst.msk [vmem:[#allocation2 + $0x58] sm:$0x3] %vm2412_vm1, %v6941_v1 }
  0x32   : > { %2425 = vst.msk [vmem:[#allocation2 + $0x70] sm:$0x3] %vm2412_vm1, %v6941_v1  ;;  %2428 = vst.msk [vmem:[#allocation2 + $0x88] sm:$0x3] %vm2412_vm1, %v6941_v1  ;;  %2313 = vrot.lane.b32.xlu0 %v1657_v26, %s6942_s18 }
  0x33   : > { %2431 = vst.msk [vmem:[#allocation2 + $0xa0] sm:$0x3] %vm2412_vm1, %v6941_v1  ;;  %2434 = vst.msk [vmem:[#allocation2 + $0xb8] sm:$0x3] %vm2412_vm1, %v6941_v1  ;;  %2315 = vrot.lane.b32.xlu1 %v1658_v27, %s6942_s18 }
  0x34   : > { %2437 = vst.msk [vmem:[#allocation2 + $0xd0] sm:$0x3] %vm2412_vm1, %v6941_v1  ;;  %2440 = vst.msk [vmem:[#allocation2 + $0xe8] sm:$0x3] %vm2412_vm1, %v6941_v1 }
  0x35   : > { %2443 = vst.msk [vmem:[#allocation2 + $0x100] sm:$0x3] %vm2412_vm1, %v6941_v1  ;;  %2446 = vst.msk [vmem:[#allocation2 + $0x118] sm:$0x3] %vm2412_vm1, %v6941_v1 }
  0x36   : > { %2449 = vst.msk [vmem:[#allocation2 + $0x130] sm:$0x3] %vm2412_vm1, %v6941_v1  ;;  %2452 = vst.msk [vmem:[#allocation2 + $0x148] sm:$0x3] %vm2412_vm1, %v6941_v1  ;;  %2317 = vrot.lane.b32.xlu0 %v1659_v28, %s6942_s18 }
  0x37   : > { %2455 = vst.msk [vmem:[#allocation2 + $0x160] sm:$0x3] %vm2412_vm1, %v6941_v1  ;;  %2458 = vst.msk [vmem:[#allocation2 + $0x178] sm:$0x3] %vm2412_vm1, %v6941_v1  ;;  %2319 = vrot.lane.b32.xlu1 %v1660_v29, %s6942_s18  ;;  %v2531_v43 = vld [vmem:[#allocation2 + $0x9] sm:$0xff] }
  0x38   : > { %2461 = vst.msk [vmem:[#allocation2 + $0x190] sm:$0x3] %vm2412_vm1, %v6941_v1  ;;  %2464 = vst.msk [vmem:[#allocation2 + $0x1a8] sm:$0x3] %vm2412_vm1, %v6941_v1  ;;  %v2563_v45 = vld [vmem:[#allocation2 + $0xa] sm:$0xff] }
  0x39   : > { %4414 = vst.msk [vmem:[#allocation3 + $0x10] sm:$0x3] %vm2412_vm1, %v6941_v1  ;;  %4417 = vst.msk [vmem:[#allocation3 + $0x28] sm:$0x3] %vm2412_vm1, %v6941_v1 }
  0x3a   : > { %4420 = vst.msk [vmem:[#allocation3 + $0x40] sm:$0x3] %vm2412_vm1, %v6941_v1  ;;  %4423 = vst.msk [vmem:[#allocation3 + $0x58] sm:$0x3] %vm2412_vm1, %v6941_v1  ;;  %2321 = vrot.lane.b32.xlu0 %v1661_v30, %s6942_s18 }
  0x3b   : > { %4426 = vst.msk [vmem:[#allocation3 + $0x70] sm:$0x3] %vm2412_vm1, %v6941_v1  ;;  %4429 = vst.msk [vmem:[#allocation3 + $0x88] sm:$0x3] %vm2412_vm1, %v6941_v1  ;;  %2323 = vrot.lane.b32.xlu1 %v1662_v31, %s6942_s18 }
  0x3c   : > { %4432 = vst.msk [vmem:[#allocation3 + $0xa0] sm:$0x3] %vm2412_vm1, %v6941_v1  ;;  %4435 = vst.msk [vmem:[#allocation3 + $0xb8] sm:$0x3] %vm2412_vm1, %v6941_v1 }
  0x3d   : > { %4438 = vst.msk [vmem:[#allocation3 + $0xd0] sm:$0x3] %vm2412_vm1, %v6941_v1  ;;  %4441 = vst.msk [vmem:[#allocation3 + $0xe8] sm:$0x3] %vm2412_vm1, %v6941_v1 }
  0x3e   : > { %4444 = vst.msk [vmem:[#allocation3 + $0x100] sm:$0x3] %vm2412_vm1, %v6941_v1  ;;  %4447 = vst.msk [vmem:[#allocation3 + $0x118] sm:$0x3] %vm2412_vm1, %v6941_v1  ;;  %2325 = vrot.lane.b32.xlu0 %v1663_v32, %s6942_s18 }
  0x3f   : > { %4450 = vst.msk [vmem:[#allocation3 + $0x130] sm:$0x3] %vm2412_vm1, %v6941_v1  ;;  %4453 = vst.msk [vmem:[#allocation3 + $0x148] sm:$0x3] %vm2412_vm1, %v6941_v1  ;;  %2327 = vrot.lane.b32.xlu1 %v1664_v33, %s6942_s18 }
  0x40   : > { %4456 = vst.msk [vmem:[#allocation3 + $0x160] sm:$0x3] %vm2412_vm1, %v6941_v1  ;;  %4459 = vst.msk [vmem:[#allocation3 + $0x178] sm:$0x3] %vm2412_vm1, %v6941_v1 }
  0x41   : > { %4462 = vst.msk [vmem:[#allocation3 + $0x190] sm:$0x3] %vm2412_vm1, %v6941_v1  ;;  %4465 = vst.msk [vmem:[#allocation3 + $0x1a8] sm:$0x3] %vm2412_vm1, %v6941_v1 }
  0x42   : > { %2329 = vrot.lane.b32.xlu0 %v1665_v34, %s6942_s18 }
  0x43   : > { %2331 = vrot.lane.b32.xlu1 %v1666_v35, %s6942_s18 }
  0x46   : > { %2333 = vrot.lane.b32.xlu0 %v1667_v36, %s6942_s18 }
  0x47   : > { %2335 = vrot.lane.b32.xlu1 %v1668_v37, %s6942_s18 }
  0x4a   : > { %2337 = vrot.lane.b32.xlu0 %v1669_v38, %s6942_s18 }
  0x4b   : > { %2339 = vrot.lane.b32.xlu1 %v1670_v39, %s6942_s18 }
  0x4e   : > { %2341 = vrot.lane.b32.xlu0 %v1671_v40, %s6942_s18 }
  0x4f   : > { %2343 = vrot.lane.b32.xlu1 %v1672_v41, %s6942_s18 }
  0x52   : > { %2819 = vrot.lane.b32.xlu0 %v2530_v42, %s6943_s19 }
  0x53   : > { %2821 = vrot.lane.b32.xlu1 %v2531_v43, %s6943_s19 }
  0x56   : > { %2947 = vrot.lane.b32.xlu0 %v2562_v44, %s6944_s20 }
  0x57   : > { %2949 = vrot.lane.b32.xlu1 %v2563_v45, %s6944_s20 }
  0x84   : > { %v7399_v21 = vpop.permute.xlu0 %2281 }
  0x85   : > { %v7405_v23 = vpop.permute.xlu1 %2283 }
  0x88   : > { %v7425_v33 = vpop.permute.xlu0 %2285 }
  0x89   : > { %11097 = vst [vmem:[#allocation4_spill] sm:$0xff] %v7425_v33  ;;  %v7432_v36 = vpop.permute.xlu1 %2287 }
  0x8a   : > { %11098 = vst [vmem:[#allocation5_spill] sm:$0xff] %v7432_v36 }
  0xd2   : > { %v6722_v53 = vpop.f32.mrf.mxu0 }
  0xd3   : > { %v439_v54 = vadd.f32 %v6722_v53, %v7336_v51 }
  0xd4   : > { %v433_v55 = vpop.f32.mrf.mxu0 }
  0xd5   : > { %v536_v56 = vrot.slane %v439_v54, %v7339_v52  ;;  %v434_v57 = vadd.f32 %v7336_v51, %v433_v55  ;;  %v529_v59 = vcombine.high %v439_v54, %v439_v54  ;;  %v7466_v55 = vpop.permute.xlu0 %2289 }
  0xd6   : > { %v6725_v5 = vpop.f32.mrf.mxu0 }
  0xd7   : > { %v544_v60 = vcombine.high %v536_v56, %v536_v56  ;;  %v7348_v61 = vrot.slane %v536_v56, %v7339_v52  ;;  %v487_v62 = vrot.slane %v434_v57, %v7339_v52  ;;  %v543_v2 = vrot.slane %v529_v59, %v7339_v52 }
  0xd8   : > { %v480_v6 = vcombine.high %v434_v57, %v434_v57  ;;  %v443_v13 = vpop.f32.mrf.mxu0  ;;  %v7403_v22 = vadd.f32 %v6725_v5, %v7336_v51  ;;  %v7472_v57 = vpop.permute.xlu1 %2291 }
  0xd9   : > { %v7352_v63 = vrot.slane %v544_v60, %v7339_v52  ;;  %v7355_v0 = vrot.slane %v487_v62, %v7339_v52  ;;  %v971_v1 = vrot.slane %v7348_v61, %v7345_v58  ;;  %v7372_v8 = vcombine.high %v7348_v61, %v7348_v61 }
  0xda   : > { %v545_v9 = vcombine.high %v543_v2, %v543_v2  ;;  %v495_v10 = vcombine.high %v487_v62, %v487_v62  ;;  %v7383_v14 = vrot.slane %v543_v2, %v7339_v52  ;;  %v7387_v16 = vpop.f32.mrf.mxu0  ;;  %v494_v17 = vrot.slane %v480_v6, %v7339_v52 }
  0xdb   : > { %v975_v3 = vrot.slane %v7352_v63, %v7345_v58  ;;  %1208 = vrot.lane.b32.xlu0 %v971_v1, %s6946_s23  ;;  %v7365_v4 = vcombine.high %v7355_v0, %v7355_v0  ;;  %v939_v7 = vrot.slane %v7355_v0, %v7345_v58  ;;  %v7378_v12 = vcombine.high %v7352_v63, %v7352_v63 }
  0xdc   : > { %v979_v15 = vrot.slane %v7372_v8, %v7345_v58  ;;  %v7391_v18 = vrot.slane %v495_v10, %v7339_v52  ;;  %v7396_v20 = vrot.slane %v545_v9, %v7339_v52  ;;  %v987_v24 = vrot.slane %v7383_v14, %v7345_v58  ;;  %v453_v25 = vpop.f32.mrf.mxu0 }
  0xdd   : > { %1210 = vrot.lane.b32.xlu1 %v975_v3, %s6946_s23  ;;  %v947_v11 = vrot.slane %v7365_v4, %v7345_v58  ;;  %v983_v19 = vrot.slane %v7378_v12, %v7345_v58  ;;  %v496_v26 = vcombine.high %v494_v17, %v494_v17  ;;  %v634_v29 = vrot.slane %v7403_v22, %v7339_v52 }
  0xde   : > { %v991_v27 = vrot.slane %v7396_v20, %v7345_v58  ;;  %v7413_v28 = vcombine.high %v7391_v18, %v7391_v18  ;;  %v454_v30 = vadd.f32 %v7336_v51, %v453_v25  ;;  %v7421_v31 = vrot.slane %v494_v17, %v7339_v52  ;;  %v6731_v43 = vpop.f32.mrf.mxu0 }
  0xdf   : > { %1192 = vrot.lane.b32.xlu0 %v939_v7, %s6946_s23  ;;  %v943_v32 = vrot.slane %v7391_v18, %v7345_v58  ;;  %v7430_v35 = vrot.slane %v496_v26, %v7339_v52  ;;  %v642_v39 = vcombine.high %v634_v29, %v634_v29  ;;  %v7442_v44 = vadd.f32 %v7336_v51, %v443_v13  ;;  %v7505_v26 = vpop.permute.xlu1 %2295 }
  0xe0   : > { %v951_v34 = vrot.slane %v7413_v28, %v7345_v58  ;;  %v676_v37 = vcombine.high %v454_v30, %v454_v30  ;;  %v683_v38 = vrot.slane %v454_v30, %v7339_v52  ;;  %v955_v45 = vrot.slane %v7421_v31, %v7345_v58  ;;  %v463_v60 = vpop.f32.mrf.mxu0  ;;  %11101 = vst [vmem:[#allocation8_spill] sm:$0xff] %v7505_v26 }
  0xe1   : > { %1196 = vrot.lane.b32.xlu1 %v947_v11, %s6946_s23  ;;  %v7448_v46 = vcombine.high %v7383_v14, %v7383_v14  ;;  %v959_v47 = vrot.slane %v7430_v35, %v7345_v58  ;;  %v7454_v48 = vcombine.high %v7396_v20, %v7396_v20  ;;  %v7463_v54 = vrot.slane %v634_v29, %v7339_v52 }
  0xe2   : > { %v690_v40 = vrot.slane %v676_v37, %v7339_v52  ;;  %v691_v41 = vcombine.high %v683_v38, %v683_v38  ;;  %v7439_v42 = vrot.slane %v683_v38, %v7339_v52  ;;  %v7469_v56 = vrot.slane %v642_v39, %v7339_v52 }
  0xe3   : > { %1212 = vrot.lane.b32.xlu0 %v979_v15, %s6946_s23  ;;  %v585_v62 = vrot.slane %v7442_v44, %v7339_v52  ;;  %v995_v1 = vrot.slane %v7448_v46, %v7345_v58  ;;  %v999_v2 = vrot.slane %v7454_v48, %v7345_v58  ;;  %v469_v3 = vadd.f32 %v6731_v43, %v7336_v51 }
  0xe4   : > { %v7457_v49 = vrot.slane %v690_v40, %v7339_v52  ;;  %v7460_v53 = vrot.slane %v691_v41, %v7339_v52  ;;  %v692_v59 = vcombine.high %v690_v40, %v690_v40  ;;  %v627_v5 = vcombine.high %v7403_v22, %v7403_v22 }
  0xe5   : > { %1214 = vrot.lane.b32.xlu1 %v983_v19, %s6946_s23  ;;  %v1035_v6 = vrot.slane %v7463_v54, %v7345_v58  ;;  %v464_v7 = vadd.f32 %v7336_v51, %v463_v60  ;;  %v1039_v9 = vrot.slane %v7469_v56, %v7345_v58  ;;  %v823_v10 = vcombine.high %v469_v3, %v469_v3  ;;  %v7498_v19 = vpop.permute.xlu0 %2293 }
  0xe6   : > { %11099 = vst [vmem:[#allocation6_spill] sm:$0xff] %v7457_v49  ;;  %v830_v11 = vrot.slane %v469_v3, %v7339_v52  ;;  %v7492_v13 = vrot.slane %v692_v59, %v7339_v52  ;;  %v593_v15 = vcombine.high %v585_v62, %v585_v62  ;;  %v7496_v17 = vcombine.high %v7421_v31, %v7421_v31  ;;  %v7544_v3 = vpop.permute.xlu1 %2299 }
  0xe7   : > { %1216 = vrot.lane.b32.xlu0 %v987_v24, %s6946_s23  ;;  %11100 = vst [vmem:[#allocation7_spill] sm:$0xff] %v7498_v19  ;;  %v774_v22 = vcombine.high %v464_v7, %v464_v7  ;;  %v781_v24 = vrot.slane %v464_v7, %v7339_v52  ;;  %v7503_v25 = vcombine.high %v7430_v35, %v7430_v35  ;;  %11108 = vst [vmem:[#allocation15_spill] sm:$0xff] %v7544_v3 }
  0xe8   : > { %v838_v29 = vcombine.high %v830_v11, %v830_v11  ;;  %v7509_v30 = vrot.slane %v830_v11, %v7339_v52  ;;  %v641_v38 = vrot.slane %v627_v5, %v7339_v52  ;;  %v7525_v43 = vrot.slane %v585_v62, %v7339_v52 }
  0xe9   : > { %1218 = vrot.lane.b32.xlu1 %v991_v27, %s6946_s23  ;;  %v837_v27 = vrot.slane %v823_v10, %v7339_v52  ;;  %v7514_v37 = vrot.slane %v781_v24, %v7339_v52  ;;  %v7536_v60 = vrot.slane %v593_v15, %v7339_v52  ;;  %v7541_v62 = vpop.permute.xlu0 %2297  ;;  %v578_v10 = vcombine.high %v7442_v44, %v7442_v44 }
  0xea   : > { %11102 = vst [vmem:[#allocation9_spill] sm:$0xff] %v7509_v30  ;;  %v7522_v41 = vrot.slane %v838_v29, %v7339_v52  ;;  %v1003_v7 = vrot.slane %v7525_v43, %v7345_v58  ;;  %v7561_v15 = vcombine.high %v7469_v56, %v7469_v56 }
  0xeb   : > { %1194 = vrot.lane.b32.xlu0 %v943_v32, %s6946_s23  ;;  %v788_v32 = vrot.slane %v774_v22, %v7339_v52  ;;  %11103 = vst [vmem:[#allocation10_spill] sm:$0xff] %v7514_v37  ;;  %v839_v39 = vcombine.high %v837_v27, %v837_v27  ;;  %v7519_v40 = vrot.slane %v837_v27, %v7339_v52 }
  0xec   : > { %11105 = vst [vmem:[#allocation12_spill] sm:$0xff] %v7522_v41  ;;  %v1007_v11 = vrot.slane %v7536_v60, %v7345_v58  ;;  %v592_v29 = vrot.slane %v578_v10, %v7339_v52 }
  0xed   : > { %1198 = vrot.lane.b32.xlu1 %v951_v34, %s6946_s23  ;;  %v789_v34 = vcombine.high %v781_v24, %v781_v24  ;;  %11104 = vst [vmem:[#allocation11_spill] sm:$0xff] %v7519_v40  ;;  %v7547_v5 = vrot.slane %v839_v39, %v7339_v52  ;;  %v7569_v24 = vrot.slane %v641_v38, %v7339_v52  ;;  %v7573_v27 = vpop.permute.xlu0 %2301  ;;  %v7581_v39 = vpop.permute.xlu1 %2303 }
  0xee   : > { %11111 = vst [vmem:[#allocation18_spill] sm:$0xff] %v7573_v27  ;;  %11112 = vst [vmem:[#allocation19_spill] sm:$0xff] %v7581_v39 }
  0xef   : > { %1200 = vrot.lane.b32.xlu0 %v955_v45, %s6946_s23  ;;  %v963_v45 = vrot.slane %v7496_v17, %v7345_v58  ;;  %v7533_v59 = vrot.slane %v789_v34, %v7339_v52  ;;  %11109 = vst [vmem:[#allocation16_spill] sm:$0xff] %v7547_v5 }
  0xf1   : > { %1202 = vrot.lane.b32.xlu1 %v959_v47, %s6946_s23  ;;  %v7530_v47 = vrot.slane %v788_v32, %v7339_v52  ;;  %11107 = vst [vmem:[#allocation14_spill] sm:$0xff] %v7533_v59  ;;  %v7600_v10 = vpop.permute.xlu0 %2305 }
  0xf3   : > { %1220 = vrot.lane.b32.xlu0 %v995_v1, %s6946_s23  ;;  %11106 = vst [vmem:[#allocation13_spill] sm:$0xff] %v7530_v47  ;;  %v967_v1 = vrot.slane %v7503_v25, %v7345_v58 }
  0xf5   : > { %1222 = vrot.lane.b32.xlu1 %v999_v2, %s6946_s23  ;;  %v790_v2 = vcombine.high %v788_v32, %v788_v32  ;;  %v1047_v32 = vrot.slane %v7561_v15, %v7345_v58  ;;  %v7624_v27 = vpop.permute.xlu0 %2309 }
  0xf6   : > { %11114 = vst [vmem:[#allocation21_spill] sm:$0xff] %v7624_v27 }
  0xf7   : > { %1240 = vrot.lane.b32.xlu0 %v1035_v6, %s6946_s23  ;;  %v643_v6 = vcombine.high %v641_v38, %v641_v38  ;;  %v7564_v22 = vrot.slane %v790_v2, %v7339_v52  ;;  %v459_v38 = vadd.f32 %v7387_v16, %v7336_v51  ;;  %v594_v2 = vcombine.high %v592_v29, %v592_v29  ;;  %v7604_v16 = vpop.permute.xlu1 %2307 }
  0xf8   : > { %11113 = vst [vmem:[#allocation20_spill] sm:$0xff] %v7604_v16 }
  0xf9   : > { %1242 = vrot.lane.b32.xlu1 %v1039_v9, %s6946_s23  ;;  %v7553_v9 = vcombine.high %v7463_v54, %v7463_v54  ;;  %11110 = vst [vmem:[#allocation17_spill] sm:$0xff] %v7564_v22  ;;  %v7579_v34 = vrot.slane %v643_v6, %v7339_v52  ;;  %v732_v51 = vrot.slane %v459_v38, %v7339_v52 }
  0xfa   : > { %v7614_v39 = vrot.slane %v594_v2, %v7339_v52  ;;  %v725_v19 = vcombine.high %v459_v38, %v459_v38  ;;  %v1067_v38 = vrot.slane %v7439_v42, %v7345_v58 }
  0xfb   : > { %1204 = vrot.lane.b32.xlu0 %v963_v45, %s6946_s23  ;;  %v1043_v44 = vrot.slane %v7553_v9, %v7345_v58  ;;  %v1051_v45 = vrot.slane %v7569_v24, %v7345_v58  ;;  %v1055_v6 = vrot.slane %v7579_v34, %v7345_v58  ;;  %v7630_v2 = vcombine.high %v7579_v34, %v7579_v34 }
  0xfc   : > { %v1023_v36 = vrot.slane %v7614_v39, %v7345_v58 }
  0xfd   : > { %1206 = vrot.lane.b32.xlu1 %v967_v1, %s6946_s23  ;;  %v7591_v1 = vcombine.high %v7525_v43, %v7525_v43  ;;  %v1063_v33 = vrot.slane %v7630_v2, %v7345_v58 }
  0xff   : > { %1224 = vrot.lane.b32.xlu0 %v1003_v7, %s6946_s23  ;;  %v7597_v7 = vcombine.high %v7536_v60, %v7536_v60 }
 0x101   : > { %1226 = vrot.lane.b32.xlu1 %v1007_v11, %s6946_s23  ;;  %v7607_v11 = vrot.slane %v592_v29, %v7339_v52  ;;  %v7622_v29 = vcombine.high %v7569_v24, %v7569_v24 }
 0x103   : > { %1244 = vrot.lane.b32.xlu0 %v1043_v44, %s6946_s23  ;;  %v1011_v44 = vrot.slane %v7591_v1, %v7345_v58  ;;  %v1059_v27 = vrot.slane %v7622_v29, %v7345_v58 }
 0x105   : > { %1246 = vrot.lane.b32.xlu1 %v1047_v32, %s6946_s23  ;;  %v1015_v32 = vrot.slane %v7597_v7, %v7345_v58 }
 0x107   : > { %1248 = vrot.lane.b32.xlu0 %v1051_v45, %s6946_s23  ;;  %v740_v45 = vcombine.high %v732_v51, %v732_v51 }
 0x109   : > { %1250 = vrot.lane.b32.xlu1 %v1055_v6, %s6946_s23  ;;  %v1019_v6 = vrot.slane %v7607_v11, %v7345_v58  ;;  %v7639_v26 = vrot.slane %v740_v45, %v7339_v52 }
 0x10b   : > { %1228 = vrot.lane.b32.xlu0 %v1011_v44, %s6946_s23  ;;  %v7632_v44 = vpop.permute.xlu1 %2311  ;;  %11117 = vst [vmem:[#allocation24_spill] sm:$0xff] %v7639_v26  ;;  %v1103_v45 = vrot.slane %v7639_v26, %v7345_v58 }
 0x10c   : > { %11115 = vst [vmem:[#allocation22_spill] sm:$0xff] %v7632_v44 }
 0x10d   : > { %1230 = vrot.lane.b32.xlu1 %v1015_v32, %s6946_s23  ;;  %v7635_v32 = vrot.slane %v732_v51, %v7339_v52  ;;  %v7649_v51 = vpop.permute.xlu0 %2313 }
 0x10e   : > { %11118 = vst [vmem:[#allocation25_spill] sm:$0xff] %v7649_v51 }
 0x10f   : > { %11116 = vst [vmem:[#allocation23_spill] sm:$0xff] %v7635_v32  ;;  %1232 = vrot.lane.b32.xlu0 %v1019_v6, %s6946_s23  ;;  %v1099_v44 = vrot.slane %v7635_v32, %v7345_v58  ;;  %v7654_v6 = vpop.permute.xlu1 %2315 }
 0x110   : > { %11119 = vst [vmem:[#allocation26_spill] sm:$0xff] %v7654_v6  ;;  %v739_v6 = vrot.slane %v725_v19, %v7339_v52  ;;  %v1071_v19 = vrot.slane %v7460_v53, %v7345_v58 }
 0x111   : > { %1234 = vrot.lane.b32.xlu1 %v1023_v36, %s6946_s23  ;;  %v7658_v36 = vcombine.high %v7607_v11, %v7607_v11  ;;  %v7668_v51 = vpop.permute.xlu0 %2317 }
 0x112   : > { %11121 = vst [vmem:[#allocation28_spill] sm:$0xff] %v7668_v51  ;;  %v7687_v51 = vcombine.high %v7639_v26, %v7639_v26 }
 0x113   : > { %1252 = vrot.lane.b32.xlu0 %v1059_v27, %s6946_s23  ;;  %v7662_v27 = vcombine.high %v7614_v39, %v7614_v39  ;;  %v7673_v16 = vpop.permute.xlu1 %2319 }
 0x114   : > { %11122 = vst [vmem:[#allocation29_spill] sm:$0xff] %v7673_v16  ;;  %v7696_v16 = vrot.slane %v739_v6, %v7339_v52 }
 0x115   : > { %1254 = vrot.lane.b32.xlu1 %v1063_v33, %s6946_s23  ;;  %11120 = vst [vmem:[#allocation27_spill] sm:$0xff] %v7662_v27  ;;  %v1027_v33 = vrot.slane %v7658_v36, %v7345_v58  ;;  %v1031_v3 = vrot.slane %v7662_v27, %v7345_v58  ;;  %v1111_v27 = vrot.slane %v7687_v51, %v7345_v58 }
 0x116   : > { %11125 = vst [vmem:[#allocation32_spill] sm:$0xff] %v7696_v16 }
 0x117   : > { %1272 = vrot.lane.b32.xlu0 %v1099_v44, %s6946_s23  ;;  %v7681_v44 = vcombine.high %v7635_v32, %v7635_v32 }
 0x119   : > { %1274 = vrot.lane.b32.xlu1 %v1103_v45, %s6946_s23  ;;  %v741_v45 = vcombine.high %v739_v6, %v739_v6  ;;  %v1107_v32 = vrot.slane %v7681_v44, %v7345_v58  ;;  %v7711_v6 = vcombine.high %v7439_v42, %v7439_v42 }
 0x11b   : > { %1236 = vrot.lane.b32.xlu0 %v1027_v33, %s6946_s23  ;;  %v7690_v33 = vpop.permute.xlu0 %2321  ;;  %v7703_v26 = vrot.slane %v741_v45, %v7339_v52  ;;  %v7719_v52 = vcombine.high %v7460_v53, %v7460_v53 }
 0x11c   : > { %11123 = vst [vmem:[#allocation30_spill] sm:$0xff] %v7690_v33 }
 0x11d   : > { %1238 = vrot.lane.b32.xlu1 %v1031_v3, %s6946_s23  ;;  %v7693_v3 = vpop.permute.xlu1 %2323  ;;  %11127 = vst [vmem:[#allocation34_spill] sm:$0xff] %v7719_v52 }
 0x11e   : > { %11124 = vst [vmem:[#allocation31_spill] sm:$0xff] %v7693_v3  ;;  %v1119_v3 = vrot.slane %v7703_v26, %v7345_v58 }
 0x11f   : > { %1256 = vrot.lane.b32.xlu0 %v1067_v38, %s6946_s23  ;;  %v1115_v38 = vrot.slane %v7696_v16, %v7345_v58 }
 0x121   : > { %1258 = vrot.lane.b32.xlu1 %v1071_v19, %s6946_s23  ;;  %v7713_v19 = vpop.permute.xlu0 %2325  ;;  %v7721_v45 = vpop.permute.xlu1 %2327 }
 0x122   : > { %11126 = vst [vmem:[#allocation33_spill] sm:$0xff] %v7713_v19  ;;  %11128 = vst [vmem:[#allocation35_spill] sm:$0xff] %v7721_v45  ;;  %v1083_v45 = vrot.slane %v7457_v49, %v7345_v58 }
 0x123   : > { %1276 = vrot.lane.b32.xlu0 %v1107_v32, %s6946_s23  ;;  %v1075_v32 = vrot.slane %v7711_v6, %v7345_v58 }
 0x125   : > { %1278 = vrot.lane.b32.xlu1 %v1111_v27, %s6946_s23  ;;  %v1079_v27 = vrot.slane %v7719_v52, %v7345_v58  ;;  %v7730_v19 = vpop.permute.xlu0 %2329  ;;  %v7733_v33 = vpop.permute.xlu1 %2331  ;;  %v7745_v52 = vcombine.high %v7703_v26, %v7703_v26 }
 0x126   : > { %11129 = vst [vmem:[#allocation36_spill] sm:$0xff] %v7730_v19  ;;  %11130 = vst [vmem:[#allocation37_spill] sm:$0xff] %v7733_v33 }
 0x127   : > { %1280 = vrot.lane.b32.xlu0 %v1115_v38, %s6946_s23  ;;  %v1087_v38 = vrot.slane %v7492_v13, %v7345_v58  ;;  %11131 = vst [vmem:[#allocation38_spill] sm:$0xff] %v7745_v52  ;;  %v1127_v33 = vrot.slane %v7745_v52, %v7345_v58 }
 0x129   : > { %1282 = vrot.lane.b32.xlu1 %v1119_v3, %s6946_s23  ;;  %v7739_v3 = vcombine.high %v7696_v16, %v7696_v16  ;;  %v7755_v19 = vpop.permute.xlu1 %2335  ;;  %v1163_v16 = vrot.slane %v7509_v30, %v7345_v58 }
 0x12a   : > { %11133 = vst [vmem:[#allocation40_spill] sm:$0xff] %v7755_v19 }
 0x12b   : > { %1260 = vrot.lane.b32.xlu0 %v1075_v32, %s6946_s23  ;;  %v1123_v32 = vrot.slane %v7739_v3, %v7345_v58 }
 0x12d   : > { %1262 = vrot.lane.b32.xlu1 %v1079_v27, %s6946_s23  ;;  %v7751_v27 = vpop.permute.xlu0 %2333 }
 0x12e   : > { %11132 = vst [vmem:[#allocation39_spill] sm:$0xff] %v7751_v27  ;;  %v7769_v27 = vcombine.high %v7492_v13, %v7492_v13 }
 0x12f   : > { %1264 = vrot.lane.b32.xlu0 %v1083_v45, %s6946_s23  ;;  %v1167_v45 = vrot.slane %v7522_v41, %v7345_v58 }
 0x130   : > { %11135 = vst [vmem:[#allocation42_spill] sm:$0xff] %v7769_v27  ;;  %v1095_v52 = vrot.slane %v7769_v27, %v7345_v58  ;;  %v7797_v27 = vcombine.high %v7522_v41, %v7522_v41 }
 0x131   : > { %1266 = vrot.lane.b32.xlu1 %v1087_v38, %s6946_s23  ;;  %v7765_v38 = vcombine.high %v7457_v49, %v7457_v49  ;;  %v7772_v19 = vpop.permute.xlu0 %2337 }
 0x132   : > { %11136 = vst [vmem:[#allocation43_spill] sm:$0xff] %v7772_v19  ;;  %v1135_v19 = vrot.slane %v7533_v59, %v7345_v58  ;;  %11141 = vst [vmem:[#allocation48_spill] sm:$0xff] %v7797_v27 }
 0x133   : > { %1284 = vrot.lane.b32.xlu0 %v1123_v32, %s6946_s23  ;;  %11134 = vst [vmem:[#allocation41_spill] sm:$0xff] %v7765_v38  ;;  %v7775_v32 = vpop.permute.xlu1 %2339 }
 0x134   : > { %11137 = vst [vmem:[#allocation44_spill] sm:$0xff] %v7775_v32 }
 0x135   : > { %1286 = vrot.lane.b32.xlu1 %v1127_v33, %s6946_s23  ;;  %v1091_v33 = vrot.slane %v7765_v38, %v7345_v58  ;;  %v7783_v49 = vpop.permute.xlu0 %2341 }
 0x136   : > { %11138 = vst [vmem:[#allocation45_spill] sm:$0xff] %v7783_v49 }
 0x137   : > { %1304 = vrot.lane.b32.xlu0 %v1163_v16, %s6946_s23  ;;  %v1131_v16 = vrot.slane %v7514_v37, %v7345_v58  ;;  %v7791_v32 = vpop.permute.xlu1 %2343 }
 0x138   : > { %11140 = vst [vmem:[#allocation47_spill] sm:$0xff] %v7791_v32 }
 0x139   : > { %1306 = vrot.lane.b32.xlu1 %v1167_v45, %s6946_s23  ;;  %v7789_v45 = vcombine.high %v7509_v30, %v7509_v30  ;;  %v7805_v49 = vpop.permute.xlu0 %2819  ;;  %v1179_v30 = vrot.slane %v7519_v40, %v7345_v58 }
 0x13a   : > { %11142 = vst [vmem:[#allocation49_spill] sm:$0xff] %v7805_v49 }
 0x13b   : > { %1268 = vrot.lane.b32.xlu0 %v1091_v33, %s6946_s23  ;;  %11139 = vst [vmem:[#allocation46_spill] sm:$0xff] %v7789_v45  ;;  %v1175_v33 = vrot.slane %v7797_v27, %v7345_v58  ;;  %v7808_v32 = vpop.permute.xlu1 %2821  ;;  %v7821_v27 = vcombine.high %v7533_v59, %v7533_v59 }
 0x13c   : > { %11143 = vst [vmem:[#allocation50_spill] sm:$0xff] %v7808_v32 }
 0x13d   : > { %1270 = vrot.lane.b32.xlu1 %v1095_v52, %s6946_s23  ;;  %v1171_v52 = vrot.slane %v7789_v45, %v7345_v58  ;;  %11145 = vst [vmem:[#allocation52_spill] sm:$0xff] %v7821_v27  ;;  %v1143_v49 = vrot.slane %v7821_v27, %v7345_v58  ;;  %v7845_v27 = vcombine.high %v7547_v5, %v7547_v5 }
 0x13f   : > { %1288 = vrot.lane.b32.xlu0 %v1131_v16, %s6946_s23  ;;  %v1183_v16 = vrot.slane %v7547_v5, %v7345_v58  ;;  %v7829_v32 = vpop.permute.xlu1 %2949  ;;  %11149 = vst [vmem:[#allocation56_spill] sm:$0xff] %v7845_v27  ;;  %v1191_v41 = vrot.slane %v7845_v27, %v7345_v58  ;;  %v7859_v5 = vcombine.high %v7564_v22, %v7564_v22 }
 0x140   : > { %11147 = vst [vmem:[#allocation54_spill] sm:$0xff] %v7829_v32  ;;  %v1151_v32 = vrot.slane %v7564_v22, %v7345_v58 }
 0x141   : > { %1290 = vrot.lane.b32.xlu1 %v1135_v19, %s6946_s23  ;;  %v7815_v19 = vcombine.high %v7514_v37, %v7514_v37  ;;  %v1159_v38 = vrot.slane %v7859_v5, %v7345_v58 }
 0x143   : > { %1308 = vrot.lane.b32.xlu0 %v1171_v52, %s6946_s23  ;;  %11144 = vst [vmem:[#allocation51_spill] sm:$0xff] %v7815_v19  ;;  %v7825_v52 = vpop.permute.xlu0 %2947 }
 0x144   : > { %11146 = vst [vmem:[#allocation53_spill] sm:$0xff] %v7825_v52  ;;  %v6947_v52 = vmov 1983009808  }
 0x145   : > { %1310 = vrot.lane.b32.xlu1 %v1175_v33, %s6946_s23  ;;  %v1139_v33 = vrot.slane %v7815_v19, %v7345_v58  ;;  %v1676_v59 = vunpack.c.l.s4 %v6947_v52 }
 0x147   : > { %1312 = vrot.lane.b32.xlu0 %v1179_v30, %s6946_s23  ;;  %v1147_v30 = vrot.slane %v7530_v47, %v7345_v58  ;;  %v1677_v52 = vunpack.c.0.s8 %v1676_v59 }
 0x149   : > { %1314 = vrot.lane.b32.xlu1 %v1183_v16, %s6946_s23  ;;  %v7839_v16 = vcombine.high %v7519_v40, %v7519_v40  ;;  %v7853_v40 = vcombine.high %v7530_v47, %v7530_v47  ;;  %v7870_v27 = vsub.s32 %v1677_v52, %v7331_v50 }
 0x14b   : > { %1292 = vrot.lane.b32.xlu0 %v1139_v33, %s6946_s23  ;;  %11148 = vst [vmem:[#allocation55_spill] sm:$0xff] %v7839_v16  ;;  %v1187_v33 = vrot.slane %v7839_v16, %v7345_v58  ;;  %v1155_v47 = vrot.slane %v7853_v40, %v7345_v58 }
 0x14d   : > { %1294 = vrot.lane.b32.xlu1 %v1143_v49, %s6946_s23  ;;  %v1209_v37 = vpop.permute.xlu0 %1208 }
 0x14f   : > { %v1211_v19 = vpop.permute.xlu1 %1210  ;;  %1296 = vrot.lane.b32.xlu0 %v1147_v30, %s6946_s23  ;;  %v1393_v30 = vsel %vm1384_vm2, %v7348_v61, %v1209_v37 }
 0x151   : > { %1298 = vrot.lane.b32.xlu1 %v1151_v32, %s6946_s23  ;;  %v1193_v49 = vpop.permute.xlu0 %1192  ;;  %v1394_v32 = vsel %vm1384_vm2, %v7352_v63, %v1211_v19 }
 0x152   : > { %v1741_v16 = vcombine.low %v1393_v30, %v1394_v32 }
 0x153   : > { %v1197_v45 = vpop.permute.xlu1 %1196  ;;  %1316 = vrot.lane.b32.xlu0 %v1187_v33, %s6946_s23 }
 0x154   : > { %v1749_v50 = vrot.slane %v1741_v16, %v7870_v27  ;;  %v1387_v16 = vsel %vm1384_vm2, %v7365_v4, %v1197_v45 }
 0x155   : > { %1318 = vrot.lane.b32.xlu1 %v1191_v41, %s6946_s23  ;;  %v1213_v59 = vpop.permute.xlu0 %1212 }
 0x156   : > { %v1395_v63 = vsel %vm1384_vm2, %v7372_v8, %v1213_v59 }
 0x157   : > { %v1215_v22 = vpop.permute.xlu1 %1214  ;;  %1300 = vrot.lane.b32.xlu0 %v1155_v47, %s6946_s23 }
 0x158   : > { %v1396_v41 = vsel %vm1384_vm2, %v7378_v12, %v1215_v22  ;;  %v1385_v12 = vsel %vm1384_vm2, %v7355_v0, %v1193_v49 }
 0x159   : > { %v1742_v61 = vcombine.low %v1395_v63, %v1396_v41  ;;  %1302 = vrot.lane.b32.xlu1 %v1159_v38, %s6946_s23  ;;  %v1217_v37 = vpop.permute.xlu0 %1216 }
 0x15b   : > { %v1756_v19 = vrot.slane %v1742_v61, %v7870_v27  ;;  %v1219_v33 = vpop.permute.xlu1 %1218  ;;  %1529 = vrot.lane.b32.xlu0 %v1393_v30, %s6948_s24 }
 0x15c   : > { %v1398_v4 = vsel %vm1384_vm2, %v7396_v20, %v1219_v33 }
 0x15d   : > { %v1757_v58 = vcombine.low %v1749_v50, %v1756_v19  ;;  %1531 = vrot.lane.b32.xlu1 %v1394_v32, %s6948_s24  ;;  %v1195_v8 = vpop.permute.xlu0 %1194 }
 0x15e   : > { %v1386_v22 = vsel %vm1384_vm2, %v7391_v18, %v1195_v8 }
 0x15f   : > { %v2382_v47 = vsel %vm2377_vm3, %v1757_v58, %v7466_v55  ;;  %v1199_v38 = vpop.permute.xlu1 %1198  ;;  %v1673_v52 = vcombine.low %v1385_v12, %v1386_v22  ;;  %1513 = vrot.lane.b32.xlu0 %v1385_v12, %s6948_s24 }
 0x160   : > { %2470 = vst.msk [vmem:[#allocation2 + $0x49] sm:$0xff] %vm342_vm0, %v2382_v47  ;;  %v1388_v32 = vsel %vm1384_vm2, %v7413_v28, %v1199_v38  ;;  %v1397_v28 = vsel %vm1384_vm2, %v7383_v14, %v1217_v37 }
 0x161   : > { %v1674_v30 = vcombine.low %v1387_v16, %v1388_v32  ;;  %1515 = vrot.lane.b32.xlu1 %v1386_v22, %s6948_s24  ;;  %v1201_v0 = vpop.permute.xlu0 %1200  ;;  %v1681_v55 = vrot.slane %v1673_v52, %v7870_v27  ;;  %v1758_v61 = vcombine.low %v1397_v28, %v1398_v4 }
 0x163   : > { %v1688_v18 = vrot.slane %v1674_v30, %v7870_v27  ;;  %v1203_v49 = vpop.permute.xlu1 %1202  ;;  %1533 = vrot.lane.b32.xlu0 %v1395_v63, %s6948_s24 }
 0x164   : > { %v1390_v33 = vsel %vm1384_vm2, %v7430_v35, %v1203_v49 }
 0x165   : > { %v1689_v45 = vcombine.low %v1681_v55, %v1688_v18  ;;  %1535 = vrot.lane.b32.xlu1 %v1396_v41, %s6948_s24  ;;  %v1221_v59 = vpop.permute.xlu0 %1220  ;;  %v1766_v41 = vrot.slane %v1758_v61, %v7870_v27 }
 0x166   : > { %v1399_v58 = vsel %vm1384_vm2, %v7448_v46, %v1221_v59 }
 0x167   : > { %v2378_v50 = vsel %vm2377_vm3, %v1689_v45, %v7399_v21  ;;  %v1223_v19 = vpop.permute.xlu1 %1222  ;;  %1537 = vrot.lane.b32.xlu0 %v1397_v28, %s6948_s24 }
 0x168   : > { %2466 = vst.msk [vmem:[#allocation2 + $0x19] sm:$0xff] %vm342_vm0, %v2378_v50  ;;  %v1400_v20 = vsel %vm1384_vm2, %v7454_v48, %v1223_v19  ;;  %v1389_v48 = vsel %vm1384_vm2, %v7421_v31, %v1201_v0 }
 0x169   : > { %v1759_v63 = vcombine.low %v1399_v58, %v1400_v20  ;;  %1539 = vrot.lane.b32.xlu1 %v1398_v4, %s6948_s24  ;;  %v1241_v14 = vpop.permute.xlu0 %1240  ;;  %v1690_v12 = vcombine.low %v1389_v48, %v1390_v33 }
 0x16b   : > { %v1773_v37 = vrot.slane %v1759_v63, %v7870_v27  ;;  %v1243_v21 = vpop.permute.xlu1 %1242  ;;  %1517 = vrot.lane.b32.xlu0 %v1387_v16, %s6948_s24  ;;  %v1698_v52 = vrot.slane %v1690_v12, %v7870_v27 }
 0x16c   : > { %v1410_v30 = vsel %vm1384_vm2, %v7469_v56, %v1243_v21 }
 0x16d   : > { %v1774_v46 = vcombine.low %v1766_v41, %v1773_v37  ;;  %1519 = vrot.lane.b32.xlu1 %v1388_v32, %s6948_s24  ;;  %v1205_v8 = vpop.permute.xlu0 %1204 }
 0x16e   : > { %v1391_v38 = vsel %vm1384_vm2, %v7496_v17, %v1205_v8 }
 0x16f   : > { %v2383_v47 = vsel %vm2377_vm3, %v1774_v46, %v7472_v57  ;;  %v1207_v22 = vpop.permute.xlu1 %1206  ;;  %1521 = vrot.lane.b32.xlu0 %v1389_v48, %s6948_s24 }
 0x170   : > { %2471 = vst.msk [vmem:[#allocation2 + $0x51] sm:$0xff] %vm342_vm0, %v2383_v47  ;;  %v1392_v35 = vsel %vm1384_vm2, %v7503_v25, %v1207_v22  ;;  %v1409_v25 = vsel %vm1384_vm2, %v7463_v54, %v1241_v14 }
 0x171   : > { %v1691_v16 = vcombine.low %v1391_v38, %v1392_v35  ;;  %1523 = vrot.lane.b32.xlu1 %v1390_v33, %s6948_s24  ;;  %v1225_v31 = vpop.permute.xlu0 %1224  ;;  %v1877_v55 = vcombine.low %v1409_v25, %v1410_v30 }
 0x173   : > { %v1705_v32 = vrot.slane %v1691_v16, %v7870_v27  ;;  %v1227_v57 = vpop.permute.xlu1 %1226  ;;  %1541 = vrot.lane.b32.xlu0 %v1399_v58, %s6948_s24  ;;  %v1885_v28 = vrot.slane %v1877_v55, %v7870_v27 }
 0x174   : > { %v1402_v61 = vsel %vm1384_vm2, %v7536_v60, %v1227_v57 }
 0x175   : > { %v1706_v17 = vcombine.low %v1698_v52, %v1705_v32  ;;  %1543 = vrot.lane.b32.xlu1 %v1400_v20, %s6948_s24  ;;  %v1245_v0 = vpop.permute.xlu0 %1244  ;;  %v11150_v52 = vld [vmem:[#allocation20_spill] sm:$0xff] }
 0x176   : > { %v1411_v4 = vsel %vm1384_vm2, %v7553_v9, %v1245_v0 }
 0x177   : > { %v2379_v18 = vsel %vm2377_vm3, %v1706_v17, %v7405_v23  ;;  %v1247_v49 = vpop.permute.xlu1 %1246  ;;  %1561 = vrot.lane.b32.xlu0 %v1409_v25, %s6948_s24 }
 0x178   : > { %2467 = vst.msk [vmem:[#allocation2 + $0x21] sm:$0xff] %vm342_vm0, %v2379_v18  ;;  %v1412_v56 = vsel %vm1384_vm2, %v7561_v15, %v1247_v49  ;;  %v1401_v15 = vsel %vm1384_vm2, %v7525_v43, %v1225_v31  ;;  %v11152_v49 = vld [vmem:[#allocation24_spill] sm:$0xff] }
 0x179   : > { %v1878_v45 = vcombine.low %v1411_v4, %v1412_v56  ;;  %1563 = vrot.lane.b32.xlu1 %v1410_v30, %s6948_s24  ;;  %v1249_v54 = vpop.permute.xlu0 %1248  ;;  %v1809_v19 = vcombine.low %v1401_v15, %v1402_v61 }
 0x17b   : > { %v1892_v59 = vrot.slane %v1878_v45, %v7870_v27  ;;  %v1251_v23 = vpop.permute.xlu1 %1250  ;;  %1525 = vrot.lane.b32.xlu0 %v1391_v38, %s6948_s24  ;;  %v1817_v41 = vrot.slane %v1809_v19, %v7870_v27 }
 0x17c   : > { %v1414_v21 = vsel %vm1384_vm2, %v7579_v34, %v1251_v23 }
 0x17d   : > { %v1893_v9 = vcombine.low %v1885_v28, %v1892_v59  ;;  %1527 = vrot.lane.b32.xlu1 %v1392_v35, %s6948_s24  ;;  %v1229_v50 = vpop.permute.xlu0 %1228  ;;  %v11154_v59 = vld [vmem:[#allocation15_spill] sm:$0xff] }
 0x17e   : > { %v1403_v63 = vsel %vm1384_vm2, %v7591_v1, %v1229_v50 }
 0x17f   : > { %v2390_v58 = vsel %vm2377_vm3, %v1893_v9, %v7600_v10  ;;  %v1231_v20 = vpop.permute.xlu1 %1230  ;;  %1545 = vrot.lane.b32.xlu0 %v1401_v15, %s6948_s24 }
 0x180   : > { %2478 = vst.msk [vmem:[#allocation2 + $0xa9] sm:$0xff] %vm342_vm0, %v2390_v58  ;;  %v1404_v60 = vsel %vm1384_vm2, %v7597_v7, %v1231_v20  ;;  %v1413_v7 = vsel %vm1384_vm2, %v7569_v24, %v1249_v54 }
 0x181   : > { %v1810_v14 = vcombine.low %v1403_v63, %v1404_v60  ;;  %1547 = vrot.lane.b32.xlu1 %v1402_v61, %s6948_s24  ;;  %v1233_v43 = vpop.permute.xlu0 %1232  ;;  %v1894_v46 = vcombine.low %v1413_v7, %v1414_v21 }
 0x183   : > { %v1824_v37 = vrot.slane %v1810_v14, %v7870_v27  ;;  %v1235_v10 = vpop.permute.xlu1 %1234  ;;  %1565 = vrot.lane.b32.xlu0 %v1411_v4, %s6948_s24  ;;  %v1902_v22 = vrot.slane %v1894_v46, %v7870_v27 }
 0x184   : > { %v1406_v35 = vsel %vm1384_vm2, %v7614_v39, %v1235_v10  ;;  %v11151_v39 = vld [vmem:[#allocation27_spill] sm:$0xff] }
 0x185   : > { %v1825_v1 = vcombine.low %v1817_v41, %v1824_v37  ;;  %1567 = vrot.lane.b32.xlu1 %v1412_v56, %s6948_s24  ;;  %v1253_v33 = vpop.permute.xlu0 %1252  ;;  %v11153_v56 = vld [vmem:[#allocation23_spill] sm:$0xff]  ;;  %v11155_v41 = vld [vmem:[#allocation30_spill] sm:$0xff] }
 0x186   : > { %v1415_v12 = vsel %vm1384_vm2, %v7622_v29, %v1253_v33 }
 0x187   : > { %v2386_v48 = vsel %vm2377_vm3, %v1825_v1, %v7541_v62  ;;  %v1255_v8 = vpop.permute.xlu1 %1254  ;;  %1569 = vrot.lane.b32.xlu0 %v1413_v7, %s6948_s24 }
 0x188   : > { %2474 = vst.msk [vmem:[#allocation2 + $0x79] sm:$0xff] %vm342_vm0, %v2386_v48  ;;  %v1416_v34 = vsel %vm1384_vm2, %v7630_v2, %v1255_v8  ;;  %v1405_v2 = vsel %vm1384_vm2, %v7607_v11, %v1233_v43 }
 0x189   : > { %v1895_v47 = vcombine.low %v1415_v12, %v1416_v34  ;;  %1571 = vrot.lane.b32.xlu1 %v1414_v21, %s6948_s24  ;;  %v1273_v24 = vpop.permute.xlu0 %1272  ;;  %v1826_v31 = vcombine.low %v1405_v2, %v1406_v35 }
 0x18a   : > { %v1425_v45 = vsel %vm1384_vm2, %v11153_v56, %v1273_v24 }
 0x18b   : > { %v1909_v38 = vrot.slane %v1895_v47, %v7870_v27  ;;  %v1275_v62 = vpop.permute.xlu1 %1274  ;;  %1549 = vrot.lane.b32.xlu0 %v1403_v63, %s6948_s24  ;;  %v1834_v0 = vrot.slane %v1826_v31, %v7870_v27 }
 0x18c   : > { %v1426_v4 = vsel %vm1384_vm2, %v11152_v49, %v1275_v62 }
 0x18d   : > { %v1910_v29 = vcombine.low %v1902_v22, %v1909_v38  ;;  %1551 = vrot.lane.b32.xlu1 %v1404_v60, %s6948_s24  ;;  %v1237_v16 = vpop.permute.xlu0 %1236  ;;  %v2013_v28 = vcombine.low %v1425_v45, %v1426_v4  ;;  %v11158_v22 = vld [vmem:[#allocation25_spill] sm:$0xff] }
 0x18e   : > { %v1407_v30 = vsel %vm1384_vm2, %v7658_v36, %v1237_v16 }
 0x18f   : > { %v2391_v32 = vsel %vm2377_vm3, %v1910_v29, %v11150_v52  ;;  %v1239_v57 = vpop.permute.xlu1 %1238  ;;  %1553 = vrot.lane.b32.xlu0 %v1405_v2, %s6948_s24  ;;  %v2021_v58 = vrot.slane %v2013_v28, %v7870_v27 }
 0x190   : > { %2479 = vst.msk [vmem:[#allocation2 + $0xb1] sm:$0xff] %vm342_vm0, %v2391_v32  ;;  %v1408_v17 = vsel %vm1384_vm2, %v11151_v39, %v1239_v57 }
 0x191   : > { %v1827_v25 = vcombine.low %v1407_v30, %v1408_v17  ;;  %1555 = vrot.lane.b32.xlu1 %v1406_v35, %s6948_s24  ;;  %v1257_v11 = vpop.permute.xlu0 %1256 }
 0x193   : > { %v1841_v55 = vrot.slane %v1827_v25, %v7870_v27  ;;  %v1259_v18 = vpop.permute.xlu1 %1258  ;;  %1573 = vrot.lane.b32.xlu0 %v1415_v12, %s6948_s24  ;;  %v11157_v12 = vld [vmem:[#allocation32_spill] sm:$0xff] }
 0x194   : > { %v1418_v60 = vsel %vm1384_vm2, %v7460_v53, %v1259_v18  ;;  %v11156_v53 = vld [vmem:[#allocation34_spill] sm:$0xff]  ;;  %v11162_v18 = vld [vmem:[#allocation41_spill] sm:$0xff] }
 0x195   : > { %v1842_v36 = vcombine.low %v1834_v0, %v1841_v55  ;;  %1575 = vrot.lane.b32.xlu1 %v1416_v34, %s6948_s24  ;;  %v1277_v54 = vpop.permute.xlu0 %1276 }
 0x196   : > { %v1427_v9 = vsel %vm1384_vm2, %v7681_v44, %v1277_v54 }
 0x197   : > { %v2387_v23 = vsel %vm2377_vm3, %v1842_v36, %v11154_v59  ;;  %v1279_v61 = vpop.permute.xlu1 %1278  ;;  %1593 = vrot.lane.b32.xlu0 %v1425_v45, %s6948_s24  ;;  %v11164_v59 = vld [vmem:[#allocation12_spill] sm:$0xff] }
 0x198   : > { %2475 = vst.msk [vmem:[#allocation2 + $0x81] sm:$0xff] %vm342_vm0, %v2387_v23  ;;  %v1428_v15 = vsel %vm1384_vm2, %v7687_v51, %v1279_v61  ;;  %v1417_v51 = vsel %vm1384_vm2, %v7439_v42, %v1257_v11  ;;  %v11161_v11 = vld [vmem:[#allocation31_spill] sm:$0xff] }
 0x199   : > { %v2014_v50 = vcombine.low %v1427_v9, %v1428_v15  ;;  %1595 = vrot.lane.b32.xlu1 %v1426_v4, %s6948_s24  ;;  %v1281_v19 = vpop.permute.xlu0 %1280  ;;  %v1945_v43 = vcombine.low %v1417_v51, %v1418_v60 }
 0x19a   : > { %v1429_v34 = vsel %vm1384_vm2, %v11157_v12, %v1281_v19 }
 0x19b   : > { %v2028_v20 = vrot.slane %v2014_v50, %v7870_v27  ;;  %v1283_v63 = vpop.permute.xlu1 %1282  ;;  %1557 = vrot.lane.b32.xlu0 %v1407_v30, %s6948_s24  ;;  %v1953_v33 = vrot.slane %v1945_v43, %v7870_v27  ;;  %v11160_v30 = vld [vmem:[#allocation6_spill] sm:$0xff] }
 0x19c   : > { %v1430_v8 = vsel %vm1384_vm2, %v7703_v26, %v1283_v63  ;;  %v11159_v26 = vld [vmem:[#allocation38_spill] sm:$0xff] }
 0x19d   : > { %v2029_v44 = vcombine.low %v2021_v58, %v2028_v20  ;;  %1559 = vrot.lane.b32.xlu1 %v1408_v17, %s6948_s24  ;;  %v1261_v14 = vpop.permute.xlu0 %1260  ;;  %v2030_v24 = vcombine.low %v1429_v34, %v1430_v8  ;;  %v11166_v58 = vld [vmem:[#allocation26_spill] sm:$0xff] }
 0x19e   : > { %v1419_v21 = vsel %vm1384_vm2, %v7711_v6, %v1261_v14 }
 0x19f   : > { %v2398_v37 = vsel %vm2377_vm3, %v2029_v44, %v11155_v41  ;;  %v1263_v10 = vpop.permute.xlu1 %1262  ;;  %1577 = vrot.lane.b32.xlu0 %v1417_v51, %s6948_s24  ;;  %v2038_v31 = vrot.slane %v2030_v24, %v7870_v27  ;;  %v11168_v51 = vld [vmem:[#allocation48_spill] sm:$0xff] }
 0x1a0   : > { %2486 = vst.msk [vmem:[#allocation2 + $0x109] sm:$0xff] %vm342_vm0, %v2398_v37  ;;  %v1420_v1 = vsel %vm1384_vm2, %v11156_v53, %v1263_v10  ;;  %v11169_v53 = vld [vmem:[#allocation14_spill] sm:$0xff]  ;;  %v11173_v24 = vld [vmem:[#allocation52_spill] sm:$0xff] }
 0x1a1   : > { %v1946_v7 = vcombine.low %v1419_v21, %v1420_v1  ;;  %1579 = vrot.lane.b32.xlu1 %v1418_v60, %s6948_s24  ;;  %v1265_v42 = vpop.permute.xlu0 %1264  ;;  %v11167_v60 = vld [vmem:[#allocation46_spill] sm:$0xff] }
 0x1a2   : > { %v1421_v39 = vsel %vm1384_vm2, %v11160_v30, %v1265_v42  ;;  %v11170_v42 = vld [vmem:[#allocation10_spill] sm:$0xff]  ;;  %v11176_v30 = vld [vmem:[#allocation36_spill] sm:$0xff] }
 0x1a3   : > { %v1960_v46 = vrot.slane %v1946_v7, %v7870_v27  ;;  %v1267_v48 = vpop.permute.xlu1 %1266  ;;  %1597 = vrot.lane.b32.xlu0 %v1427_v9, %s6948_s24  ;;  %v11165_v9 = vld [vmem:[#allocation9_spill] sm:$0xff] }
 0x1a4   : > { %v1422_v57 = vsel %vm1384_vm2, %v7492_v13, %v1267_v48  ;;  %v11163_v13 = vld [vmem:[#allocation42_spill] sm:$0xff] }
 0x1a5   : > { %v1961_v6 = vcombine.low %v1953_v33, %v1960_v46  ;;  %1599 = vrot.lane.b32.xlu1 %v1428_v15, %s6948_s24  ;;  %v1285_v47 = vpop.permute.xlu0 %1284  ;;  %v1962_v25 = vcombine.low %v1421_v39, %v1422_v57 }
 0x1a6   : > { %v1431_v35 = vsel %vm1384_vm2, %v7739_v3, %v1285_v47 }
 0x1a7   : > { %v2394_v38 = vsel %vm2377_vm3, %v1961_v6, %v11158_v22  ;;  %v1287_v62 = vpop.permute.xlu1 %1286  ;;  %1601 = vrot.lane.b32.xlu0 %v1429_v34, %s6948_s24  ;;  %v1970_v45 = vrot.slane %v1962_v25, %v7870_v27  ;;  %v11172_v34 = vld [vmem:[#allocation51_spill] sm:$0xff]  ;;  %v11177_v25 = vld [vmem:[#allocation17_spill] sm:$0xff] }
 0x1a8   : > { %2482 = vst.msk [vmem:[#allocation2 + $0xd9] sm:$0xff] %vm342_vm0, %v2394_v38  ;;  %v1432_v29 = vsel %vm1384_vm2, %v11159_v26, %v1287_v62 }
 0x1a9   : > { %v2031_v2 = vcombine.low %v1431_v35, %v1432_v29  ;;  %1603 = vrot.lane.b32.xlu1 %v1430_v8, %s6948_s24  ;;  %v1305_v16 = vpop.permute.xlu0 %1304  ;;  %v11171_v8 = vld [vmem:[#allocation43_spill] sm:$0xff] }
 0x1aa   : > { %v1441_v15 = vsel %vm1384_vm2, %v11165_v9, %v1305_v16 }
 0x1ab   : > { %v2045_v52 = vrot.slane %v2031_v2, %v7870_v27  ;;  %v1307_v32 = vpop.permute.xlu1 %1306  ;;  %1581 = vrot.lane.b32.xlu0 %v1419_v21, %s6948_s24  ;;  %v11174_v2 = vld [vmem:[#allocation16_spill] sm:$0xff] }
 0x1ac   : > { %v1442_v23 = vsel %vm1384_vm2, %v11164_v59, %v1307_v32 }
 0x1ad   : > { %v2046_v3 = vcombine.low %v2038_v31, %v2045_v52  ;;  %1583 = vrot.lane.b32.xlu1 %v1420_v1, %s6948_s24  ;;  %v1269_v17 = vpop.permute.xlu0 %1268  ;;  %v2149_v19 = vcombine.low %v1441_v15, %v1442_v23  ;;  %v11175_v52 = vld [vmem:[#allocation11_spill] sm:$0xff] }
 0x1ae   : > { %v1423_v49 = vsel %vm1384_vm2, %v11162_v18, %v1269_v17  ;;  %v11179_v18 = vld [vmem:[#allocation56_spill] sm:$0xff] }
 0x1af   : > { %v2399_v0 = vsel %vm2377_vm3, %v2046_v3, %v11161_v11  ;;  %v1271_v55 = vpop.permute.xlu1 %1270  ;;  %1585 = vrot.lane.b32.xlu0 %v1421_v39, %s6948_s24  ;;  %v2157_v37 = vrot.slane %v2149_v19, %v7870_v27 }
 0x1b0   : > { %2487 = vst.msk [vmem:[#allocation2 + $0x111] sm:$0xff] %vm342_vm0, %v2399_v0  ;;  %v1424_v4 = vsel %vm1384_vm2, %v11163_v13, %v1271_v55  ;;  %v11178_v0 = vld [vmem:[#allocation55_spill] sm:$0xff] }
 0x1b1   : > { %v1963_v36 = vcombine.low %v1423_v49, %v1424_v4  ;;  %1587 = vrot.lane.b32.xlu1 %v1422_v57, %s6948_s24  ;;  %v1289_v56 = vpop.permute.xlu0 %1288 }
 0x1b2   : > { %v1433_v33 = vsel %vm1384_vm2, %v11170_v42, %v1289_v56 }
 0x1b3   : > { %v1977_v54 = vrot.slane %v1963_v36, %v7870_v27  ;;  %v1291_v28 = vpop.permute.xlu1 %1290  ;;  %1605 = vrot.lane.b32.xlu0 %v1431_v35, %s6948_s24 }
 0x1b4   : > { %v1434_v1 = vsel %vm1384_vm2, %v11169_v53, %v1291_v28 }
 0x1b5   : > { %v1978_v61 = vcombine.low %v1970_v45, %v1977_v54  ;;  %1607 = vrot.lane.b32.xlu1 %v1432_v29, %s6948_s24  ;;  %v1309_v50 = vpop.permute.xlu0 %1308  ;;  %v2081_v48 = vcombine.low %v1433_v33, %v1434_v1 }
 0x1b6   : > { %v1443_v44 = vsel %vm1384_vm2, %v11167_v60, %v1309_v50 }
 0x1b7   : > { %v2395_v20 = vsel %vm2377_vm3, %v1978_v61, %v11166_v58  ;;  %v1311_v63 = vpop.permute.xlu1 %1310  ;;  %1625 = vrot.lane.b32.xlu0 %v1441_v15, %s6948_s24  ;;  %v2089_v35 = vrot.slane %v2081_v48, %v7870_v27  ;;  %v11181_v58 = vld [vmem:[#allocation44_spill] sm:$0xff] }
 0x1b8   : > { %2483 = vst.msk [vmem:[#allocation2 + $0xe1] sm:$0xff] %vm342_vm0, %v2395_v20  ;;  %v1444_v14 = vsel %vm1384_vm2, %v11168_v51, %v1311_v63 }
 0x1b9   : > { %v2150_v43 = vcombine.low %v1443_v44, %v1444_v14  ;;  %1627 = vrot.lane.b32.xlu1 %v1442_v23, %s6948_s24  ;;  %v1313_v41 = vpop.permute.xlu0 %1312 }
 0x1ba   : > { %v1445_v32 = vsel %vm1384_vm2, %v11175_v52, %v1313_v41  ;;  %v11184_v52 = vld [vmem:[#allocation4_spill] sm:$0xff] }
 0x1bb   : > { %v2164_v10 = vrot.slane %v2150_v43, %v7870_v27  ;;  %v1315_v21 = vpop.permute.xlu1 %1314  ;;  %1589 = vrot.lane.b32.xlu0 %v1423_v49, %s6948_s24 }
 0x1bc   : > { %v1446_v16 = vsel %vm1384_vm2, %v11174_v2, %v1315_v21 }
 0x1bd   : > { %v2165_v7 = vcombine.low %v2157_v37, %v2164_v10  ;;  %1591 = vrot.lane.b32.xlu1 %v1424_v4, %s6948_s24  ;;  %v1293_v46 = vpop.permute.xlu0 %1292  ;;  %v2166_v3 = vcombine.low %v1445_v32, %v1446_v16  ;;  %v11180_v4 = vld [vmem:[#allocation13_spill] sm:$0xff] }
 0x1be   : > { %v1435_v47 = vsel %vm1384_vm2, %v11172_v34, %v1293_v46  ;;  %v8150_v46 = vld [vmem:[#allocation2 + $0x51] sm:$0xff]  ;;  %v8157_v34 = vld [vmem:[#allocation2 + $0x19] sm:$0xff] }
 0x1bf   : > { %v2406_v6 = vsel %vm2377_vm3, %v2165_v7, %v11171_v8  ;;  %v1295_v12 = vpop.permute.xlu1 %1294  ;;  %1609 = vrot.lane.b32.xlu0 %v1433_v33, %s6948_s24  ;;  %v2174_v45 = vrot.slane %v2166_v3, %v7870_v27  ;;  %v8146_v7 = vld [vmem:[#allocation2 + $0x49] sm:$0xff]  ;;  %v11183_v8 = vld [vmem:[#allocation7_spill] sm:$0xff] }
 0x1c0   : > { %2494 = vst.msk [vmem:[#allocation2 + $0x169] sm:$0xff] %vm342_vm0, %v2406_v6  ;;  %v1436_v22 = vsel %vm1384_vm2, %v11173_v24, %v1295_v12  ;;  %v8178_v3 = vld [vmem:[#allocation2 + $0x79] sm:$0xff] }
 0x1c1   : > { %v2082_v38 = vcombine.low %v1435_v47, %v1436_v22  ;;  %1611 = vrot.lane.b32.xlu1 %v1434_v1, %s6948_s24  ;;  %v1297_v62 = vpop.permute.xlu0 %1296 }
 0x1c2   : > { %v1437_v36 = vsel %vm1384_vm2, %v11180_v4, %v1297_v62 }
 0x1c3   : > { %v2096_v26 = vrot.slane %v2082_v38, %v7870_v27  ;;  %v1299_v29 = vpop.permute.xlu1 %1298  ;;  %1629 = vrot.lane.b32.xlu0 %v1443_v44, %s6948_s24  ;;  %v11182_v44 = vld [vmem:[#allocation37_spill] sm:$0xff] }
 0x1c4   : > { %v1438_v11 = vsel %vm1384_vm2, %v11177_v25, %v1299_v29 }
 0x1c5   : > { %v2097_v31 = vcombine.low %v2089_v35, %v2096_v26  ;;  %1631 = vrot.lane.b32.xlu1 %v1444_v14, %s6948_s24  ;;  %v1317_v57 = vpop.permute.xlu0 %1316  ;;  %v2098_v54 = vcombine.low %v1437_v36, %v1438_v11  ;;  %v8167_v26 = vld [vmem:[#allocation2 + $0xa9] sm:$0xff] }
 0x1c6   : > { %v1447_v55 = vsel %vm1384_vm2, %v11178_v0, %v1317_v57 }
 0x1c7   : > { %v2402_v39 = vsel %vm2377_vm3, %v2097_v31, %v11176_v30  ;;  %v1319_v17 = vpop.permute.xlu1 %1318  ;;  %1633 = vrot.lane.b32.xlu0 %v1445_v32, %s6948_s24  ;;  %v2106_v19 = vrot.slane %v2098_v54, %v7870_v27  ;;  %v8199_v54 = vld [vmem:[#allocation2 + $0xd9] sm:$0xff] }
 0x1c8   : > { %2490 = vst.msk [vmem:[#allocation2 + $0x139] sm:$0xff] %vm342_vm0, %v2402_v39  ;;  %v1448_v49 = vsel %vm1384_vm2, %v11179_v18, %v1319_v17  ;;  %v8182_v17 = vld [vmem:[#allocation2 + $0x81] sm:$0xff] }
 0x1c9   : > { %v2167_v13 = vcombine.low %v1447_v55, %v1448_v49  ;;  %1635 = vrot.lane.b32.xlu1 %v1446_v16, %s6948_s24  ;;  %v1301_v56 = vpop.permute.xlu0 %1300  ;;  %v8171_v16 = vld [vmem:[#allocation2 + $0xb1] sm:$0xff] }
 0x1ca   : > { %v1439_v23 = vsel %vm1384_vm2, %v7853_v40, %v1301_v56 }
 0x1cb   : > { %v2181_v28 = vrot.slane %v2167_v13, %v7870_v27  ;;  %v1303_v59 = vpop.permute.xlu1 %1302  ;;  %1613 = vrot.lane.b32.xlu0 %v1435_v47, %s6948_s24  ;;  %v8192_v13 = vld [vmem:[#allocation2 + $0x111] sm:$0xff] }
 0x1cc   : > { %v1440_v61 = vsel %vm1384_vm2, %v7859_v5, %v1303_v59 }
 0x1cd   : > { %v2182_v9 = vcombine.low %v2174_v45, %v2181_v28  ;;  %v2099_v15 = vcombine.low %v1439_v23, %v1440_v61  ;;  %1615 = vrot.lane.b32.xlu1 %v1436_v22, %s6948_s24  ;;  %v1530_v50 = vpop.permute.xlu0 %1529  ;;  %v8161_v22 = vld [vmem:[#allocation2 + $0x21] sm:$0xff] }
 0x1cf   : > { %v2407_v20 = vsel %vm2377_vm3, %v2182_v9, %v11181_v58  ;;  %v2113_v63 = vrot.slane %v2099_v15, %v7870_v27  ;;  %v1532_v60 = vpop.permute.xlu1 %1531  ;;  %1617 = vrot.lane.b32.xlu0 %v1437_v36, %s6948_s24  ;;  %v11185_v36 = vld [vmem:[#allocation8_spill] sm:$0xff] }
 0x1d0   : > { %2495 = vst.msk [vmem:[#allocation2 + $0x171] sm:$0xff] %vm342_vm0, %v2407_v20  ;;  %v1775_v43 = vcombine.low %v1530_v50, %v1532_v60  ;;  %v8209_v50 = vld [vmem:[#allocation2 + $0x169] sm:$0xff] }
 0x1d1   : > { %v2114_v40 = vcombine.low %v2106_v19, %v2113_v63  ;;  %1619 = vrot.lane.b32.xlu1 %v1438_v11, %s6948_s24  ;;  %v1514_v5 = vpop.permute.xlu0 %1513  ;;  %v8213_v20 = vld [vmem:[#allocation2 + $0x22] sm:$0xff] }
 0x1d2   : > { %v1783_v21 = vrot.slane %v1775_v43, %v7870_v27  ;;  %v11186_v60 = vld [vmem:[#allocation5_spill] sm:$0xff] }
 0x1d3   : > { %v2403_v51 = vsel %vm2377_vm3, %v2114_v40, %v11182_v44  ;;  %v1516_v14 = vpop.permute.xlu1 %1515  ;;  %1637 = vrot.lane.b32.xlu0 %v1447_v55, %s6948_s24  ;;  %v8188_v55 = vld [vmem:[#allocation2 + $0x109] sm:$0xff]  ;;  %v8220_v44 = vld [vmem:[#allocation2 + $0x139] sm:$0xff] }
 0x1d4   : > { %2491 = vst.msk [vmem:[#allocation2 + $0x141] sm:$0xff] %vm342_vm0, %v2403_v51  ;;  %v1707_v48 = vcombine.low %v1514_v5, %v1516_v14 }
 0x1d5   : > { %1639 = vrot.lane.b32.xlu1 %v1448_v49, %s6948_s24  ;;  %v1534_v41 = vpop.permute.xlu0 %1533 }
 0x1d6   : > { %v1715_v38 = vrot.slane %v1707_v48, %v7870_v27  ;;  %v11187_v48 = vld [vmem:[#allocation21_spill] sm:$0xff] }
 0x1d7   : > { %v1536_v37 = vpop.permute.xlu1 %1535  ;;  %1621 = vrot.lane.b32.xlu0 %v1439_v23, %s6948_s24  ;;  %v8203_v23 = vld [vmem:[#allocation2 + $0xe1] sm:$0xff]  ;;  %v8224_v43 = vld [vmem:[#allocation2 + $0x171] sm:$0xff] }
 0x1d8   : > { %v1776_v10 = vcombine.low %v1534_v41, %v1536_v37 }
 0x1d9   : > { %1623 = vrot.lane.b32.xlu1 %v1440_v61, %s6948_s24  ;;  %v1538_v1 = vpop.permute.xlu0 %1537 }
 0x1da   : > { %v1790_v53 = vrot.slane %v1776_v10, %v7870_v27 }
 0x1db   : > { %v1540_v42 = vpop.permute.xlu1 %1539  ;;  %2831 = vrot.lane.b32.xlu0 %v8146_v7, %s6943_s19 }
 0x1dc   : > { %v1791_v33 = vcombine.low %v1783_v21, %v1790_v53  ;;  %v1792_v31 = vcombine.low %v1538_v1, %v1540_v42  ;;  %v8230_v21 = vld [vmem:[#allocation2 + $0x1a] sm:$0xff] }
 0x1dd   : > { %2833 = vrot.lane.b32.xlu1 %v8150_v46, %s6943_s19  ;;  %v1518_v12 = vpop.permute.xlu0 %1517  ;;  %v8234_v42 = vld [vmem:[#allocation2 + $0x141] sm:$0xff] }
 0x1de   : > { %v2384_v6 = vsel %vm2377_vm3, %v1791_v33, %v11183_v8  ;;  %v1800_v25 = vrot.slane %v1792_v31, %v7870_v27 }
 0x1df   : > { %2472 = vst.msk [vmem:[#allocation2 + $0x61] sm:$0xff] %vm342_vm0, %v2384_v6  ;;  %v1520_v47 = vpop.permute.xlu1 %1519  ;;  %2823 = vrot.lane.b32.xlu0 %v8157_v34, %s6943_s19 }
 0x1e0   : > { %v1708_v24 = vcombine.low %v1518_v12, %v1520_v47  ;;  %v8241_v12 = vld [vmem:[#allocation2 + $0x4a] sm:$0xff] }
 0x1e1   : > { %2825 = vrot.lane.b32.xlu1 %v8161_v22, %s6943_s19  ;;  %v1522_v35 = vpop.permute.xlu0 %1521 }
 0x1e2   : > { %v1722_v62 = vrot.slane %v1708_v24, %v7870_v27 }
 0x1e3   : > { %v1524_v29 = vpop.permute.xlu1 %1523  ;;  %2847 = vrot.lane.b32.xlu0 %v8167_v26, %s6943_s19 }
 0x1e4   : > { %v1723_v2 = vcombine.low %v1715_v38, %v1722_v62  ;;  %v1724_v4 = vcombine.low %v1522_v35, %v1524_v29  ;;  %v8245_v38 = vld [vmem:[#allocation2 + $0x52] sm:$0xff] }
 0x1e5   : > { %2849 = vrot.lane.b32.xlu1 %v8171_v16, %s6943_s19  ;;  %v1542_v57 = vpop.permute.xlu0 %1541 }
 0x1e6   : > { %v2380_v32 = vsel %vm2377_vm3, %v1723_v2, %v11184_v52  ;;  %v1732_v61 = vrot.slane %v1724_v4, %v7870_v27  ;;  %v8251_v2 = vld [vmem:[#allocation2 + $0x7a] sm:$0xff] }
 0x1e7   : > { %2468 = vst.msk [vmem:[#allocation2 + $0x31] sm:$0xff] %vm342_vm0, %v2380_v32  ;;  %v1544_v30 = vpop.permute.xlu1 %1543  ;;  %2839 = vrot.lane.b32.xlu0 %v8178_v3, %s6943_s19  ;;  %v8255_v32 = vld [vmem:[#allocation2 + $0x82] sm:$0xff] }
 0x1e8   : > { %v1793_v39 = vcombine.low %v1542_v57, %v1544_v30  ;;  %v11188_v30 = vld [vmem:[#allocation18_spill] sm:$0xff] }
 0x1e9   : > { %2841 = vrot.lane.b32.xlu1 %v8182_v17, %s6943_s19  ;;  %v1562_v0 = vpop.permute.xlu0 %1561 }
 0x1ea   : > { %v1807_v11 = vrot.slane %v1793_v39, %v7870_v27 }
 0x1eb   : > { %v1564_v18 = vpop.permute.xlu1 %1563  ;;  %2863 = vrot.lane.b32.xlu0 %v8188_v55, %s6943_s19 }
 0x1ec   : > { %v1808_v49 = vcombine.low %v1800_v25, %v1807_v11  ;;  %v1911_v63 = vcombine.low %v1562_v0, %v1564_v18  ;;  %v2576_v11 = vld [vmem:[#allocation2 + $0xaa] sm:$0xff] }
 0x1ed   : > { %2865 = vrot.lane.b32.xlu1 %v8192_v13, %s6943_s19  ;;  %v1526_v45 = vpop.permute.xlu0 %1525 }
 0x1ee   : > { %v2385_v56 = vsel %vm2377_vm3, %v1808_v49, %v11185_v36  ;;  %v1919_v41 = vrot.slane %v1911_v63, %v7870_v27  ;;  %v8263_v49 = vld [vmem:[#allocation2 + $0xb2] sm:$0xff]  ;;  %v2584_v63 = vld [vmem:[#allocation2 + $0x10a] sm:$0xff] }
 0x1ef   : > { %2473 = vst.msk [vmem:[#allocation2 + $0x69] sm:$0xff] %vm342_vm0, %v2385_v56  ;;  %v1528_v28 = vpop.permute.xlu1 %1527  ;;  %2855 = vrot.lane.b32.xlu0 %v8199_v54, %s6943_s19 }
 0x1f0   : > { %v1725_v59 = vcombine.low %v1526_v45, %v1528_v28  ;;  %v2580_v45 = vld [vmem:[#allocation2 + $0xda] sm:$0xff] }
 0x1f1   : > { %2857 = vrot.lane.b32.xlu1 %v8203_v23, %s6943_s19  ;;  %v1546_v15 = vpop.permute.xlu0 %1545 }
 0x1f2   : > { %v1739_v9 = vrot.slane %v1725_v59, %v7870_v27 }
 0x1f3   : > { %v1548_v19 = vpop.permute.xlu1 %1547  ;;  %2879 = vrot.lane.b32.xlu0 %v8209_v50, %s6943_s19 }
 0x1f4   : > { %v1740_v58 = vcombine.low %v1732_v61, %v1739_v9  ;;  %v1843_v33 = vcombine.low %v1546_v15, %v1548_v19  ;;  %v2581_v61 = vld [vmem:[#allocation2 + $0xe2] sm:$0xff]  ;;  %v11189_v15 = vld [vmem:[#allocation22_spill] sm:$0xff] }
 0x1f5   : > { %2953 = vrot.lane.b32.xlu1 %v8213_v20, %s6944_s20  ;;  %v1566_v5 = vpop.permute.xlu0 %1565 }
 0x1f6   : > { %v2381_v40 = vsel %vm2377_vm3, %v1740_v58, %v11186_v60  ;;  %v1851_v62 = vrot.slane %v1843_v33, %v7870_v27 }
 0x1f7   : > { %2469 = vst.msk [vmem:[#allocation2 + $0x39] sm:$0xff] %vm342_vm0, %v2381_v40  ;;  %v1568_v51 = vpop.permute.xlu1 %1567  ;;  %2871 = vrot.lane.b32.xlu0 %v8220_v44, %s6943_s19 }
 0x1f8   : > { %v1912_v14 = vcombine.low %v1566_v5, %v1568_v51  ;;  %v2585_v5 = vld [vmem:[#allocation2 + $0x112] sm:$0xff] }
 0x1f9   : > { %2881 = vrot.lane.b32.xlu1 %v8224_v43, %s6943_s19  ;;  %v1570_v10 = vpop.permute.xlu0 %1569 }
 0x1fa   : > { %v1926_v37 = vrot.slane %v1912_v14, %v7870_v27 }
 0x1fb   : > { %v1572_v53 = vpop.permute.xlu1 %1571  ;;  %2951 = vrot.lane.b32.xlu0 %v8230_v21, %s6944_s20 }
 0x1fc   : > { %v1927_v1 = vcombine.low %v1919_v41, %v1926_v37  ;;  %v1928_v57 = vcombine.low %v1570_v10, %v1572_v53  ;;  %v2588_v37 = vld [vmem:[#allocation2 + $0x13a] sm:$0xff] }
 0x1fd   : > { %2873 = vrot.lane.b32.xlu1 %v8234_v42, %s6943_s19  ;;  %v1550_v6 = vpop.permute.xlu0 %1549 }
 0x1fe   : > { %v2392_v8 = vsel %vm2377_vm3, %v1927_v1, %v11187_v48  ;;  %v1936_v4 = vrot.slane %v1928_v57, %v7870_v27  ;;  %v2589_v1 = vld [vmem:[#allocation2 + $0x142] sm:$0xff]  ;;  %v11190_v48 = vld [vmem:[#allocation19_spill] sm:$0xff] }
 0x1ff   : > { %2480 = vst.msk [vmem:[#allocation2 + $0xc1] sm:$0xff] %vm342_vm0, %v2392_v8  ;;  %v1552_v47 = vpop.permute.xlu1 %1551  ;;  %2959 = vrot.lane.b32.xlu0 %v8241_v12, %s6944_s20  ;;  %v2594_v57 = vld [vmem:[#allocation2 + $0x18] sm:$0xff] }
 0x200   : > { %v1844_v24 = vcombine.low %v1550_v6, %v1552_v47  ;;  %v2592_v47 = vld [vmem:[#allocation2 + $0x16a] sm:$0xff] }
 0x201   : > { %2961 = vrot.lane.b32.xlu1 %v8245_v38, %s6944_s20  ;;  %v1554_v29 = vpop.permute.xlu0 %1553 }
 0x202   : > { %v1858_v35 = vrot.slane %v1844_v24, %v7870_v27 }
 0x203   : > { %v1556_v31 = vpop.permute.xlu1 %1555  ;;  %2967 = vrot.lane.b32.xlu0 %v8251_v2, %s6944_s20 }
 0x204   : > { %v1859_v52 = vcombine.low %v1851_v62, %v1858_v35  ;;  %v1860_v9 = vcombine.low %v1554_v29, %v1556_v31  ;;  %v2593_v35 = vld [vmem:[#allocation2 + $0x172] sm:$0xff] }
 0x205   : > { %2969 = vrot.lane.b32.xlu1 %v8255_v32, %s6944_s20  ;;  %v1574_v25 = vpop.permute.xlu0 %1573 }
 0x206   : > { %v2388_v39 = vsel %vm2377_vm3, %v1859_v52, %v11188_v30  ;;  %v1868_v51 = vrot.slane %v1860_v9, %v7870_v27 }
 0x207   : > { %2476 = vst.msk [vmem:[#allocation2 + $0x91] sm:$0xff] %vm342_vm0, %v2388_v39  ;;  %v1576_v0 = vpop.permute.xlu1 %1575  ;;  %2975 = vrot.lane.b32.xlu0 %v2576_v11, %s6944_s20 }
 0x208   : > { %v1929_v18 = vcombine.low %v1574_v25, %v1576_v0  ;;  %v2595_v25 = vld [vmem:[#allocation2 + $0x20] sm:$0xff]  ;;  %v11191_v0 = vld [vmem:[#allocation33_spill] sm:$0xff] }
 0x209   : > { %2977 = vrot.lane.b32.xlu1 %v8263_v49, %s6944_s20  ;;  %v1594_v56 = vpop.permute.xlu0 %1593 }
 0x20a   : > { %v1943_v36 = vrot.slane %v1929_v18, %v7870_v27 }
 0x20b   : > { %v1596_v28 = vpop.permute.xlu1 %1595  ;;  %2983 = vrot.lane.b32.xlu0 %v2580_v45, %s6944_s20 }
 0x20c   : > { %v1944_v59 = vcombine.low %v1936_v4, %v1943_v36  ;;  %v2047_v33 = vcombine.low %v1594_v56, %v1596_v28  ;;  %v2598_v36 = vld [vmem:[#allocation2 + $0x48] sm:$0xff]  ;;  %v2599_v28 = vld [vmem:[#allocation2 + $0x50] sm:$0xff] }
 0x20d   : > { %2985 = vrot.lane.b32.xlu1 %v2581_v61, %s6944_s20  ;;  %v1558_v58 = vpop.permute.xlu0 %1557 }
 0x20e   : > { %v2393_v19 = vsel %vm2377_vm3, %v1944_v59, %v11189_v15  ;;  %v2055_v29 = vrot.slane %v2047_v33, %v7870_v27  ;;  %v2602_v15 = vld [vmem:[#allocation2 + $0x78] sm:$0xff] }
 0x20f   : > { %2481 = vst.msk [vmem:[#allocation2 + $0xc9] sm:$0xff] %vm342_vm0, %v2393_v19  ;;  %v1560_v60 = vpop.permute.xlu1 %1559  ;;  %2991 = vrot.lane.b32.xlu0 %v2584_v63, %s6944_s20  ;;  %v2603_v63 = vld [vmem:[#allocation2 + $0x80] sm:$0xff] }
 0x210   : > { %v1861_v40 = vcombine.low %v1558_v58, %v1560_v60 }
 0x211   : > { %2993 = vrot.lane.b32.xlu1 %v2585_v5, %s6944_s20  ;;  %v1578_v41 = vpop.permute.xlu0 %1577 }
 0x212   : > { %v1875_v14 = vrot.slane %v1861_v40, %v7870_v27  ;;  %v11192_v40 = vld [vmem:[#allocation28_spill] sm:$0xff] }
 0x213   : > { %v1580_v10 = vpop.permute.xlu1 %1579  ;;  %2999 = vrot.lane.b32.xlu0 %v2588_v37, %s6944_s20 }
 0x214   : > { %v1876_v53 = vcombine.low %v1868_v51, %v1875_v14  ;;  %v1979_v11 = vcombine.low %v1578_v41, %v1580_v10  ;;  %v2606_v14 = vld [vmem:[#allocation2 + $0xa8] sm:$0xff]  ;;  %v2607_v10 = vld [vmem:[#allocation2 + $0xb0] sm:$0xff] }
 0x215   : > { %3001 = vrot.lane.b32.xlu1 %v2589_v1, %s6944_s20  ;;  %v1598_v6 = vpop.permute.xlu0 %1597 }
 0x216   : > { %v2389_v8 = vsel %vm2377_vm3, %v1876_v53, %v11190_v48  ;;  %v1987_v59 = vrot.slane %v1979_v11, %v7870_v27  ;;  %v8305_v48 = vld [vmem:[#allocation2 + $0x61] sm:$0xff] }
 0x217   : > { %2477 = vst.msk [vmem:[#allocation2 + $0x99] sm:$0xff] %vm342_vm0, %v2389_v8  ;;  %v1600_v24 = vpop.permute.xlu1 %1599  ;;  %3007 = vrot.lane.b32.xlu0 %v2592_v47, %s6944_s20  ;;  %v8309_v47 = vld [vmem:[#allocation2 + $0x69] sm:$0xff] }
 0x218   : > { %v2048_v62 = vcombine.low %v1598_v6, %v1600_v24 }
 0x219   : > { %3009 = vrot.lane.b32.xlu1 %v2593_v35, %s6944_s20  ;;  %v1602_v52 = vpop.permute.xlu0 %1601 }
 0x21a   : > { %v2062_v31 = vrot.slane %v2048_v62, %v7870_v27  ;;  %v11193_v62 = vld [vmem:[#allocation35_spill] sm:$0xff] }
 0x21b   : > { %v1604_v30 = vpop.permute.xlu1 %1603  ;;  %3075 = vrot.lane.b32.xlu0 %v2594_v57, %s6949_s25 }
 0x21c   : > { %v2063_v39 = vcombine.low %v2055_v29, %v2062_v31  ;;  %v2064_v60 = vcombine.low %v1602_v52, %v1604_v30  ;;  %v2600_v31 = vld [vmem:[#allocation2 + $0x60] sm:$0xff]  ;;  %v8317_v30 = vld [vmem:[#allocation2 + $0x6a] sm:$0xff] }
 0x21d   : > { %3077 = vrot.lane.b32.xlu1 %v2595_v25, %s6949_s25  ;;  %v1582_v4 = vpop.permute.xlu0 %1581 }
 0x21e   : > { %v2400_v18 = vsel %vm2377_vm3, %v2063_v39, %v11191_v0  ;;  %v2072_v53 = vrot.slane %v2064_v60, %v7870_v27  ;;  %v8323_v0 = vld [vmem:[#allocation2 + $0x31] sm:$0xff] }
 0x21f   : > { %2488 = vst.msk [vmem:[#allocation2 + $0x121] sm:$0xff] %vm342_vm0, %v2400_v18  ;;  %v1584_v56 = vpop.permute.xlu1 %1583  ;;  %3083 = vrot.lane.b32.xlu0 %v2598_v36, %s6949_s25  ;;  %v8327_v36 = vld [vmem:[#allocation2 + $0x68] sm:$0xff] }
 0x220   : > { %v1980_v45 = vcombine.low %v1582_v4, %v1584_v56 }
 0x221   : > { %3085 = vrot.lane.b32.xlu1 %v2599_v28, %s6949_s25  ;;  %v1586_v9 = vpop.permute.xlu0 %1585 }
 0x222   : > { %v1994_v61 = vrot.slane %v1980_v45, %v7870_v27  ;;  %v11194_v45 = vld [vmem:[#allocation29_spill] sm:$0xff] }
 0x223   : > { %v1588_v19 = vpop.permute.xlu1 %1587  ;;  %3091 = vrot.lane.b32.xlu0 %v2602_v15, %s6949_s25 }
 0x224   : > { %v1995_v58 = vcombine.low %v1987_v59, %v1994_v61  ;;  %v1996_v24 = vcombine.low %v1586_v9, %v1588_v19  ;;  %v8334_v61 = vld [vmem:[#allocation2 + $0x62] sm:$0xff]  ;;  %v8338_v19 = vld [vmem:[#allocation2 + $0x39] sm:$0xff] }
 0x225   : > { %3093 = vrot.lane.b32.xlu1 %v2603_v63, %s6949_s25  ;;  %v1606_v51 = vpop.permute.xlu0 %1605 }
 0x226   : > { %v2396_v5 = vsel %vm2377_vm3, %v1995_v58, %v11192_v40  ;;  %v2004_v39 = vrot.slane %v1996_v24, %v7870_v27  ;;  %v8344_v40 = vld [vmem:[#allocation2 + $0x30] sm:$0xff] }
 0x227   : > { %2484 = vst.msk [vmem:[#allocation2 + $0xf1] sm:$0xff] %vm342_vm0, %v2396_v5  ;;  %v1608_v41 = vpop.permute.xlu1 %1607  ;;  %3099 = vrot.lane.b32.xlu0 %v2606_v14, %s6949_s25  ;;  %v8348_v14 = vld [vmem:[#allocation2 + $0x3a] sm:$0xff] }
 0x228   : > { %v2065_v37 = vcombine.low %v1606_v51, %v1608_v41 }
 0x229   : > { %3101 = vrot.lane.b32.xlu1 %v2607_v10, %s6949_s25  ;;  %v1626_v33 = vpop.permute.xlu0 %1625 }
 0x22a   : > { %v2079_v1 = vrot.slane %v2065_v37, %v7870_v27  ;;  %v11195_v37 = vld [vmem:[#allocation45_spill] sm:$0xff] }
 0x22b   : > { %v1628_v8 = vpop.permute.xlu1 %1627  ;;  %2835 = vrot.lane.b32.xlu0 %v8305_v48, %s6943_s19 }
 0x22c   : > { %v2080_v6 = vcombine.low %v2072_v53, %v2079_v1  ;;  %v2183_v56 = vcombine.low %v1626_v33, %v1628_v8  ;;  %v8355_v1 = vld [vmem:[#allocation2 + $0xc1] sm:$0xff] }
 0x22d   : > { %2837 = vrot.lane.b32.xlu1 %v8309_v47, %s6943_s19  ;;  %v1590_v29 = vpop.permute.xlu0 %1589 }
 0x22e   : > { %v2401_v35 = vsel %vm2377_vm3, %v2080_v6, %v11193_v62  ;;  %v2191_v58 = vrot.slane %v2183_v56, %v7870_v27  ;;  %v8359_v6 = vld [vmem:[#allocation2 + $0x38] sm:$0xff] }
 0x22f   : > { %2489 = vst.msk [vmem:[#allocation2 + $0x129] sm:$0xff] %vm342_vm0, %v2401_v35  ;;  %v1592_v52 = vpop.permute.xlu1 %1591  ;;  %3087 = vrot.lane.b32.xlu0 %v2600_v31, %s6949_s25 }
 0x230   : > { %v1997_v57 = vcombine.low %v1590_v29, %v1592_v52  ;;  %v8365_v29 = vld [vmem:[#allocation2 + $0x32] sm:$0xff] }
 0x231   : > { %2965 = vrot.lane.b32.xlu1 %v8317_v30, %s6944_s20  ;;  %v1610_v11 = vpop.permute.xlu0 %1609 }
 0x232   : > { %v2011_v25 = vrot.slane %v1997_v57, %v7870_v27  ;;  %v8369_v57 = vld [vmem:[#allocation2 + $0xc9] sm:$0xff] }
 0x233   : > { %v1612_v18 = vpop.permute.xlu1 %1611  ;;  %2827 = vrot.lane.b32.xlu0 %v8323_v0, %s6943_s19 }
 0x234   : > { %v2012_v4 = vcombine.low %v2004_v39, %v2011_v25  ;;  %v2115_v41 = vcombine.low %v1610_v11, %v1612_v18  ;;  %v11196_v25 = vld [vmem:[#allocation39_spill] sm:$0xff] }
 0x235   : > { %3089 = vrot.lane.b32.xlu1 %v8327_v36, %s6949_s25  ;;  %v1630_v59 = vpop.permute.xlu0 %1629 }
 0x236   : > { %v2397_v28 = vsel %vm2377_vm3, %v2012_v4, %v11194_v45  ;;  %v2123_v24 = vrot.slane %v2115_v41, %v7870_v27  ;;  %v8376_v4 = vld [vmem:[#allocation2 + $0x91] sm:$0xff]  ;;  %v8390_v41 = vld [vmem:[#allocation2 + $0x99] sm:$0xff] }
 0x237   : > { %2485 = vst.msk [vmem:[#allocation2 + $0xf9] sm:$0xff] %vm342_vm0, %v2397_v28  ;;  %v1632_v9 = vpop.permute.xlu1 %1631  ;;  %2963 = vrot.lane.b32.xlu0 %v8334_v61, %s6944_s20  ;;  %v8380_v28 = vld [vmem:[#allocation2 + $0xca] sm:$0xff] }
 0x238   : > { %v2184_v15 = vcombine.low %v1630_v59, %v1632_v9 }
 0x239   : > { %2829 = vrot.lane.b32.xlu1 %v8338_v19, %s6943_s19  ;;  %v1634_v60 = vpop.permute.xlu0 %1633 }
 0x23a   : > { %v2198_v63 = vrot.slane %v2184_v15, %v7870_v27 }
 0x23b   : > { %v1636_v5 = vpop.permute.xlu1 %1635  ;;  %3079 = vrot.lane.b32.xlu0 %v8344_v40, %s6949_s25 }
 0x23c   : > { %v2199_v51 = vcombine.low %v2191_v58, %v2198_v63  ;;  %v2200_v39 = vcombine.low %v1634_v60, %v1636_v5  ;;  %v8386_v63 = vld [vmem:[#allocation2 + $0xc2] sm:$0xff] }
 0x23d   : > { %2957 = vrot.lane.b32.xlu1 %v8348_v14, %s6944_s20  ;;  %v1614_v53 = vpop.permute.xlu0 %1613 }
 0x23e   : > { %v2408_v10 = vsel %vm2377_vm3, %v2199_v51, %v11195_v37  ;;  %v2208_v59 = vrot.slane %v2200_v39, %v7870_v27 }
 0x23f   : > { %2496 = vst.msk [vmem:[#allocation2 + $0x181] sm:$0xff] %vm342_vm0, %v2408_v10  ;;  %v1616_v33 = vpop.permute.xlu1 %1615  ;;  %2851 = vrot.lane.b32.xlu0 %v8355_v1, %s6943_s19  ;;  %v11197_v10 = vld [vmem:[#allocation47_spill] sm:$0xff] }
 0x240   : > { %v2116_v8 = vcombine.low %v1614_v53, %v1616_v33 }
 0x241   : > { %3081 = vrot.lane.b32.xlu1 %v8359_v6, %s6949_s25  ;;  %v1618_v35 = vpop.permute.xlu0 %1617 }
 0x242   : > { %v2130_v62 = vrot.slane %v2116_v8, %v7870_v27 }
 0x243   : > { %v1620_v31 = vpop.permute.xlu1 %1619  ;;  %2955 = vrot.lane.b32.xlu0 %v8365_v29, %s6944_s20 }
 0x244   : > { %v2131_v52 = vcombine.low %v2123_v24, %v2130_v62  ;;  %v2132_v9 = vcombine.low %v1618_v35, %v1620_v31  ;;  %v8401_v24 = vld [vmem:[#allocation2 + $0x90] sm:$0xff]  ;;  %v8407_v31 = vld [vmem:[#allocation2 + $0x9a] sm:$0xff] }
 0x245   : > { %2853 = vrot.lane.b32.xlu1 %v8369_v57, %s6943_s19  ;;  %v1638_v18 = vpop.permute.xlu0 %1637 }
 0x246   : > { %v2404_v11 = vsel %vm2377_vm3, %v2131_v52, %v11196_v25  ;;  %v2140_v37 = vrot.slane %v2132_v9, %v7870_v27  ;;  %v11200_v52 = vld [vmem:[#allocation40_spill] sm:$0xff]  ;;  %v8434_v9 = vld [vmem:[#allocation2 + $0x129] sm:$0xff] }
 0x247   : > { %2492 = vst.msk [vmem:[#allocation2 + $0x151] sm:$0xff] %vm342_vm0, %v2404_v11  ;;  %v1640_v56 = vpop.permute.xlu1 %1639  ;;  %2843 = vrot.lane.b32.xlu0 %v8376_v4, %s6943_s19  ;;  %v8416_v25 = vld [vmem:[#allocation2 + $0x121] sm:$0xff] }
 0x248   : > { %v2201_v45 = vcombine.low %v1638_v18, %v1640_v56  ;;  %v8422_v18 = vld [vmem:[#allocation2 + $0x98] sm:$0xff] }
 0x249   : > { %2981 = vrot.lane.b32.xlu1 %v8380_v28, %s6944_s20  ;;  %v1622_v58 = vpop.permute.xlu0 %1621 }
 0x24a   : > { %v2215_v15 = vrot.slane %v2201_v45, %v7870_v27  ;;  %v8428_v45 = vld [vmem:[#allocation2 + $0x92] sm:$0xff] }
 0x24b   : > { %v1624_v60 = vpop.permute.xlu1 %1623  ;;  %2979 = vrot.lane.b32.xlu0 %v8386_v63, %s6944_s20 }
 0x24c   : > { %v2216_v5 = vcombine.low %v2208_v59, %v2215_v15  ;;  %v2133_v51 = vcombine.low %v1622_v58, %v1624_v60  ;;  %v8440_v58 = vld [vmem:[#allocation2 + $0xf1] sm:$0xff] }
 0x24d   : > { %2845 = vrot.lane.b32.xlu1 %v8390_v41, %s6943_s19  ;;  %v8398_v8 = vpop.permute.xlu0 %2831 }
 0x24e   : > { %v2409_v53 = vsel %vm2377_vm3, %v2216_v5, %v11197_v10  ;;  %v2147_v33 = vrot.slane %v2133_v51, %v7870_v27  ;;  %11198 = vst [vmem:[#allocation20_spill] sm:$0xff] %v8398_v8  ;;  %v8446_v5 = vld [vmem:[#allocation2 + $0x12a] sm:$0xff] }
 0x24f   : > { %2497 = vst.msk [vmem:[#allocation2 + $0x189] sm:$0xff] %vm342_vm0, %v2409_v53  ;;  %v8403_v62 = vpop.permute.xlu1 %2833  ;;  %3095 = vrot.lane.b32.xlu0 %v8401_v24, %s6949_s25  ;;  %v8458_v53 = vld [vmem:[#allocation2 + $0xf9] sm:$0xff] }
 0x250   : > { %11199 = vst [vmem:[#allocation27_spill] sm:$0xff] %v8403_v62  ;;  %v2148_v35 = vcombine.low %v2140_v37, %v2147_v33  ;;  %v8452_v37 = vld [vmem:[#allocation2 + $0x122] sm:$0xff] }
 0x251   : > { %2973 = vrot.lane.b32.xlu1 %v8407_v31, %s6944_s20  ;;  %v8413_v39 = vpop.permute.xlu0 %2823  ;;  %v8500_v62 = vld [vmem:[#allocation2 + $0xc0] sm:$0xff] }
 0x252   : > { %v2405_v27 = vsel %vm2377_vm3, %v2148_v35, %v11200_v52  ;;  %11201 = vst [vmem:[#allocation24_spill] sm:$0xff] %v8413_v39  ;;  %v8464_v35 = vld [vmem:[#allocation2 + $0xf2] sm:$0xff]  ;;  %11216 = vst [vmem:[#allocation46_spill] sm:$0xff] %v8500_v62  ;;  %v8516_v39 = vld [vmem:[#allocation2 + $0xe0] sm:$0xff] }
 0x253   : > { %2493 = vst.msk [vmem:[#allocation2 + $0x159] sm:$0xff] %vm342_vm0, %v2405_v27  ;;  %v8418_v11 = vpop.permute.xlu1 %2825  ;;  %2867 = vrot.lane.b32.xlu0 %v8416_v25, %s6943_s19  ;;  %v8470_v27 = vld [vmem:[#allocation2 + $0xfa] sm:$0xff]  ;;  %11222 = vst [vmem:[#allocation52_spill] sm:$0xff] %v8516_v39 }
 0x254   : > { %11202 = vst [vmem:[#allocation23_spill] sm:$0xff] %v8418_v11 }
 0x255   : > { %3097 = vrot.lane.b32.xlu1 %v8422_v18, %s6949_s25  ;;  %v8426_v56 = vpop.permute.xlu0 %2847 }
 0x256   : > { %11203 = vst [vmem:[#allocation15_spill] sm:$0xff] %v8426_v56 }
 0x257   : > { %v8430_v59 = vpop.permute.xlu1 %2849  ;;  %2971 = vrot.lane.b32.xlu0 %v8428_v45, %s6944_s20 }
 0x258   : > { %11204 = vst [vmem:[#allocation30_spill] sm:$0xff] %v8430_v59 }
 0x259   : > { %2869 = vrot.lane.b32.xlu1 %v8434_v9, %s6943_s19  ;;  %v8438_v15 = vpop.permute.xlu0 %2839 }
 0x25a   : > { %11205 = vst [vmem:[#allocation34_spill] sm:$0xff] %v8438_v15  ;;  %v8488_v56 = vld [vmem:[#allocation2 + $0x152] sm:$0xff] }
 0x25b   : > { %v8442_v60 = vpop.permute.xlu1 %2841  ;;  %2859 = vrot.lane.b32.xlu0 %v8440_v58, %s6943_s19 }
 0x25c   : > { %11206 = vst [vmem:[#allocation32_spill] sm:$0xff] %v8442_v60 }
 0x25d   : > { %2997 = vrot.lane.b32.xlu1 %v8446_v5, %s6944_s20  ;;  %v8450_v51 = vpop.permute.xlu0 %2863 }
 0x25e   : > { %11207 = vst [vmem:[#allocation25_spill] sm:$0xff] %v8450_v51  ;;  %v8476_v51 = vld [vmem:[#allocation2 + $0x151] sm:$0xff] }
 0x25f   : > { %v8454_v10 = vpop.permute.xlu1 %2865  ;;  %2995 = vrot.lane.b32.xlu0 %v8452_v37, %s6944_s20 }
 0x260   : > { %11208 = vst [vmem:[#allocation38_spill] sm:$0xff] %v8454_v10 }
 0x261   : > { %2861 = vrot.lane.b32.xlu1 %v8458_v53, %s6943_s19  ;;  %v8462_v33 = vpop.permute.xlu0 %2855 }
 0x262   : > { %11209 = vst [vmem:[#allocation6_spill] sm:$0xff] %v8462_v33  ;;  %v8482_v33 = vld [vmem:[#allocation2 + $0x159] sm:$0xff] }
 0x263   : > { %v8466_v52 = vpop.permute.xlu1 %2857  ;;  %2987 = vrot.lane.b32.xlu0 %v8464_v35, %s6944_s20 }
 0x264   : > { %11210 = vst [vmem:[#allocation31_spill] sm:$0xff] %v8466_v52 }
 0x265   : > { %2989 = vrot.lane.b32.xlu1 %v8470_v27, %s6944_s20  ;;  %v8474_v10 = vpop.permute.xlu0 %2879 }
 0x266   : > { %11211 = vst [vmem:[#allocation41_spill] sm:$0xff] %v8474_v10  ;;  %v8494_v10 = vld [vmem:[#allocation2 + $0x15a] sm:$0xff] }
 0x267   : > { %v8478_v59 = vpop.permute.xlu1 %2953  ;;  %2875 = vrot.lane.b32.xlu0 %v8476_v51, %s6943_s19 }
 0x268   : > { %11212 = vst [vmem:[#allocation42_spill] sm:$0xff] %v8478_v59  ;;  %v8512_v59 = vld [vmem:[#allocation2 + $0xd8] sm:$0xff] }
 0x269   : > { %2877 = vrot.lane.b32.xlu1 %v8482_v33, %s6943_s19  ;;  %v8486_v52 = vpop.permute.xlu0 %2871  ;;  %11220 = vst [vmem:[#allocation43_spill] sm:$0xff] %v8512_v59 }
 0x26a   : > { %11213 = vst [vmem:[#allocation12_spill] sm:$0xff] %v8486_v52  ;;  %v8506_v52 = vld [vmem:[#allocation2 + $0xc8] sm:$0xff] }
 0x26b   : > { %v8490_v60 = vpop.permute.xlu1 %2881  ;;  %3003 = vrot.lane.b32.xlu0 %v8488_v56, %s6944_s20  ;;  %11218 = vst [vmem:[#allocation14_spill] sm:$0xff] %v8506_v52 }
 0x26c   : > { %11214 = vst [vmem:[#allocation9_spill] sm:$0xff] %v8490_v60 }
 0x26d   : > { %3005 = vrot.lane.b32.xlu1 %v8494_v10, %s6944_s20  ;;  %v8498_v15 = vpop.permute.xlu0 %2951 }
 0x26e   : > { %11215 = vst [vmem:[#allocation26_spill] sm:$0xff] %v8498_v15  ;;  %v8524_v15 = vld [vmem:[#allocation2 + $0xf0] sm:$0xff] }
 0x26f   : > { %v8502_v8 = vpop.permute.xlu1 %2873  ;;  %3103 = vrot.lane.b32.xlu0 %v8500_v62, %s6949_s25  ;;  %11224 = vst [vmem:[#allocation11_spill] sm:$0xff] %v8524_v15 }
 0x270   : > { %11217 = vst [vmem:[#allocation48_spill] sm:$0xff] %v8502_v8 }
 0x271   : > { %3105 = vrot.lane.b32.xlu1 %v8506_v52, %s6949_s25  ;;  %v8510_v60 = vpop.permute.xlu0 %2959 }
 0x272   : > { %11219 = vst [vmem:[#allocation10_spill] sm:$0xff] %v8510_v60  ;;  %v8530_v60 = vld [vmem:[#allocation2 + $0xf8] sm:$0xff] }
 0x273   : > { %v8514_v11 = vpop.permute.xlu1 %2961  ;;  %3107 = vrot.lane.b32.xlu0 %v8512_v59, %s6949_s25  ;;  %11226 = vst [vmem:[#allocation17_spill] sm:$0xff] %v8530_v60  ;;  %v8536_v59 = vld [vmem:[#allocation2 + $0x108] sm:$0xff] }
 0x274   : > { %11221 = vst [vmem:[#allocation51_spill] sm:$0xff] %v8514_v11  ;;  %11228 = vst [vmem:[#allocation56_spill] sm:$0xff] %v8536_v59 }
 0x275   : > { %3109 = vrot.lane.b32.xlu1 %v8516_v39, %s6949_s25  ;;  %v8522_v8 = vpop.permute.xlu0 %2967  ;;  %v8540_v39 = vld [vmem:[#allocation2 + $0x110] sm:$0xff] }
 0x276   : > { %11223 = vst [vmem:[#allocation16_spill] sm:$0xff] %v8522_v8  ;;  %11230 = vst [vmem:[#allocation44_spill] sm:$0xff] %v8540_v39  ;;  %v8548_v8 = vld [vmem:[#allocation2 + $0x120] sm:$0xff] }
 0x277   : > { %v8526_v62 = vpop.permute.xlu1 %2969  ;;  %3111 = vrot.lane.b32.xlu0 %v8524_v15, %s6949_s25  ;;  %11232 = vst [vmem:[#allocation7_spill] sm:$0xff] %v8548_v8 }
 0x278   : > { %11225 = vst [vmem:[#allocation36_spill] sm:$0xff] %v8526_v62 }
 0x279   : > { %3113 = vrot.lane.b32.xlu1 %v8530_v60, %s6949_s25  ;;  %v8534_v11 = vpop.permute.xlu0 %2975 }
 0x27a   : > { %11227 = vst [vmem:[#allocation55_spill] sm:$0xff] %v8534_v11  ;;  %v8554_v11 = vld [vmem:[#allocation2 + $0x128] sm:$0xff] }
 0x27b   : > { %v8538_v52 = vpop.permute.xlu1 %2977  ;;  %3115 = vrot.lane.b32.xlu0 %v8536_v59, %s6949_s25  ;;  %11234 = vst [vmem:[#allocation8_spill] sm:$0xff] %v8554_v11  ;;  %v8560_v59 = vld [vmem:[#allocation2 + $0x138] sm:$0xff] }
 0x27c   : > { %11229 = vst [vmem:[#allocation13_spill] sm:$0xff] %v8538_v52  ;;  %11236 = vst [vmem:[#allocation21_spill] sm:$0xff] %v8560_v59 }
 0x27d   : > { %3117 = vrot.lane.b32.xlu1 %v8540_v39, %s6949_s25  ;;  %v8546_v62 = vpop.permute.xlu0 %2983  ;;  %v8564_v39 = vld [vmem:[#allocation2 + $0x140] sm:$0xff] }
 0x27e   : > { %11231 = vst [vmem:[#allocation37_spill] sm:$0xff] %v8546_v62  ;;  %11238 = vst [vmem:[#allocation22_spill] sm:$0xff] %v8564_v39  ;;  %v8572_v62 = vld [vmem:[#allocation2 + $0x150] sm:$0xff] }
 0x27f   : > { %v8550_v15 = vpop.permute.xlu1 %2985  ;;  %3119 = vrot.lane.b32.xlu0 %v8548_v8, %s6949_s25  ;;  %11240 = vst [vmem:[#allocation33_spill] sm:$0xff] %v8572_v62 }
 0x280   : > { %11233 = vst [vmem:[#allocation4_spill] sm:$0xff] %v8550_v15 }
 0x281   : > { %3121 = vrot.lane.b32.xlu1 %v8554_v11, %s6949_s25  ;;  %v8558_v52 = vpop.permute.xlu0 %2991 }
 0x282   : > { %11235 = vst [vmem:[#allocation5_spill] sm:$0xff] %v8558_v52  ;;  %v8578_v52 = vld [vmem:[#allocation2 + $0x158] sm:$0xff] }
 0x283   : > { %v8562_v60 = vpop.permute.xlu1 %2993  ;;  %3123 = vrot.lane.b32.xlu0 %v8560_v59, %s6949_s25  ;;  %v8584_v59 = vld [vmem:[#allocation2 + $0x168] sm:$0xff] }
 0x284   : > { %11237 = vst [vmem:[#allocation18_spill] sm:$0xff] %v8562_v60  ;;  %11243 = vst [vmem:[#allocation29_spill] sm:$0xff] %v8584_v59 }
 0x285   : > { %3125 = vrot.lane.b32.xlu1 %v8564_v39, %s6949_s25  ;;  %v8570_v15 = vpop.permute.xlu0 %2999  ;;  %v8588_v39 = vld [vmem:[#allocation2 + $0x170] sm:$0xff] }
 0x286   : > { %11239 = vst [vmem:[#allocation19_spill] sm:$0xff] %v8570_v15  ;;  %v8596_v15 = vld [vmem:[#allocation2 + $0x180] sm:$0xff] }
 0x287   : > { %v8574_v8 = vpop.permute.xlu1 %3001  ;;  %3127 = vrot.lane.b32.xlu0 %v8572_v62, %s6949_s25 }
 0x288   : > { %11241 = vst [vmem:[#allocation28_spill] sm:$0xff] %v8574_v8 }
 0x289   : > { %3129 = vrot.lane.b32.xlu1 %v8578_v52, %s6949_s25  ;;  %v8582_v60 = vpop.permute.xlu0 %3007 }
 0x28a   : > { %11242 = vst [vmem:[#allocation35_spill] sm:$0xff] %v8582_v60  ;;  %v8602_v60 = vld [vmem:[#allocation2 + $0x188] sm:$0xff] }
 0x28b   : > { %v8586_v11 = vpop.permute.xlu1 %3009  ;;  %3131 = vrot.lane.b32.xlu0 %v8584_v59, %s6949_s25 }
 0x28c   : > { %11244 = vst [vmem:[#allocation45_spill] sm:$0xff] %v8586_v11 }
 0x28d   : > { %3133 = vrot.lane.b32.xlu1 %v8588_v39, %s6949_s25  ;;  %v8594_v8 = vpop.permute.xlu0 %3075 }
 0x28e   : > { %11245 = vst [vmem:[#allocation39_spill] sm:$0xff] %v8594_v8 }
 0x28f   : > { %v8598_v62 = vpop.permute.xlu1 %3077  ;;  %3135 = vrot.lane.b32.xlu0 %v8596_v15, %s6949_s25 }
 0x290   : > { %11246 = vst [vmem:[#allocation47_spill] sm:$0xff] %v8598_v62 }
 0x291   : > { %3137 = vrot.lane.b32.xlu1 %v8602_v60, %s6949_s25  ;;  %v8606_v11 = vpop.permute.xlu0 %3083 }
 0x292   : > { %11247 = vst [vmem:[#allocation40_spill] sm:$0xff] %v8606_v11 }
 0x293   : > { %v8608_v59 = vpop.permute.xlu1 %3085  ;;  %3203 = vrot.lane.b32.xlu0 %v8157_v34, %s6950_s26 }
 0x294   : > { %11248 = vst [vmem:[#allocation57_spill] sm:$0xff] %v8608_v59 }
 0x295   : > { %3205 = vrot.lane.b32.xlu1 %v8161_v22, %s6950_s26  ;;  %v8614_v62 = vpop.permute.xlu0 %3091 }
 0x297   : > { %v8616_v8 = vpop.permute.xlu1 %3093  ;;  %3207 = vrot.lane.b32.xlu0 %v8323_v0, %s6950_s26 }
 0x299   : > { %3209 = vrot.lane.b32.xlu1 %v8338_v19, %s6950_s26  ;;  %v8622_v11 = vpop.permute.xlu0 %3099 }
 0x29a   : > { %11249 = vst [vmem:[#allocation58_spill] sm:$0xff] %v8622_v11 }
 0x29b   : > { %v8624_v59 = vpop.permute.xlu1 %3101  ;;  %3211 = vrot.lane.b32.xlu0 %v8146_v7, %s6950_s26 }
 0x29c   : > { %11250 = vst [vmem:[#allocation59_spill] sm:$0xff] %v8624_v59 }
 0x29d   : > { %3213 = vrot.lane.b32.xlu1 %v8150_v46, %s6950_s26  ;;  %v8630_v34 = vpop.permute.xlu0 %2835 }
 0x29f   : > { %v8632_v22 = vpop.permute.xlu1 %2837  ;;  %3215 = vrot.lane.b32.xlu0 %v8305_v48, %s6950_s26 }
 0x2a1   : > { %3217 = vrot.lane.b32.xlu1 %v8309_v47, %s6950_s26  ;;  %v8638_v0 = vpop.permute.xlu0 %3087 }
 0x2a3   : > { %v8640_v19 = vpop.permute.xlu1 %2965  ;;  %3219 = vrot.lane.b32.xlu0 %v8178_v3, %s6950_s26 }
 0x2a5   : > { %3221 = vrot.lane.b32.xlu1 %v8182_v17, %s6950_s26  ;;  %v8646_v7 = vpop.permute.xlu0 %2827 }
 0x2a7   : > { %v8648_v46 = vpop.permute.xlu1 %3089  ;;  %3223 = vrot.lane.b32.xlu0 %v8376_v4, %s6950_s26 }
 0x2a9   : > { %3225 = vrot.lane.b32.xlu1 %v8390_v41, %s6950_s26  ;;  %v8654_v48 = vpop.permute.xlu0 %2963 }
 0x2ab   : > { %v8656_v47 = vpop.permute.xlu1 %2829  ;;  %3227 = vrot.lane.b32.xlu0 %v8167_v26, %s6950_s26 }
 0x2ad   : > { %3229 = vrot.lane.b32.xlu1 %v8171_v16, %s6950_s26  ;;  %v8662_v3 = vpop.permute.xlu0 %3079 }
 0x2af   : > { %v8664_v17 = vpop.permute.xlu1 %2957  ;;  %3231 = vrot.lane.b32.xlu0 %v8355_v1, %s6950_s26 }
 0x2b1   : > { %3233 = vrot.lane.b32.xlu1 %v8369_v57, %s6950_s26  ;;  %v8670_v4 = vpop.permute.xlu0 %2851 }
 0x2b2   : > { %11251 = vst [vmem:[#allocation60_spill] sm:$0xff] %v8670_v4 }
 0x2b3   : > { %v8672_v41 = vpop.permute.xlu1 %3081  ;;  %3235 = vrot.lane.b32.xlu0 %v8199_v54, %s6950_s26 }
 0x2b5   : > { %3237 = vrot.lane.b32.xlu1 %v8203_v23, %s6950_s26  ;;  %v8678_v26 = vpop.permute.xlu0 %2955 }
 0x2b7   : > { %v8680_v16 = vpop.permute.xlu1 %2853  ;;  %3239 = vrot.lane.b32.xlu0 %v8440_v58, %s6950_s26 }
 0x2b8   : > { %11252 = vst [vmem:[#allocation61_spill] sm:$0xff] %v8680_v16 }
 0x2b9   : > { %3241 = vrot.lane.b32.xlu1 %v8458_v53, %s6950_s26  ;;  %v8686_v1 = vpop.permute.xlu0 %2843 }
 0x2bb   : > { %v8688_v57 = vpop.permute.xlu1 %2981  ;;  %3243 = vrot.lane.b32.xlu0 %v8188_v55, %s6950_s26 }
 0x2bc   : > { %11253 = vst [vmem:[#allocation62_spill] sm:$0xff] %v8688_v57  ;;  %v2695_v57 = vld [vmem:[#allocation2 + $0x60] sm:$0xff] }
 0x2bd   : > { %3245 = vrot.lane.b32.xlu1 %v8192_v13, %s6950_s26  ;;  %v8694_v54 = vpop.permute.xlu0 %2979 }
 0x2be   : > { %11254 = vst [vmem:[#allocation63_spill] sm:$0xff] %v8694_v54 }
 0x2bf   : > { %v8696_v23 = vpop.permute.xlu1 %2845  ;;  %3247 = vrot.lane.b32.xlu0 %v8416_v25, %s6950_s26 }
 0x2c0   : > { %11255 = vst [vmem:[#allocation64_spill] sm:$0xff] %v8696_v23 }
 0x2c1   : > { %3249 = vrot.lane.b32.xlu1 %v8434_v9, %s6950_s26  ;;  %v8702_v58 = vpop.permute.xlu0 %3095 }
 0x2c2   : > { %11256 = vst [vmem:[#allocation65_spill] sm:$0xff] %v8702_v58 }
 0x2c3   : > { %v8704_v53 = vpop.permute.xlu1 %2973  ;;  %3251 = vrot.lane.b32.xlu0 %v8220_v44, %s6950_s26 }
 0x2c4   : > { %11257 = vst [vmem:[#allocation66_spill] sm:$0xff] %v8704_v53 }
 0x2c5   : > { %3253 = vrot.lane.b32.xlu1 %v8234_v42, %s6950_s26  ;;  %v8710_v55 = vpop.permute.xlu0 %2867  ;;  %v8728_v42 = vld [vmem:[#allocation2 + $0x181] sm:$0xff] }
 0x2c6   : > { %11258 = vst [vmem:[#allocation67_spill] sm:$0xff] %v8710_v55 }
 0x2c7   : > { %v8712_v13 = vpop.permute.xlu1 %3097  ;;  %3255 = vrot.lane.b32.xlu0 %v8476_v51, %s6950_s26  ;;  %v8734_v51 = vld [vmem:[#allocation2 + $0x189] sm:$0xff] }
 0x2c8   : > { %11259 = vst [vmem:[#allocation68_spill] sm:$0xff] %v8712_v13 }
 0x2c9   : > { %3257 = vrot.lane.b32.xlu1 %v8482_v33, %s6950_s26  ;;  %v8718_v25 = vpop.permute.xlu0 %2971 }
 0x2ca   : > { %11260 = vst [vmem:[#allocation69_spill] sm:$0xff] %v8718_v25 }
 0x2cb   : > { %v8720_v9 = vpop.permute.xlu1 %2869  ;;  %3259 = vrot.lane.b32.xlu0 %v8209_v50, %s6950_s26 }
 0x2cc   : > { %11261 = vst [vmem:[#allocation70_spill] sm:$0xff] %v8720_v9 }
 0x2cd   : > { %3261 = vrot.lane.b32.xlu1 %v8224_v43, %s6950_s26  ;;  %v8726_v44 = vpop.permute.xlu0 %2859 }
 0x2ce   : > { %11262 = vst [vmem:[#allocation71_spill] sm:$0xff] %v8726_v44 }
 0x2cf   : > { %v8730_v55 = vpop.permute.xlu1 %2997  ;;  %3263 = vrot.lane.b32.xlu0 %v8728_v42, %s6950_s26 }
 0x2d0   : > { %11263 = vst [vmem:[#allocation72_spill] sm:$0xff] %v8730_v55 }
 0x2d1   : > { %3265 = vrot.lane.b32.xlu1 %v8734_v51, %s6950_s26  ;;  %v8738_v33 = vpop.permute.xlu0 %2995 }
 0x2d2   : > { %11264 = vst [vmem:[#allocation73_spill] sm:$0xff] %v8738_v33 }
 0x2d3   : > { %v8740_v50 = vpop.permute.xlu1 %2861  ;;  %3331 = vrot.lane.b32.xlu0 %v8230_v21, %s6951_s29 }
 0x2d4   : > { %11265 = vst [vmem:[#allocation74_spill] sm:$0xff] %v8740_v50 }
 0x2d5   : > { %3333 = vrot.lane.b32.xlu1 %v8213_v20, %s6951_s29  ;;  %v8746_v43 = vpop.permute.xlu0 %2987 }
 0x2d6   : > { %11266 = vst [vmem:[#allocation75_spill] sm:$0xff] %v8746_v43  ;;  %v2693_v43 = vld [vmem:[#allocation2 + $0x48] sm:$0xff] }
 0x2d7   : > { %v8748_v55 = vpop.permute.xlu1 %2989  ;;  %3335 = vrot.lane.b32.xlu0 %v8365_v29, %s6951_s29 }
 0x2d8   : > { %11267 = vst [vmem:[#allocation76_spill] sm:$0xff] %v8748_v55 }
 0x2d9   : > { %3337 = vrot.lane.b32.xlu1 %v8348_v14, %s6951_s29  ;;  %v8754_v33 = vpop.permute.xlu0 %2875 }
 0x2da   : > { %11268 = vst [vmem:[#allocation77_spill] sm:$0xff] %v8754_v33  ;;  %v8826_v33 = vld [vmem:[#allocation2 + $0x10a] sm:$0xff] }
 0x2db   : > { %v8756_v9 = vpop.permute.xlu1 %2877  ;;  %3339 = vrot.lane.b32.xlu0 %v8241_v12, %s6951_s29 }
 0x2dc   : > { %11269 = vst [vmem:[#allocation78_spill] sm:$0xff] %v8756_v9 }
 0x2dd   : > { %3341 = vrot.lane.b32.xlu1 %v8245_v38, %s6951_s29  ;;  %v8762_v20 = vpop.permute.xlu0 %3003 }
 0x2de   : > { %11270 = vst [vmem:[#allocation79_spill] sm:$0xff] %v8762_v20 }
 0x2df   : > { %v8764_v21 = vpop.permute.xlu1 %3005  ;;  %3343 = vrot.lane.b32.xlu0 %v8334_v61, %s6951_s29  ;;  %v8788_v61 = vld [vmem:[#allocation2 + $0xaa] sm:$0xff] }
 0x2e0   : > { %11271 = vst [vmem:[#allocation80_spill] sm:$0xff] %v8764_v21 }
 0x2e1   : > { %3345 = vrot.lane.b32.xlu1 %v8317_v30, %s6951_s29  ;;  %v8770_v14 = vpop.permute.xlu0 %3103 }
 0x2e2   : > { %11272 = vst [vmem:[#allocation81_spill] sm:$0xff] %v8770_v14  ;;  %v2727_v14 = vld [vmem:[#allocation2 + $0x61] sm:$0xff] }
 0x2e3   : > { %v8772_v29 = vpop.permute.xlu1 %3105  ;;  %3347 = vrot.lane.b32.xlu0 %v8251_v2, %s6951_s29 }
 0x2e4   : > { %11273 = vst [vmem:[#allocation82_spill] sm:$0xff] %v8772_v29 }
 0x2e5   : > { %3349 = vrot.lane.b32.xlu1 %v8255_v32, %s6951_s29  ;;  %v8778_v12 = vpop.permute.xlu0 %3107 }
 0x2e6   : > { %11274 = vst [vmem:[#allocation83_spill] sm:$0xff] %v8778_v12 }
 0x2e7   : > { %v8780_v38 = vpop.permute.xlu1 %3109  ;;  %3351 = vrot.lane.b32.xlu0 %v8428_v45, %s6951_s29  ;;  %v8806_v45 = vld [vmem:[#allocation2 + $0xda] sm:$0xff] }
 0x2e8   : > { %11275 = vst [vmem:[#allocation84_spill] sm:$0xff] %v8780_v38 }
 0x2e9   : > { %3353 = vrot.lane.b32.xlu1 %v8407_v31, %s6951_s29  ;;  %v8786_v30 = vpop.permute.xlu0 %3111 }
 0x2ea   : > { %11276 = vst [vmem:[#allocation85_spill] sm:$0xff] %v8786_v30  ;;  %v2694_v30 = vld [vmem:[#allocation2 + $0x50] sm:$0xff] }
 0x2eb   : > { %v8790_v21 = vpop.permute.xlu1 %3113  ;;  %3355 = vrot.lane.b32.xlu0 %v8788_v61, %s6951_s29 }
 0x2ec   : > { %11277 = vst [vmem:[#allocation86_spill] sm:$0xff] %v8790_v21 }
 0x2ed   : > { %3357 = vrot.lane.b32.xlu1 %v8263_v49, %s6951_s29  ;;  %v8796_v2 = vpop.permute.xlu0 %3115  ;;  %v8812_v49 = vld [vmem:[#allocation2 + $0xe2] sm:$0xff] }
 0x2ee   : > { %11278 = vst [vmem:[#allocation87_spill] sm:$0xff] %v8796_v2 }
 0x2ef   : > { %v8798_v32 = vpop.permute.xlu1 %3117  ;;  %3359 = vrot.lane.b32.xlu0 %v8386_v63, %s6951_s29 }
 0x2f0   : > { %11279 = vst [vmem:[#allocation88_spill] sm:$0xff] %v8798_v32 }
 0x2f1   : > { %3361 = vrot.lane.b32.xlu1 %v8380_v28, %s6951_s29  ;;  %v8804_v31 = vpop.permute.xlu0 %3119 }
 0x2f2   : > { %11280 = vst [vmem:[#allocation89_spill] sm:$0xff] %v8804_v31  ;;  %v8832_v31 = vld [vmem:[#allocation2 + $0x112] sm:$0xff] }
 0x2f3   : > { %v8808_v20 = vpop.permute.xlu1 %3121  ;;  %3363 = vrot.lane.b32.xlu0 %v8806_v45, %s6951_s29 }
 0x2f4   : > { %11281 = vst [vmem:[#allocation90_spill] sm:$0xff] %v8808_v20 }
 0x2f5   : > { %3365 = vrot.lane.b32.xlu1 %v8812_v49, %s6951_s29  ;;  %v8816_v9 = vpop.permute.xlu0 %3123 }
 0x2f6   : > { %11282 = vst [vmem:[#allocation91_spill] sm:$0xff] %v8816_v9  ;;  %v8852_v9 = vld [vmem:[#allocation2 + $0x142] sm:$0xff] }
 0x2f7   : > { %v8818_v63 = vpop.permute.xlu1 %3125  ;;  %3367 = vrot.lane.b32.xlu0 %v8464_v35, %s6951_s29 }
 0x2f8   : > { %11283 = vst [vmem:[#allocation92_spill] sm:$0xff] %v8818_v63 }
 0x2f9   : > { %3369 = vrot.lane.b32.xlu1 %v8470_v27, %s6951_s29  ;;  %v8824_v28 = vpop.permute.xlu0 %3127 }
 0x2fa   : > { %11284 = vst [vmem:[#allocation93_spill] sm:$0xff] %v8824_v28 }
 0x2fb   : > { %v8828_v20 = vpop.permute.xlu1 %3129  ;;  %3371 = vrot.lane.b32.xlu0 %v8826_v33, %s6951_s29 }
 0x2fc   : > { %11285 = vst [vmem:[#allocation94_spill] sm:$0xff] %v8828_v20  ;;  %v8846_v20 = vld [vmem:[#allocation2 + $0x13a] sm:$0xff] }
 0x2fd   : > { %3373 = vrot.lane.b32.xlu1 %v8832_v31, %s6951_s29  ;;  %v8836_v63 = vpop.permute.xlu0 %3131 }
 0x2fe   : > { %11286 = vst [vmem:[#allocation95_spill] sm:$0xff] %v8836_v63  ;;  %v8872_v63 = vld [vmem:[#allocation2 + $0x172] sm:$0xff] }
 0x2ff   : > { %v8838_v35 = vpop.permute.xlu1 %3133  ;;  %3375 = vrot.lane.b32.xlu0 %v8452_v37, %s6951_s29 }
 0x300   : > { %11287 = vst [vmem:[#allocation96_spill] sm:$0xff] %v8838_v35 }
 0x301   : > { %3377 = vrot.lane.b32.xlu1 %v8446_v5, %s6951_s29  ;;  %v8844_v27 = vpop.permute.xlu0 %3135 }
 0x302   : > { %11288 = vst [vmem:[#allocation97_spill] sm:$0xff] %v8844_v27 }
 0x303   : > { %v8848_v28 = vpop.permute.xlu1 %3137  ;;  %3379 = vrot.lane.b32.xlu0 %v8846_v20, %s6951_s29 }
 0x304   : > { %11289 = vst [vmem:[#allocation98_spill] sm:$0xff] %v8848_v28  ;;  %v8866_v28 = vld [vmem:[#allocation2 + $0x16a] sm:$0xff] }
 0x305   : > { %3381 = vrot.lane.b32.xlu1 %v8852_v9, %s6951_s29  ;;  %v8856_v35 = vpop.permute.xlu0 %3203 }
 0x307   : > { %v8858_v37 = vpop.permute.xlu1 %3205  ;;  %3383 = vrot.lane.b32.xlu0 %v8488_v56, %s6951_s29  ;;  %v8878_v56 = vld [vmem:[#allocation2 + $0x182] sm:$0xff] }
 0x309   : > { %3385 = vrot.lane.b32.xlu1 %v8494_v10, %s6951_s29  ;;  %v8864_v5 = vpop.permute.xlu0 %3207  ;;  %v8884_v10 = vld [vmem:[#allocation2 + $0x18a] sm:$0xff] }
 0x30b   : > { %v8868_v27 = vpop.permute.xlu1 %3209  ;;  %3387 = vrot.lane.b32.xlu0 %v8866_v28, %s6951_s29 }
 0x30d   : > { %3389 = vrot.lane.b32.xlu1 %v8872_v63, %s6951_s29  ;;  %v8876_v32 = vpop.permute.xlu0 %3211 }
 0x30f   : > { %v8880_v55 = vpop.permute.xlu1 %3213  ;;  %3391 = vrot.lane.b32.xlu0 %v8878_v56, %s6951_s29 }
 0x311   : > { %3393 = vrot.lane.b32.xlu1 %v8884_v10, %s6951_s29  ;;  %v8888_v50 = vpop.permute.xlu0 %3215 }
 0x313   : > { %v8890_v2 = vpop.permute.xlu1 %3217  ;;  %3459 = vrot.lane.b32.xlu0 %v8344_v40, %s6952_s30 }
 0x315   : > { %3461 = vrot.lane.b32.xlu1 %v8359_v6, %s6952_s30  ;;  %v8896_v21 = vpop.permute.xlu0 %3219  ;;  %v2697_v6 = vld [vmem:[#allocation2 + $0x78] sm:$0xff] }
 0x317   : > { %v8898_v44 = vpop.permute.xlu1 %3221  ;;  %3463 = vrot.lane.b32.xlu0 %v2693_v43, %s6952_s30  ;;  %v2698_v43 = vld [vmem:[#allocation2 + $0x80] sm:$0xff] }
 0x318   : > { %11290 = vst [vmem:[#allocation99_spill] sm:$0xff] %v8898_v44  ;;  %v2768_v44 = vld [vmem:[#allocation2 + $0xca] sm:$0xff] }
 0x319   : > { %3465 = vrot.lane.b32.xlu1 %v2694_v30, %s6952_s30  ;;  %v8902_v38 = vpop.permute.xlu0 %3223 }
 0x31a   : > { %11291 = vst [vmem:[#allocation100_spill] sm:$0xff] %v8902_v38 }
 0x31b   : > { %v8904_v16 = vpop.permute.xlu1 %3225  ;;  %3467 = vrot.lane.b32.xlu0 %v2695_v57, %s6952_s30  ;;  %v2701_v57 = vld [vmem:[#allocation2 + $0xa8] sm:$0xff] }
 0x31c   : > { %11292 = vst [vmem:[#allocation101_spill] sm:$0xff] %v8904_v16  ;;  %v2731_v16 = vld [vmem:[#allocation2 + $0x91] sm:$0xff] }
 0x31d   : > { %3469 = vrot.lane.b32.xlu1 %v8327_v36, %s6952_s30  ;;  %v8909_v40 = vpop.permute.xlu0 %3227 }
 0x31e   : > { %11293 = vst [vmem:[#allocation102_spill] sm:$0xff] %v8909_v40  ;;  %v2729_v40 = vld [vmem:[#allocation2 + $0x79] sm:$0xff] }
 0x31f   : > { %v8911_v12 = vpop.permute.xlu1 %3229  ;;  %3471 = vrot.lane.b32.xlu0 %v2697_v6, %s6952_s30  ;;  %v2702_v6 = vld [vmem:[#allocation2 + $0xb0] sm:$0xff] }
 0x320   : > { %11294 = vst [vmem:[#allocation103_spill] sm:$0xff] %v8911_v12 }
 0x321   : > { %3473 = vrot.lane.b32.xlu1 %v2698_v43, %s6952_s30  ;;  %v8915_v30 = vpop.permute.xlu0 %3231 }
 0x322   : > { %11295 = vst [vmem:[#allocation104_spill] sm:$0xff] %v8915_v30  ;;  %v2725_v30 = vld [vmem:[#allocation2 + $0x49] sm:$0xff] }
 0x323   : > { %v8917_v29 = vpop.permute.xlu1 %3233  ;;  %3475 = vrot.lane.b32.xlu0 %v8401_v24, %s6952_s30  ;;  %v11302_v24 = vld [vmem:[#allocation14_spill] sm:$0xff] }
 0x324   : > { %11296 = vst [vmem:[#allocation105_spill] sm:$0xff] %v8917_v29  ;;  %v11301_v29 = vld [vmem:[#allocation46_spill] sm:$0xff] }
 0x325   : > { %3477 = vrot.lane.b32.xlu1 %v8422_v18, %s6952_s30  ;;  %v8923_v36 = vpop.permute.xlu0 %3235 }
 0x326   : > { %11297 = vst [vmem:[#allocation106_spill] sm:$0xff] %v8923_v36 }
 0x327   : > { %v8925_v54 = vpop.permute.xlu1 %3237  ;;  %3479 = vrot.lane.b32.xlu0 %v2701_v57, %s6952_s30  ;;  %v11306_v57 = vld [vmem:[#allocation52_spill] sm:$0xff] }
 0x328   : > { %11298 = vst [vmem:[#allocation107_spill] sm:$0xff] %v8925_v54  ;;  %v11305_v54 = vld [vmem:[#allocation43_spill] sm:$0xff] }
 0x329   : > { %3481 = vrot.lane.b32.xlu1 %v2702_v6, %s6952_s30  ;;  %v8929_v43 = vpop.permute.xlu0 %3239 }
 0x32a   : > { %11299 = vst [vmem:[#allocation108_spill] sm:$0xff] %v8929_v43 }
 0x32b   : > { %v8931_v4 = vpop.permute.xlu1 %3241  ;;  %3483 = vrot.lane.b32.xlu0 %v11301_v29, %s6952_s30  ;;  %v11310_v29 = vld [vmem:[#allocation17_spill] sm:$0xff] }
 0x32c   : > { %11300 = vst [vmem:[#allocation109_spill] sm:$0xff] %v8931_v4  ;;  %v11309_v4 = vld [vmem:[#allocation11_spill] sm:$0xff] }
 0x32d   : > { %3485 = vrot.lane.b32.xlu1 %v11302_v24, %s6952_s30  ;;  %v8937_v18 = vpop.permute.xlu0 %3243 }
 0x32e   : > { %11303 = vst [vmem:[#allocation46_spill] sm:$0xff] %v8937_v18 }
 0x32f   : > { %v8939_v36 = vpop.permute.xlu1 %3245  ;;  %3487 = vrot.lane.b32.xlu0 %v11305_v54, %s6952_s30  ;;  %v11314_v54 = vld [vmem:[#allocation44_spill] sm:$0xff] }
 0x330   : > { %11304 = vst [vmem:[#allocation14_spill] sm:$0xff] %v8939_v36  ;;  %v11313_v36 = vld [vmem:[#allocation56_spill] sm:$0xff] }
 0x331   : > { %3489 = vrot.lane.b32.xlu1 %v11306_v57, %s6952_s30  ;;  %v8945_v6 = vpop.permute.xlu0 %3247 }
 0x332   : > { %11307 = vst [vmem:[#allocation43_spill] sm:$0xff] %v8945_v6 }
 0x333   : > { %v8947_v43 = vpop.permute.xlu1 %3249  ;;  %3491 = vrot.lane.b32.xlu0 %v11309_v4, %s6952_s30  ;;  %v11318_v4 = vld [vmem:[#allocation8_spill] sm:$0xff] }
 0x334   : > { %11308 = vst [vmem:[#allocation52_spill] sm:$0xff] %v8947_v43  ;;  %v11317_v43 = vld [vmem:[#allocation7_spill] sm:$0xff] }
 0x335   : > { %3493 = vrot.lane.b32.xlu1 %v11310_v29, %s6952_s30  ;;  %v8953_v24 = vpop.permute.xlu0 %3251 }
 0x336   : > { %11311 = vst [vmem:[#allocation11_spill] sm:$0xff] %v8953_v24 }
 0x337   : > { %v8955_v18 = vpop.permute.xlu1 %3253  ;;  %3495 = vrot.lane.b32.xlu0 %v11313_v36, %s6952_s30  ;;  %v11322_v36 = vld [vmem:[#allocation22_spill] sm:$0xff] }
 0x338   : > { %11312 = vst [vmem:[#allocation17_spill] sm:$0xff] %v8955_v18  ;;  %v11321_v18 = vld [vmem:[#allocation21_spill] sm:$0xff] }
 0x339   : > { %3497 = vrot.lane.b32.xlu1 %v11314_v54, %s6952_s30  ;;  %v8961_v57 = vpop.permute.xlu0 %3255 }
 0x33a   : > { %11315 = vst [vmem:[#allocation56_spill] sm:$0xff] %v8961_v57 }
 0x33b   : > { %v8963_v6 = vpop.permute.xlu1 %3257  ;;  %3499 = vrot.lane.b32.xlu0 %v11317_v43, %s6952_s30 }
 0x33c   : > { %11316 = vst [vmem:[#allocation44_spill] sm:$0xff] %v8963_v6  ;;  %v11325_v6 = vld [vmem:[#allocation33_spill] sm:$0xff] }
 0x33d   : > { %3501 = vrot.lane.b32.xlu1 %v11318_v4, %s6952_s30  ;;  %v8969_v29 = vpop.permute.xlu0 %3259 }
 0x33e   : > { %11319 = vst [vmem:[#allocation7_spill] sm:$0xff] %v8969_v29 }
 0x33f   : > { %v8971_v24 = vpop.permute.xlu1 %3261  ;;  %3503 = vrot.lane.b32.xlu0 %v11321_v18, %s6952_s30 }
 0x340   : > { %11320 = vst [vmem:[#allocation8_spill] sm:$0xff] %v8971_v24  ;;  %v11326_v24 = vld [vmem:[#allocation29_spill] sm:$0xff] }
 0x341   : > { %3505 = vrot.lane.b32.xlu1 %v11322_v36, %s6952_s30  ;;  %v8977_v54 = vpop.permute.xlu0 %3263 }
 0x342   : > { %11323 = vst [vmem:[#allocation21_spill] sm:$0xff] %v8977_v54 }
 0x343   : > { %v8979_v57 = vpop.permute.xlu1 %3265  ;;  %3507 = vrot.lane.b32.xlu0 %v11325_v6, %s6952_s30 }
 0x344   : > { %11324 = vst [vmem:[#allocation22_spill] sm:$0xff] %v8979_v57  ;;  %v2722_v57 = vld [vmem:[#allocation2 + $0x1a0] sm:$0xff] }
 0x345   : > { %3509 = vrot.lane.b32.xlu1 %v8578_v52, %s6952_s30  ;;  %v8985_v43 = vpop.permute.xlu0 %3331  ;;  %v2721_v52 = vld [vmem:[#allocation2 + $0x198] sm:$0xff] }
 0x347   : > { %v8987_v4 = vpop.permute.xlu1 %3333  ;;  %3511 = vrot.lane.b32.xlu0 %v11326_v24, %s6952_s30  ;;  %v2723_v24 = vld [vmem:[#allocation2 + $0x31] sm:$0xff] }
 0x349   : > { %3513 = vrot.lane.b32.xlu1 %v8588_v39, %s6952_s30  ;;  %v8993_v18 = vpop.permute.xlu0 %3335 }
 0x34b   : > { %v8995_v36 = vpop.permute.xlu1 %3337  ;;  %3515 = vrot.lane.b32.xlu0 %v8596_v15, %s6952_s30  ;;  %v2724_v15 = vld [vmem:[#allocation2 + $0x39] sm:$0xff] }
 0x34d   : > { %3517 = vrot.lane.b32.xlu1 %v8602_v60, %s6952_s30  ;;  %v9001_v6 = vpop.permute.xlu0 %3339 }
 0x34f   : > { %v9003_v54 = vpop.permute.xlu1 %3341  ;;  %3519 = vrot.lane.b32.xlu0 %v2721_v52, %s6952_s30  ;;  %v2726_v52 = vld [vmem:[#allocation2 + $0x51] sm:$0xff] }
 0x351   : > { %3521 = vrot.lane.b32.xlu1 %v2722_v57, %s6952_s30  ;;  %v9007_v39 = vpop.permute.xlu0 %3343 }
 0x353   : > { %v9009_v29 = vpop.permute.xlu1 %3345  ;;  %3587 = vrot.lane.b32.xlu0 %v2723_v24, %s6953_s9  ;;  %v2728_v24 = vld [vmem:[#allocation2 + $0x69] sm:$0xff] }
 0x355   : > { %3589 = vrot.lane.b32.xlu1 %v2724_v15, %s6953_s9  ;;  %v9013_v60 = vpop.permute.xlu0 %3347 }
 0x357   : > { %v9015_v12 = vpop.permute.xlu1 %3349  ;;  %3591 = vrot.lane.b32.xlu0 %v2725_v30, %s6953_s9  ;;  %v2730_v30 = vld [vmem:[#allocation2 + $0x81] sm:$0xff] }
 0x358   : > { %11327 = vst [vmem:[#allocation33_spill] sm:$0xff] %v9015_v12  ;;  %v2764_v12 = vld [vmem:[#allocation2 + $0x9a] sm:$0xff] }
 0x359   : > { %3593 = vrot.lane.b32.xlu1 %v2726_v52, %s6953_s9  ;;  %v9019_v57 = vpop.permute.xlu0 %3351 }
 0x35a   : > { %11328 = vst [vmem:[#allocation29_spill] sm:$0xff] %v9019_v57  ;;  %v2762_v57 = vld [vmem:[#allocation2 + $0x82] sm:$0xff] }
 0x35b   : > { %v9021_v59 = vpop.permute.xlu1 %3353  ;;  %3595 = vrot.lane.b32.xlu0 %v2727_v14, %s6953_s9  ;;  %v2732_v14 = vld [vmem:[#allocation2 + $0x99] sm:$0xff] }
 0x35c   : > { %11329 = vst [vmem:[#allocation110_spill] sm:$0xff] %v9021_v59 }
 0x35d   : > { %3597 = vrot.lane.b32.xlu1 %v2728_v24, %s6953_s9  ;;  %v9025_v15 = vpop.permute.xlu0 %3355 }
 0x35e   : > { %11330 = vst [vmem:[#allocation111_spill] sm:$0xff] %v9025_v15  ;;  %v2733_v15 = vld [vmem:[#allocation2 + $0xa9] sm:$0xff] }
 0x35f   : > { %v9027_v11 = vpop.permute.xlu1 %3357  ;;  %3599 = vrot.lane.b32.xlu0 %v2729_v40, %s6953_s9  ;;  %v2734_v40 = vld [vmem:[#allocation2 + $0xb1] sm:$0xff] }
 0x360   : > { %11331 = vst [vmem:[#allocation112_spill] sm:$0xff] %v9027_v11 }
 0x361   : > { %3601 = vrot.lane.b32.xlu1 %v2730_v30, %s6953_s9  ;;  %v9031_v52 = vpop.permute.xlu0 %3359  ;;  %v4082_v30 = vld [vmem:[%s11050_s4 + $0x40] sm:$0xff] }
 0x362   : > { %11332 = vst [vmem:[#allocation113_spill] sm:$0xff] %v9031_v52  ;;  %6732 = vmatprep.subr.mxu1 %v4082_v30  ;;  %v2742_v52 = vld [vmem:[#allocation2 + $0x111] sm:$0xff] }
 0x363   : > { %v9033_v13 = vpop.permute.xlu1 %3361  ;;  %3603 = vrot.lane.b32.xlu0 %v2731_v16, %s6953_s9  ;;  %6733 = vmatpush3.msra.mxu1 %v4082_v30  ;;  %v2735_v16 = vld [vmem:[#allocation2 + $0xc1] sm:$0xff]  ;;  %v2737_v30 = vld [vmem:[#allocation2 + $0xd9] sm:$0xff] }
 0x364   : > { %11333 = vst [vmem:[#allocation114_spill] sm:$0xff] %v9033_v13 }
 0x365   : > { %3605 = vrot.lane.b32.xlu1 %v2732_v14, %s6953_s9  ;;  %v9037_v24 = vpop.permute.xlu0 %3363 }
 0x366   : > { %11334 = vst [vmem:[#allocation115_spill] sm:$0xff] %v9037_v24  ;;  %v4080_v24 = vld [vmem:[%s11050_s4 + $0x30] sm:$0xff] }
 0x367   : > { %v9039_v59 = vpop.permute.xlu1 %3365  ;;  %3607 = vrot.lane.b32.xlu0 %v2733_v15, %s6953_s9  ;;  %v2736_v15 = vld [vmem:[#allocation2 + $0xc9] sm:$0xff] }
 0x368   : > { %11335 = vst [vmem:[#allocation116_spill] sm:$0xff] %v9039_v59  ;;  %v4081_v59 = vld [vmem:[%s11050_s4 + $0x38] sm:$0xff] }
 0x369   : > { %3609 = vrot.lane.b32.xlu1 %v2734_v40, %s6953_s9  ;;  %v9046_v13 = vpop.permute.xlu0 %3367  ;;  %6734 = vmatprep.subr.mxu1 %v4081_v59 }
 0x36a   : > { %11336 = vst [vmem:[#allocation117_spill] sm:$0xff] %v9046_v13  ;;  %6735 = vmatpush3.msra.mxu1 %v4081_v59  ;;  %v2738_v13 = vld [vmem:[#allocation2 + $0xe1] sm:$0xff] }
 0x36b   : > { %v9048_v14 = vpop.permute.xlu1 %3369  ;;  %3611 = vrot.lane.b32.xlu0 %v2735_v16, %s6953_s9  ;;  %6736 = vmatprep.subr.mxu1 %v4080_v24  ;;  %v4079_v16 = vld [vmem:[%s11050_s4 + $0x28] sm:$0xff] }
 0x36c   : > { %11337 = vst [vmem:[#allocation118_spill] sm:$0xff] %v9048_v14  ;;  %6737 = vmatpush3.msra.mxu1 %v4080_v24 }
 0x36d   : > { %3613 = vrot.lane.b32.xlu1 %v2736_v15, %s6953_s9  ;;  %v9058_v40 = vpop.permute.xlu0 %3371  ;;  %6738 = vmatprep.subr.mxu1 %v4079_v16  ;;  %v4078_v15 = vld [vmem:[%s11050_s4 + $0x20] sm:$0xff] }
 0x36e   : > { %11338 = vst [vmem:[#allocation119_spill] sm:$0xff] %v9058_v40  ;;  %6739 = vmatpush3.msra.mxu1 %v4079_v16  ;;  %v2740_v40 = vld [vmem:[#allocation2 + $0xf9] sm:$0xff] }
 0x36f   : > { %v9060_v14 = vpop.permute.xlu1 %3373  ;;  %3615 = vrot.lane.b32.xlu0 %v2737_v30, %s6953_s9  ;;  %6740 = vmatprep.subr.mxu1 %v4078_v15  ;;  %v4077_v30 = vld [vmem:[%s11050_s4 + $0x18] sm:$0xff] }
 0x370   : > { %11339 = vst [vmem:[#allocation120_spill] sm:$0xff] %v9060_v14  ;;  %v2739_v14 = vld [vmem:[#allocation2 + $0xf1] sm:$0xff]  ;;  %6741 = vmatpush3.msra.mxu1 %v4078_v15 }
 0x371   : > { %3617 = vrot.lane.b32.xlu1 %v2738_v13, %s6953_s9  ;;  %v9070_v59 = vpop.permute.xlu0 %3375  ;;  %6742 = vmatprep.subr.mxu1 %v4077_v30  ;;  %v4076_v13 = vld [vmem:[%s11050_s4 + $0x10] sm:$0xff] }
 0x372   : > { %11340 = vst [vmem:[#allocation121_spill] sm:$0xff] %v9070_v59  ;;  %6743 = vmatpush3.msra.mxu1 %v4077_v30  ;;  %v4074_v59 = vld [vmem:[%s11050_s4] sm:$0xff] }
 0x373   : > { %v9072_v24 = vpop.permute.xlu1 %3377  ;;  %3619 = vrot.lane.b32.xlu0 %v2739_v14, %s6953_s9  ;;  %6744 = vmatprep.subr.mxu1 %v4076_v13  ;;  %v4075_v14 = vld [vmem:[%s11050_s4 + $0x8] sm:$0xff] }
 0x374   : > { %11341 = vst [vmem:[#allocation122_spill] sm:$0xff] %v9072_v24  ;;  %v2741_v24 = vld [vmem:[#allocation2 + $0x109] sm:$0xff]  ;;  %6745 = vmatpush3.msra.mxu1 %v4076_v13  ;;  %v2743_v30 = vld [vmem:[#allocation2 + $0x121] sm:$0xff] }
 0x375   : > { %3621 = vrot.lane.b32.xlu1 %v2740_v40, %s6953_s9  ;;  %v9082_v16 = vpop.permute.xlu0 %3379  ;;  %6746 = vmatprep.subr.mxu1 %v4075_v14 }
 0x376   : > { %11342 = vst [vmem:[#allocation123_spill] sm:$0xff] %v9082_v16  ;;  %6747 = vmatpush3.msra.mxu1 %v4075_v14 }
 0x377   : > { %v9084_v15 = vpop.permute.xlu1 %3381  ;;  %3623 = vrot.lane.b32.xlu0 %v2741_v24, %s6953_s9  ;;  %6748 = vmatprep.subr.mxu1 %v4074_v59  ;;  %v2745_v24 = vld [vmem:[#allocation2 + $0x139] sm:$0xff] }
 0x378   : > { %11343 = vst [vmem:[#allocation124_spill] sm:$0xff] %v9084_v15  ;;  %6749 = vmatpush3.msra.mxu1 %v4074_v59  ;;  %v2744_v15 = vld [vmem:[#allocation2 + $0x129] sm:$0xff]  ;;  %v2755_v59 = vld [vmem:[#allocation2 + $0x32] sm:$0xff] }
 0x379   : > { %3625 = vrot.lane.b32.xlu1 %v2742_v52, %s6953_s9  ;;  %v9094_v40 = vpop.permute.xlu0 %3383  ;;  %v2746_v52 = vld [vmem:[#allocation2 + $0x141] sm:$0xff] }
 0x37a   : > { %11344 = vst [vmem:[#allocation125_spill] sm:$0xff] %v9094_v40  ;;  %v2747_v40 = vld [vmem:[#allocation2 + $0x151] sm:$0xff] }
 0x37b   : > { %v9096_v13 = vpop.permute.xlu1 %3385  ;;  %3627 = vrot.lane.b32.xlu0 %v2743_v30, %s6953_s9  ;;  %v2756_v30 = vld [vmem:[#allocation2 + $0x3a] sm:$0xff] }
 0x37c   : > { %11345 = vst [vmem:[#allocation126_spill] sm:$0xff] %v9096_v13 }
 0x37d   : > { %3629 = vrot.lane.b32.xlu1 %v2744_v15, %s6953_s9  ;;  %v9100_v16 = vpop.permute.xlu0 %3387 }
 0x37e   : > { %11346 = vst [vmem:[#allocation127_spill] sm:$0xff] %v9100_v16  ;;  %v2760_v16 = vld [vmem:[#allocation2 + $0x6a] sm:$0xff] }
 0x37f   : > { %v9102_v11 = vpop.permute.xlu1 %3389  ;;  %3631 = vrot.lane.b32.xlu0 %v2745_v24, %s6953_s9  ;;  %v2757_v24 = vld [vmem:[#allocation2 + $0x4a] sm:$0xff] }
 0x380   : > { %11347 = vst [vmem:[#allocation128_spill] sm:$0xff] %v9102_v11 }
 0x381   : > { %3633 = vrot.lane.b32.xlu1 %v2746_v52, %s6953_s9  ;;  %v9106_v14 = vpop.permute.xlu0 %3391 }
 0x382   : > { %11348 = vst [vmem:[#allocation129_spill] sm:$0xff] %v9106_v14  ;;  %v2758_v14 = vld [vmem:[#allocation2 + $0x52] sm:$0xff] }
 0x383   : > { %v9108_v13 = vpop.permute.xlu1 %3393  ;;  %3635 = vrot.lane.b32.xlu0 %v2747_v40, %s6953_s9  ;;  %v2759_v40 = vld [vmem:[#allocation2 + $0x62] sm:$0xff] }
 0x384   : > { %11349 = vst [vmem:[#allocation130_spill] sm:$0xff] %v9108_v13 }
 0x385   : > { %3715 = vrot.lane.b32.xlu1 %v2755_v59, %s6954_s17  ;;  %v9112_v15 = vpop.permute.xlu0 %3459 }
 0x387   : > { %v9114_v11 = vpop.permute.xlu1 %3461  ;;  %3717 = vrot.lane.b32.xlu0 %v2756_v30, %s6954_s17  ;;  %v2761_v30 = vld [vmem:[#allocation2 + $0x7a] sm:$0xff] }
 0x389   : > { %3719 = vrot.lane.b32.xlu1 %v2757_v24, %s6954_s17  ;;  %v9118_v52 = vpop.permute.xlu0 %3463 }
 0x38b   : > { %v9120_v13 = vpop.permute.xlu1 %3465  ;;  %3721 = vrot.lane.b32.xlu0 %v2758_v14, %s6954_s17  ;;  %v2763_v14 = vld [vmem:[#allocation2 + $0x92] sm:$0xff] }
 0x38d   : > { %3723 = vrot.lane.b32.xlu1 %v2759_v40, %s6954_s17  ;;  %v9124_v59 = vpop.permute.xlu0 %3467 }
 0x38f   : > { %v9126_v53 = vpop.permute.xlu1 %3469  ;;  %3725 = vrot.lane.b32.xlu0 %v2760_v16, %s6954_s17 }
 0x391   : > { %3727 = vrot.lane.b32.xlu1 %v2761_v30, %s6954_s17  ;;  %v9130_v24 = vpop.permute.xlu0 %3471  ;;  %v2766_v30 = vld [vmem:[#allocation2 + $0xb2] sm:$0xff] }
 0x393   : > { %v9132_v23 = vpop.permute.xlu1 %3473  ;;  %3729 = vrot.lane.b32.xlu0 %v2762_v57, %s6954_s17  ;;  %v2767_v57 = vld [vmem:[#allocation2 + $0xc2] sm:$0xff] }
 0x395   : > { %3731 = vrot.lane.b32.xlu1 %v2763_v14, %s6954_s17  ;;  %v9136_v40 = vpop.permute.xlu0 %3475 }
 0x397   : > { %v9138_v38 = vpop.permute.xlu1 %3477  ;;  %3733 = vrot.lane.b32.xlu0 %v2764_v12, %s6954_s17 }
 0x398   : > { %11350 = vst [vmem:[#allocation131_spill] sm:$0xff] %v9138_v38 }
 0x399   : > { %3735 = vrot.lane.b32.xlu1 %v8788_v61, %s6954_s17  ;;  %v9143_v16 = vpop.permute.xlu0 %3479 }
 0x39a   : > { %11351 = vst [vmem:[#allocation132_spill] sm:$0xff] %v9143_v16 }
 0x39b   : > { %v9145_v25 = vpop.permute.xlu1 %3481  ;;  %3737 = vrot.lane.b32.xlu0 %v2766_v30, %s6954_s17  ;;  %v2771_v30 = vld [vmem:[#allocation2 + $0xf2] sm:$0xff] }
 0x39c   : > { %11352 = vst [vmem:[#allocation133_spill] sm:$0xff] %v9145_v25 }
 0x39d   : > { %3739 = vrot.lane.b32.xlu1 %v2767_v57, %s6954_s17  ;;  %v9149_v14 = vpop.permute.xlu0 %3483 }
 0x39e   : > { %11353 = vst [vmem:[#allocation134_spill] sm:$0xff] %v9149_v14  ;;  %v2772_v14 = vld [vmem:[#allocation2 + $0xfa] sm:$0xff] }
 0x39f   : > { %v9151_v58 = vpop.permute.xlu1 %3485  ;;  %3741 = vrot.lane.b32.xlu0 %v2768_v44, %s6954_s17 }
 0x3a0   : > { %11354 = vst [vmem:[#allocation135_spill] sm:$0xff] %v9151_v58 }
 0x3a1   : > { %3743 = vrot.lane.b32.xlu1 %v8806_v45, %s6954_s17  ;;  %v9156_v12 = vpop.permute.xlu0 %3487 }
 0x3a2   : > { %11355 = vst [vmem:[#allocation136_spill] sm:$0xff] %v9156_v12 }
 0x3a3   : > { %v9158_v61 = vpop.permute.xlu1 %3489  ;;  %3745 = vrot.lane.b32.xlu0 %v8812_v49, %s6954_s17  ;;  %v2775_v49 = vld [vmem:[#allocation2 + $0x122] sm:$0xff] }
 0x3a4   : > { %11356 = vst [vmem:[#allocation137_spill] sm:$0xff] %v9158_v61 }
 0x3a5   : > { %3747 = vrot.lane.b32.xlu1 %v2771_v30, %s6954_s17  ;;  %v9163_v57 = vpop.permute.xlu0 %3491 }
 0x3a6   : > { %11357 = vst [vmem:[#allocation138_spill] sm:$0xff] %v9163_v57  ;;  %v2776_v57 = vld [vmem:[#allocation2 + $0x12a] sm:$0xff] }
 0x3a7   : > { %v9165_v25 = vpop.permute.xlu1 %3493  ;;  %3749 = vrot.lane.b32.xlu0 %v2772_v14, %s6954_s17 }
 0x3a8   : > { %11358 = vst [vmem:[#allocation139_spill] sm:$0xff] %v9165_v25 }
 0x3a9   : > { %3751 = vrot.lane.b32.xlu1 %v8826_v33, %s6954_s17  ;;  %v9170_v44 = vpop.permute.xlu0 %3495 }
 0x3aa   : > { %11359 = vst [vmem:[#allocation140_spill] sm:$0xff] %v9170_v44 }
 0x3ab   : > { %v9172_v45 = vpop.permute.xlu1 %3497  ;;  %3753 = vrot.lane.b32.xlu0 %v8832_v31, %s6954_s17  ;;  %v2748_v31 = vld [vmem:[#allocation2 + $0x159] sm:$0xff] }
 0x3ac   : > { %11360 = vst [vmem:[#allocation141_spill] sm:$0xff] %v9172_v45 }
 0x3ad   : > { %3755 = vrot.lane.b32.xlu1 %v2775_v49, %s6954_s17  ;;  %v9177_v30 = vpop.permute.xlu0 %3499 }
 0x3ae   : > { %11361 = vst [vmem:[#allocation142_spill] sm:$0xff] %v9177_v30  ;;  %v2779_v30 = vld [vmem:[#allocation2 + $0x152] sm:$0xff] }
 0x3af   : > { %v9179_v61 = vpop.permute.xlu1 %3501  ;;  %3757 = vrot.lane.b32.xlu0 %v2776_v57, %s6954_s17  ;;  %v2780_v57 = vld [vmem:[#allocation2 + $0x15a] sm:$0xff] }
 0x3b0   : > { %11362 = vst [vmem:[#allocation143_spill] sm:$0xff] %v9179_v61 }
 0x3b1   : > { %3759 = vrot.lane.b32.xlu1 %v8846_v20, %s6954_s17  ;;  %v9184_v33 = vpop.permute.xlu0 %3503 }
 0x3b2   : > { %11363 = vst [vmem:[#allocation144_spill] sm:$0xff] %v9184_v33  ;;  %v2749_v33 = vld [vmem:[#allocation2 + $0x169] sm:$0xff] }
 0x3b3   : > { %v9186_v14 = vpop.permute.xlu1 %3505  ;;  %3761 = vrot.lane.b32.xlu0 %v8852_v9, %s6954_s17  ;;  %v2750_v9 = vld [vmem:[#allocation2 + $0x171] sm:$0xff] }
 0x3b4   : > { %11364 = vst [vmem:[#allocation145_spill] sm:$0xff] %v9186_v14 }
 0x3b5   : > { %3637 = vrot.lane.b32.xlu1 %v2748_v31, %s6953_s9  ;;  %v9191_v49 = vpop.permute.xlu0 %3507 }
 0x3b6   : > { %11365 = vst [vmem:[#allocation146_spill] sm:$0xff] %v9191_v49 }
 0x3b7   : > { %v9193_v45 = vpop.permute.xlu1 %3509  ;;  %3763 = vrot.lane.b32.xlu0 %v2779_v30, %s6954_s17 }
 0x3b8   : > { %11366 = vst [vmem:[#allocation147_spill] sm:$0xff] %v9193_v45 }
 0x3b9   : > { %3765 = vrot.lane.b32.xlu1 %v2780_v57, %s6954_s17  ;;  %v9197_v20 = vpop.permute.xlu0 %3511 }
 0x3ba   : > { %11367 = vst [vmem:[#allocation148_spill] sm:$0xff] %v9197_v20 }
 0x3bb   : > { %v9199_v14 = vpop.permute.xlu1 %3513  ;;  %3639 = vrot.lane.b32.xlu0 %v2749_v33, %s6953_s9 }
 0x3bc   : > { %11368 = vst [vmem:[#allocation149_spill] sm:$0xff] %v9199_v14 }
 0x3bd   : > { %3641 = vrot.lane.b32.xlu1 %v2750_v9, %s6953_s9  ;;  %v9203_v31 = vpop.permute.xlu0 %3515 }
 0x3be   : > { %11369 = vst [vmem:[#allocation150_spill] sm:$0xff] %v9203_v31 }
 0x3bf   : > { %v9205_v49 = vpop.permute.xlu1 %3517  ;;  %3767 = vrot.lane.b32.xlu0 %v8866_v28, %s6954_s17 }
 0x3c0   : > { %11370 = vst [vmem:[#allocation151_spill] sm:$0xff] %v9205_v49  ;;  %v2786_v49 = vld [vmem:[#allocation2 + $0x1a2] sm:$0xff] }
 0x3c1   : > { %3769 = vrot.lane.b32.xlu1 %v8872_v63, %s6954_s17  ;;  %v9211_v30 = vpop.permute.xlu0 %3519  ;;  %v2753_v63 = vld [vmem:[#allocation2 + $0x199] sm:$0xff] }
 0x3c2   : > { %11371 = vst [vmem:[#allocation152_spill] sm:$0xff] %v9211_v30 }
 0x3c3   : > { %v9213_v57 = vpop.permute.xlu1 %3521  ;;  %3643 = vrot.lane.b32.xlu0 %v8728_v42, %s6953_s9  ;;  %v2785_v42 = vld [vmem:[#allocation2 + $0x19a] sm:$0xff] }
 0x3c4   : > { %11372 = vst [vmem:[#allocation153_spill] sm:$0xff] %v9213_v57  ;;  %v2754_v57 = vld [vmem:[#allocation2 + $0x1a1] sm:$0xff] }
 0x3c5   : > { %3645 = vrot.lane.b32.xlu1 %v8734_v51, %s6953_s9  ;;  %v9219_v33 = vpop.permute.xlu0 %3587 }
 0x3c7   : > { %v9221_v9 = vpop.permute.xlu1 %3589  ;;  %3771 = vrot.lane.b32.xlu0 %v8878_v56, %s6954_s17 }
 0x3c9   : > { %3773 = vrot.lane.b32.xlu1 %v8884_v10, %s6954_s17  ;;  %v9227_v28 = vpop.permute.xlu0 %3591 }
 0x3cb   : > { %v9229_v30 = vpop.permute.xlu1 %3593  ;;  %3647 = vrot.lane.b32.xlu0 %v2753_v63, %s6953_s9 }
 0x3cd   : > { %3649 = vrot.lane.b32.xlu1 %v2754_v57, %s6953_s9  ;;  %v9233_v51 = vpop.permute.xlu0 %3595 }
 0x3cf   : > { %v9235_v31 = vpop.permute.xlu1 %3597  ;;  %3775 = vrot.lane.b32.xlu0 %v2785_v42, %s6954_s17 }
 0x3d1   : > { %3777 = vrot.lane.b32.xlu1 %v2786_v49, %s6954_s17  ;;  %v9239_v56 = vpop.permute.xlu0 %3599 }
 0x3d3   : > { %v9241_v10 = vpop.permute.xlu1 %3601 }
 0x3d5   : > { %v9243_v14 = vpop.permute.xlu0 %3603 }
 0x3d6   : > { %11373 = vst [vmem:[#allocation154_spill] sm:$0xff] %v9243_v14  ;;  %v11395_v14 = vld [vmem:[#allocation23_spill] sm:$0xff] }
 0x3d7   : > { %v9245_v20 = vpop.permute.xlu1 %3605 }
 0x3d8   : > { %11374 = vst [vmem:[#allocation155_spill] sm:$0xff] %v9245_v20  ;;  %v2498_v20 = vld [vmem:[#allocation2] sm:$0xff] }
 0x3d9   : > { %v9247_v63 = vpop.permute.xlu0 %3607 }
 0x3da   : > { %11375 = vst [vmem:[#allocation156_spill] sm:$0xff] %v9247_v63  ;;  %v2499_v63 = vld [vmem:[#allocation2 + $0x8] sm:$0xff] }
 0x3db   : > { %v9249_v57 = vpop.permute.xlu1 %3609 }
 0x3dc   : > { %11376 = vst [vmem:[#allocation157_spill] sm:$0xff] %v9249_v57  ;;  %v11386_v57 = vld [vmem:[#allocation49_spill] sm:$0xff] }
 0x3dd   : > { %v9251_v45 = vpop.permute.xlu0 %3611 }
 0x3de   : > { %11377 = vst [vmem:[#allocation158_spill] sm:$0xff] %v9251_v45  ;;  %v3811_v45 = vsel %vm342_vm0, %v2498_v20, %v11386_v57  ;;  %v11393_v20 = vld [vmem:[#allocation54_spill] sm:$0xff] }
 0x3df   : > { %v9253_v61 = vpop.permute.xlu1 %3613 }
 0x3e0   : > { %11378 = vst [vmem:[#allocation159_spill] sm:$0xff] %v9253_v61 }
 0x3e1   : > { %v9255_v44 = vpop.permute.xlu0 %3615 }
 0x3e2   : > { %11379 = vst [vmem:[#allocation160_spill] sm:$0xff] %v9255_v44  ;;  %v11391_v44 = vld [vmem:[#allocation39_spill] sm:$0xff] }
 0x3e3   : > { %v9257_v42 = vpop.permute.xlu1 %3617 }
 0x3e4   : > { %11380 = vst [vmem:[#allocation161_spill] sm:$0xff] %v9257_v42  ;;  %v11388_v42 = vld [vmem:[#allocation50_spill] sm:$0xff] }
 0x3e5   : > { %v9259_v49 = vpop.permute.xlu0 %3619 }
 0x3e6   : > { %11381 = vst [vmem:[#allocation162_spill] sm:$0xff] %v9259_v49  ;;  %v3812_v49 = vsel %vm342_vm0, %v2499_v63, %v11388_v42  ;;  %v6886_v63 = vld [vmem:[#allocation2 + $0x18] sm:$0xff]  ;;  %v11394_v42 = vld [vmem:[#allocation24_spill] sm:$0xff] }
 0x3e7   : > { %v9261_v25 = vpop.permute.xlu1 %3621  ;;  %v3845_v57 = vsel %vm3843_vm4, %v3812_v49, %v11393_v20  ;;  %v11397_v49 = vld [vmem:[#allocation47_spill] sm:$0xff] }
 0x3e8   : > { %11382 = vst [vmem:[#allocation163_spill] sm:$0xff] %v9261_v25  ;;  %v11389_v25 = vld [vmem:[#allocation53_spill] sm:$0xff]  ;;  %v3878_v20 = vsel %vm3876_vm5, %v3845_v57, %v11397_v49  ;;  %v11399_v49 = vld [vmem:[#allocation40_spill] sm:$0xff] }
 0x3e9   : > { %v9263_v12 = vpop.permute.xlu0 %3623 }
 0x3ea   : > { %11383 = vst [vmem:[#allocation164_spill] sm:$0xff] %v9263_v12  ;;  %v3844_v12 = vsel %vm3843_vm4, %v3811_v45, %v11389_v25  ;;  %v3813_v25 = vsel %vm342_vm0, %v6886_v63, %v11394_v42  ;;  %v6887_v45 = vld [vmem:[#allocation2 + $0x20] sm:$0xff]  ;;  %v6888_v63 = vld [vmem:[#allocation2 + $0x30] sm:$0xff] }
 0x3eb   : > { %v9265_v58 = vpop.permute.xlu1 %3625 }
 0x3ec   : > { %11384 = vst [vmem:[#allocation165_spill] sm:$0xff] %v9265_v58 }
 0x3ed   : > { %v9267_v16 = vpop.permute.xlu0 %3627 }
 0x3ee   : > { %11385 = vst [vmem:[#allocation166_spill] sm:$0xff] %v9267_v16  ;;  %v3877_v16 = vsel %vm3876_vm5, %v3844_v12, %v11391_v44  ;;  %v11396_v44 = vld [vmem:[#allocation26_spill] sm:$0xff] }
 0x3ef   : > { %v9271_v61 = vpop.permute.xlu1 %3629 }
 0x3f0   : > { %11387 = vst [vmem:[#allocation49_spill] sm:$0xff] %v9271_v61  ;;  %v3910_v61 = vsel %vm3909_vm6, %v3877_v16, %v8856_v35 }
 0x3f1   : > { %v9277_v58 = vpop.permute.xlu0 %3631  ;;  %v3943_v12 = vsel %vm3942_vm7, %v3910_v61, %v8985_v43  ;;  %v3911_v61 = vsel %vm3909_vm6, %v3878_v20, %v8858_v37 }
 0x3f2   : > { %11390 = vst [vmem:[#allocation50_spill] sm:$0xff] %v9277_v58  ;;  %v3814_v58 = vsel %vm342_vm0, %v6887_v45, %v11395_v14  ;;  %v3976_v35 = vsel %vm3975_vm8, %v3943_v12, %v9112_v15  ;;  %v3815_v14 = vsel %vm342_vm0, %v6888_v63, %v8646_v7  ;;  %v3944_v45 = vsel %vm3942_vm7, %v3911_v61, %v8987_v4  ;;  %v11398_v12 = vld [vmem:[#allocation42_spill] sm:$0xff]  ;;  %v11400_v63 = vld [vmem:[#allocation20_spill] sm:$0xff]  ;;  %v11401_v61 = vld [vmem:[#allocation27_spill] sm:$0xff] }
 0x3f3   : > { %v9281_v38 = vpop.permute.xlu1 %3633  ;;  %v4009_v42 = vsel %vm4008_vm9, %v3976_v35, %v9219_v33  ;;  %v3848_v15 = vsel %vm3843_vm4, %v3815_v14, %v8678_v26  ;;  %v3977_v26 = vsel %vm3975_vm8, %v3944_v45, %v9114_v11  ;;  %v11403_v45 = vld [vmem:[#allocation57_spill] sm:$0xff] }
 0x3f4   : > { %11392 = vst [vmem:[#allocation53_spill] sm:$0xff] %v9281_v38  ;;  %v3846_v38 = vsel %vm3843_vm4, %v3813_v25, %v11396_v44  ;;  %v3881_v11 = vsel %vm3876_vm5, %v3848_v15, %v11399_v49 }
 0x3f5   : > { %v9299_v16 = vpop.permute.xlu0 %3635  ;;  %v3879_v43 = vsel %vm3876_vm5, %v3846_v38, %v8662_v3  ;;  %v3847_v3 = vsel %vm3843_vm4, %v3814_v58, %v11398_v12  ;;  %v6889_v38 = vld [vmem:[#allocation2 + $0x38] sm:$0xff] }
 0x3f6   : > { %v3912_v25 = vsel %vm3909_vm6, %v3879_v43, %v8864_v5  ;;  %v3816_v37 = vsel %vm342_vm0, %v6889_v38, %v8656_v47  ;;  %v3880_v4 = vsel %vm3876_vm5, %v3847_v3, %v8672_v41  ;;  %v4010_v47 = vsel %vm4008_vm9, %v3977_v26, %v9221_v9  ;;  %v6890_v41 = vld [vmem:[#allocation2 + $0x48] sm:$0xff]  ;;  %v6891_v43 = vld [vmem:[#allocation2 + $0x50] sm:$0xff] }
 0x3f7   : > { %v3716_v57 = vpop.permute.xlu1 %3715  ;;  %v3945_v33 = vsel %vm3942_vm7, %v3912_v25, %v8993_v18  ;;  %v3849_v5 = vsel %vm3843_vm4, %v3816_v37, %v8664_v17  ;;  %v3913_v18 = vsel %vm3909_vm6, %v3880_v4, %v8868_v27  ;;  %v3914_v9 = vsel %vm3909_vm6, %v3881_v11, %v8876_v32  ;;  %v11405_v11 = vld [vmem:[#allocation34_spill] sm:$0xff] }
 0x3f8   : > { %v4042_v7 = vsel %vm4041_vm10, %v4009_v42, %v3716_v57  ;;  %v3978_v58 = vsel %vm3975_vm8, %v3945_v33, %v9118_v52  ;;  %v3817_v52 = vsel %vm342_vm0, %v6890_v41, %v11400_v63  ;;  %v3946_v14 = vsel %vm3942_vm7, %v3913_v18, %v8995_v36  ;;  %v11402_v42 = vld [vmem:[#allocation10_spill] sm:$0xff]  ;;  %v6892_v36 = vld [vmem:[#allocation2 + $0x60] sm:$0xff] }
 0x3f9   : > { %6750 = vmatprep.mubr.msk.f32.mxu1 %vm4090_vm11, %v4042_v7  ;;  %v3718_v44 = vpop.permute.xlu0 %3717  ;;  %v4011_v20 = vsel %vm4008_vm9, %v3978_v58, %v9227_v28  ;;  %v3818_v28 = vsel %vm342_vm0, %v6891_v43, %v11401_v61  ;;  %v3850_v57 = vsel %vm3843_vm4, %v3817_v52, %v11402_v42  ;;  %v3947_v15 = vsel %vm3942_vm7, %v3914_v9, %v9001_v6  ;;  %v11410_v42 = vld [vmem:[#allocation154_spill] sm:$0xff] }
 0x3fa   : > { %v4043_v17 = vsel %vm4041_vm10, %v4010_v47, %v3718_v44  ;;  %v3979_v32 = vsel %vm3975_vm8, %v3946_v14, %v9120_v13  ;;  %v3819_v25 = vsel %vm342_vm0, %v6892_v36, %v8630_v34  ;;  %v3882_v7 = vsel %vm3876_vm5, %v3849_v5, %v11403_v45 }
 0x3fb   : > { %v3720_v35 = vpop.permute.xlu1 %3719  ;;  %6751 = vmatmul.mubr.msk.f32.vlgmr.msra.gmra.mxu1 %vm4090_vm11, %v4043_v17  ;;  %v3980_v12 = vsel %vm3975_vm8, %v3947_v15, %v9124_v59  ;;  %v4012_v3 = vsel %vm4008_vm9, %v3979_v32, %v9229_v30  ;;  %v3883_v6 = vsel %vm3876_vm5, %v3850_v57, %v8638_v0  ;;  %v3915_v13 = vsel %vm3909_vm6, %v3882_v7, %v8880_v55  ;;  %v11404_v55 = vld [vmem:[#allocation51_spill] sm:$0xff]  ;;  %v11406_v17 = vld [vmem:[#allocation32_spill] sm:$0xff] }
 0x3fc   : > { %v4044_v27 = vsel %vm4041_vm10, %v4011_v20, %v3720_v35  ;;  %v4013_v37 = vsel %vm4008_vm9, %v3980_v12, %v9233_v51  ;;  %v3852_v26 = vsel %vm3843_vm4, %v3819_v25, %v8654_v48  ;;  %v3916_v59 = vsel %vm3909_vm6, %v3883_v6, %v8888_v50  ;;  %v6893_v51 = vld [vmem:[#allocation2 + $0x68] sm:$0xff]  ;;  %v11407_v35 = vld [vmem:[#allocation16_spill] sm:$0xff] }
 0x3fd   : > { %6753 = vmatprep.mubr.msk.f32.mxu1 %vm4090_vm11, %v4044_v27  ;;  %v3722_v38 = vpop.permute.xlu0 %3721  ;;  %v3948_v30 = vsel %vm3942_vm7, %v3915_v13, %v9003_v54  ;;  %v3851_v5 = vsel %vm3843_vm4, %v3818_v28, %v11404_v55  ;;  %v3820_v4 = vsel %vm342_vm0, %v6893_v51, %v8632_v22  ;;  %v3949_v48 = vsel %vm3942_vm7, %v3916_v59, %v9007_v39  ;;  %v11414_v7 = vld [vmem:[#allocation36_spill] sm:$0xff]  ;;  %v11416_v13 = vld [vmem:[#allocation29_spill] sm:$0xff]  ;;  %v11421_v51 = vld [vmem:[#allocation155_spill] sm:$0xff] }
 0x3fe   : > { %v4045_v34 = vsel %vm4041_vm10, %v4012_v3, %v3722_v38  ;;  %v3981_v50 = vsel %vm3975_vm8, %v3948_v30, %v9126_v53  ;;  %v3853_v54 = vsel %vm3843_vm4, %v3820_v4, %v8640_v19  ;;  %v3884_v58 = vsel %vm3876_vm5, %v3851_v5, %v8648_v46  ;;  %v6894_v46 = vld [vmem:[#allocation2 + $0x78] sm:$0xff]  ;;  %v11415_v38 = vld [vmem:[#allocation64_spill] sm:$0xff] }
 0x3ff   : > { %v3724_v33 = vpop.permute.xlu1 %3723  ;;  %6754 = vmatmul.mubr.msk.f32.gmra.mxu1 %vm4090_vm11, %v4045_v34  ;;  %v3982_v47 = vsel %vm3975_vm8, %v3949_v48, %v9130_v24  ;;  %v4014_v22 = vsel %vm4008_vm9, %v3981_v50, %v9235_v31  ;;  %v3917_v39 = vsel %vm3909_vm6, %v3884_v58, %v8890_v2  ;;  %v3885_v53 = vsel %vm3876_vm5, %v3852_v26, %v8614_v62  ;;  %v6895_v2 = vld [vmem:[#allocation2 + $0x80] sm:$0xff]  ;;  %v6897_v3 = vld [vmem:[#allocation2 + $0x98] sm:$0xff]  ;;  %v11418_v26 = vld [vmem:[#allocation66_spill] sm:$0xff] }
 0x400   : > { %v4046_v0 = vsel %vm4041_vm10, %v4013_v37, %v3724_v33  ;;  %v4015_v18 = vsel %vm4008_vm9, %v3982_v47, %v9239_v56  ;;  %v3821_v24 = vsel %vm342_vm0, %v6894_v46, %v11405_v11  ;;  %v3918_v31 = vsel %vm3909_vm6, %v3885_v53, %v8896_v21  ;;  %v11417_v34 = vld [vmem:[#allocation131_spill] sm:$0xff]  ;;  %v11419_v30 = vld [vmem:[#allocation68_spill] sm:$0xff]  ;;  %v11422_v50 = vld [vmem:[#allocation101_spill] sm:$0xff] }
 0x401   : > { %6756 = vmatprep.mubr.msk.f32.mxu1 %vm4090_vm11, %v4046_v0  ;;  %v3726_v44 = vpop.permute.xlu0 %3725  ;;  %v3950_v20 = vsel %vm3942_vm7, %v3917_v39, %v9009_v29  ;;  %v3822_v56 = vsel %vm342_vm0, %v6895_v2, %v11406_v17  ;;  %v3854_v41 = vsel %vm3843_vm4, %v3821_v24, %v11407_v35  ;;  %v3951_v63 = vsel %vm3942_vm7, %v3918_v31, %v9013_v60  ;;  %v6896_v29 = vld [vmem:[#allocation2 + $0x90] sm:$0xff]  ;;  %v11408_v60 = vld [vmem:[#allocation65_spill] sm:$0xff]  ;;  %v11420_v55 = vld [vmem:[#allocation132_spill] sm:$0xff] }
 0x402   : > { %v4047_v19 = vsel %vm4041_vm10, %v4014_v22, %v3726_v44  ;;  %v3983_v21 = vsel %vm3975_vm8, %v3950_v20, %v9132_v23  ;;  %v3823_v52 = vsel %vm342_vm0, %v6896_v29, %v8686_v1  ;;  %v3886_v9 = vsel %vm3876_vm5, %v3853_v54, %v8616_v8  ;;  %v11409_v23 = vld [vmem:[#allocation99_spill] sm:$0xff]  ;;  %v11411_v8 = vld [vmem:[#allocation69_spill] sm:$0xff]  ;;  %v11423_v58 = vld [vmem:[#allocation58_spill] sm:$0xff] }
 0x403   : > { %v3728_v49 = vpop.permute.xlu1 %3727  ;;  %6757 = vmatmul.mubr.msk.f32.gmra.mxu1 %vm4090_vm11, %v4047_v19  ;;  %v3984_v14 = vsel %vm3975_vm8, %v3951_v63, %v9136_v40  ;;  %v4016_v27 = vsel %vm4008_vm9, %v3983_v21, %v9241_v10  ;;  %v3887_v61 = vsel %vm3876_vm5, %v3854_v41, %v11408_v60  ;;  %v3919_v28 = vsel %vm3909_vm6, %v3886_v9, %v11409_v23  ;;  %v11412_v40 = vld [vmem:[#allocation100_spill] sm:$0xff]  ;;  %v11413_v10 = vld [vmem:[#allocation33_spill] sm:$0xff]  ;;  %v11427_v31 = vld [vmem:[#allocation15_spill] sm:$0xff] }
 0x404   : > { %v4048_v62 = vsel %vm4041_vm10, %v4015_v18, %v3728_v49  ;;  %v4017_v57 = vsel %vm4008_vm9, %v3984_v14, %v11410_v42  ;;  %v3856_v32 = vsel %vm3843_vm4, %v3823_v52, %v11411_v8  ;;  %v3920_v36 = vsel %vm3909_vm6, %v3887_v61, %v11412_v40  ;;  %v11424_v22 = vld [vmem:[#allocation156_spill] sm:$0xff]  ;;  %v11425_v18 = vld [vmem:[#allocation102_spill] sm:$0xff]  ;;  %v6898_v24 = vld [vmem:[#allocation2 + $0xa8] sm:$0xff] }
 0x405   : > { %6759 = vmatprep.mubr.msk.f32.mxu1 %vm4090_vm11, %v4048_v62  ;;  %v3730_v43 = vpop.permute.xlu0 %3729  ;;  %v3952_v25 = vsel %vm3942_vm7, %v3919_v28, %v11413_v10  ;;  %v3855_v12 = vsel %vm3843_vm4, %v3822_v56, %v11414_v7  ;;  %v3824_v6 = vsel %vm342_vm0, %v6897_v3, %v11415_v38  ;;  %v3953_v37 = vsel %vm3942_vm7, %v3920_v36, %v11416_v13  ;;  %v11426_v49 = vld [vmem:[#allocation110_spill] sm:$0xff]  ;;  %v11428_v62 = vld [vmem:[#allocation111_spill] sm:$0xff]  ;;  %v11429_v17 = vld [vmem:[#allocation133_spill] sm:$0xff] }
 0x406   : > { %v4049_v1 = vsel %vm4041_vm10, %v4016_v27, %v3730_v43  ;;  %v3985_v33 = vsel %vm3975_vm8, %v3952_v25, %v11417_v34  ;;  %v3857_v59 = vsel %vm3843_vm4, %v3824_v6, %v11418_v26  ;;  %v3888_v0 = vsel %vm3876_vm5, %v3855_v12, %v11419_v30  ;;  %v11430_v35 = vld [vmem:[#allocation55_spill] sm:$0xff]  ;;  %v11432_v29 = vld [vmem:[#allocation134_spill] sm:$0xff]  ;;  %v11433_v9 = vld [vmem:[#allocation157_spill] sm:$0xff] }
 0x407   : > { %v3732_v15 = vpop.permute.xlu1 %3731  ;;  %6760 = vmatmul.mubr.msk.f32.gmra.mxu1 %vm4090_vm11, %v4049_v1  ;;  %v3986_v5 = vsel %vm3975_vm8, %v3953_v37, %v11420_v55  ;;  %v4018_v4 = vsel %vm4008_vm9, %v3985_v33, %v11421_v51  ;;  %v3921_v54 = vsel %vm3909_vm6, %v3888_v0, %v11422_v50  ;;  %v3889_v47 = vsel %vm3876_vm5, %v3856_v32, %v11423_v58  ;;  %v11431_v63 = vld [vmem:[#allocation59_spill] sm:$0xff]  ;;  %v11434_v43 = vld [vmem:[#allocation81_spill] sm:$0xff]  ;;  %v11436_v28 = vld [vmem:[#allocation158_spill] sm:$0xff] }
 0x408   : > { %v4050_v45 = vsel %vm4041_vm10, %v4017_v57, %v3732_v15  ;;  %v4019_v44 = vsel %vm4008_vm9, %v3986_v5, %v11424_v22  ;;  %v3922_v19 = vsel %vm3909_vm6, %v3889_v47, %v11425_v18  ;;  %v3954_v46 = vsel %vm3942_vm7, %v3921_v54, %v11426_v49  ;;  %v11435_v61 = vld [vmem:[#allocation103_spill] sm:$0xff]  ;;  %v6899_v15 = vld [vmem:[#allocation2 + $0xb0] sm:$0xff]  ;;  %v11438_v40 = vld [vmem:[#allocation104_spill] sm:$0xff] }
 0x409   : > { %6762 = vmatprep.mubr.msk.f32.mxu1 %vm4090_vm11, %v4050_v45  ;;  %v3734_v48 = vpop.permute.xlu0 %3733  ;;  %v3825_v20 = vsel %vm342_vm0, %v6898_v24, %v11427_v31  ;;  %v3955_v2 = vsel %vm3942_vm7, %v3922_v19, %v11428_v62  ;;  %v3987_v56 = vsel %vm3975_vm8, %v3954_v46, %v11429_v17  ;;  %v3890_v21 = vsel %vm3876_vm5, %v3857_v59, %v11431_v63  ;;  %v11437_v8 = vld [vmem:[#allocation30_spill] sm:$0xff]  ;;  %v11439_v10 = vld [vmem:[#allocation112_spill] sm:$0xff]  ;;  %v11440_v7 = vld [vmem:[#allocation13_spill] sm:$0xff] }
 0x40a   : > { %v4051_v39 = vsel %vm4041_vm10, %v4018_v4, %v3734_v48  ;;  %v3858_v41 = vsel %vm3843_vm4, %v3825_v20, %v11430_v35  ;;  %v3988_v52 = vsel %vm3975_vm8, %v3955_v2, %v11432_v29  ;;  %v4020_v14 = vsel %vm4008_vm9, %v3987_v56, %v11433_v9  ;;  %v6900_v3 = vld [vmem:[#allocation2 + $0xc0] sm:$0xff]  ;;  %v11442_v13 = vld [vmem:[#allocation113_spill] sm:$0xff]  ;;  %v11443_v34 = vld [vmem:[#allocation135_spill] sm:$0xff] }
 0x40b   : > { %v3736_v53 = vpop.permute.xlu1 %3735  ;;  %6763 = vmatmul.mubr.msk.f32.gmra.mxu1 %vm4090_vm11, %v4051_v39  ;;  %v3891_v60 = vsel %vm3876_vm5, %v3858_v41, %v11434_v43  ;;  %v3923_v23 = vsel %vm3909_vm6, %v3890_v21, %v11435_v61  ;;  %v4021_v42 = vsel %vm4008_vm9, %v3988_v52, %v11436_v28  ;;  %v3826_v32 = vsel %vm342_vm0, %v6899_v15, %v11437_v8  ;;  %v11441_v38 = vld [vmem:[#allocation60_spill] sm:$0xff]  ;;  %v11444_v26 = vld [vmem:[#allocation63_spill] sm:$0xff]  ;;  %v11445_v30 = vld [vmem:[#allocation82_spill] sm:$0xff] }
 0x40c   : > { %v4052_v11 = vsel %vm4041_vm10, %v4019_v44, %v3736_v53  ;;  %v3924_v36 = vsel %vm3909_vm6, %v3891_v60, %v11438_v40  ;;  %v3956_v25 = vsel %vm3942_vm7, %v3923_v23, %v11439_v10  ;;  %v3859_v12 = vsel %vm3843_vm4, %v3826_v32, %v11440_v7  ;;  %v11446_v55 = vld [vmem:[#allocation136_spill] sm:$0xff]  ;;  %v11447_v51 = vld [vmem:[#allocation159_spill] sm:$0xff]  ;;  %v11449_v58 = vld [vmem:[#allocation105_spill] sm:$0xff] }
 0x40d   : > { %6765 = vmatprep.mubr.msk.f32.mxu1 %vm4090_vm11, %v4052_v11  ;;  %v3738_v27 = vpop.permute.xlu0 %3737  ;;  %v3827_v6 = vsel %vm342_vm0, %v6900_v3, %v11441_v38  ;;  %v3957_v37 = vsel %vm3942_vm7, %v3924_v36, %v11442_v13  ;;  %v3989_v33 = vsel %vm3975_vm8, %v3956_v25, %v11443_v34  ;;  %v3892_v0 = vsel %vm3876_vm5, %v3859_v12, %v11445_v30  ;;  %v11448_v50 = vld [vmem:[#allocation83_spill] sm:$0xff]  ;;  %v11450_v22 = vld [vmem:[#allocation160_spill] sm:$0xff]  ;;  %v6901_v18 = vld [vmem:[#allocation2 + $0xc8] sm:$0xff] }
 0x40e   : > { %v4053_v57 = vsel %vm4041_vm10, %v4020_v14, %v3738_v27  ;;  %v3860_v59 = vsel %vm3843_vm4, %v3827_v6, %v11444_v26  ;;  %v3990_v5 = vsel %vm3975_vm8, %v3957_v37, %v11446_v55  ;;  %v4022_v4 = vsel %vm4008_vm9, %v3989_v33, %v11447_v51  ;;  %v11451_v19 = vld [vmem:[#allocation61_spill] sm:$0xff]  ;;  %v11452_v46 = vld [vmem:[#allocation106_spill] sm:$0xff]  ;;  %v6902_v62 = vld [vmem:[#allocation2 + $0xd8] sm:$0xff] }
 0x40f   : > { %v3740_v1 = vpop.permute.xlu1 %3739  ;;  %6766 = vmatmul.mubr.msk.f32.gmra.mxu1 %vm4090_vm11, %v4053_v57  ;;  %v3893_v54 = vsel %vm3876_vm5, %v3860_v59, %v11448_v50  ;;  %v3925_v47 = vsel %vm3909_vm6, %v3892_v0, %v11449_v58  ;;  %v4023_v44 = vsel %vm4008_vm9, %v3990_v5, %v11450_v22  ;;  %v3828_v49 = vsel %vm342_vm0, %v6901_v18, %v11451_v19  ;;  %v11453_v24 = vld [vmem:[#allocation114_spill] sm:$0xff]  ;;  %v11456_v41 = vld [vmem:[#allocation115_spill] sm:$0xff]  ;;  %v11457_v21 = vld [vmem:[#allocation137_spill] sm:$0xff] }
 0x410   : > { %v4054_v45 = vsel %vm4041_vm10, %v4021_v42, %v3740_v1  ;;  %v3926_v11 = vsel %vm3909_vm6, %v3893_v54, %v11452_v46  ;;  %v3958_v31 = vsel %vm3942_vm7, %v3925_v47, %v11453_v24  ;;  %v11454_v2 = vld [vmem:[#allocation6_spill] sm:$0xff]  ;;  %v11458_v52 = vld [vmem:[#allocation37_spill] sm:$0xff]  ;;  %v11459_v14 = vld [vmem:[#allocation84_spill] sm:$0xff] }
 0x411   : > { %6768 = vmatprep.mubr.msk.f32.mxu1 %vm4090_vm11, %v4054_v45  ;;  %v3742_v48 = vpop.permute.xlu0 %3741  ;;  %v3829_v17 = vsel %vm342_vm0, %v6902_v62, %v11454_v2  ;;  %v11455_v56 = vld [vmem:[#allocation62_spill] sm:$0xff]  ;;  %v3959_v63 = vsel %vm3942_vm7, %v3926_v11, %v11456_v41  ;;  %v3991_v29 = vsel %vm3975_vm8, %v3958_v31, %v11457_v21  ;;  %v11461_v61 = vld [vmem:[#allocation161_spill] sm:$0xff]  ;;  %v11463_v1 = vld [vmem:[#allocation107_spill] sm:$0xff] }
 0x412   : > { %v4055_v39 = vsel %vm4041_vm10, %v4022_v4, %v3742_v48  ;;  %v3861_v35 = vsel %vm3843_vm4, %v3828_v49, %v11455_v56  ;;  %v3862_v9 = vsel %vm3843_vm4, %v3829_v17, %v11458_v52  ;;  %v11460_v43 = vld [vmem:[#allocation138_spill] sm:$0xff]  ;;  %v4024_v23 = vsel %vm4008_vm9, %v3991_v29, %v11461_v61  ;;  %v11462_v42 = vld [vmem:[#allocation85_spill] sm:$0xff]  ;;  %v6903_v10 = vld [vmem:[#allocation2 + $0xe0] sm:$0xff] }
 0x413   : > { %v3744_v53 = vpop.permute.xlu1 %3743  ;;  %6769 = vmatmul.mubr.msk.f32.gmra.mxu1 %vm4090_vm11, %v4055_v39  ;;  %v3894_v27 = vsel %vm3876_vm5, %v3861_v35, %v11459_v14  ;;  %v3992_v60 = vsel %vm3975_vm8, %v3959_v63, %v11460_v43  ;;  %v3895_v57 = vsel %vm3876_vm5, %v3862_v9, %v11462_v42  ;;  %v11464_v8 = vld [vmem:[#allocation162_spill] sm:$0xff]  ;;  %v11465_v25 = vld [vmem:[#allocation31_spill] sm:$0xff]  ;;  %v11466_v7 = vld [vmem:[#allocation108_spill] sm:$0xff] }
 0x414   : > { %v4056_v20 = vsel %vm4041_vm10, %v4023_v44, %v3744_v53  ;;  %v3927_v15 = vsel %vm3909_vm6, %v3894_v27, %v11463_v1  ;;  %v4025_v32 = vsel %vm4008_vm9, %v3992_v60, %v11464_v8  ;;  %v3830_v45 = vsel %vm342_vm0, %v6903_v10, %v11465_v25  ;;  %v11467_v3 = vld [vmem:[#allocation116_spill] sm:$0xff]  ;;  %v6904_v34 = vld [vmem:[#allocation2 + $0xf0] sm:$0xff]  ;;  %v11469_v33 = vld [vmem:[#allocation71_spill] sm:$0xff] }
 0x415   : > { %6771 = vmatprep.mubr.msk.f32.mxu1 %vm4090_vm11, %v4056_v20  ;;  %v3746_v28 = vpop.permute.xlu0 %3745  ;;  %v3928_v12 = vsel %vm3909_vm6, %v3895_v57, %v11466_v7  ;;  %v3960_v38 = vsel %vm3942_vm7, %v3927_v15, %v11467_v3  ;;  %v11468_v13 = vld [vmem:[#allocation4_spill] sm:$0xff]  ;;  %v3831_v26 = vsel %vm342_vm0, %v6904_v34, %v11469_v33  ;;  %v11470_v59 = vld [vmem:[#allocation117_spill] sm:$0xff]  ;;  %v11471_v0 = vld [vmem:[#allocation139_spill] sm:$0xff] }
 0x416   : > { %v4057_v40 = vsel %vm4041_vm10, %v4024_v23, %v3746_v28  ;;  %v3863_v37 = vsel %vm3843_vm4, %v3830_v45, %v11468_v13  ;;  %v3961_v30 = vsel %vm3942_vm7, %v3928_v12, %v11470_v59  ;;  %v3993_v55 = vsel %vm3975_vm8, %v3960_v38, %v11471_v0  ;;  %v11472_v5 = vld [vmem:[#allocation75_spill] sm:$0xff]  ;;  %v11473_v4 = vld [vmem:[#allocation86_spill] sm:$0xff]  ;;  %v11474_v50 = vld [vmem:[#allocation140_spill] sm:$0xff] }
 0x417   : > { %v3748_v36 = vpop.permute.xlu1 %3747  ;;  %6772 = vmatmul.mubr.msk.f32.gmra.mxu1 %vm4090_vm11, %v4057_v40  ;;  %v3864_v51 = vsel %vm3843_vm4, %v3831_v26, %v11472_v5  ;;  %v3896_v48 = vsel %vm3876_vm5, %v3863_v37, %v11473_v4  ;;  %v3994_v54 = vsel %vm3975_vm8, %v3961_v30, %v11474_v50  ;;  %v11475_v58 = vld [vmem:[#allocation163_spill] sm:$0xff]  ;;  %v11477_v53 = vld [vmem:[#allocation109_spill] sm:$0xff]  ;;  %v11478_v19 = vld [vmem:[#allocation164_spill] sm:$0xff] }
 0x418   : > { %v4058_v6 = vsel %vm4041_vm10, %v4025_v32, %v3748_v36  ;;  %v4026_v47 = vsel %vm4008_vm9, %v3993_v55, %v11475_v58  ;;  %v11476_v44 = vld [vmem:[#allocation87_spill] sm:$0xff]  ;;  %v3929_v18 = vsel %vm3909_vm6, %v3896_v48, %v11477_v53  ;;  %v4027_v49 = vsel %vm4008_vm9, %v3994_v54, %v11478_v19  ;;  %v11479_v31 = vld [vmem:[#allocation74_spill] sm:$0xff]  ;;  %v6906_v41 = vld [vmem:[#allocation2 + $0x108] sm:$0xff] }
 0x419   : > { %6774 = vmatprep.mubr.msk.f32.mxu1 %vm4090_vm11, %v4058_v6  ;;  %v3750_v22 = vpop.permute.xlu0 %3749  ;;  %v3897_v39 = vsel %vm3876_vm5, %v3864_v51, %v11476_v44  ;;  %v6905_v24 = vld [vmem:[#allocation2 + $0xf8] sm:$0xff]  ;;  %v11480_v62 = vld [vmem:[#allocation46_spill] sm:$0xff]  ;;  %v11482_v63 = vld [vmem:[#allocation25_spill] sm:$0xff] }
 0x41a   : > { %v4059_v46 = vsel %vm4041_vm10, %v4026_v47, %v3750_v22  ;;  %v3832_v20 = vsel %vm342_vm0, %v6905_v24, %v11479_v31  ;;  %v3930_v2 = vsel %vm3909_vm6, %v3897_v39, %v11480_v62  ;;  %v11481_v17 = vld [vmem:[#allocation118_spill] sm:$0xff]  ;;  %v3833_v21 = vsel %vm342_vm0, %v6906_v41, %v11482_v63  ;;  %v11483_v29 = vld [vmem:[#allocation76_spill] sm:$0xff]  ;;  %v11484_v9 = vld [vmem:[#allocation119_spill] sm:$0xff] }
 0x41b   : > { %v3752_v11 = vpop.permute.xlu1 %3751  ;;  %v3962_v56 = vsel %vm3942_vm7, %v3929_v18, %v11481_v17  ;;  %6775 = vmatmul.mubr.msk.f32.gmra.mxu1 %vm4090_vm11, %v4059_v46  ;;  %v3865_v52 = vsel %vm3843_vm4, %v3832_v20, %v11483_v29  ;;  %v3963_v14 = vsel %vm3942_vm7, %v3930_v2, %v11484_v9  ;;  %v11485_v27 = vld [vmem:[#allocation141_spill] sm:$0xff]  ;;  %v11487_v23 = vld [vmem:[#allocation88_spill] sm:$0xff]  ;;  %v11488_v42 = vld [vmem:[#allocation142_spill] sm:$0xff] }
 0x41c   : > { %v4060_v35 = vsel %vm4041_vm10, %v4027_v49, %v3752_v11  ;;  %v3995_v43 = vsel %vm3975_vm8, %v3962_v56, %v11485_v27  ;;  %v11486_v60 = vld [vmem:[#allocation5_spill] sm:$0xff]  ;;  %v3898_v28 = vsel %vm3876_vm5, %v3865_v52, %v11487_v23  ;;  %v3996_v57 = vsel %vm3975_vm8, %v3963_v14, %v11488_v42  ;;  %v11491_v36 = vld [vmem:[#allocation14_spill] sm:$0xff]  ;;  %v11494_v13 = vld [vmem:[#allocation43_spill] sm:$0xff] }
 0x41d   : > { %6777 = vmatprep.mubr.msk.f32.mxu1 %vm4090_vm11, %v4060_v35  ;;  %v3866_v61 = vsel %vm3843_vm4, %v3833_v21, %v11486_v60  ;;  %v11489_v1 = vld [vmem:[#allocation165_spill] sm:$0xff]  ;;  %v3754_v8 = vpop.permute.xlu0 %3753  ;;  %v3931_v10 = vsel %vm3909_vm6, %v3898_v28, %v11491_v36  ;;  %v11492_v25 = vld [vmem:[#allocation166_spill] sm:$0xff]  ;;  %v11495_v34 = vld [vmem:[#allocation120_spill] sm:$0xff] }
 0x41e   : > { %v4028_v15 = vsel %vm4008_vm9, %v3995_v43, %v11489_v1  ;;  %v11490_v32 = vld [vmem:[#allocation89_spill] sm:$0xff]  ;;  %v4029_v45 = vsel %vm4008_vm9, %v3996_v57, %v11492_v25  ;;  %v6907_v3 = vld [vmem:[#allocation2 + $0x110] sm:$0xff]  ;;  %v3964_v33 = vsel %vm3942_vm7, %v3931_v10, %v11495_v34  ;;  %v11498_v5 = vld [vmem:[#allocation143_spill] sm:$0xff] }
 0x41f   : > { %v3899_v40 = vsel %vm3876_vm5, %v3866_v61, %v11490_v32  ;;  %v4061_v7 = vsel %vm4041_vm10, %v4028_v15, %v3754_v8  ;;  %v3756_v12 = vpop.permute.xlu1 %3755  ;;  %v11493_v38 = vld [vmem:[#allocation38_spill] sm:$0xff]  ;;  %v11497_v0 = vld [vmem:[#allocation121_spill] sm:$0xff]  ;;  %v3997_v51 = vsel %vm3975_vm8, %v3964_v33, %v11498_v5  ;;  %v11500_v50 = vld [vmem:[#allocation144_spill] sm:$0xff] }
 0x420   : > { %v3834_v6 = vsel %vm342_vm0, %v6907_v3, %v11493_v38  ;;  %v3932_v37 = vsel %vm3909_vm6, %v3899_v40, %v11494_v13  ;;  %6778 = vmatmul.mubr.msk.f32.gmra.mxu1 %vm4090_vm11, %v4061_v7  ;;  %v4062_v26 = vsel %vm4041_vm10, %v4029_v45, %v3756_v12  ;;  %v11496_v59 = vld [vmem:[#allocation18_spill] sm:$0xff]  ;;  %v11501_v58 = vld [vmem:[#allocation49_spill] sm:$0xff]  ;;  %v11502_v44 = vld [vmem:[#allocation52_spill] sm:$0xff] }
 0x421   : > { %v3867_v30 = vsel %vm3843_vm4, %v3834_v6, %v11496_v59  ;;  %v3965_v55 = vsel %vm3942_vm7, %v3932_v37, %v11497_v0  ;;  %6780 = vmatprep.mubr.msk.f32.mxu1 %vm4090_vm11, %v4062_v26  ;;  %v11499_v4 = vld [vmem:[#allocation90_spill] sm:$0xff]  ;;  %v4030_v47 = vsel %vm4008_vm9, %v3997_v51, %v11501_v58  ;;  %v3758_v22 = vpop.permute.xlu0 %3757  ;;  %v6908_v46 = vld [vmem:[#allocation2 + $0x120] sm:$0xff]  ;;  %v11504_v11 = vld [vmem:[#allocation67_spill] sm:$0xff] }
 0x422   : > { %v3900_v48 = vsel %vm3876_vm5, %v3867_v30, %v11499_v4  ;;  %v3998_v54 = vsel %vm3975_vm8, %v3965_v55, %v11500_v50  ;;  %v11503_v53 = vld [vmem:[#allocation50_spill] sm:$0xff]  ;;  %v4063_v19 = vsel %vm4041_vm10, %v4030_v47, %v3758_v22  ;;  %v3835_v24 = vsel %vm342_vm0, %v6908_v46, %v11504_v11  ;;  %v6909_v2 = vld [vmem:[#allocation2 + $0x128] sm:$0xff]  ;;  %v11509_v29 = vld [vmem:[#allocation72_spill] sm:$0xff] }
 0x423   : > { %v3933_v39 = vsel %vm3909_vm6, %v3900_v48, %v11502_v44  ;;  %v4031_v18 = vsel %vm4008_vm9, %v3998_v54, %v11503_v53  ;;  %v3760_v49 = vpop.permute.xlu1 %3759  ;;  %v11505_v31 = vld [vmem:[#allocation122_spill] sm:$0xff]  ;;  %v11507_v35 = vld [vmem:[#allocation73_spill] sm:$0xff]  ;;  %v11510_v9 = vld [vmem:[#allocation91_spill] sm:$0xff] }
 0x424   : > { %v3966_v20 = vsel %vm3942_vm7, %v3933_v39, %v11505_v31  ;;  %6781 = vmatmul.mubr.msk.f32.gmra.mxu1 %vm4090_vm11, %v4063_v19  ;;  %v4064_v62 = vsel %vm4041_vm10, %v4031_v18, %v3760_v49  ;;  %v11506_v17 = vld [vmem:[#allocation70_spill] sm:$0xff]  ;;  %v3868_v41 = vsel %vm3843_vm4, %v3835_v24, %v11507_v35  ;;  %v11508_v63 = vld [vmem:[#allocation145_spill] sm:$0xff]  ;;  %v11512_v61 = vld [vmem:[#allocation92_spill] sm:$0xff] }
 0x425   : > { %v3836_v56 = vsel %vm342_vm0, %v6909_v2, %v11506_v17  ;;  %v3999_v21 = vsel %vm3975_vm8, %v3966_v20, %v11508_v63  ;;  %6783 = vmatprep.mubr.msk.f32.mxu1 %vm4090_vm11, %v4064_v62  ;;  %v3901_v14 = vsel %vm3876_vm5, %v3868_v41, %v11510_v9  ;;  %v11511_v27 = vld [vmem:[#allocation53_spill] sm:$0xff]  ;;  %v3762_v60 = vpop.permute.xlu0 %3761  ;;  %v11513_v28 = vld [vmem:[#allocation11_spill] sm:$0xff]  ;;  %v11516_v36 = vld [vmem:[#allocation124_spill] sm:$0xff] }
 0x426   : > { %v3869_v52 = vsel %vm3843_vm4, %v3836_v56, %v11509_v29  ;;  %v4032_v43 = vsel %vm4008_vm9, %v3999_v21, %v11511_v27  ;;  %v3934_v42 = vsel %vm3909_vm6, %v3901_v14, %v11513_v28  ;;  %v11514_v15 = vld [vmem:[#allocation17_spill] sm:$0xff]  ;;  %v11515_v32 = vld [vmem:[#allocation123_spill] sm:$0xff]  ;;  %v11517_v25 = vld [vmem:[#allocation146_spill] sm:$0xff] }
 0x427   : > { %v3902_v23 = vsel %vm3876_vm5, %v3869_v52, %v11512_v61  ;;  %v4065_v57 = vsel %vm4041_vm10, %v4032_v43, %v3762_v60  ;;  %v3638_v1 = vpop.permute.xlu1 %3637  ;;  %v3967_v40 = vsel %vm3942_vm7, %v3934_v42, %v11515_v32  ;;  %v11518_v7 = vld [vmem:[#allocation147_spill] sm:$0xff]  ;;  %v11519_v33 = vld [vmem:[#allocation12_spill] sm:$0xff]  ;;  %v11523_v48 = vld [vmem:[#allocation93_spill] sm:$0xff] }
 0x428   : > { %v3935_v8 = vsel %vm3909_vm6, %v3902_v23, %v11514_v15  ;;  %6784 = vmatmul.mubr.msk.f32.gmra.mxu1 %vm4090_vm11, %v4065_v57  ;;  %v4000_v45 = vsel %vm3975_vm8, %v3967_v40, %v11517_v25  ;;  %v6910_v34 = vld [vmem:[#allocation2 + $0x138] sm:$0xff]  ;;  %v6911_v30 = vld [vmem:[#allocation2 + $0x140] sm:$0xff]  ;;  %v11524_v58 = vld [vmem:[#allocation94_spill] sm:$0xff] }
 0x429   : > { %v3968_v10 = vsel %vm3942_vm7, %v3935_v8, %v11516_v36  ;;  %v4033_v3 = vsel %vm4008_vm9, %v4000_v45, %v9299_v16  ;;  %v3764_v38 = vpop.permute.xlu0 %3763  ;;  %v3837_v26 = vsel %vm342_vm0, %v6910_v34, %v11519_v33  ;;  %v11520_v0 = vld [vmem:[#allocation48_spill] sm:$0xff]  ;;  %v11521_v5 = vld [vmem:[#allocation19_spill] sm:$0xff]  ;;  %v11527_v19 = vld [vmem:[#allocation125_spill] sm:$0xff] }
 0x42a   : > { %v4001_v12 = vsel %vm3975_vm8, %v3968_v10, %v11518_v7  ;;  %v4066_v13 = vsel %vm4041_vm10, %v4033_v3, %v3764_v38  ;;  %v3838_v55 = vsel %vm342_vm0, %v6911_v30, %v11520_v0  ;;  %v3870_v16 = vsel %vm3843_vm4, %v3837_v26, %v11521_v5  ;;  %v11522_v51 = vld [vmem:[#allocation28_spill] sm:$0xff]  ;;  %v11528_v46 = vld [vmem:[#allocation126_spill] sm:$0xff]  ;;  %v11530_v20 = vld [vmem:[#allocation149_spill] sm:$0xff] }
 0x42b   : > { %v4034_v6 = vsel %vm4008_vm9, %v4001_v12, %v3638_v1  ;;  %v3766_v37 = vpop.permute.xlu1 %3765  ;;  %6786 = vmatprep.mubr.msk.f32.mxu1 %vm4090_vm11, %v4066_v13  ;;  %v3871_v4 = vsel %vm3843_vm4, %v3838_v55, %v11522_v51  ;;  %v3903_v50 = vsel %vm3876_vm5, %v3870_v16, %v11523_v48  ;;  %v11525_v22 = vld [vmem:[#allocation56_spill] sm:$0xff]  ;;  %v6912_v63 = vld [vmem:[#allocation2 + $0x150] sm:$0xff]  ;;  %v11531_v21 = vld [vmem:[#allocation77_spill] sm:$0xff] }
 0x42c   : > { %v4067_v59 = vsel %vm4041_vm10, %v4034_v6, %v3766_v37  ;;  %v3904_v47 = vsel %vm3876_vm5, %v3871_v4, %v11524_v58  ;;  %v3936_v44 = vsel %vm3909_vm6, %v3903_v50, %v11525_v22  ;;  %v11526_v53 = vld [vmem:[#allocation44_spill] sm:$0xff]  ;;  %v3839_v29 = vsel %vm342_vm0, %v6912_v63, %v11531_v21  ;;  %v6913_v9 = vld [vmem:[#allocation2 + $0x158] sm:$0xff]  ;;  %v11532_v14 = vld [vmem:[#allocation78_spill] sm:$0xff] }
 0x42d   : > { %6787 = vmatmul.mubr.msk.f32.gmra.mxu1 %vm4090_vm11, %v4067_v59  ;;  %v3640_v54 = vpop.permute.xlu0 %3639  ;;  %v3937_v18 = vsel %vm3909_vm6, %v3904_v47, %v11526_v53  ;;  %v3969_v49 = vsel %vm3942_vm7, %v3936_v44, %v11527_v19  ;;  %v11529_v24 = vld [vmem:[#allocation148_spill] sm:$0xff]  ;;  %v3840_v27 = vsel %vm342_vm0, %v6913_v9, %v11532_v14  ;;  %v11533_v43 = vld [vmem:[#allocation79_spill] sm:$0xff]  ;;  %v11541_v3 = vld [vmem:[#allocation150_spill] sm:$0xff] }
 0x42e   : > { %v3970_v11 = vsel %vm3942_vm7, %v3937_v18, %v11528_v46  ;;  %v4002_v31 = vsel %vm3975_vm8, %v3969_v49, %v11529_v24  ;;  %v3872_v60 = vsel %vm3843_vm4, %v3839_v29, %v11533_v43  ;;  %v11534_v61 = vld [vmem:[#allocation80_spill] sm:$0xff]  ;;  %v11535_v28 = vld [vmem:[#allocation95_spill] sm:$0xff]  ;;  %v6914_v30 = vld [vmem:[#allocation2 + $0x168] sm:$0xff] }
 0x42f   : > { %v3642_v39 = vpop.permute.xlu1 %3641  ;;  %v4003_v62 = vsel %vm3975_vm8, %v3970_v11, %v11530_v20  ;;  %v4035_v2 = vsel %vm4008_vm9, %v4002_v31, %v3640_v54  ;;  %v3873_v23 = vsel %vm3843_vm4, %v3840_v27, %v11534_v61  ;;  %v3905_v42 = vsel %vm3876_vm5, %v3872_v60, %v11535_v28  ;;  %v11536_v1 = vld [vmem:[#allocation96_spill] sm:$0xff]  ;;  %v11537_v8 = vld [vmem:[#allocation7_spill] sm:$0xff]  ;;  %v11543_v0 = vld [vmem:[#allocation41_spill] sm:$0xff] }
 0x430   : > { %v4036_v56 = vsel %vm4008_vm9, %v4003_v62, %v3642_v39  ;;  %v3906_v15 = vsel %vm3876_vm5, %v3873_v23, %v11536_v1  ;;  %v3938_v32 = vsel %vm3909_vm6, %v3905_v42, %v11537_v8  ;;  %v11538_v36 = vld [vmem:[#allocation8_spill] sm:$0xff]  ;;  %v11539_v25 = vld [vmem:[#allocation127_spill] sm:$0xff]  ;;  %v3841_v55 = vsel %vm342_vm0, %v6914_v30, %v11543_v0  ;;  %v6915_v16 = vld [vmem:[#allocation2 + $0x170] sm:$0xff] }
 0x431   : > { %v3768_v17 = vpop.permute.xlu0 %3767  ;;  %v3939_v10 = vsel %vm3909_vm6, %v3906_v15, %v11538_v36  ;;  %v3971_v45 = vsel %vm3942_vm7, %v3938_v32, %v11539_v25  ;;  %v11540_v7 = vld [vmem:[#allocation128_spill] sm:$0xff]  ;;  %v11542_v6 = vld [vmem:[#allocation151_spill] sm:$0xff]  ;;  %v11544_v51 = vld [vmem:[#allocation9_spill] sm:$0xff] }
 0x432   : > { %v4068_v35 = vsel %vm4041_vm10, %v4035_v2, %v3768_v17  ;;  %v3972_v12 = vsel %vm3942_vm7, %v3939_v10, %v11540_v7  ;;  %v4004_v38 = vsel %vm3975_vm8, %v3971_v45, %v11541_v3  ;;  %v3842_v4 = vsel %vm342_vm0, %v6915_v16, %v11544_v51  ;;  %v11545_v48 = vld [vmem:[#allocation35_spill] sm:$0xff]  ;;  %v11546_v54 = vld [vmem:[#allocation45_spill] sm:$0xff]  ;;  %v11548_v39 = vld [vmem:[#allocation98_spill] sm:$0xff] }
 0x433   : > { %v3770_v41 = vpop.permute.xlu1 %3769  ;;  %6789 = vmatprep.mubr.msk.f32.mxu1 %vm4090_vm11, %v4068_v35  ;;  %v4005_v13 = vsel %vm3975_vm8, %v3972_v12, %v11542_v6  ;;  %v3874_v50 = vsel %vm3843_vm4, %v3841_v55, %v11545_v48  ;;  %v3875_v58 = vsel %vm3843_vm4, %v3842_v4, %v11546_v54  ;;  %v11547_v47 = vld [vmem:[#allocation97_spill] sm:$0xff]  ;;  %v11550_v46 = vld [vmem:[#allocation22_spill] sm:$0xff]  ;;  %v11553_v2 = vld [vmem:[#allocation152_spill] sm:$0xff] }
 0x434   : > { %v4069_v52 = vsel %vm4041_vm10, %v4036_v56, %v3770_v41  ;;  %v3907_v22 = vsel %vm3876_vm5, %v3874_v50, %v11547_v47  ;;  %v3908_v53 = vsel %vm3876_vm5, %v3875_v58, %v11548_v39  ;;  %v11549_v18 = vld [vmem:[#allocation21_spill] sm:$0xff]  ;;  %v11552_v20 = vld [vmem:[#allocation130_spill] sm:$0xff]  ;;  %v4532_v14 = vld [vmem:[#allocation3 + $0x9] sm:$0xff] }
 0x435   : > { %6790 = vmatmul.mubr.msk.f32.gmra.mxu1 %vm4090_vm11, %v4069_v52  ;;  %v3644_v57 = vpop.permute.xlu0 %3643  ;;  %v3940_v19 = vsel %vm3909_vm6, %v3907_v22, %v11549_v18  ;;  %v3941_v11 = vsel %vm3909_vm6, %v3908_v53, %v11550_v46  ;;  %v11551_v24 = vld [vmem:[#allocation129_spill] sm:$0xff]  ;;  %4822 = vrot.lane.b32.xlu1 %v4532_v14, %s6943_s19  ;;  %v4531_v27 = vld [vmem:[#allocation3 + $0x1] sm:$0xff]  ;;  %v9787_v43 = vld [vmem:[%s11051_s5] ss:$0 sm:$0xff] }
 0x436   : > { %v4037_v37 = vsel %vm4008_vm9, %v4004_v38, %v3644_v57  ;;  %v3973_v31 = vsel %vm3942_vm7, %v3940_v19, %v11551_v24  ;;  %v3974_v62 = vsel %vm3942_vm7, %v3941_v11, %v11552_v20  ;;  %v11554_v56 = vld [vmem:[#allocation153_spill] sm:$0xff]  ;;  %4820 = vrot.lane.b32.xlu0 %v4531_v27, %s6943_s19 }
 0x437   : > { %v3646_v40 = vpop.permute.xlu1 %3645  ;;  %v4006_v17 = vsel %vm3975_vm8, %v3973_v31, %v11553_v2  ;;  %v4007_v35 = vsel %vm3975_vm8, %v3974_v62, %v11554_v56 }
 0x438   : > { %v4038_v33 = vsel %vm4008_vm9, %v4005_v13, %v3646_v40 }
 0x439   : > { %v3772_v34 = vpop.permute.xlu0 %3771 }
 0x43a   : > { %v4070_v26 = vsel %vm4041_vm10, %v4037_v37, %v3772_v34 }
 0x43b   : > { %v3774_v59 = vpop.permute.xlu1 %3773  ;;  %6792 = vmatprep.mubr.msk.f32.mxu1 %vm4090_vm11, %v4070_v26 }
 0x43c   : > { %v4071_v5 = vsel %vm4041_vm10, %v4038_v33, %v3774_v59 }
 0x43d   : > { %6793 = vmatmul.mubr.msk.f32.gmra.mxu1 %vm4090_vm11, %v4071_v5  ;;  %v3648_v44 = vpop.permute.xlu0 %3647 }
 0x43e   : > { %v4039_v41 = vsel %vm4008_vm9, %v4006_v17, %v3648_v44 }
 0x43f   : > { %v3650_v49 = vpop.permute.xlu1 %3649 }
 0x440   : > { %v4040_v21 = vsel %vm4008_vm9, %v4007_v35, %v3650_v49 }
 0x441   : > { %v3776_v63 = vpop.permute.xlu0 %3775 }
 0x442   : > { %v4072_v29 = vsel %vm4041_vm10, %v4039_v41, %v3776_v63 }
 0x443   : > { %v3778_v52 = vpop.permute.xlu1 %3777  ;;  %6795 = vmatprep.mubr.msk.f32.mxu1 %vm4090_vm11, %v4072_v29 }
 0x444   : > { %v4073_v9 = vsel %vm4041_vm10, %v4040_v21, %v3778_v52 }
 0x445   : > { %6796 = vmatmul.mubr.msk.f32.gmra.mxu1 %vm4090_vm11, %v4073_v9 }
 0x4bb   : > { %v6752_v60 = vpop.f32.mrf.mxu1 }
 0x4bc   : > { %v4259_v61 = vadd.f32 %v6752_v60, %v9787_v43 }
 0x4bd   : > { %v4253_v23 = vpop.f32.mrf.mxu1 }
 0x4be   : > { %4468 = vst.msk [vmem:[#allocation3 + $0x21] sm:$0xff] %vm342_vm0, %v4259_v61  ;;  %v4254_v28 = vadd.f32 %v9787_v43, %v4253_v23 }
 0x4bf   : > { %v6755_v42 = vpop.f32.mrf.mxu1 }
 0x4c0   : > { %4467 = vst.msk [vmem:[#allocation3 + $0x19] sm:$0xff] %vm342_vm0, %v4254_v28  ;;  %v4269_v57 = vadd.f32 %v6755_v42, %v9787_v43 }
 0x4c1   : > { %v4263_v1 = vpop.f32.mrf.mxu1 }
 0x4c2   : > { %4470 = vst.msk [vmem:[#allocation3 + $0x39] sm:$0xff] %vm342_vm0, %v4269_v57  ;;  %v4264_v15 = vadd.f32 %v9787_v43, %v4263_v1 }
 0x4c3   : > { %v6758_v8 = vpop.f32.mrf.mxu1 }
 0x4c4   : > { %4469 = vst.msk [vmem:[#allocation3 + $0x31] sm:$0xff] %vm342_vm0, %v4264_v15  ;;  %v4279_v32 = vadd.f32 %v6758_v8, %v9787_v43 }
 0x4c5   : > { %v4273_v40 = vpop.f32.mrf.mxu1  ;;  %v9798_v36 = vld [vmem:[#allocation3 + $0x21] sm:$0xff] }
 0x4c6   : > { %4472 = vst.msk [vmem:[#allocation3 + $0x51] sm:$0xff] %vm342_vm0, %v4279_v32  ;;  %v4274_v10 = vadd.f32 %v9787_v43, %v4273_v40  ;;  %4826 = vrot.lane.b32.xlu1 %v9798_v36, %s6943_s19 }
 0x4c7   : > { %v6761_v25 = vpop.f32.mrf.mxu1  ;;  %v9804_v45 = vld [vmem:[#allocation3 + $0x19] sm:$0xff] }
 0x4c8   : > { %4471 = vst.msk [vmem:[#allocation3 + $0x49] sm:$0xff] %vm342_vm0, %v4274_v10  ;;  %v4289_v7 = vadd.f32 %v6761_v25, %v9787_v43  ;;  %4824 = vrot.lane.b32.xlu0 %v9804_v45, %s6943_s19 }
 0x4c9   : > { %v4283_v12 = vpop.f32.mrf.mxu1  ;;  %v9810_v3 = vld [vmem:[#allocation3 + $0x39] sm:$0xff] }
 0x4ca   : > { %4474 = vst.msk [vmem:[#allocation3 + $0x69] sm:$0xff] %vm342_vm0, %v4289_v7  ;;  %v4284_v38 = vadd.f32 %v9787_v43, %v4283_v12  ;;  %4830 = vrot.lane.b32.xlu1 %v9810_v3, %s6943_s19 }
 0x4cb   : > { %v6764_v6 = vpop.f32.mrf.mxu1  ;;  %v9816_v13 = vld [vmem:[#allocation3 + $0x31] sm:$0xff] }
 0x4cc   : > { %4473 = vst.msk [vmem:[#allocation3 + $0x61] sm:$0xff] %vm342_vm0, %v4284_v38  ;;  %v4299_v37 = vadd.f32 %v6764_v6, %v9787_v43  ;;  %4828 = vrot.lane.b32.xlu0 %v9816_v13, %s6943_s19 }
 0x4cd   : > { %v4293_v34 = vpop.f32.mrf.mxu1  ;;  %v9822_v33 = vld [vmem:[#allocation3 + $0x51] sm:$0xff] }
 0x4ce   : > { %4476 = vst.msk [vmem:[#allocation3 + $0x81] sm:$0xff] %vm342_vm0, %v4299_v37  ;;  %v4294_v26 = vadd.f32 %v9787_v43, %v4293_v34  ;;  %4834 = vrot.lane.b32.xlu1 %v9822_v33, %s6943_s19 }
 0x4cf   : > { %v6767_v59 = vpop.f32.mrf.mxu1  ;;  %v9828_v30 = vld [vmem:[#allocation3 + $0x49] sm:$0xff] }
 0x4d0   : > { %4475 = vst.msk [vmem:[#allocation3 + $0x79] sm:$0xff] %vm342_vm0, %v4294_v26  ;;  %v4309_v0 = vadd.f32 %v6767_v59, %v9787_v43  ;;  %4832 = vrot.lane.b32.xlu0 %v9828_v30, %s6943_s19 }
 0x4d1   : > { %v4303_v55 = vpop.f32.mrf.mxu1  ;;  %v9834_v5 = vld [vmem:[#allocation3 + $0x69] sm:$0xff] }
 0x4d2   : > { %4478 = vst.msk [vmem:[#allocation3 + $0x99] sm:$0xff] %vm342_vm0, %v4309_v0  ;;  %v4304_v16 = vadd.f32 %v9787_v43, %v4303_v55  ;;  %4838 = vrot.lane.b32.xlu1 %v9834_v5, %s6943_s19 }
 0x4d3   : > { %v6770_v51 = vpop.f32.mrf.mxu1  ;;  %v9840_v4 = vld [vmem:[#allocation3 + $0x61] sm:$0xff] }
 0x4d4   : > { %4477 = vst.msk [vmem:[#allocation3 + $0x91] sm:$0xff] %vm342_vm0, %v4304_v16  ;;  %v4319_v48 = vadd.f32 %v6770_v51, %v9787_v43  ;;  %4836 = vrot.lane.b32.xlu0 %v9840_v4, %s6943_s19 }
 0x4d5   : > { %v4313_v50 = vpop.f32.mrf.mxu1  ;;  %v9846_v54 = vld [vmem:[#allocation3 + $0x81] sm:$0xff] }
 0x4d6   : > { %4480 = vst.msk [vmem:[#allocation3 + $0xb1] sm:$0xff] %vm342_vm0, %v4319_v48  ;;  %v4314_v58 = vadd.f32 %v9787_v43, %v4313_v50  ;;  %4842 = vrot.lane.b32.xlu1 %v9846_v54, %s6943_s19 }
 0x4d7   : > { %v6773_v47 = vpop.f32.mrf.mxu1  ;;  %v9852_v22 = vld [vmem:[#allocation3 + $0x79] sm:$0xff] }
 0x4d8   : > { %4479 = vst.msk [vmem:[#allocation3 + $0xa9] sm:$0xff] %vm342_vm0, %v4314_v58  ;;  %v4329_v44 = vadd.f32 %v6773_v47, %v9787_v43  ;;  %4840 = vrot.lane.b32.xlu0 %v9852_v22, %s6943_s19 }
 0x4d9   : > { %v4323_v39 = vpop.f32.mrf.mxu1  ;;  %v9858_v53 = vld [vmem:[#allocation3 + $0x99] sm:$0xff] }
 0x4da   : > { %4482 = vst.msk [vmem:[#allocation3 + $0xc9] sm:$0xff] %vm342_vm0, %v4329_v44  ;;  %v4324_v18 = vadd.f32 %v9787_v43, %v4323_v39  ;;  %4846 = vrot.lane.b32.xlu1 %v9858_v53, %s6943_s19 }
 0x4db   : > { %v6776_v19 = vpop.f32.mrf.mxu1  ;;  %v9864_v49 = vld [vmem:[#allocation3 + $0x91] sm:$0xff] }
 0x4dc   : > { %4481 = vst.msk [vmem:[#allocation3 + $0xc1] sm:$0xff] %vm342_vm0, %v4324_v18  ;;  %v4339_v46 = vadd.f32 %v6776_v19, %v9787_v43  ;;  %4844 = vrot.lane.b32.xlu0 %v9864_v49, %s6943_s19  ;;  %v4564_v18 = vld [vmem:[#allocation3 + $0xa] sm:$0xff]  ;;  %v4563_v19 = vld [vmem:[#allocation3 + $0x2] sm:$0xff] }
 0x4dd   : > { %v4333_v11 = vpop.f32.mrf.mxu1  ;;  %v4546_v24 = vld [vmem:[#allocation3 + $0xb1] sm:$0xff] }
 0x4de   : > { %4484 = vst.msk [vmem:[#allocation3 + $0xe1] sm:$0xff] %vm342_vm0, %v4339_v46  ;;  %v4334_v31 = vadd.f32 %v9787_v43, %v4333_v11  ;;  %4850 = vrot.lane.b32.xlu1 %v4546_v24, %s6943_s19  ;;  %v9921_v46 = vld [vmem:[#allocation3 + $0x22] sm:$0xff]  ;;  %v9925_v11 = vld [vmem:[#allocation3 + $0x1a] sm:$0xff]  ;;  %v9933_v24 = vld [vmem:[#allocation3 + $0x32] sm:$0xff] }
 0x4df   : > { %v4545_v62 = vld [vmem:[#allocation3 + $0xa9] sm:$0xff] }
 0x4e0   : > { %v6779_v20 = vpop.f32.mrf.mxu1  ;;  %4483 = vst.msk [vmem:[#allocation3 + $0xd9] sm:$0xff] %vm342_vm0, %v4334_v31  ;;  %4848 = vrot.lane.b32.xlu0 %v4545_v62, %s6943_s19  ;;  %v9937_v31 = vld [vmem:[#allocation3 + $0x52] sm:$0xff]  ;;  %v9945_v62 = vld [vmem:[#allocation3 + $0x6a] sm:$0xff] }
 0x4e1   : > { %v4349_v2 = vadd.f32 %v6779_v20, %v9787_v43  ;;  %v4548_v56 = vld [vmem:[#allocation3 + $0xc9] sm:$0xff] }
 0x4e2   : > { %v4343_v17 = vpop.f32.mrf.mxu1  ;;  %4854 = vrot.lane.b32.xlu1 %v4548_v56, %s6943_s19  ;;  %v9941_v20 = vld [vmem:[#allocation3 + $0x4a] sm:$0xff]  ;;  %v9957_v56 = vld [vmem:[#allocation3 + $0x7a] sm:$0xff] }
 0x4e3   : > { %4486 = vst.msk [vmem:[#allocation3 + $0xf9] sm:$0xff] %vm342_vm0, %v4349_v2  ;;  %v4344_v35 = vadd.f32 %v9787_v43, %v4343_v17  ;;  %v4547_v63 = vld [vmem:[#allocation3 + $0xc1] sm:$0xff] }
 0x4e4   : > { %v6782_v41 = vpop.f32.mrf.mxu1  ;;  %4852 = vrot.lane.b32.xlu0 %v4547_v63, %s6943_s19  ;;  %v9949_v2 = vld [vmem:[#allocation3 + $0x62] sm:$0xff]  ;;  %v9969_v63 = vld [vmem:[#allocation3 + $0xb2] sm:$0xff] }
 0x4e5   : > { %4485 = vst.msk [vmem:[#allocation3 + $0xf1] sm:$0xff] %vm342_vm0, %v4344_v35  ;;  %v4359_v21 = vadd.f32 %v6782_v41, %v9787_v43  ;;  %v4550_v52 = vld [vmem:[#allocation3 + $0xe1] sm:$0xff]  ;;  %v9965_v41 = vld [vmem:[#allocation3 + $0x92] sm:$0xff] }
 0x4e6   : > { %v4353_v29 = vpop.f32.mrf.mxu1  ;;  %4858 = vrot.lane.b32.xlu1 %v4550_v52, %s6943_s19  ;;  %v9953_v17 = vld [vmem:[#allocation3 + $0x82] sm:$0xff]  ;;  %v9961_v35 = vld [vmem:[#allocation3 + $0x9a] sm:$0xff] }
 0x4e7   : > { %4488 = vst.msk [vmem:[#allocation3 + $0x111] sm:$0xff] %vm342_vm0, %v4359_v21  ;;  %v4354_v9 = vadd.f32 %v9787_v43, %v4353_v29  ;;  %v4549_v27 = vld [vmem:[#allocation3 + $0xd9] sm:$0xff]  ;;  %v9973_v21 = vld [vmem:[#allocation3 + $0xaa] sm:$0xff]  ;;  %v9978_v52 = vld [vmem:[#allocation3 + $0xc2] sm:$0xff] }
 0x4e8   : > { %v6785_v14 = vpop.f32.mrf.mxu1  ;;  %4856 = vrot.lane.b32.xlu0 %v4549_v27, %s6943_s19  ;;  %v4580_v29 = vld [vmem:[#allocation3 + $0xca] sm:$0xff] }
 0x4e9   : > { %4487 = vst.msk [vmem:[#allocation3 + $0x109] sm:$0xff] %vm342_vm0, %v4354_v9  ;;  %v4369_v60 = vadd.f32 %v6785_v14, %v9787_v43  ;;  %v4582_v9 = vld [vmem:[#allocation3 + $0xe2] sm:$0xff]  ;;  %v4581_v14 = vld [vmem:[#allocation3 + $0xda] sm:$0xff] }
 0x4ea   : > { %v4363_v61 = vpop.f32.mrf.mxu1  ;;  %v4552_v23 = vld [vmem:[#allocation3 + $0xf9] sm:$0xff] }
 0x4eb   : > { %4490 = vst.msk [vmem:[#allocation3 + $0x129] sm:$0xff] %vm342_vm0, %v4369_v60  ;;  %v4364_v28 = vadd.f32 %v9787_v43, %v4363_v61  ;;  %4862 = vrot.lane.b32.xlu1 %v4552_v23, %s6943_s19  ;;  %v4584_v27 = vld [vmem:[#allocation3 + $0xfa] sm:$0xff]  ;;  %v9984_v60 = vpop.permute.xlu1 %4822  ;;  %v9987_v61 = vpop.permute.xlu0 %4820 }
 0x4ec   : > { %v4551_v42 = vld [vmem:[#allocation3 + $0xf1] sm:$0xff] }
 0x4ed   : > { %4489 = vst.msk [vmem:[#allocation3 + $0x121] sm:$0xff] %vm342_vm0, %v4364_v28  ;;  %4860 = vrot.lane.b32.xlu0 %v4551_v42, %s6943_s19  ;;  %v6788_v57 = vpop.f32.mrf.mxu1  ;;  %v4583_v23 = vld [vmem:[#allocation3 + $0xf2] sm:$0xff] }
 0x4ee   : > { %v4379_v1 = vadd.f32 %v6788_v57, %v9787_v43  ;;  %v4554_v15 = vld [vmem:[#allocation3 + $0x111] sm:$0xff] }
 0x4ef   : > { %4866 = vrot.lane.b32.xlu1 %v4554_v15, %s6943_s19  ;;  %v4373_v8 = vpop.f32.mrf.mxu1  ;;  %v4586_v28 = vld [vmem:[#allocation3 + $0x112] sm:$0xff] }
 0x4f0   : > { %4492 = vst.msk [vmem:[#allocation3 + $0x141] sm:$0xff] %vm342_vm0, %v4379_v1  ;;  %v4374_v32 = vadd.f32 %v9787_v43, %v4373_v8  ;;  %v4553_v40 = vld [vmem:[#allocation3 + $0x109] sm:$0xff] }
 0x4f1   : > { %4864 = vrot.lane.b32.xlu0 %v4553_v40, %s6943_s19  ;;  %v4585_v57 = vld [vmem:[#allocation3 + $0x10a] sm:$0xff] }
 0x4f2   : > { %4491 = vst.msk [vmem:[#allocation3 + $0x139] sm:$0xff] %vm342_vm0, %v4374_v32  ;;  %v4556_v10 = vld [vmem:[#allocation3 + $0x129] sm:$0xff] }
 0x4f3   : > { %4870 = vrot.lane.b32.xlu1 %v4556_v10, %s6943_s19  ;;  %v4588_v15 = vld [vmem:[#allocation3 + $0x12a] sm:$0xff] }
 0x4f4   : > { %v4555_v25 = vld [vmem:[#allocation3 + $0x121] sm:$0xff] }
 0x4f5   : > { %4868 = vrot.lane.b32.xlu0 %v4555_v25, %s6943_s19  ;;  %v6791_v7 = vpop.f32.mrf.mxu1  ;;  %v4587_v32 = vld [vmem:[#allocation3 + $0x122] sm:$0xff] }
 0x4f6   : > { %v4389_v12 = vadd.f32 %v6791_v7, %v9787_v43 }
 0x4f7   : > { %v4383_v38 = vpop.f32.mrf.mxu1  ;;  %v4558_v6 = vld [vmem:[#allocation3 + $0x141] sm:$0xff] }
 0x4f8   : > { %4494 = vst.msk [vmem:[#allocation3 + $0x159] sm:$0xff] %vm342_vm0, %v4389_v12  ;;  %v4384_v37 = vadd.f32 %v9787_v43, %v4383_v38  ;;  %4874 = vrot.lane.b32.xlu1 %v4558_v6, %s6943_s19  ;;  %v4590_v10 = vld [vmem:[#allocation3 + $0x142] sm:$0xff] }
 0x4f9   : > { %v4557_v34 = vld [vmem:[#allocation3 + $0x139] sm:$0xff] }
 0x4fa   : > { %4493 = vst.msk [vmem:[#allocation3 + $0x151] sm:$0xff] %vm342_vm0, %v4384_v37  ;;  %4872 = vrot.lane.b32.xlu0 %v4557_v34, %s6943_s19  ;;  %v4589_v7 = vld [vmem:[#allocation3 + $0x13a] sm:$0xff] }
 0x4fd   : > { %v6794_v26 = vpop.f32.mrf.mxu1 }
 0x4fe   : > { %v4399_v59 = vadd.f32 %v6794_v26, %v9787_v43 }
 0x4ff   : > { %v4393_v0 = vpop.f32.mrf.mxu1  ;;  %v4560_v55 = vld [vmem:[#allocation3 + $0x159] sm:$0xff] }
 0x500   : > { %4496 = vst.msk [vmem:[#allocation3 + $0x171] sm:$0xff] %vm342_vm0, %v4399_v59  ;;  %v4394_v16 = vadd.f32 %v9787_v43, %v4393_v0  ;;  %4878 = vrot.lane.b32.xlu1 %v4560_v55, %s6943_s19  ;;  %v4592_v38 = vld [vmem:[#allocation3 + $0x15a] sm:$0xff] }
 0x501   : > { %v4559_v51 = vld [vmem:[#allocation3 + $0x151] sm:$0xff]  ;;  %v10018_v55 = vld [vmem:[#allocation3 + $0x20] sm:$0xff] }
 0x502   : > { %4495 = vst.msk [vmem:[#allocation3 + $0x169] sm:$0xff] %vm342_vm0, %v4394_v16  ;;  %4876 = vrot.lane.b32.xlu0 %v4559_v51, %s6943_s19  ;;  %v4591_v37 = vld [vmem:[#allocation3 + $0x152] sm:$0xff] }
 0x503   : > { %v10024_v51 = vld [vmem:[#allocation3 + $0x18] sm:$0xff] }
 0x505   : > { %v6797_v48 = vpop.f32.mrf.mxu1 }
 0x506   : > { %v4409_v50 = vadd.f32 %v6797_v48, %v9787_v43 }
 0x507   : > { %v4403_v58 = vpop.f32.mrf.mxu1  ;;  %v4562_v47 = vld [vmem:[#allocation3 + $0x171] sm:$0xff] }
 0x508   : > { %4498 = vst.msk [vmem:[#allocation3 + $0x189] sm:$0xff] %vm342_vm0, %v4409_v50  ;;  %v4404_v44 = vadd.f32 %v9787_v43, %v4403_v58  ;;  %4882 = vrot.lane.b32.xlu1 %v4562_v47, %s6943_s19  ;;  %v9929_v43 = vld [vmem:[#allocation3 + $0x3a] sm:$0xff]  ;;  %v4594_v26 = vld [vmem:[#allocation3 + $0x172] sm:$0xff] }
 0x509   : > { %v4561_v39 = vld [vmem:[#allocation3 + $0x169] sm:$0xff]  ;;  %v10030_v50 = vld [vmem:[#allocation3 + $0x38] sm:$0xff] }
 0x50a   : > { %4497 = vst.msk [vmem:[#allocation3 + $0x181] sm:$0xff] %vm342_vm0, %v4404_v44  ;;  %4880 = vrot.lane.b32.xlu0 %v4561_v39, %s6943_s19  ;;  %v4593_v0 = vld [vmem:[#allocation3 + $0x16a] sm:$0xff] }
 0x50b   : > { %v10036_v47 = vld [vmem:[#allocation3 + $0x30] sm:$0xff] }
 0x50c   : > { %4950 = vrot.lane.b32.xlu1 %v4564_v18, %s6944_s20  ;;  %v10042_v39 = vld [vmem:[#allocation3 + $0x50] sm:$0xff] }
 0x50e   : > { %4948 = vrot.lane.b32.xlu0 %v4563_v19, %s6944_s20  ;;  %v10048_v19 = vld [vmem:[#allocation3 + $0x48] sm:$0xff] }
 0x510   : > { %4954 = vrot.lane.b32.xlu1 %v9921_v46, %s6944_s20 }
 0x512   : > { %4952 = vrot.lane.b32.xlu0 %v9925_v11, %s6944_s20 }
 0x514   : > { %4958 = vrot.lane.b32.xlu1 %v9929_v43, %s6944_s20 }
 0x516   : > { %4956 = vrot.lane.b32.xlu0 %v9933_v24, %s6944_s20 }
 0x518   : > { %4962 = vrot.lane.b32.xlu1 %v9937_v31, %s6944_s20 }
 0x51a   : > { %4960 = vrot.lane.b32.xlu0 %v9941_v20, %s6944_s20 }
 0x51c   : > { %4966 = vrot.lane.b32.xlu1 %v9945_v62, %s6944_s20 }
 0x51e   : > { %4964 = vrot.lane.b32.xlu0 %v9949_v2, %s6944_s20 }
 0x520   : > { %4970 = vrot.lane.b32.xlu1 %v9953_v17, %s6944_s20 }
 0x522   : > { %4968 = vrot.lane.b32.xlu0 %v9957_v56, %s6944_s20 }
 0x524   : > { %4974 = vrot.lane.b32.xlu1 %v9961_v35, %s6944_s20 }
 0x526   : > { %4972 = vrot.lane.b32.xlu0 %v9965_v41, %s6944_s20 }
 0x528   : > { %4978 = vrot.lane.b32.xlu1 %v9969_v63, %s6944_s20 }
 0x52a   : > { %4976 = vrot.lane.b32.xlu0 %v9973_v21, %s6944_s20 }
 0x52c   : > { %4982 = vrot.lane.b32.xlu1 %v4580_v29, %s6944_s20 }
 0x52e   : > { %4980 = vrot.lane.b32.xlu0 %v9978_v52, %s6944_s20 }
 0x530   : > { %4986 = vrot.lane.b32.xlu1 %v4582_v9, %s6944_s20  ;;  %v10054_v9 = vld [vmem:[#allocation3 + $0x68] sm:$0xff] }
 0x532   : > { %4984 = vrot.lane.b32.xlu0 %v4581_v14, %s6944_s20 }
 0x534   : > { %4990 = vrot.lane.b32.xlu1 %v4584_v27, %s6944_s20  ;;  %v10060_v27 = vld [vmem:[#allocation3 + $0x60] sm:$0xff] }
 0x536   : > { %4988 = vrot.lane.b32.xlu0 %v4583_v23, %s6944_s20  ;;  %v10064_v23 = vld [vmem:[#allocation3 + $0x80] sm:$0xff] }
 0x538   : > { %4994 = vrot.lane.b32.xlu1 %v4586_v28, %s6944_s20  ;;  %v9991_v42 = vpop.permute.xlu1 %4826 }
 0x53a   : > { %4992 = vrot.lane.b32.xlu0 %v4585_v57, %s6944_s20  ;;  %v9994_v1 = vpop.permute.xlu0 %4824  ;;  %v10070_v57 = vld [vmem:[#allocation3 + $0x78] sm:$0xff] }
 0x53c   : > { %4998 = vrot.lane.b32.xlu1 %v4588_v15, %s6944_s20  ;;  %v9997_v8 = vpop.permute.xlu1 %4830 }
 0x53e   : > { %4996 = vrot.lane.b32.xlu0 %v4587_v32, %s6944_s20  ;;  %v10000_v40 = vpop.permute.xlu0 %4828  ;;  %v10076_v32 = vld [vmem:[#allocation3 + $0x98] sm:$0xff] }
 0x540   : > { %5002 = vrot.lane.b32.xlu1 %v4590_v10, %s6944_s20  ;;  %v10003_v25 = vpop.permute.xlu1 %4834  ;;  %v10080_v10 = vld [vmem:[#allocation3 + $0x90] sm:$0xff] }
 0x541   : > { %11555 = vst [vmem:[#allocation39_spill] sm:$0xff] %v10003_v25  ;;  %v4528_v25 = vld [vmem:[#allocation3 + $0x158] sm:$0xff] }
 0x542   : > { %5000 = vrot.lane.b32.xlu0 %v4589_v7, %s6944_s20  ;;  %v10006_v12 = vpop.permute.xlu0 %4832 }
 0x543   : > { %11556 = vst [vmem:[#allocation54_spill] sm:$0xff] %v10006_v12 }
 0x544   : > { %5006 = vrot.lane.b32.xlu1 %v4592_v38, %s6944_s20  ;;  %v10009_v6 = vpop.permute.xlu1 %4838  ;;  %v10086_v38 = vld [vmem:[#allocation3 + $0xb0] sm:$0xff] }
 0x545   : > { %11557 = vst [vmem:[#allocation24_spill] sm:$0xff] %v10009_v6 }
 0x546   : > { %5004 = vrot.lane.b32.xlu0 %v4591_v37, %s6944_s20  ;;  %v10012_v34 = vpop.permute.xlu0 %4836 }
 0x547   : > { %11558 = vst [vmem:[#allocation23_spill] sm:$0xff] %v10012_v34 }
 0x548   : > { %5010 = vrot.lane.b32.xlu1 %v4594_v26, %s6944_s20  ;;  %v10015_v59 = vpop.permute.xlu1 %4842  ;;  %v10092_v26 = vld [vmem:[#allocation3 + $0xa8] sm:$0xff] }
 0x549   : > { %11559 = vst [vmem:[#allocation26_spill] sm:$0xff] %v10015_v59  ;;  %11571 = vst [vmem:[#allocation65_spill] sm:$0xff] %v10092_v26  ;;  %v4524_v59 = vld [vmem:[#allocation3 + $0x128] sm:$0xff] }
 0x54a   : > { %5008 = vrot.lane.b32.xlu0 %v4593_v0, %s6944_s20  ;;  %v10020_v16 = vpop.permute.xlu0 %4840  ;;  %v10096_v0 = vld [vmem:[#allocation3 + $0xc8] sm:$0xff] }
 0x54b   : > { %11560 = vst [vmem:[#allocation47_spill] sm:$0xff] %v10020_v16 }
 0x54c   : > { %5078 = vrot.lane.b32.xlu1 %v10018_v55, %s6949_s25  ;;  %v10026_v48 = vpop.permute.xlu1 %4846 }
 0x54d   : > { %11561 = vst [vmem:[#allocation42_spill] sm:$0xff] %v10026_v48  ;;  %v10130_v48 = vld [vmem:[#allocation3 + $0x110] sm:$0xff] }
 0x54e   : > { %5076 = vrot.lane.b32.xlu0 %v10024_v51, %s6949_s25  ;;  %v10032_v58 = vpop.permute.xlu0 %4844  ;;  %11578 = vst [vmem:[#allocation64_spill] sm:$0xff] %v10130_v48 }
 0x54f   : > { %11562 = vst [vmem:[#allocation40_spill] sm:$0xff] %v10032_v58  ;;  %v10136_v58 = vld [vmem:[#allocation3 + $0x108] sm:$0xff] }
 0x550   : > { %5082 = vrot.lane.b32.xlu1 %v10030_v50, %s6949_s25  ;;  %v10038_v44 = vpop.permute.xlu1 %4850  ;;  %11580 = vst [vmem:[#allocation131_spill] sm:$0xff] %v10136_v58 }
 0x551   : > { %11563 = vst [vmem:[#allocation20_spill] sm:$0xff] %v10038_v44 }
 0x552   : > { %5080 = vrot.lane.b32.xlu0 %v10036_v47, %s6949_s25  ;;  %v10044_v18 = vpop.permute.xlu0 %4848 }
 0x553   : > { %11564 = vst [vmem:[#allocation27_spill] sm:$0xff] %v10044_v18 }
 0x554   : > { %5086 = vrot.lane.b32.xlu1 %v10042_v39, %s6949_s25  ;;  %v10050_v29 = vpop.permute.xlu1 %4854 }
 0x555   : > { %11565 = vst [vmem:[#allocation10_spill] sm:$0xff] %v10050_v29  ;;  %v10112_v29 = vld [vmem:[#allocation3 + $0xd8] sm:$0xff] }
 0x556   : > { %5084 = vrot.lane.b32.xlu0 %v10048_v19, %s6949_s25  ;;  %v10056_v14 = vpop.permute.xlu0 %4852 }
 0x557   : > { %11566 = vst [vmem:[#allocation57_spill] sm:$0xff] %v10056_v14 }
 0x558   : > { %5090 = vrot.lane.b32.xlu1 %v10054_v9, %s6949_s25  ;;  %v10066_v28 = vpop.permute.xlu1 %4858 }
 0x559   : > { %11567 = vst [vmem:[#allocation51_spill] sm:$0xff] %v10066_v28 }
 0x55a   : > { %5088 = vrot.lane.b32.xlu0 %v10060_v27, %s6949_s25  ;;  %v10072_v15 = vpop.permute.xlu0 %4856 }
 0x55b   : > { %11568 = vst [vmem:[#allocation34_spill] sm:$0xff] %v10072_v15 }
 0x55c   : > { %5094 = vrot.lane.b32.xlu1 %v10064_v23, %s6949_s25 }
 0x55d   : > { %v10082_v7 = vpop.permute.xlu1 %4862 }
 0x55e   : > { %5092 = vrot.lane.b32.xlu0 %v10070_v57, %s6949_s25  ;;  %11569 = vst [vmem:[#allocation32_spill] sm:$0xff] %v10082_v7  ;;  %v10102_v7 = vld [vmem:[#allocation3 + $0xc0] sm:$0xff] }
 0x55f   : > { %v10088_v37 = vpop.permute.xlu0 %4860 }
 0x560   : > { %5098 = vrot.lane.b32.xlu1 %v10076_v32, %s6949_s25  ;;  %11570 = vst [vmem:[#allocation16_spill] sm:$0xff] %v10088_v37  ;;  %v10108_v37 = vld [vmem:[#allocation3 + $0xe0] sm:$0xff] }
 0x561   : > { %v10098_v28 = vpop.permute.xlu1 %4866 }
 0x562   : > { %5096 = vrot.lane.b32.xlu0 %v10080_v10, %s6949_s25  ;;  %11572 = vst [vmem:[#allocation99_spill] sm:$0xff] %v10098_v28  ;;  %v10118_v28 = vld [vmem:[#allocation3 + $0xf8] sm:$0xff] }
 0x563   : > { %v10104_v15 = vpop.permute.xlu0 %4864  ;;  %11575 = vst [vmem:[#allocation100_spill] sm:$0xff] %v10118_v28 }
 0x564   : > { %5102 = vrot.lane.b32.xlu1 %v10086_v38, %s6949_s25  ;;  %11573 = vst [vmem:[#allocation154_spill] sm:$0xff] %v10104_v15  ;;  %v10124_v15 = vld [vmem:[#allocation3 + $0xf0] sm:$0xff] }
 0x565   : > { %v10114_v14 = vpop.permute.xlu1 %4870 }
 0x566   : > { %5100 = vrot.lane.b32.xlu0 %v10092_v26, %s6949_s25  ;;  %11574 = vst [vmem:[#allocation69_spill] sm:$0xff] %v10114_v14 }
 0x567   : > { %v10120_v44 = vpop.permute.xlu0 %4868 }
 0x568   : > { %5106 = vrot.lane.b32.xlu1 %v10096_v0, %s6949_s25  ;;  %11576 = vst [vmem:[#allocation33_spill] sm:$0xff] %v10120_v44 }
 0x56a   : > { %5104 = vrot.lane.b32.xlu0 %v10102_v7, %s6949_s25  ;;  %v10126_v18 = vpop.permute.xlu1 %4874 }
 0x56b   : > { %11577 = vst [vmem:[#allocation36_spill] sm:$0xff] %v10126_v18  ;;  %v4523_v18 = vld [vmem:[#allocation3 + $0x120] sm:$0xff] }
 0x56c   : > { %5110 = vrot.lane.b32.xlu1 %v10108_v37, %s6949_s25  ;;  %v10132_v14 = vpop.permute.xlu0 %4872 }
 0x56d   : > { %11579 = vst [vmem:[#allocation29_spill] sm:$0xff] %v10132_v14  ;;  %v4526_v14 = vld [vmem:[#allocation3 + $0x140] sm:$0xff] }
 0x56e   : > { %5108 = vrot.lane.b32.xlu0 %v10112_v29, %s6949_s25 }
 0x570   : > { %5114 = vrot.lane.b32.xlu1 %v10118_v28, %s6949_s25 }
 0x572   : > { %5112 = vrot.lane.b32.xlu0 %v10124_v15, %s6949_s25  ;;  %v10138_v44 = vpop.permute.xlu1 %4878 }
 0x573   : > { %11581 = vst [vmem:[#allocation66_spill] sm:$0xff] %v10138_v44 }
 0x574   : > { %5118 = vrot.lane.b32.xlu1 %v10130_v48, %s6949_s25  ;;  %v10142_v16 = vpop.permute.xlu0 %4876  ;;  %v4525_v48 = vld [vmem:[#allocation3 + $0x138] sm:$0xff] }
 0x575   : > { %11582 = vst [vmem:[#allocation68_spill] sm:$0xff] %v10142_v16 }
 0x576   : > { %5116 = vrot.lane.b32.xlu0 %v10136_v58, %s6949_s25 }
 0x578   : > { %5122 = vrot.lane.b32.xlu1 %v4524_v59, %s6949_s25  ;;  %v4527_v59 = vld [vmem:[#allocation3 + $0x150] sm:$0xff] }
 0x57a   : > { %5120 = vrot.lane.b32.xlu0 %v4523_v18, %s6949_s25  ;;  %v10146_v6 = vpop.permute.xlu1 %4882  ;;  %v6076_v18 = vld [vmem:[%s11052_s6 + $0x40] sm:$0xff] }
 0x57b   : > { %11583 = vst [vmem:[#allocation132_spill] sm:$0xff] %v10146_v6  ;;  %6798 = vmatprep.subr.mxu0 %v6076_v18  ;;  %v4529_v6 = vld [vmem:[#allocation3 + $0x168] sm:$0xff] }
 0x57c   : > { %5126 = vrot.lane.b32.xlu1 %v4526_v14, %s6949_s25  ;;  %v10149_v34 = vpop.permute.xlu0 %4880  ;;  %6799 = vmatpush3.msra.mxu0 %v6076_v18  ;;  %v6073_v18 = vld [vmem:[%s11052_s6 + $0x28] sm:$0xff] }
 0x57d   : > { %11584 = vst [vmem:[#allocation155_spill] sm:$0xff] %v10149_v34  ;;  %v4530_v34 = vld [vmem:[#allocation3 + $0x170] sm:$0xff] }
 0x57e   : > { %5124 = vrot.lane.b32.xlu0 %v4525_v48, %s6949_s25  ;;  %v10152_v44 = vpop.permute.xlu1 %4950  ;;  %v6075_v48 = vld [vmem:[%s11052_s6 + $0x38] sm:$0xff] }
 0x57f   : > { %6800 = vmatprep.subr.mxu0 %v6075_v48 }
 0x580   : > { %5130 = vrot.lane.b32.xlu1 %v4528_v25, %s6949_s25  ;;  %v10155_v16 = vpop.permute.xlu0 %4948  ;;  %6801 = vmatpush3.msra.mxu0 %v6075_v48  ;;  %v4625_v48 = vld [vmem:[#allocation3 + $0x180] sm:$0xff] }
 0x582   : > { %5128 = vrot.lane.b32.xlu0 %v4527_v59, %s6949_s25  ;;  %v10161_v14 = vpop.permute.xlu1 %4954  ;;  %v6074_v59 = vld [vmem:[%s11052_s6 + $0x30] sm:$0xff] }
 0x583   : > { %6802 = vmatprep.subr.mxu0 %v6074_v59 }
 0x584   : > { %5134 = vrot.lane.b32.xlu1 %v4530_v34, %s6949_s25  ;;  %v10167_v25 = vpop.permute.xlu0 %4952  ;;  %6803 = vmatpush3.msra.mxu0 %v6074_v59  ;;  %v6071_v59 = vld [vmem:[%s11052_s6 + $0x18] sm:$0xff] }
 0x585   : > { %6804 = vmatprep.subr.mxu0 %v6073_v18 }
 0x586   : > { %5132 = vrot.lane.b32.xlu0 %v4529_v6, %s6949_s25  ;;  %v10173_v58 = vpop.permute.xlu1 %4958  ;;  %6805 = vmatpush3.msra.mxu0 %v6073_v18  ;;  %v6072_v6 = vld [vmem:[%s11052_s6 + $0x20] sm:$0xff] }
 0x587   : > { %6806 = vmatprep.subr.mxu0 %v6072_v6 }
 0x588   : > { %v10178_v34 = vpop.permute.xlu0 %4956  ;;  %5204 = vrot.lane.b32.xlu1 %v9804_v45, %s6950_s26  ;;  %6807 = vmatpush3.msra.mxu0 %v6072_v6  ;;  %v6070_v45 = vld [vmem:[%s11052_s6 + $0x10] sm:$0xff] }
 0x589   : > { %6808 = vmatprep.subr.mxu0 %v6071_v59 }
 0x58a   : > { %5136 = vrot.lane.b32.xlu0 %v4625_v48, %s6949_s25  ;;  %v10186_v12 = vpop.permute.xlu1 %4962  ;;  %6809 = vmatpush3.msra.mxu0 %v6071_v59  ;;  %v6069_v48 = vld [vmem:[%s11052_s6 + $0x8] sm:$0xff] }
 0x58b   : > { %6810 = vmatprep.subr.mxu0 %v6070_v45 }
 0x58c   : > { %v10191_v28 = vpop.permute.xlu0 %4960  ;;  %5332 = vrot.lane.b32.xlu1 %v9925_v11, %s6951_s29  ;;  %6811 = vmatpush3.msra.mxu0 %v6070_v45  ;;  %v6068_v11 = vld [vmem:[%s11052_s6] sm:$0xff] }
 0x58d   : > { %6812 = vmatprep.subr.mxu0 %v6069_v48 }
 0x58e   : > { %5206 = vrot.lane.b32.xlu0 %v9798_v36, %s6950_s26  ;;  %v10200_v18 = vpop.permute.xlu1 %4966  ;;  %6813 = vmatpush3.msra.mxu0 %v6069_v48 }
 0x58f   : > { %6814 = vmatprep.subr.mxu0 %v6068_v11 }
 0x590   : > { %v10205_v6 = vpop.permute.xlu0 %4964  ;;  %5460 = vrot.lane.b32.xlu1 %v10036_v47, %s6952_s30  ;;  %6815 = vmatpush3.msra.mxu0 %v6068_v11 }
 0x592   : > { %5334 = vrot.lane.b32.xlu0 %v9921_v46, %s6951_s29  ;;  %v10214_v36 = vpop.permute.xlu1 %4970 }
 0x593   : > { %11585 = vst [vmem:[#allocation101_spill] sm:$0xff] %v10214_v36 }
 0x594   : > { %v10216_v59 = vpop.permute.xlu0 %4968  ;;  %5588 = vrot.lane.b32.xlu1 %v9816_v13, %s6953_s9 }
 0x596   : > { %5462 = vrot.lane.b32.xlu0 %v10030_v50, %s6952_s30  ;;  %v10222_v45 = vpop.permute.xlu1 %4974 }
 0x597   : > { %11586 = vst [vmem:[#allocation58_spill] sm:$0xff] %v10222_v45 }
 0x598   : > { %v10224_v48 = vpop.permute.xlu0 %4972  ;;  %5590 = vrot.lane.b32.xlu1 %v9810_v3, %s6953_s9 }
 0x59a   : > { %5208 = vrot.lane.b32.xlu0 %v9816_v13, %s6950_s26  ;;  %v10230_v46 = vpop.permute.xlu1 %4978 }
 0x59b   : > { %11587 = vst [vmem:[#allocation156_spill] sm:$0xff] %v10230_v46 }
 0x59c   : > { %v10232_v11 = vpop.permute.xlu0 %4976  ;;  %5210 = vrot.lane.b32.xlu1 %v9810_v3, %s6950_s26 }
 0x59d   : > { %11588 = vst [vmem:[#allocation102_spill] sm:$0xff] %v10232_v11 }
 0x59e   : > { %5716 = vrot.lane.b32.xlu0 %v9933_v24, %s6954_s17  ;;  %v10238_v36 = vpop.permute.xlu1 %4982 }
 0x59f   : > { %11589 = vst [vmem:[#allocation110_spill] sm:$0xff] %v10238_v36 }
 0x5a0   : > { %v10240_v45 = vpop.permute.xlu0 %4980  ;;  %5718 = vrot.lane.b32.xlu1 %v9929_v43, %s6954_s17 }
 0x5a1   : > { %11590 = vst [vmem:[#allocation15_spill] sm:$0xff] %v10240_v45 }
 0x5a2   : > { %5336 = vrot.lane.b32.xlu0 %v9933_v24, %s6951_s29  ;;  %v10246_v13 = vpop.permute.xlu1 %4986 }
 0x5a3   : > { %11591 = vst [vmem:[#allocation111_spill] sm:$0xff] %v10246_v13 }
 0x5a4   : > { %v10248_v46 = vpop.permute.xlu0 %4984  ;;  %5464 = vrot.lane.b32.xlu1 %v10048_v19, %s6952_s30 }
 0x5a5   : > { %11592 = vst [vmem:[#allocation133_spill] sm:$0xff] %v10248_v46 }
 0x5a6   : > { %5338 = vrot.lane.b32.xlu0 %v9929_v43, %s6951_s29  ;;  %v10254_v3 = vpop.permute.xlu1 %4990 }
 0x5a7   : > { %11593 = vst [vmem:[#allocation55_spill] sm:$0xff] %v10254_v3 }
 0x5a8   : > { %v10256_v36 = vpop.permute.xlu0 %4988  ;;  %5592 = vrot.lane.b32.xlu1 %v9828_v30, %s6953_s9 }
 0x5a9   : > { %11594 = vst [vmem:[#allocation59_spill] sm:$0xff] %v10256_v36 }
 0x5aa   : > { %5466 = vrot.lane.b32.xlu0 %v10042_v39, %s6952_s30  ;;  %v10262_v24 = vpop.permute.xlu1 %4994 }
 0x5ab   : > { %11595 = vst [vmem:[#allocation134_spill] sm:$0xff] %v10262_v24 }
 0x5ac   : > { %v10264_v13 = vpop.permute.xlu0 %4992  ;;  %5594 = vrot.lane.b32.xlu1 %v9822_v33, %s6953_s9 }
 0x5ad   : > { %11596 = vst [vmem:[#allocation157_spill] sm:$0xff] %v10264_v13 }
 0x5ae   : > { %5212 = vrot.lane.b32.xlu0 %v9828_v30, %s6950_s26  ;;  %v10270_v43 = vpop.permute.xlu1 %4998 }
 0x5af   : > { %11597 = vst [vmem:[#allocation81_spill] sm:$0xff] %v10270_v43 }
 0x5b0   : > { %v10272_v3 = vpop.permute.xlu0 %4996  ;;  %5214 = vrot.lane.b32.xlu1 %v9822_v33, %s6950_s26 }
 0x5b1   : > { %11598 = vst [vmem:[#allocation103_spill] sm:$0xff] %v10272_v3 }
 0x5b2   : > { %5720 = vrot.lane.b32.xlu0 %v9941_v20, %s6954_s17  ;;  %v10278_v36 = vpop.permute.xlu1 %5002 }
 0x5b3   : > { %11599 = vst [vmem:[#allocation158_spill] sm:$0xff] %v10278_v36 }
 0x5b4   : > { %v10280_v24 = vpop.permute.xlu0 %5000  ;;  %5722 = vrot.lane.b32.xlu1 %v9937_v31, %s6954_s17 }
 0x5b5   : > { %11600 = vst [vmem:[#allocation30_spill] sm:$0xff] %v10280_v24 }
 0x5b6   : > { %5340 = vrot.lane.b32.xlu0 %v9941_v20, %s6951_s29  ;;  %v10286_v30 = vpop.permute.xlu1 %5006 }
 0x5b7   : > { %11601 = vst [vmem:[#allocation104_spill] sm:$0xff] %v10286_v30 }
 0x5b8   : > { %v10288_v43 = vpop.permute.xlu0 %5004  ;;  %5468 = vrot.lane.b32.xlu1 %v10060_v27, %s6952_s30 }
 0x5b9   : > { %11602 = vst [vmem:[#allocation112_spill] sm:$0xff] %v10288_v43 }
 0x5ba   : > { %5342 = vrot.lane.b32.xlu0 %v9937_v31, %s6951_s29  ;;  %v10294_v33 = vpop.permute.xlu1 %5010 }
 0x5bb   : > { %11603 = vst [vmem:[#allocation13_spill] sm:$0xff] %v10294_v33 }
 0x5bc   : > { %v10296_v36 = vpop.permute.xlu0 %5008  ;;  %5596 = vrot.lane.b32.xlu1 %v9840_v4, %s6953_s9 }
 0x5bd   : > { %11604 = vst [vmem:[#allocation60_spill] sm:$0xff] %v10296_v36 }
 0x5be   : > { %5470 = vrot.lane.b32.xlu0 %v10054_v9, %s6952_s30  ;;  %v10302_v20 = vpop.permute.xlu1 %5078 }
 0x5c0   : > { %v10304_v30 = vpop.permute.xlu0 %5076  ;;  %5598 = vrot.lane.b32.xlu1 %v9834_v5, %s6953_s9 }
 0x5c2   : > { %5216 = vrot.lane.b32.xlu0 %v9840_v4, %s6950_s26  ;;  %v10310_v31 = vpop.permute.xlu1 %5082 }
 0x5c4   : > { %v10312_v33 = vpop.permute.xlu0 %5080  ;;  %5218 = vrot.lane.b32.xlu1 %v9834_v5, %s6950_s26 }
 0x5c6   : > { %5724 = vrot.lane.b32.xlu0 %v9949_v2, %s6954_s17  ;;  %v10318_v36 = vpop.permute.xlu1 %5086 }
 0x5c8   : > { %v10320_v43 = vpop.permute.xlu0 %5084  ;;  %5726 = vrot.lane.b32.xlu1 %v9945_v62, %s6954_s17 }
 0x5ca   : > { %5344 = vrot.lane.b32.xlu0 %v9949_v2, %s6951_s29  ;;  %v10326_v4 = vpop.permute.xlu1 %5090 }
 0x5cc   : > { %v10328_v24 = vpop.permute.xlu0 %5088  ;;  %5472 = vrot.lane.b32.xlu1 %v10070_v57, %s6952_s30 }
 0x5ce   : > { %5346 = vrot.lane.b32.xlu0 %v9945_v62, %s6951_s29  ;;  %v10334_v5 = vpop.permute.xlu1 %5094 }
 0x5d0   : > { %v10336_v3 = vpop.permute.xlu0 %5092  ;;  %5600 = vrot.lane.b32.xlu1 %v9852_v22, %s6953_s9 }
 0x5d2   : > { %5474 = vrot.lane.b32.xlu0 %v10064_v23, %s6952_s30  ;;  %v10342_v2 = vpop.permute.xlu1 %5098 }
 0x5d4   : > { %v10344_v13 = vpop.permute.xlu0 %5096  ;;  %5602 = vrot.lane.b32.xlu1 %v9846_v54, %s6953_s9 }
 0x5d6   : > { %5220 = vrot.lane.b32.xlu0 %v9852_v22, %s6950_s26  ;;  %v10350_v62 = vpop.permute.xlu1 %5102 }
 0x5d7   : > { %11605 = vst [vmem:[#allocation113_spill] sm:$0xff] %v10350_v62 }
 0x5d8   : > { %v10352_v46 = vpop.permute.xlu0 %5100  ;;  %5222 = vrot.lane.b32.xlu1 %v9846_v54, %s6950_s26 }
 0x5d9   : > { %11606 = vst [vmem:[#allocation135_spill] sm:$0xff] %v10352_v46  ;;  %v4736_v46 = vld [vmem:[#allocation3 + $0xc1] sm:$0xff] }
 0x5da   : > { %5728 = vrot.lane.b32.xlu0 %v9957_v56, %s6954_s17  ;;  %v10358_v45 = vpop.permute.xlu1 %5106 }
 0x5db   : > { %11607 = vst [vmem:[#allocation63_spill] sm:$0xff] %v10358_v45 }
 0x5dc   : > { %v10360_v11 = vpop.permute.xlu0 %5104  ;;  %5730 = vrot.lane.b32.xlu1 %v9953_v17, %s6954_s17 }
 0x5dd   : > { %11608 = vst [vmem:[#allocation82_spill] sm:$0xff] %v10360_v11 }
 0x5de   : > { %5348 = vrot.lane.b32.xlu0 %v9957_v56, %s6951_s29  ;;  %v10366_v22 = vpop.permute.xlu1 %5110 }
 0x5df   : > { %11609 = vst [vmem:[#allocation136_spill] sm:$0xff] %v10366_v22 }
 0x5e0   : > { %v10368_v62 = vpop.permute.xlu0 %5108  ;;  %5476 = vrot.lane.b32.xlu1 %v10080_v10, %s6952_s30 }
 0x5e1   : > { %11610 = vst [vmem:[#allocation159_spill] sm:$0xff] %v10368_v62 }
 0x5e2   : > { %5350 = vrot.lane.b32.xlu0 %v9953_v17, %s6951_s29  ;;  %v10374_v54 = vpop.permute.xlu1 %5114 }
 0x5e3   : > { %11611 = vst [vmem:[#allocation83_spill] sm:$0xff] %v10374_v54  ;;  %v4638_v54 = vld [vmem:[#allocation3 + $0x99] sm:$0xff] }
 0x5e4   : > { %v10376_v45 = vpop.permute.xlu0 %5112  ;;  %5604 = vrot.lane.b32.xlu1 %v9864_v49, %s6953_s9 }
 0x5e5   : > { %11612 = vst [vmem:[#allocation105_spill] sm:$0xff] %v10376_v45 }
 0x5e6   : > { %5478 = vrot.lane.b32.xlu0 %v10076_v32, %s6952_s30  ;;  %v10382_v56 = vpop.permute.xlu1 %5118 }
 0x5e7   : > { %11613 = vst [vmem:[#allocation160_spill] sm:$0xff] %v10382_v56 }
 0x5e8   : > { %v10384_v22 = vpop.permute.xlu0 %5116  ;;  %5606 = vrot.lane.b32.xlu1 %v9858_v53, %s6953_s9 }
 0x5e9   : > { %11614 = vst [vmem:[#allocation61_spill] sm:$0xff] %v10384_v22 }
 0x5ea   : > { %5224 = vrot.lane.b32.xlu0 %v9864_v49, %s6950_s26  ;;  %v10390_v17 = vpop.permute.xlu1 %5122 }
 0x5eb   : > { %11615 = vst [vmem:[#allocation106_spill] sm:$0xff] %v10390_v17 }
 0x5ec   : > { %v10392_v45 = vpop.permute.xlu0 %5120  ;;  %5226 = vrot.lane.b32.xlu1 %v4638_v54, %s6950_s26 }
 0x5ed   : > { %11616 = vst [vmem:[#allocation114_spill] sm:$0xff] %v10392_v45  ;;  %v4499_v45 = vld [vmem:[#allocation3] sm:$0xff] }
 0x5ee   : > { %5732 = vrot.lane.b32.xlu0 %v9965_v41, %s6954_s17  ;;  %v10397_v62 = vpop.permute.xlu1 %5126 }
 0x5ef   : > { %11617 = vst [vmem:[#allocation6_spill] sm:$0xff] %v10397_v62  ;;  %v4734_v62 = vld [vmem:[#allocation3 + $0xa9] sm:$0xff] }
 0x5f0   : > { %v10399_v56 = vpop.permute.xlu0 %5124  ;;  %5734 = vrot.lane.b32.xlu1 %v9961_v35, %s6954_s17 }
 0x5f1   : > { %11618 = vst [vmem:[#allocation62_spill] sm:$0xff] %v10399_v56 }
 0x5f2   : > { %5352 = vrot.lane.b32.xlu0 %v9965_v41, %s6951_s29  ;;  %v10405_v53 = vpop.permute.xlu1 %5130 }
 0x5f3   : > { %11619 = vst [vmem:[#allocation115_spill] sm:$0xff] %v10405_v53  ;;  %v4735_v53 = vld [vmem:[#allocation3 + $0xb1] sm:$0xff] }
 0x5f4   : > { %v10407_v49 = vpop.permute.xlu0 %5128  ;;  %5480 = vrot.lane.b32.xlu1 %v10092_v26, %s6952_s30 }
 0x5f5   : > { %11620 = vst [vmem:[#allocation137_spill] sm:$0xff] %v10407_v49 }
 0x5f6   : > { %5354 = vrot.lane.b32.xlu0 %v9961_v35, %s6951_s29  ;;  %v10413_v54 = vpop.permute.xlu1 %5134 }
 0x5f7   : > { %11621 = vst [vmem:[#allocation37_spill] sm:$0xff] %v10413_v54 }
 0x5f8   : > { %v10415_v56 = vpop.permute.xlu0 %5132  ;;  %5608 = vrot.lane.b32.xlu1 %v4734_v62, %s6953_s9 }
 0x5f9   : > { %11622 = vst [vmem:[#allocation84_spill] sm:$0xff] %v10415_v56 }
 0x5fa   : > { %5482 = vrot.lane.b32.xlu0 %v10086_v38, %s6952_s30  ;;  %v5205_v41 = vpop.permute.xlu1 %5204 }
 0x5fc   : > { %v10420_v17 = vpop.permute.xlu0 %5136  ;;  %5610 = vrot.lane.b32.xlu1 %v4735_v53, %s6953_s9 }
 0x5fd   : > { %11623 = vst [vmem:[#allocation138_spill] sm:$0xff] %v10420_v17  ;;  %v4500_v17 = vld [vmem:[#allocation3 + $0x8] sm:$0xff] }
 0x5fe   : > { %5228 = vrot.lane.b32.xlu0 %v4734_v62, %s6950_s26  ;;  %v5333_v49 = vpop.permute.xlu1 %5332  ;;  %v5813_v62 = vsel %vm342_vm0, %v4500_v17, %v9984_v60 }
 0x600   : > { %v5207_v35 = vpop.permute.xlu0 %5206  ;;  %5230 = vrot.lane.b32.xlu1 %v4735_v53, %s6950_s26  ;;  %v5812_v53 = vsel %vm342_vm0, %v4499_v45, %v9987_v61 }
 0x601   : > { %v5844_v26 = vsel %vm3843_vm4, %v5812_v53, %v10155_v16 }
 0x602   : > { %5736 = vrot.lane.b32.xlu0 %v9973_v21, %s6954_s17  ;;  %v5461_v54 = vpop.permute.xlu1 %5460  ;;  %v5876_v60 = vsel %vm3876_vm5, %v5844_v26, %v10304_v30  ;;  %v4737_v26 = vld [vmem:[#allocation3 + $0xc9] sm:$0xff] }
 0x603   : > { %v5908_v61 = vsel %vm3909_vm6, %v5876_v60, %v5205_v41  ;;  %v5815_v60 = vsel %vm342_vm0, %v10018_v55, %v9991_v42 }
 0x604   : > { %v5335_v56 = vpop.permute.xlu0 %5334  ;;  %5738 = vrot.lane.b32.xlu1 %v9969_v63, %s6954_s17  ;;  %v5940_v45 = vsel %vm3942_vm7, %v5908_v61, %v5333_v49 }
 0x606   : > { %5356 = vrot.lane.b32.xlu0 %v9973_v21, %s6951_s29  ;;  %v5589_v38 = vpop.permute.xlu1 %5588  ;;  %v5845_v21 = vsel %vm3843_vm4, %v5813_v62, %v10152_v44 }
 0x608   : > { %v5463_v22 = vpop.permute.xlu0 %5462  ;;  %5484 = vrot.lane.b32.xlu1 %v10102_v7, %s6952_s30  ;;  %v5877_v7 = vsel %vm3876_vm5, %v5845_v21, %v10302_v20  ;;  %v5972_v20 = vsel %vm3975_vm8, %v5940_v45, %v5461_v54  ;;  %v5814_v21 = vsel %vm342_vm0, %v10024_v51, %v9994_v1  ;;  %v5847_v1 = vsel %vm3843_vm4, %v5815_v60, %v10161_v14  ;;  %v4738_v45 = vld [vmem:[#allocation3 + $0xd9] sm:$0xff] }
 0x609   : > { %v6004_v30 = vsel %vm4008_vm9, %v5972_v20, %v5589_v38  ;;  %v4739_v20 = vld [vmem:[#allocation3 + $0xe1] sm:$0xff] }
 0x60a   : > { %5358 = vrot.lane.b32.xlu0 %v9969_v63, %s6951_s29  ;;  %v5591_v11 = vpop.permute.xlu1 %5590  ;;  %v5909_v63 = vsel %vm3909_vm6, %v5877_v7, %v5207_v35  ;;  %v4769_v35 = vld [vmem:[#allocation3 + $0xca] sm:$0xff] }
 0x60b   : > { %v5941_v44 = vsel %vm3942_vm7, %v5909_v63, %v5335_v56 }
 0x60c   : > { %v5209_v17 = vpop.permute.xlu0 %5208  ;;  %5612 = vrot.lane.b32.xlu1 %v4736_v46, %s6953_s9  ;;  %v5973_v62 = vsel %vm3975_vm8, %v5941_v44, %v5463_v22 }
 0x60d   : > { %v6005_v49 = vsel %vm4008_vm9, %v5973_v62, %v5591_v11  ;;  %v4673_v11 = vld [vmem:[#allocation3 + $0xc2] sm:$0xff] }
 0x60e   : > { %5486 = vrot.lane.b32.xlu0 %v10096_v0, %s6952_s30  ;;  %v5211_v16 = vpop.permute.xlu1 %5210 }
 0x610   : > { %v5717_v53 = vpop.permute.xlu0 %5716  ;;  %5614 = vrot.lane.b32.xlu1 %v4737_v26, %s6953_s9 }
 0x611   : > { %v6036_v41 = vsel %vm4041_vm10, %v6004_v30, %v5717_v53 }
 0x612   : > { %5232 = vrot.lane.b32.xlu0 %v4736_v46, %s6950_s26  ;;  %6816 = vmatprep.mubr.msk.f32.mxu0 %vm4090_vm11, %v6036_v41  ;;  %v5719_v0 = vpop.permute.xlu1 %5718  ;;  %v4770_v41 = vld [vmem:[#allocation3 + $0xda] sm:$0xff] }
 0x613   : > { %v6037_v56 = vsel %vm4041_vm10, %v6005_v49, %v5719_v0  ;;  %v4771_v0 = vld [vmem:[#allocation3 + $0xe2] sm:$0xff] }
 0x614   : > { %v5337_v54 = vpop.permute.xlu0 %5336  ;;  %5234 = vrot.lane.b32.xlu1 %v4737_v26, %s6950_s26  ;;  %6817 = vmatmul.mubr.msk.f32.vlgmr.msra.gmra.mxu0 %vm4090_vm11, %v6037_v56 }
 0x616   : > { %5740 = vrot.lane.b32.xlu0 %v9978_v52, %s6954_s17  ;;  %v5465_v22 = vpop.permute.xlu1 %5464  ;;  %v5846_v52 = vsel %vm3843_vm4, %v5814_v21, %v10167_v25 }
 0x617   : > { %v5878_v61 = vsel %vm3876_vm5, %v5846_v52, %v10312_v33 }
 0x618   : > { %v5339_v38 = vpop.permute.xlu0 %5338  ;;  %5742 = vrot.lane.b32.xlu1 %v4769_v35, %s6954_s17  ;;  %v5910_v51 = vsel %vm3909_vm6, %v5878_v61, %v5209_v17 }
 0x619   : > { %v5942_v25 = vsel %vm3942_vm7, %v5910_v51, %v5337_v54 }
 0x61a   : > { %5360 = vrot.lane.b32.xlu0 %v4673_v11, %s6951_s29  ;;  %v5593_v46 = vpop.permute.xlu1 %5592  ;;  %v5974_v14 = vsel %vm3975_vm8, %v5942_v25, %v5465_v22  ;;  %v5816_v22 = vsel %vm342_vm0, %v10036_v47, %v10000_v40  ;;  %v5817_v11 = vsel %vm342_vm0, %v10030_v50, %v9997_v8 }
 0x61b   : > { %v5849_v40 = vsel %vm3843_vm4, %v5817_v11, %v10173_v58  ;;  %v4743_v11 = vld [vmem:[#allocation3 + $0x111] sm:$0xff] }
 0x61c   : > { %v5467_v7 = vpop.permute.xlu0 %5466  ;;  %5488 = vrot.lane.b32.xlu1 %v10112_v29, %s6952_s30  ;;  %v5879_v29 = vsel %vm3876_vm5, %v5847_v1, %v10310_v31  ;;  %v6006_v31 = vsel %vm4008_vm9, %v5974_v14, %v5593_v46 }
 0x61d   : > { %v5911_v42 = vsel %vm3909_vm6, %v5879_v29, %v5211_v16 }
 0x61e   : > { %5362 = vrot.lane.b32.xlu0 %v4769_v35, %s6951_s29  ;;  %v5595_v63 = vpop.permute.xlu1 %5594  ;;  %v5943_v55 = vsel %vm3942_vm7, %v5911_v42, %v5339_v38  ;;  %v5848_v38 = vsel %vm3843_vm4, %v5816_v22, %v10178_v34  ;;  %v4772_v42 = vld [vmem:[#allocation3 + $0xf2] sm:$0xff] }
 0x61f   : > { %v5975_v17 = vsel %vm3975_vm8, %v5943_v55, %v5467_v7  ;;  %v5880_v46 = vsel %vm3876_vm5, %v5848_v38, %v10320_v43  ;;  %v4740_v7 = vld [vmem:[#allocation3 + $0xf1] sm:$0xff] }
 0x620   : > { %v5213_v44 = vpop.permute.xlu0 %5212  ;;  %5616 = vrot.lane.b32.xlu1 %v4738_v45, %s6953_s9  ;;  %v6007_v16 = vsel %vm4008_vm9, %v5975_v17, %v5595_v63  ;;  %v11624_v43 = vld [vmem:[#allocation100_spill] sm:$0xff]  ;;  %v4741_v63 = vld [vmem:[#allocation3 + $0xf9] sm:$0xff] }
 0x621   : > { %v5912_v47 = vsel %vm3909_vm6, %v5880_v46, %v5213_v44  ;;  %v11628_v22 = vld [vmem:[#allocation64_spill] sm:$0xff] }
 0x622   : > { %5490 = vrot.lane.b32.xlu0 %v10108_v37, %s6952_s30  ;;  %v5215_v33 = vpop.permute.xlu1 %5214 }
 0x624   : > { %v5721_v62 = vpop.permute.xlu0 %5720  ;;  %5618 = vrot.lane.b32.xlu1 %v4739_v20, %s6953_s9 }
 0x625   : > { %v6038_v26 = vsel %vm4041_vm10, %v6006_v31, %v5721_v62 }
 0x626   : > { %5236 = vrot.lane.b32.xlu0 %v4738_v45, %s6950_s26  ;;  %6819 = vmatprep.mubr.msk.f32.mxu0 %vm4090_vm11, %v6038_v26  ;;  %v5723_v37 = vpop.permute.xlu1 %5722  ;;  %v11626_v26 = vld [vmem:[#allocation131_spill] sm:$0xff] }
 0x627   : > { %v6039_v30 = vsel %vm4041_vm10, %v6007_v16, %v5723_v37  ;;  %v11627_v37 = vld [vmem:[#allocation39_spill] sm:$0xff] }
 0x628   : > { %v5341_v53 = vpop.permute.xlu0 %5340  ;;  %5238 = vrot.lane.b32.xlu1 %v4739_v20, %s6950_s26  ;;  %6820 = vmatmul.mubr.msk.f32.gmra.mxu0 %vm4090_vm11, %v6039_v30  ;;  %v11625_v20 = vld [vmem:[#allocation54_spill] sm:$0xff]  ;;  %v5819_v30 = vsel %vm342_vm0, %v10042_v39, %v11627_v37 }
 0x629   : > { %v5944_v34 = vsel %vm3942_vm7, %v5912_v47, %v5341_v53  ;;  %v5818_v31 = vsel %vm342_vm0, %v10048_v19, %v11625_v20  ;;  %v5851_v19 = vsel %vm3843_vm4, %v5819_v30, %v10186_v12  ;;  %v4745_v20 = vld [vmem:[#allocation3 + $0x129] sm:$0xff] }
 0x62a   : > { %5744 = vrot.lane.b32.xlu0 %v4770_v41, %s6954_s17  ;;  %v5469_v49 = vpop.permute.xlu1 %5468  ;;  %v5850_v16 = vsel %vm3843_vm4, %v5818_v31, %v10191_v28 }
 0x62b   : > { %v5976_v58 = vsel %vm3975_vm8, %v5944_v34, %v5469_v49  ;;  %v5882_v53 = vsel %vm3876_vm5, %v5850_v16, %v10328_v24  ;;  %v4774_v34 = vld [vmem:[#allocation3 + $0x10a] sm:$0xff] }
 0x62c   : > { %v5343_v56 = vpop.permute.xlu0 %5342  ;;  %5746 = vrot.lane.b32.xlu1 %v4771_v0, %s6954_s17 }
 0x62e   : > { %5364 = vrot.lane.b32.xlu0 %v4770_v41, %s6951_s29  ;;  %v5597_v54 = vpop.permute.xlu1 %5596 }
 0x630   : > { %v5471_v35 = vpop.permute.xlu0 %5470  ;;  %5492 = vrot.lane.b32.xlu1 %v10124_v15, %s6952_s30  ;;  %v5881_v15 = vsel %vm3876_vm5, %v5849_v40, %v10318_v36  ;;  %v6008_v36 = vsel %vm4008_vm9, %v5976_v58, %v5597_v54  ;;  %v11629_v58 = vld [vmem:[#allocation23_spill] sm:$0xff] }
 0x631   : > { %v5913_v8 = vsel %vm3909_vm6, %v5881_v15, %v5215_v33  ;;  %v4773_v33 = vld [vmem:[#allocation3 + $0xfa] sm:$0xff] }
 0x632   : > { %5366 = vrot.lane.b32.xlu0 %v4771_v0, %s6951_s29  ;;  %v5599_v21 = vpop.permute.xlu1 %5598  ;;  %v5945_v50 = vsel %vm3942_vm7, %v5913_v8, %v5343_v56  ;;  %v4742_v0 = vld [vmem:[#allocation3 + $0x109] sm:$0xff]  ;;  %v5883_v56 = vsel %vm3876_vm5, %v5851_v19, %v10326_v4  ;;  %v4775_v8 = vld [vmem:[#allocation3 + $0x112] sm:$0xff] }
 0x633   : > { %v5977_v61 = vsel %vm3975_vm8, %v5945_v50, %v5471_v35  ;;  %v4777_v19 = vld [vmem:[#allocation3 + $0x12a] sm:$0xff] }
 0x634   : > { %v5217_v52 = vpop.permute.xlu0 %5216  ;;  %5620 = vrot.lane.b32.xlu1 %v4740_v7, %s6953_s9  ;;  %v6009_v45 = vsel %vm4008_vm9, %v5977_v61, %v5599_v21  ;;  %v5820_v61 = vsel %vm342_vm0, %v10060_v27, %v11629_v58 }
 0x635   : > { %v5914_v49 = vsel %vm3909_vm6, %v5882_v53, %v5217_v52  ;;  %v4776_v53 = vld [vmem:[#allocation3 + $0x122] sm:$0xff] }
 0x636   : > { %5494 = vrot.lane.b32.xlu0 %v11624_v43, %s6952_s30  ;;  %v5219_v60 = vpop.permute.xlu1 %5218 }
 0x637   : > { %v5915_v39 = vsel %vm3909_vm6, %v5883_v56, %v5219_v60  ;;  %v4712_v60 = vld [vmem:[#allocation3 + $0x120] sm:$0xff]  ;;  %v4714_v56 = vld [vmem:[#allocation3 + $0x138] sm:$0xff] }
 0x638   : > { %v5725_v1 = vpop.permute.xlu0 %5724  ;;  %5622 = vrot.lane.b32.xlu1 %v4741_v63, %s6953_s9 }
 0x639   : > { %v6040_v51 = vsel %vm4041_vm10, %v6008_v36, %v5725_v1  ;;  %v5852_v36 = vsel %vm3843_vm4, %v5820_v61, %v10205_v6  ;;  %v11630_v1 = vld [vmem:[#allocation24_spill] sm:$0xff] }
 0x63a   : > { %5240 = vrot.lane.b32.xlu0 %v4740_v7, %s6950_s26  ;;  %6822 = vmatprep.mubr.msk.f32.mxu0 %vm4090_vm11, %v6040_v51  ;;  %v5727_v29 = vpop.permute.xlu1 %5726  ;;  %v5821_v51 = vsel %vm342_vm0, %v10054_v9, %v11630_v1  ;;  %v4779_v1 = vld [vmem:[#allocation3 + $0x142] sm:$0xff] }
 0x63b   : > { %v6041_v25 = vsel %vm4041_vm10, %v6009_v45, %v5727_v29  ;;  %v5884_v45 = vsel %vm3876_vm5, %v5852_v36, %v10336_v3  ;;  %v4713_v3 = vld [vmem:[#allocation3 + $0x128] sm:$0xff] }
 0x63c   : > { %v5345_v44 = vpop.permute.xlu0 %5344  ;;  %5242 = vrot.lane.b32.xlu1 %v4741_v63, %s6950_s26  ;;  %6823 = vmatmul.mubr.msk.f32.gmra.mxu0 %vm4090_vm11, %v6041_v25  ;;  %v5853_v25 = vsel %vm3843_vm4, %v5821_v51, %v10200_v18 }
 0x63d   : > { %v5946_v28 = vsel %vm3942_vm7, %v5914_v49, %v5345_v44  ;;  %v4744_v44 = vld [vmem:[#allocation3 + $0x121] sm:$0xff] }
 0x63e   : > { %5748 = vrot.lane.b32.xlu0 %v4772_v42, %s6954_s17  ;;  %v5473_v55 = vpop.permute.xlu1 %5472 }
 0x63f   : > { %v5978_v12 = vsel %vm3975_vm8, %v5946_v28, %v5473_v55  ;;  %v11631_v28 = vld [vmem:[#allocation47_spill] sm:$0xff] }
 0x640   : > { %v5347_v14 = vpop.permute.xlu0 %5346  ;;  %5750 = vrot.lane.b32.xlu1 %v4773_v33, %s6954_s17 }
 0x641   : > { %v5947_v24 = vsel %vm3942_vm7, %v5915_v39, %v5347_v14 }
 0x642   : > { %5368 = vrot.lane.b32.xlu0 %v4772_v42, %s6951_s29  ;;  %v5601_v17 = vpop.permute.xlu1 %5600  ;;  %v5885_v42 = vsel %vm3876_vm5, %v5853_v25, %v10334_v5  ;;  %v11634_v25 = vld [vmem:[#allocation40_spill] sm:$0xff] }
 0x643   : > { %v6010_v4 = vsel %vm4008_vm9, %v5978_v12, %v5601_v17 }
 0x644   : > { %v5475_v62 = vpop.permute.xlu0 %5474  ;;  %5496 = vrot.lane.b32.xlu1 %v11626_v26, %s6952_s30 }
 0x645   : > { %v5979_v38 = vsel %vm3975_vm8, %v5947_v24, %v5475_v62 }
 0x646   : > { %5370 = vrot.lane.b32.xlu0 %v4773_v33, %s6951_s29  ;;  %v5603_v41 = vpop.permute.xlu1 %5602 }
 0x647   : > { %v6011_v40 = vsel %vm4008_vm9, %v5979_v38, %v5603_v41 }
 0x648   : > { %v5221_v54 = vpop.permute.xlu0 %5220  ;;  %5624 = vrot.lane.b32.xlu1 %v4742_v0, %s6953_s9 }
 0x649   : > { %v5916_v27 = vsel %vm3909_vm6, %v5884_v45, %v5221_v54  ;;  %v5822_v54 = vsel %vm342_vm0, %v10070_v57, %v11631_v28 }
 0x64a   : > { %5498 = vrot.lane.b32.xlu0 %v11628_v22, %s6952_s30  ;;  %v5223_v35 = vpop.permute.xlu1 %5222  ;;  %v5854_v24 = vsel %vm3843_vm4, %v5822_v54, %v10216_v59  ;;  %v11632_v22 = vld [vmem:[#allocation26_spill] sm:$0xff] }
 0x64b   : > { %v5917_v9 = vsel %vm3909_vm6, %v5885_v42, %v5223_v35  ;;  %v5823_v35 = vsel %vm342_vm0, %v10064_v23, %v11632_v22  ;;  %v5886_v12 = vsel %vm3876_vm5, %v5854_v24, %v10344_v13  ;;  %v4715_v13 = vld [vmem:[#allocation3 + $0x140] sm:$0xff] }
 0x64c   : > { %v5729_v46 = vpop.permute.xlu0 %5728  ;;  %5626 = vrot.lane.b32.xlu1 %v4743_v11, %s6953_s9  ;;  %v4781_v22 = vld [vmem:[#allocation3 + $0x15a] sm:$0xff] }
 0x64d   : > { %v6042_v21 = vsel %vm4041_vm10, %v6010_v4, %v5729_v46  ;;  %v4746_v46 = vld [vmem:[#allocation3 + $0x139] sm:$0xff] }
 0x64e   : > { %5244 = vrot.lane.b32.xlu0 %v4742_v0, %s6950_s26  ;;  %6825 = vmatprep.mubr.msk.f32.mxu0 %vm4090_vm11, %v6042_v21  ;;  %v5731_v47 = vpop.permute.xlu1 %5730 }
 0x64f   : > { %v6043_v7 = vsel %vm4041_vm10, %v6011_v40, %v5731_v47 }
 0x650   : > { %v5349_v15 = vpop.permute.xlu0 %5348  ;;  %5246 = vrot.lane.b32.xlu1 %v4743_v11, %s6950_s26  ;;  %6826 = vmatmul.mubr.msk.f32.gmra.mxu0 %vm4090_vm11, %v6043_v7  ;;  %v11633_v11 = vld [vmem:[#allocation101_spill] sm:$0xff] }
 0x651   : > { %v5948_v6 = vsel %vm3942_vm7, %v5916_v27, %v5349_v15  ;;  %v5855_v4 = vsel %vm3843_vm4, %v5823_v35, %v11633_v11  ;;  %v5824_v27 = vsel %vm342_vm0, %v10080_v10, %v11634_v25  ;;  %v11639_v11 = vld [vmem:[#allocation27_spill] sm:$0xff] }
 0x652   : > { %5752 = vrot.lane.b32.xlu0 %v4774_v34, %s6954_s17  ;;  %v5477_v52 = vpop.permute.xlu1 %5476  ;;  %v5887_v21 = vsel %vm3876_vm5, %v5855_v4, %v10342_v2  ;;  %v5856_v42 = vsel %vm3843_vm4, %v5824_v27, %v10224_v48  ;;  %v11640_v4 = vld [vmem:[#allocation65_spill] sm:$0xff] }
 0x653   : > { %v5980_v18 = vsel %vm3975_vm8, %v5948_v6, %v5477_v52  ;;  %v4747_v52 = vld [vmem:[#allocation3 + $0x141] sm:$0xff] }
 0x654   : > { %v5351_v50 = vpop.permute.xlu0 %5350  ;;  %5754 = vrot.lane.b32.xlu1 %v4775_v8, %s6954_s17  ;;  %v11635_v6 = vld [vmem:[#allocation42_spill] sm:$0xff] }
 0x655   : > { %v5949_v33 = vsel %vm3942_vm7, %v5917_v9, %v5351_v50  ;;  %v11636_v9 = vld [vmem:[#allocation135_spill] sm:$0xff] }
 0x656   : > { %5372 = vrot.lane.b32.xlu0 %v4774_v34, %s6951_s29  ;;  %v5605_v43 = vpop.permute.xlu1 %5604 }
 0x657   : > { %v6012_v5 = vsel %vm4008_vm9, %v5980_v18, %v5605_v43 }
 0x658   : > { %v5479_v63 = vpop.permute.xlu0 %5478  ;;  %5500 = vrot.lane.b32.xlu1 %v4712_v60, %s6952_s30 }
 0x659   : > { %v5981_v17 = vsel %vm3975_vm8, %v5949_v33, %v5479_v63  ;;  %v4778_v63 = vld [vmem:[#allocation3 + $0x13a] sm:$0xff] }
 0x65a   : > { %5374 = vrot.lane.b32.xlu0 %v4775_v8, %s6951_s29  ;;  %v5607_v29 = vpop.permute.xlu1 %5606 }
 0x65b   : > { %v6013_v26 = vsel %vm4008_vm9, %v5981_v17, %v5607_v29  ;;  %v4716_v29 = vld [vmem:[#allocation3 + $0x150] sm:$0xff] }
 0x65c   : > { %v5225_v55 = vpop.permute.xlu0 %5224  ;;  %5628 = vrot.lane.b32.xlu1 %v4744_v44, %s6953_s9  ;;  %v4748_v17 = vld [vmem:[#allocation3 + $0x151] sm:$0xff] }
 0x65d   : > { %v5918_v57 = vsel %vm3909_vm6, %v5886_v12, %v5225_v55  ;;  %v5825_v55 = vsel %vm342_vm0, %v10076_v32, %v11635_v6 }
 0x65e   : > { %5502 = vrot.lane.b32.xlu0 %v4713_v3, %s6952_s30  ;;  %v5227_v14 = vpop.permute.xlu1 %5226  ;;  %v5888_v3 = vsel %vm3876_vm5, %v5856_v42, %v11636_v9 }
 0x65f   : > { %v5919_v23 = vsel %vm3909_vm6, %v5887_v21, %v5227_v14  ;;  %v11637_v14 = vld [vmem:[#allocation58_spill] sm:$0xff] }
 0x660   : > { %v5733_v31 = vpop.permute.xlu0 %5732  ;;  %5630 = vrot.lane.b32.xlu1 %v4745_v20, %s6953_s9  ;;  %v5857_v18 = vsel %vm3843_vm4, %v5825_v55, %v11637_v14  ;;  %v11641_v21 = vld [vmem:[#allocation102_spill] sm:$0xff]  ;;  %v4783_v14 = vld [vmem:[#allocation3 + $0x172] sm:$0xff] }
 0x661   : > { %v6044_v62 = vsel %vm4041_vm10, %v6012_v5, %v5733_v31 }
 0x662   : > { %5248 = vrot.lane.b32.xlu0 %v4744_v44, %s6950_s26  ;;  %6828 = vmatprep.mubr.msk.f32.mxu0 %vm4090_vm11, %v6044_v62  ;;  %v5735_v16 = vpop.permute.xlu1 %5734  ;;  %v4717_v62 = vld [vmem:[#allocation3 + $0x158] sm:$0xff] }
 0x663   : > { %v6045_v37 = vsel %vm4041_vm10, %v6013_v26, %v5735_v16 }
 0x664   : > { %v5353_v30 = vpop.permute.xlu0 %5352  ;;  %5250 = vrot.lane.b32.xlu1 %v4745_v20, %s6950_s26  ;;  %6829 = vmatmul.mubr.msk.f32.gmra.mxu0 %vm4090_vm11, %v6045_v37  ;;  %v11638_v20 = vld [vmem:[#allocation113_spill] sm:$0xff] }
 0x665   : > { %v5950_v59 = vsel %vm3942_vm7, %v5918_v57, %v5353_v30  ;;  %v5889_v5 = vsel %vm3876_vm5, %v5857_v18, %v11638_v20  ;;  %v5826_v57 = vsel %vm342_vm0, %v11640_v4, %v11639_v11  ;;  %v6917_v20 = vld [vmem:[#allocation3 + $0xc0] sm:$0xff] }
 0x666   : > { %5756 = vrot.lane.b32.xlu0 %v4776_v53, %s6954_s17  ;;  %v5481_v41 = vpop.permute.xlu1 %5480 }
 0x667   : > { %v5982_v15 = vsel %vm3975_vm8, %v5950_v59, %v5481_v41  ;;  %v5858_v59 = vsel %vm3843_vm4, %v5826_v57, %v11641_v21 }
 0x668   : > { %v5355_v49 = vpop.permute.xlu0 %5354  ;;  %5758 = vrot.lane.b32.xlu1 %v4777_v19, %s6954_s17 }
 0x669   : > { %v5951_v47 = vsel %vm3942_vm7, %v5919_v23, %v5355_v49  ;;  %v11642_v23 = vld [vmem:[#allocation20_spill] sm:$0xff] }
 0x66a   : > { %5376 = vrot.lane.b32.xlu0 %v4776_v53, %s6951_s29  ;;  %v5609_v0 = vpop.permute.xlu1 %5608  ;;  %v4749_v53 = vld [vmem:[#allocation3 + $0x159] sm:$0xff] }
 0x66b   : > { %v6014_v2 = vsel %vm4008_vm9, %v5982_v15, %v5609_v0 }
 0x66c   : > { %v5483_v39 = vpop.permute.xlu0 %5482  ;;  %5504 = vrot.lane.b32.xlu1 %v4714_v56, %s6952_s30 }
 0x66d   : > { %v5983_v34 = vsel %vm3975_vm8, %v5951_v47, %v5483_v39  ;;  %v4780_v39 = vld [vmem:[#allocation3 + $0x152] sm:$0xff]  ;;  %v11643_v47 = vld [vmem:[#allocation82_spill] sm:$0xff] }
 0x66e   : > { %5378 = vrot.lane.b32.xlu0 %v4777_v19, %s6951_s29  ;;  %v5611_v38 = vpop.permute.xlu1 %5610 }
 0x66f   : > { %v6015_v43 = vsel %vm4008_vm9, %v5983_v34, %v5611_v38  ;;  %v4718_v38 = vld [vmem:[#allocation3 + $0x168] sm:$0xff]  ;;  %v11644_v34 = vld [vmem:[#allocation156_spill] sm:$0xff] }
 0x670   : > { %v5229_v40 = vpop.permute.xlu0 %5228  ;;  %5632 = vrot.lane.b32.xlu1 %v4746_v46, %s6953_s9 }
 0x671   : > { %v5920_v10 = vsel %vm3909_vm6, %v5888_v3, %v5229_v40  ;;  %v6916_v40 = vld [vmem:[#allocation3 + $0xb0] sm:$0xff] }
 0x672   : > { %5506 = vrot.lane.b32.xlu0 %v4715_v13, %s6952_s30  ;;  %v5231_v7 = vpop.permute.xlu1 %5230  ;;  %v5827_v13 = vsel %vm342_vm0, %v6916_v40, %v11642_v23  ;;  %v4782_v3 = vld [vmem:[#allocation3 + $0x16a] sm:$0xff] }
 0x673   : > { %v5921_v32 = vsel %vm3909_vm6, %v5889_v5, %v5231_v7  ;;  %v5890_v7 = vsel %vm3876_vm5, %v5858_v59, %v11643_v47  ;;  %v11646_v5 = vld [vmem:[#allocation57_spill] sm:$0xff] }
 0x674   : > { %v5737_v8 = vpop.permute.xlu0 %5736  ;;  %5634 = vrot.lane.b32.xlu1 %v4747_v52, %s6953_s9 }
 0x675   : > { %v6046_v50 = vsel %vm4041_vm10, %v6014_v2, %v5737_v8  ;;  %v4750_v8 = vld [vmem:[#allocation3 + $0x169] sm:$0xff] }
 0x676   : > { %5252 = vrot.lane.b32.xlu0 %v4746_v46, %s6950_s26  ;;  %6831 = vmatprep.mubr.msk.f32.mxu0 %vm4090_vm11, %v6046_v50  ;;  %v5739_v60 = vpop.permute.xlu1 %5738  ;;  %v11645_v50 = vld [vmem:[#allocation63_spill] sm:$0xff] }
 0x677   : > { %v6047_v58 = vsel %vm4041_vm10, %v6015_v43, %v5739_v60 }
 0x678   : > { %v5357_v61 = vpop.permute.xlu0 %5356  ;;  %5254 = vrot.lane.b32.xlu1 %v4747_v52, %s6950_s26  ;;  %6832 = vmatmul.mubr.msk.f32.gmra.mxu0 %vm4090_vm11, %v6047_v58  ;;  %v5859_v52 = vsel %vm3843_vm4, %v5827_v13, %v11644_v34  ;;  %v4784_v13 = vld [vmem:[#allocation3 + $0x182] sm:$0xff] }
 0x679   : > { %v5952_v48 = vsel %vm3942_vm7, %v5920_v10, %v5357_v61  ;;  %v5891_v43 = vsel %vm3876_vm5, %v5859_v52, %v11645_v50  ;;  %v11652_v50 = vld [vmem:[#allocation34_spill] sm:$0xff] }
 0x67a   : > { %5760 = vrot.lane.b32.xlu0 %v4778_v63, %s6954_s17  ;;  %v5485_v36 = vpop.permute.xlu1 %5484 }
 0x67b   : > { %v5984_v37 = vsel %vm3975_vm8, %v5952_v48, %v5485_v36  ;;  %v5828_v48 = vsel %vm342_vm0, %v6917_v20, %v11646_v5 }
 0x67c   : > { %v5359_v51 = vpop.permute.xlu0 %5358  ;;  %5762 = vrot.lane.b32.xlu1 %v4779_v1, %s6954_s17 }
 0x67d   : > { %v5953_v26 = vsel %vm3942_vm7, %v5921_v32, %v5359_v51  ;;  %v11647_v32 = vld [vmem:[#allocation15_spill] sm:$0xff] }
 0x67e   : > { %5380 = vrot.lane.b32.xlu0 %v4778_v63, %s6951_s29  ;;  %v5613_v45 = vpop.permute.xlu1 %5612  ;;  %v4719_v63 = vld [vmem:[#allocation3 + $0x170] sm:$0xff] }
 0x67f   : > { %v6016_v41 = vsel %vm4008_vm9, %v5984_v37, %v5613_v45 }
 0x680   : > { %v5487_v44 = vpop.permute.xlu0 %5486  ;;  %5508 = vrot.lane.b32.xlu1 %v4716_v29, %s6952_s30  ;;  %v4751_v29 = vld [vmem:[#allocation3 + $0x171] sm:$0xff] }
 0x681   : > { %v5985_v30 = vsel %vm3975_vm8, %v5953_v26, %v5487_v44  ;;  %v6918_v26 = vld [vmem:[#allocation3 + $0xc8] sm:$0xff] }
 0x682   : > { %5382 = vrot.lane.b32.xlu0 %v4779_v1, %s6951_s29  ;;  %v5615_v33 = vpop.permute.xlu1 %5614 }
 0x683   : > { %v6017_v0 = vsel %vm4008_vm9, %v5985_v30, %v5615_v33  ;;  %v11649_v30 = vld [vmem:[#allocation159_spill] sm:$0xff] }
 0x684   : > { %v5233_v31 = vpop.permute.xlu0 %5232  ;;  %5636 = vrot.lane.b32.xlu1 %v4748_v17, %s6953_s9 }
 0x685   : > { %v5922_v2 = vsel %vm3909_vm6, %v5890_v7, %v5233_v31  ;;  %v4753_v7 = vld [vmem:[#allocation3 + $0x189] sm:$0xff] }
 0x686   : > { %5510 = vrot.lane.b32.xlu0 %v4717_v62, %s6952_s30  ;;  %v5235_v16 = vpop.permute.xlu1 %5234  ;;  %v5860_v62 = vsel %vm3843_vm4, %v5828_v48, %v11647_v32  ;;  %v4754_v48 = vld [vmem:[#allocation3 + $0x199] sm:$0xff] }
 0x687   : > { %v5923_v61 = vsel %vm3909_vm6, %v5891_v43, %v5235_v16  ;;  %v11648_v16 = vld [vmem:[#allocation10_spill] sm:$0xff] }
 0x688   : > { %v5741_v19 = vpop.permute.xlu0 %5740  ;;  %5638 = vrot.lane.b32.xlu1 %v4749_v53, %s6953_s9  ;;  %v5829_v37 = vsel %vm342_vm0, %v6918_v26, %v11648_v16  ;;  %v4787_v26 = vld [vmem:[#allocation3 + $0x1a2] sm:$0xff] }
 0x689   : > { %v6048_v49 = vsel %vm4041_vm10, %v6016_v41, %v5741_v19  ;;  %v11650_v19 = vld [vmem:[#allocation110_spill] sm:$0xff] }
 0x68a   : > { %5256 = vrot.lane.b32.xlu0 %v4748_v17, %s6950_s26  ;;  %6834 = vmatprep.mubr.msk.f32.mxu0 %vm4090_vm11, %v6048_v49  ;;  %v5743_v56 = vpop.permute.xlu1 %5742  ;;  %v4720_v17 = vld [vmem:[#allocation3 + $0x180] sm:$0xff]  ;;  %v5861_v49 = vsel %vm3843_vm4, %v5829_v37, %v11650_v19 }
 0x68b   : > { %v6049_v28 = vsel %vm4041_vm10, %v6017_v0, %v5743_v56  ;;  %v4752_v56 = vld [vmem:[#allocation3 + $0x181] sm:$0xff] }
 0x68c   : > { %v5361_v54 = vpop.permute.xlu0 %5360  ;;  %5258 = vrot.lane.b32.xlu1 %v4749_v53, %s6950_s26  ;;  %6835 = vmatmul.mubr.msk.f32.gmra.mxu0 %vm4090_vm11, %v6049_v28  ;;  %v5892_v53 = vsel %vm3876_vm5, %v5860_v62, %v11649_v30  ;;  %v11651_v28 = vld [vmem:[#allocation136_spill] sm:$0xff] }
 0x68d   : > { %v5954_v60 = vsel %vm3942_vm7, %v5922_v2, %v5361_v54  ;;  %v5893_v54 = vsel %vm3876_vm5, %v5861_v49, %v11651_v28  ;;  %v4690_v2 = vld [vmem:[#allocation3 + $0x18a] sm:$0xff] }
 0x68e   : > { %5764 = vrot.lane.b32.xlu0 %v4780_v39, %s6954_s17  ;;  %v5489_v24 = vpop.permute.xlu1 %5488  ;;  %v11658_v28 = vld [vmem:[#allocation16_spill] sm:$0xff] }
 0x68f   : > { %v5986_v51 = vsel %vm3975_vm8, %v5954_v60, %v5489_v24 }
 0x690   : > { %v5363_v35 = vpop.permute.xlu0 %5362  ;;  %5766 = vrot.lane.b32.xlu1 %v4781_v22, %s6954_s17 }
 0x691   : > { %v5955_v36 = vsel %vm3942_vm7, %v5923_v61, %v5363_v35  ;;  %v4721_v35 = vld [vmem:[#allocation3 + $0x188] sm:$0xff] }
 0x692   : > { %5384 = vrot.lane.b32.xlu0 %v4780_v39, %s6951_s29  ;;  %v5617_v12 = vpop.permute.xlu1 %5616 }
 0x693   : > { %v6018_v25 = vsel %vm4008_vm9, %v5986_v51, %v5617_v12 }
 0x694   : > { %v5491_v46 = vpop.permute.xlu0 %5490  ;;  %5512 = vrot.lane.b32.xlu1 %v4718_v38, %s6952_s30 }
 0x695   : > { %v5987_v45 = vsel %vm3975_vm8, %v5955_v36, %v5491_v46  ;;  %v6920_v36 = vld [vmem:[#allocation3 + $0xe0] sm:$0xff] }
 0x696   : > { %5386 = vrot.lane.b32.xlu0 %v4781_v22, %s6951_s29  ;;  %v5619_v15 = vpop.permute.xlu1 %5618 }
 0x697   : > { %v6019_v42 = vsel %vm4008_vm9, %v5987_v45, %v5619_v15  ;;  %v11655_v45 = vld [vmem:[#allocation105_spill] sm:$0xff] }
 0x698   : > { %v5237_v58 = vpop.permute.xlu0 %5236  ;;  %5640 = vrot.lane.b32.xlu1 %v4750_v8, %s6953_s9 }
 0x699   : > { %v5924_v0 = vsel %vm3909_vm6, %v5892_v53, %v5237_v58  ;;  %v11653_v58 = vld [vmem:[#allocation133_spill] sm:$0xff] }
 0x69a   : > { %5514 = vrot.lane.b32.xlu0 %v4719_v63, %s6952_s30  ;;  %v5239_v1 = vpop.permute.xlu1 %5238  ;;  %v4723_v63 = vld [vmem:[#allocation3 + $0x1a0] sm:$0xff] }
 0x69b   : > { %v5925_v22 = vsel %vm3909_vm6, %v5893_v54, %v5239_v1  ;;  %v11654_v1 = vld [vmem:[#allocation51_spill] sm:$0xff]  ;;  %v4786_v53 = vld [vmem:[#allocation3 + $0x19a] sm:$0xff] }
 0x69c   : > { %v5745_v27 = vpop.permute.xlu0 %5744  ;;  %5642 = vrot.lane.b32.xlu1 %v4751_v29, %s6953_s9  ;;  %v5831_v51 = vsel %vm342_vm0, %v6920_v36, %v11654_v1 }
 0x69d   : > { %v6050_v44 = vsel %vm4041_vm10, %v6018_v25, %v5745_v27  ;;  %v11656_v27 = vld [vmem:[#allocation111_spill] sm:$0xff] }
 0x69e   : > { %5260 = vrot.lane.b32.xlu0 %v4750_v8, %s6950_s26  ;;  %6837 = vmatprep.mubr.msk.f32.mxu0 %vm4090_vm11, %v6050_v44  ;;  %v5747_v6 = vpop.permute.xlu1 %5746  ;;  %v6919_v8 = vld [vmem:[#allocation3 + $0xd8] sm:$0xff]  ;;  %v5863_v44 = vsel %vm3843_vm4, %v5831_v51, %v11656_v27 }
 0x69f   : > { %v6051_v55 = vsel %vm4041_vm10, %v6019_v42, %v5747_v6  ;;  %v5830_v43 = vsel %vm342_vm0, %v6919_v8, %v11652_v50  ;;  %v4722_v6 = vld [vmem:[#allocation3 + $0x198] sm:$0xff] }
 0x6a0   : > { %v5365_v9 = vpop.permute.xlu0 %5364  ;;  %5262 = vrot.lane.b32.xlu1 %v4751_v29, %s6950_s26  ;;  %6838 = vmatmul.mubr.msk.f32.gmra.mxu0 %vm4090_vm11, %v6051_v55  ;;  %v5862_v61 = vsel %vm3843_vm4, %v5830_v43, %v11653_v58  ;;  %v11657_v55 = vld [vmem:[#allocation83_spill] sm:$0xff] }
 0x6a1   : > { %v5956_v39 = vsel %vm3942_vm7, %v5924_v0, %v5365_v9  ;;  %v5894_v29 = vsel %vm3876_vm5, %v5862_v61, %v11655_v45  ;;  %v5895_v9 = vsel %vm3876_vm5, %v5863_v44, %v11657_v55  ;;  %v6923_v55 = vld [vmem:[#allocation3 + $0x108] sm:$0xff] }
 0x6a2   : > { %5768 = vrot.lane.b32.xlu0 %v4782_v3, %s6954_s17  ;;  %v5493_v33 = vpop.permute.xlu1 %5492 }
 0x6a3   : > { %v5988_v11 = vsel %vm3975_vm8, %v5956_v39, %v5493_v33 }
 0x6a4   : > { %v5367_v18 = vpop.permute.xlu0 %5366  ;;  %5770 = vrot.lane.b32.xlu1 %v4783_v14, %s6954_s17 }
 0x6a5   : > { %v5957_v12 = vsel %vm3942_vm7, %v5925_v22, %v5367_v18  ;;  %v4755_v18 = vld [vmem:[#allocation3 + $0x1a1] sm:$0xff] }
 0x6a6   : > { %5388 = vrot.lane.b32.xlu0 %v4782_v3, %s6951_s29  ;;  %v5621_v10 = vpop.permute.xlu1 %5620 }
 0x6a7   : > { %v6020_v57 = vsel %vm4008_vm9, %v5988_v11, %v5621_v10  ;;  %v11661_v11 = vld [vmem:[#allocation61_spill] sm:$0xff] }
 0x6a8   : > { %v5495_v31 = vpop.permute.xlu0 %5494  ;;  %5516 = vrot.lane.b32.xlu1 %v4720_v17, %s6952_s30 }
 0x6a9   : > { %v5989_v4 = vsel %vm3975_vm8, %v5957_v12, %v5495_v31  ;;  %v11660_v12 = vld [vmem:[#allocation32_spill] sm:$0xff] }
 0x6aa   : > { %5390 = vrot.lane.b32.xlu0 %v4783_v14, %s6951_s29  ;;  %v5623_v41 = vpop.permute.xlu1 %5622 }
 0x6ab   : > { %v6021_v59 = vsel %vm4008_vm9, %v5989_v4, %v5623_v41 }
 0x6ac   : > { %v5241_v24 = vpop.permute.xlu0 %5240  ;;  %5644 = vrot.lane.b32.xlu1 %v4752_v56, %s6953_s9 }
 0x6ad   : > { %v5926_v42 = vsel %vm3909_vm6, %v5894_v29, %v5241_v24  ;;  %v11659_v24 = vld [vmem:[#allocation59_spill] sm:$0xff] }
 0x6ae   : > { %5518 = vrot.lane.b32.xlu0 %v4721_v35, %s6952_s30  ;;  %v5243_v38 = vpop.permute.xlu1 %5242 }
 0x6af   : > { %v5927_v14 = vsel %vm3909_vm6, %v5895_v9, %v5243_v38  ;;  %v11664_v9 = vld [vmem:[#allocation154_spill] sm:$0xff] }
 0x6b0   : > { %v5749_v46 = vpop.permute.xlu0 %5748  ;;  %5264 = vrot.lane.b32.xlu1 %v4752_v56, %s6950_s26  ;;  %v6921_v56 = vld [vmem:[#allocation3 + $0xf0] sm:$0xff] }
 0x6b1   : > { %v6052_v21 = vsel %vm4041_vm10, %v6020_v57, %v5749_v46  ;;  %v5832_v54 = vsel %vm342_vm0, %v6921_v56, %v11658_v28  ;;  %v10803_v46 = vld [vmem:[%s11053_s7] ss:$0 sm:$0xff] }
 0x6b2   : > { %5138 = vrot.lane.b32.xlu0 %v4721_v35, %s6949_s25  ;;  %6840 = vmatprep.mubr.msk.f32.mxu0 %vm4090_vm11, %v6052_v21  ;;  %v5751_v40 = vpop.permute.xlu1 %5750  ;;  %v5864_v22 = vsel %vm3843_vm4, %v5832_v54, %v11659_v24  ;;  %v6922_v35 = vld [vmem:[#allocation3 + $0xf8] sm:$0xff]  ;;  %v11662_v21 = vld [vmem:[#allocation55_spill] sm:$0xff] }
 0x6b3   : > { %v6053_v23 = vsel %vm4041_vm10, %v6021_v59, %v5751_v40  ;;  %v5833_v38 = vsel %vm342_vm0, %v6922_v35, %v11660_v12  ;;  %v5896_v4 = vsel %vm3876_vm5, %v5864_v22, %v11661_v11 }
 0x6b4   : > { %v5369_v47 = vpop.permute.xlu0 %5368  ;;  %5772 = vrot.lane.b32.xlu1 %v4784_v13, %s6954_s17  ;;  %6841 = vmatmul.mubr.msk.f32.gmra.mxu0 %vm4090_vm11, %v6053_v23  ;;  %v5865_v59 = vsel %vm3843_vm4, %v5833_v38, %v11662_v21  ;;  %v11663_v23 = vld [vmem:[#allocation160_spill] sm:$0xff] }
 0x6b5   : > { %v5958_v3 = vsel %vm3942_vm7, %v5926_v42, %v5369_v47 }
 0x6b6   : > { %5646 = vrot.lane.b32.xlu0 %v4753_v7, %s6953_s9  ;;  %v5497_v15 = vpop.permute.xlu1 %5496 }
 0x6b7   : > { %v5990_v20 = vsel %vm3975_vm8, %v5958_v3, %v5497_v15  ;;  %v5834_v3 = vsel %vm342_vm0, %v6923_v55, %v11664_v9 }
 0x6b8   : > { %v5371_v34 = vpop.permute.xlu0 %5370  ;;  %5392 = vrot.lane.b32.xlu1 %v4784_v13, %s6951_s29  ;;  %v5897_v13 = vsel %vm3876_vm5, %v5865_v59, %v11663_v23 }
 0x6b9   : > { %v5959_v10 = vsel %vm3942_vm7, %v5927_v14, %v5371_v34  ;;  %v11665_v14 = vld [vmem:[#allocation157_spill] sm:$0xff] }
 0x6ba   : > { %5266 = vrot.lane.b32.xlu0 %v4753_v7, %s6950_s26  ;;  %v5625_v52 = vpop.permute.xlu1 %5624 }
 0x6bb   : > { %v6022_v31 = vsel %vm4008_vm9, %v5990_v20, %v5625_v52 }
 0x6bc   : > { %v5499_v60 = vpop.permute.xlu0 %5498  ;;  %5394 = vrot.lane.b32.xlu1 %v4690_v2, %s6951_s29 }
 0x6bd   : > { %v5991_v5 = vsel %vm3975_vm8, %v5959_v10, %v5499_v60  ;;  %v6924_v10 = vld [vmem:[#allocation3 + $0x110] sm:$0xff] }
 0x6be   : > { %5774 = vrot.lane.b32.xlu0 %v4690_v2, %s6954_s17  ;;  %v5627_v25 = vpop.permute.xlu1 %5626 }
 0x6bf   : > { %v6023_v16 = vsel %vm4008_vm9, %v5991_v5, %v5627_v25  ;;  %v11667_v5 = vld [vmem:[#allocation114_spill] sm:$0xff] }
 0x6c0   : > { %v5245_v33 = vpop.permute.xlu0 %5244  ;;  %5522 = vrot.lane.b32.xlu1 %v4723_v63, %s6952_s30 }
 0x6c1   : > { %v5928_v40 = vsel %vm3909_vm6, %v5896_v4, %v5245_v33 }
 0x6c2   : > { %5520 = vrot.lane.b32.xlu0 %v4722_v6, %s6952_s30  ;;  %v5247_v17 = vpop.permute.xlu1 %5246 }
 0x6c3   : > { %v5929_v34 = vsel %vm3909_vm6, %v5897_v13, %v5247_v17  ;;  %v11666_v17 = vld [vmem:[#allocation99_spill] sm:$0xff] }
 0x6c4   : > { %v5753_v32 = vpop.permute.xlu0 %5752  ;;  %5650 = vrot.lane.b32.xlu1 %v4755_v18, %s6953_s9  ;;  %v5866_v18 = vsel %vm3843_vm4, %v5834_v3, %v11665_v14  ;;  %v5835_v20 = vsel %vm342_vm0, %v6924_v10, %v11666_v17 }
 0x6c5   : > { %v6054_v62 = vsel %vm4041_vm10, %v6022_v31, %v5753_v32  ;;  %v11668_v32 = vld [vmem:[#allocation134_spill] sm:$0xff] }
 0x6c6   : > { %5648 = vrot.lane.b32.xlu0 %v4754_v48, %s6953_s9  ;;  %6843 = vmatprep.mubr.msk.f32.mxu0 %vm4090_vm11, %v6054_v62  ;;  %v5755_v37 = vpop.permute.xlu1 %5754  ;;  %s10818_s9 = scalar_lea.vmem %s11054_s8, %s6625_s11  ;;  %v5898_v48 = vsel %vm3876_vm5, %v5866_v18, %v11667_v5  ;;  %v5867_v62 = vsel %vm3843_vm4, %v5835_v20, %v11668_v32 }
 0x6c7   : > { %v6055_v30 = vsel %vm4041_vm10, %v6023_v16, %v5755_v37  ;;  %v11669_v16 = vld [vmem:[#allocation106_spill] sm:$0xff] }
 0x6c8   : > { %v5373_v41 = vpop.permute.xlu0 %5372  ;;  %5778 = vrot.lane.b32.xlu1 %v4787_v26, %s6954_s17  ;;  %6844 = vmatmul.mubr.msk.f32.gmra.mxu0 %vm4090_vm11, %v6055_v30  ;;  %v5899_v37 = vsel %vm3876_vm5, %v5867_v62, %v11669_v16 }
 0x6c9   : > { %v5960_v47 = vsel %vm3942_vm7, %v5928_v40, %v5373_v41 }
 0x6ca   : > { %5776 = vrot.lane.b32.xlu0 %v4786_v53, %s6954_s17  ;;  %v5501_v19 = vpop.permute.xlu1 %5500 }
 0x6cb   : > { %v5992_v43 = vsel %vm3975_vm8, %v5960_v47, %v5501_v19  ;;  %v6925_v47 = vld [vmem:[#allocation3 + $0x120] sm:$0xff] }
 0x6cc   : > { %v5375_v49 = vpop.permute.xlu0 %5374 }
 0x6cd   : > { %v5961_v2 = vsel %vm3942_vm7, %v5929_v34, %v5375_v49 }
 0x6ce   : > { %v5629_v0 = vpop.permute.xlu1 %5628 }
 0x6cf   : > { %v6024_v63 = vsel %vm4008_vm9, %v5992_v43, %v5629_v0 }
 0x6d0   : > { %v5503_v39 = vpop.permute.xlu0 %5502 }
 0x6d1   : > { %v5993_v60 = vsel %vm3975_vm8, %v5961_v2, %v5503_v39 }
 0x6d2   : > { %v5631_v57 = vpop.permute.xlu1 %5630 }
 0x6d3   : > { %v6025_v45 = vsel %vm4008_vm9, %v5993_v60, %v5631_v57  ;;  %v11673_v60 = vld [vmem:[#allocation62_spill] sm:$0xff] }
 0x6d4   : > { %v5249_v7 = vpop.permute.xlu0 %5248  ;;  %v6818_v15 = vpop.f32.mrf.mxu0 }
 0x6d5   : > { %v6252_v52 = vadd.f32 %v6818_v15, %v10803_v46  ;;  %v5930_v26 = vsel %vm3909_vm6, %v5898_v48, %v5249_v7  ;;  %v11670_v7 = vld [vmem:[#allocation33_spill] sm:$0xff] }
 0x6d6   : > { %v6246_v8 = vpop.f32.mrf.mxu0  ;;  %v5251_v50 = vpop.permute.xlu1 %5250  ;;  %v5836_v15 = vsel %vm342_vm0, %v6925_v47, %v11670_v7 }
 0x6d7   : > { %v6406_v58 = vmax.f32 %v6252_v52, 0.0  ;;  %v6247_v61 = vadd.f32 %v10803_v46, %v6246_v8  ;;  %v5931_v19 = vsel %vm3909_vm6, %v5899_v37, %v5251_v50  ;;  %v11671_v52 = vld [vmem:[#allocation103_spill] sm:$0xff]  ;;  %v11672_v50 = vld [vmem:[#allocation69_spill] sm:$0xff] }
 0x6d8   : > { %v5757_v36 = vpop.permute.xlu0 %5756  ;;  %v5868_v2 = vsel %vm3843_vm4, %v5836_v15, %v11671_v52  ;;  %v6926_v8 = vld [vmem:[#allocation3 + $0x128] sm:$0xff] }
 0x6d9   : > { %6438 = vst.msk [vmem:[%s10818_s9 + $0x8] sm:$0xff] %vm342_vm0, %v6406_v58  ;;  %v6405_v1 = vmax.f32 %v6247_v61, 0.0  ;;  %v6056_v51 = vsel %vm4041_vm10, %v6024_v63, %v5757_v36  ;;  %v5837_v43 = vsel %vm342_vm0, %v6926_v8, %v11672_v50  ;;  %v5900_v58 = vsel %vm3876_vm5, %v5868_v2, %v11673_v60  ;;  %v11674_v63 = vld [vmem:[#allocation81_spill] sm:$0xff] }
 0x6da   : > { %6846 = vmatprep.mubr.msk.f32.mxu0 %vm4090_vm11, %v6056_v51  ;;  %v5759_v29 = vpop.permute.xlu1 %5758  ;;  %v5869_v36 = vsel %vm3843_vm4, %v5837_v43, %v11674_v63  ;;  %v11675_v51 = vld [vmem:[#allocation6_spill] sm:$0xff] }
 0x6db   : > { %6437 = vst.msk [vmem:[%s10818_s9] sm:$0xff] %vm342_vm0, %v6405_v1  ;;  %v6057_v25 = vsel %vm4041_vm10, %v6025_v45, %v5759_v29  ;;  %v5901_v45 = vsel %vm3876_vm5, %v5869_v36, %v11675_v51 }
 0x6dc   : > { %v5377_v27 = vpop.permute.xlu0 %5376  ;;  %6847 = vmatmul.mubr.msk.f32.gmra.mxu0 %vm4090_vm11, %v6057_v25 }
 0x6dd   : > { %v5962_v30 = vsel %vm3942_vm7, %v5930_v26, %v5377_v27 }
 0x6de   : > { %v5505_v44 = vpop.permute.xlu1 %5504 }
 0x6df   : > { %v5994_v54 = vsel %vm3975_vm8, %v5962_v30, %v5505_v44  ;;  %v6927_v30 = vld [vmem:[#allocation3 + $0x138] sm:$0xff] }
 0x6e0   : > { %v5379_v42 = vpop.permute.xlu0 %5378 }
 0x6e1   : > { %v5963_v0 = vsel %vm3942_vm7, %v5931_v19, %v5379_v42 }
 0x6e2   : > { %v5633_v6 = vpop.permute.xlu1 %5632 }
 0x6e3   : > { %v6026_v35 = vsel %vm4008_vm9, %v5994_v54, %v5633_v6 }
 0x6e4   : > { %v5507_v33 = vpop.permute.xlu0 %5506 }
 0x6e5   : > { %v5995_v39 = vsel %vm3975_vm8, %v5963_v0, %v5507_v33 }
 0x6e6   : > { %v5635_v31 = vpop.permute.xlu1 %5634 }
 0x6e7   : > { %v6027_v4 = vsel %vm4008_vm9, %v5995_v39, %v5635_v31  ;;  %v11679_v39 = vld [vmem:[#allocation137_spill] sm:$0xff] }
 0x6e8   : > { %v5253_v53 = vpop.permute.xlu0 %5252  ;;  %v6821_v41 = vpop.f32.mrf.mxu0 }
 0x6e9   : > { %v6262_v49 = vadd.f32 %v6821_v41, %v10803_v46  ;;  %v5932_v1 = vsel %vm3909_vm6, %v5900_v58, %v5253_v53  ;;  %v11676_v53 = vld [vmem:[#allocation29_spill] sm:$0xff] }
 0x6ea   : > { %v6256_v56 = vpop.f32.mrf.mxu0  ;;  %v5255_v28 = vpop.permute.xlu1 %5254  ;;  %v5838_v41 = vsel %vm342_vm0, %v6927_v30, %v11676_v53  ;;  %v6930_v30 = vld [vmem:[#allocation3 + $0x158] sm:$0xff]  ;;  %v11685_v53 = vld [vmem:[#allocation66_spill] sm:$0xff] }
 0x6eb   : > { %v6408_v24 = vmax.f32 %v6262_v49, 0.0  ;;  %v6257_v22 = vadd.f32 %v10803_v46, %v6256_v56  ;;  %v5933_v44 = vsel %vm3909_vm6, %v5901_v45, %v5255_v28  ;;  %v11677_v49 = vld [vmem:[#allocation30_spill] sm:$0xff]  ;;  %v11678_v28 = vld [vmem:[#allocation36_spill] sm:$0xff] }
 0x6ec   : > { %v5761_v12 = vpop.permute.xlu0 %5760  ;;  %v5870_v0 = vsel %vm3843_vm4, %v5838_v41, %v11677_v49  ;;  %v6928_v56 = vld [vmem:[#allocation3 + $0x140] sm:$0xff]  ;;  %v6929_v45 = vld [vmem:[#allocation3 + $0x150] sm:$0xff]  ;;  %v5841_v41 = vsel %vm342_vm0, %v6930_v30, %v11685_v53 }
 0x6ed   : > { %6440 = vst.msk [vmem:[%s10818_s9 + $0x18] sm:$0xff] %vm342_vm0, %v6408_v24  ;;  %v6407_v38 = vmax.f32 %v6257_v22, 0.0  ;;  %v6058_v11 = vsel %vm4041_vm10, %v6026_v35, %v5761_v12  ;;  %v5839_v54 = vsel %vm342_vm0, %v6928_v56, %v11678_v28  ;;  %v5902_v24 = vsel %vm3876_vm5, %v5870_v0, %v11679_v39  ;;  %v11680_v35 = vld [vmem:[#allocation158_spill] sm:$0xff]  ;;  %v11686_v49 = vld [vmem:[#allocation104_spill] sm:$0xff]  ;;  %v11687_v56 = vld [vmem:[#allocation37_spill] sm:$0xff] }
 0x6ee   : > { %6849 = vmatprep.mubr.msk.f32.mxu0 %vm4090_vm11, %v6058_v11  ;;  %v5763_v57 = vpop.permute.xlu1 %5762  ;;  %v5871_v12 = vsel %vm3843_vm4, %v5839_v54, %v11680_v35  ;;  %v11681_v11 = vld [vmem:[#allocation115_spill] sm:$0xff]  ;;  %v5873_v0 = vsel %vm3843_vm4, %v5841_v41, %v11686_v49 }
 0x6ef   : > { %6439 = vst.msk [vmem:[%s10818_s9 + $0x10] sm:$0xff] %vm342_vm0, %v6407_v38  ;;  %v6059_v21 = vsel %vm4041_vm10, %v6027_v4, %v5763_v57  ;;  %v5903_v4 = vsel %vm3876_vm5, %v5871_v12, %v11681_v11  ;;  %v5905_v28 = vsel %vm3876_vm5, %v5873_v0, %v11687_v56 }
 0x6f0   : > { %v5381_v59 = vpop.permute.xlu0 %5380  ;;  %6850 = vmatmul.mubr.msk.f32.gmra.mxu0 %vm4090_vm11, %v6059_v21 }
 0x6f1   : > { %v5964_v29 = vsel %vm3942_vm7, %v5932_v1, %v5381_v59 }
 0x6f2   : > { %v5509_v40 = vpop.permute.xlu1 %5508 }
 0x6f3   : > { %v5996_v3 = vsel %vm3975_vm8, %v5964_v29, %v5509_v40  ;;  %v11682_v29 = vld [vmem:[#allocation68_spill] sm:$0xff] }
 0x6f4   : > { %v5383_v23 = vpop.permute.xlu0 %5382 }
 0x6f5   : > { %v5965_v6 = vsel %vm3942_vm7, %v5933_v44, %v5383_v23  ;;  %v11683_v44 = vld [vmem:[#allocation112_spill] sm:$0xff] }
 0x6f6   : > { %v5637_v13 = vpop.permute.xlu1 %5636 }
 0x6f7   : > { %v6028_v10 = vsel %vm4008_vm9, %v5996_v3, %v5637_v13 }
 0x6f8   : > { %v5511_v34 = vpop.permute.xlu0 %5510 }
 0x6f9   : > { %v5997_v33 = vsel %vm3975_vm8, %v5965_v6, %v5511_v34  ;;  %v11684_v6 = vld [vmem:[#allocation84_spill] sm:$0xff] }
 0x6fa   : > { %v5639_v61 = vpop.permute.xlu1 %5638 }
 0x6fb   : > { %v6029_v48 = vsel %vm4008_vm9, %v5997_v33, %v5639_v61 }
 0x6fc   : > { %v5257_v25 = vpop.permute.xlu0 %5256  ;;  %v6824_v27 = vpop.f32.mrf.mxu0 }
 0x6fd   : > { %v6272_v42 = vadd.f32 %v6824_v27, %v10803_v46  ;;  %v5934_v38 = vsel %vm3909_vm6, %v5902_v24, %v5257_v25  ;;  %v5840_v25 = vsel %vm342_vm0, %v6929_v45, %v11682_v29 }
 0x6fe   : > { %v6266_v55 = vpop.f32.mrf.mxu0  ;;  %v5259_v9 = vpop.permute.xlu1 %5258 }
 0x6ff   : > { %v6410_v14 = vmax.f32 %v6272_v42, 0.0  ;;  %v6267_v18 = vadd.f32 %v10803_v46, %v6266_v55  ;;  %v5935_v40 = vsel %vm3909_vm6, %v5903_v4, %v5259_v9  ;;  %v5872_v42 = vsel %vm3843_vm4, %v5840_v25, %v11683_v44 }
 0x700   : > { %v5765_v17 = vpop.permute.xlu0 %5764  ;;  %v5904_v55 = vsel %vm3876_vm5, %v5872_v42, %v11684_v6 }
 0x701   : > { %6442 = vst.msk [vmem:[%s10818_s9 + $0x28] sm:$0xff] %vm342_vm0, %v6410_v14  ;;  %v6409_v20 = vmax.f32 %v6267_v18, 0.0  ;;  %v6060_v5 = vsel %vm4041_vm10, %v6028_v10, %v5765_v17 }
 0x702   : > { %6852 = vmatprep.mubr.msk.f32.mxu0 %vm4090_vm11, %v6060_v5  ;;  %v5767_v31 = vpop.permute.xlu1 %5766 }
 0x703   : > { %6441 = vst.msk [vmem:[%s10818_s9 + $0x20] sm:$0xff] %vm342_vm0, %v6409_v20  ;;  %v6061_v32 = vsel %vm4041_vm10, %v6029_v48, %v5767_v31 }
 0x704   : > { %v5385_v62 = vpop.permute.xlu0 %5384  ;;  %6853 = vmatmul.mubr.msk.f32.gmra.mxu0 %vm4090_vm11, %v6061_v32 }
 0x705   : > { %v5966_v57 = vsel %vm3942_vm7, %v5934_v38, %v5385_v62 }
 0x706   : > { %v5513_v26 = vpop.permute.xlu1 %5512 }
 0x707   : > { %v5998_v15 = vsel %vm3975_vm8, %v5966_v57, %v5513_v26 }
 0x708   : > { %v5387_v16 = vpop.permute.xlu0 %5386 }
 0x709   : > { %v5967_v13 = vsel %vm3942_vm7, %v5935_v40, %v5387_v16 }
 0x70a   : > { %v5641_v37 = vpop.permute.xlu1 %5640 }
 0x70b   : > { %v6030_v8 = vsel %vm4008_vm9, %v5998_v15, %v5641_v37 }
 0x70c   : > { %v5515_v19 = vpop.permute.xlu0 %5514 }
 0x70d   : > { %v5999_v34 = vsel %vm3975_vm8, %v5967_v13, %v5515_v19  ;;  %v11689_v13 = vld [vmem:[#allocation155_spill] sm:$0xff] }
 0x70e   : > { %v5643_v22 = vpop.permute.xlu1 %5642 }
 0x70f   : > { %v6031_v58 = vsel %vm4008_vm9, %v5999_v34, %v5643_v22 }
 0x710   : > { %v5261_v21 = vpop.permute.xlu0 %5260  ;;  %v6827_v59 = vpop.f32.mrf.mxu0 }
 0x711   : > { %v6282_v23 = vadd.f32 %v6827_v59, %v10803_v46  ;;  %v5936_v3 = vsel %vm3909_vm6, %v5904_v55, %v5261_v21  ;;  %v6931_v21 = vld [vmem:[#allocation3 + $0x170] sm:$0xff] }
 0x712   : > { %v6276_v47 = vpop.f32.mrf.mxu0  ;;  %v5263_v7 = vpop.permute.xlu1 %5262  ;;  %v11688_v59 = vld [vmem:[#allocation132_spill] sm:$0xff] }
 0x713   : > { %v6412_v52 = vmax.f32 %v6282_v23, 0.0  ;;  %v6277_v2 = vadd.f32 %v10803_v46, %v6276_v47  ;;  %v5937_v39 = vsel %vm3909_vm6, %v5905_v28, %v5263_v7  ;;  %v5843_v40 = vsel %vm342_vm0, %v6931_v21, %v11688_v59  ;;  %v6932_v23 = vld [vmem:[#allocation3 + $0x168] sm:$0xff]  ;;  %v11690_v7 = vld [vmem:[#allocation13_spill] sm:$0xff] }
 0x714   : > { %v5769_v50 = vpop.permute.xlu0 %5768  ;;  %v5842_v47 = vsel %vm342_vm0, %v6932_v23, %v11689_v13  ;;  %v5875_v15 = vsel %vm3843_vm4, %v5843_v40, %v11690_v7 }
 0x715   : > { %6444 = vst.msk [vmem:[%s10818_s9 + $0x38] sm:$0xff] %vm342_vm0, %v6412_v52  ;;  %v6411_v43 = vmax.f32 %v6277_v2, 0.0  ;;  %v6062_v60 = vsel %vm4041_vm10, %v6030_v8, %v5769_v50  ;;  %v11691_v52 = vld [vmem:[#allocation60_spill] sm:$0xff]  ;;  %v11692_v50 = vld [vmem:[#allocation138_spill] sm:$0xff] }
 0x716   : > { %6855 = vmatprep.mubr.msk.f32.mxu0 %vm4090_vm11, %v6062_v60  ;;  %v5771_v61 = vpop.permute.xlu1 %5770  ;;  %v5874_v2 = vsel %vm3843_vm4, %v5842_v47, %v11691_v52 }
 0x717   : > { %6443 = vst.msk [vmem:[%s10818_s9 + $0x30] sm:$0xff] %vm342_vm0, %v6411_v43  ;;  %v6063_v63 = vsel %vm4041_vm10, %v6031_v58, %v5771_v61  ;;  %v5906_v43 = vsel %vm3876_vm5, %v5874_v2, %v11692_v50 }
 0x718   : > { %v5389_v36 = vpop.permute.xlu0 %5388  ;;  %6856 = vmatmul.mubr.msk.f32.gmra.mxu0 %vm4090_vm11, %v6063_v63 }
 0x719   : > { %v5968_v33 = vsel %vm3942_vm7, %v5936_v3, %v5389_v36 }
 0x71a   : > { %v5517_v1 = vpop.permute.xlu1 %5516 }
 0x71b   : > { %v6000_v17 = vsel %vm3975_vm8, %v5968_v33, %v5517_v1 }
 0x71c   : > { %v5391_v51 = vpop.permute.xlu0 %5390 }
 0x71d   : > { %v5969_v24 = vsel %vm3942_vm7, %v5937_v39, %v5391_v51 }
 0x71e   : > { %v5645_v27 = vpop.permute.xlu1 %5644 }
 0x71f   : > { %v6032_v5 = vsel %vm4008_vm9, %v6000_v17, %v5645_v27 }
 0x720   : > { %v5519_v9 = vpop.permute.xlu0 %5518 }
 0x721   : > { %v6001_v35 = vsel %vm3975_vm8, %v5969_v24, %v5519_v9 }
 0x722   : > { %v5265_v14 = vpop.permute.xlu1 %5264 }
 0x723   : > { %v5938_v63 = vsel %vm3909_vm6, %v5906_v43, %v5265_v14 }
 0x724   : > { %v5139_v18 = vpop.permute.xlu0 %5138  ;;  %v6830_v10 = vpop.f32.mrf.mxu0 }
 0x725   : > { %v6292_v20 = vadd.f32 %v6830_v10, %v10803_v46  ;;  %v5907_v8 = vsel %vm3876_vm5, %v5875_v15, %v5139_v18 }
 0x726   : > { %v6286_v48 = vpop.f32.mrf.mxu0  ;;  %v5773_v31 = vpop.permute.xlu1 %5772 }
 0x727   : > { %v6414_v32 = vmax.f32 %v6292_v20, 0.0  ;;  %v6287_v62 = vadd.f32 %v10803_v46, %v6286_v48  ;;  %v6064_v26 = vsel %vm4041_vm10, %v6032_v5, %v5773_v31 }
 0x728   : > { %v5647_v16 = vpop.permute.xlu0 %5646  ;;  %6858 = vmatprep.mubr.msk.f32.mxu0 %vm4090_vm11, %v6064_v26 }
 0x729   : > { %6446 = vst.msk [vmem:[%s10818_s9 + $0x48] sm:$0xff] %vm342_vm0, %v6414_v32  ;;  %v6413_v37 = vmax.f32 %v6287_v62, 0.0  ;;  %v6033_v12 = vsel %vm4008_vm9, %v6001_v35, %v5647_v16 }
 0x72a   : > { %v5393_v19 = vpop.permute.xlu1 %5392 }
 0x72b   : > { %6445 = vst.msk [vmem:[%s10818_s9 + $0x40] sm:$0xff] %vm342_vm0, %v6413_v37  ;;  %v5970_v1 = vsel %vm3942_vm7, %v5938_v63, %v5393_v19 }
 0x72c   : > { %v5267_v54 = vpop.permute.xlu0 %5266 }
 0x72d   : > { %v5939_v60 = vsel %vm3909_vm6, %v5907_v8, %v5267_v54 }
 0x72e   : > { %v5395_v22 = vpop.permute.xlu1 %5394 }
 0x72f   : > { %v5971_v45 = vsel %vm3942_vm7, %v5939_v60, %v5395_v22 }
 0x730   : > { %v5775_v38 = vpop.permute.xlu0 %5774 }
 0x731   : > { %v6065_v11 = vsel %vm4041_vm10, %v6033_v12, %v5775_v38 }
 0x732   : > { %6859 = vmatmul.mubr.msk.f32.gmra.mxu0 %vm4090_vm11, %v6065_v11  ;;  %v5523_v4 = vpop.permute.xlu1 %5522 }
 0x733   : > { %v6003_v42 = vsel %vm3975_vm8, %v5971_v45, %v5523_v4 }
 0x734   : > { %v5521_v57 = vpop.permute.xlu0 %5520 }
 0x735   : > { %v6002_v29 = vsel %vm3975_vm8, %v5970_v1, %v5521_v57 }
 0x736   : > { %v5651_v34 = vpop.permute.xlu1 %5650 }
 0x737   : > { %v6035_v9 = vsel %vm4008_vm9, %v6003_v42, %v5651_v34 }
 0x738   : > { %v5649_v58 = vpop.permute.xlu0 %5648  ;;  %v6833_v61 = vpop.f32.mrf.mxu0 }
 0x739   : > { %v6302_v36 = vadd.f32 %v6833_v61, %v10803_v46  ;;  %v6034_v6 = vsel %vm4008_vm9, %v6002_v29, %v5649_v58 }
 0x73a   : > { %v6296_v51 = vpop.f32.mrf.mxu0  ;;  %v5779_v44 = vpop.permute.xlu1 %5778 }
 0x73b   : > { %v6416_v25 = vmax.f32 %v6302_v36, 0.0  ;;  %v6297_v27 = vadd.f32 %v10803_v46, %v6296_v51  ;;  %v6067_v14 = vsel %vm4041_vm10, %v6035_v9, %v5779_v44 }
 0x73c   : > { %v5777_v55 = vpop.permute.xlu0 %5776 }
 0x73d   : > { %6448 = vst.msk [vmem:[%s10818_s9 + $0x58] sm:$0xff] %vm342_vm0, %v6416_v25  ;;  %v6415_v3 = vmax.f32 %v6297_v27, 0.0  ;;  %v6066_v33 = vsel %vm4041_vm10, %v6034_v6, %v5777_v55 }
 0x73e   : > { %6861 = vmatprep.mubr.msk.f32.mxu0 %vm4090_vm11, %v6066_v33 }
 0x73f   : > { %6447 = vst.msk [vmem:[%s10818_s9 + $0x50] sm:$0xff] %vm342_vm0, %v6415_v3  ;;  %6862 = vmatmul.mubr.msk.f32.gmra.mxu0 %vm4090_vm11, %v6067_v14 }
 0x74c   : > { %v6836_v18 = vpop.f32.mrf.mxu0 }
 0x74d   : > { %v6312_v10 = vadd.f32 %v6836_v18, %v10803_v46 }
 0x74e   : > { %v6306_v17 = vpop.f32.mrf.mxu0 }
 0x74f   : > { %v6418_v20 = vmax.f32 %v6312_v10, 0.0  ;;  %v6307_v5 = vadd.f32 %v10803_v46, %v6306_v17 }
 0x751   : > { %6450 = vst.msk [vmem:[%s10818_s9 + $0x68] sm:$0xff] %vm342_vm0, %v6418_v20  ;;  %v6417_v48 = vmax.f32 %v6307_v5, 0.0 }
 0x753   : > { %6449 = vst.msk [vmem:[%s10818_s9 + $0x60] sm:$0xff] %vm342_vm0, %v6417_v48 }
 0x760   : > { %v6839_v31 = vpop.f32.mrf.mxu0 }
 0x761   : > { %v6322_v32 = vadd.f32 %v6839_v31, %v10803_v46 }
 0x762   : > { %v6316_v62 = vpop.f32.mrf.mxu0 }
 0x763   : > { %v6420_v26 = vmax.f32 %v6322_v32, 0.0  ;;  %v6317_v16 = vadd.f32 %v10803_v46, %v6316_v62 }
 0x765   : > { %6452 = vst.msk [vmem:[%s10818_s9 + $0x78] sm:$0xff] %vm342_vm0, %v6420_v26  ;;  %v6419_v37 = vmax.f32 %v6317_v16, 0.0 }
 0x767   : > { %6451 = vst.msk [vmem:[%s10818_s9 + $0x70] sm:$0xff] %vm342_vm0, %v6419_v37 }
 0x774   : > { %v6842_v30 = vpop.f32.mrf.mxu0 }
 0x775   : > { %v6332_v53 = vadd.f32 %v6842_v30, %v10803_v46 }
 0x776   : > { %v6326_v41 = vpop.f32.mrf.mxu0 }
 0x777   : > { %v6422_v19 = vmax.f32 %v6332_v53, 0.0  ;;  %v6327_v49 = vadd.f32 %v10803_v46, %v6326_v41 }
 0x779   : > { %6454 = vst.msk [vmem:[%s10818_s9 + $0x88] sm:$0xff] %vm342_vm0, %v6422_v19  ;;  %v6421_v0 = vmax.f32 %v6327_v49, 0.0 }
 0x77b   : > { %6453 = vst.msk [vmem:[%s10818_s9 + $0x80] sm:$0xff] %vm342_vm0, %v6421_v0 }
 0x788   : > { %v6845_v56 = vpop.f32.mrf.mxu0 }
 0x789   : > { %v6342_v28 = vadd.f32 %v6845_v56, %v10803_v46 }
 0x78a   : > { %v6336_v54 = vpop.f32.mrf.mxu0 }
 0x78b   : > { %v6424_v39 = vmax.f32 %v6342_v28, 0.0  ;;  %v6337_v24 = vadd.f32 %v10803_v46, %v6336_v54 }
 0x78d   : > { %6456 = vst.msk [vmem:[%s10818_s9 + $0x98] sm:$0xff] %vm342_vm0, %v6424_v39  ;;  %v6423_v22 = vmax.f32 %v6337_v24, 0.0 }
 0x78f   : > { %6455 = vst.msk [vmem:[%s10818_s9 + $0x90] sm:$0xff] %vm342_vm0, %v6423_v22 }
 0x79c   : > { %v6848_v35 = vpop.f32.mrf.mxu0 }
 0x79d   : > { %v6352_v12 = vadd.f32 %v6848_v35, %v10803_v46 }
 0x79e   : > { %v6346_v38 = vpop.f32.mrf.mxu0 }
 0x79f   : > { %v6426_v11 = vmax.f32 %v6352_v12, 0.0  ;;  %v6347_v4 = vadd.f32 %v10803_v46, %v6346_v38 }
 0x7a1   : > { %6458 = vst.msk [vmem:[%s10818_s9 + $0xa8] sm:$0xff] %vm342_vm0, %v6426_v11  ;;  %v6425_v57 = vmax.f32 %v6347_v4, 0.0 }
 0x7a3   : > { %6457 = vst.msk [vmem:[%s10818_s9 + $0xa0] sm:$0xff] %vm342_vm0, %v6425_v57 }
 0x7b0   : > { %v6851_v21 = vpop.f32.mrf.mxu0 }
 0x7b1   : > { %v6362_v59 = vadd.f32 %v6851_v21, %v10803_v46 }
 0x7b2   : > { %v6356_v40 = vpop.f32.mrf.mxu0 }
 0x7b3   : > { %v6428_v23 = vmax.f32 %v6362_v59, 0.0  ;;  %v6357_v13 = vadd.f32 %v10803_v46, %v6356_v40 }
 0x7b5   : > { %6460 = vst.msk [vmem:[%s10818_s9 + $0xb8] sm:$0xff] %vm342_vm0, %v6428_v23  ;;  %v6427_v47 = vmax.f32 %v6357_v13, 0.0 }
 0x7b7   : > { %6459 = vst.msk [vmem:[%s10818_s9 + $0xb0] sm:$0xff] %vm342_vm0, %v6427_v47 }
 0x7c4   : > { %v6854_v7 = vpop.f32.mrf.mxu0 }
 0x7c5   : > { %v6372_v15 = vadd.f32 %v6854_v7, %v10803_v46 }
 0x7c6   : > { %v6366_v34 = vpop.f32.mrf.mxu0 }
 0x7c7   : > { %v6430_v52 = vmax.f32 %v6372_v15, 0.0  ;;  %v6367_v2 = vadd.f32 %v10803_v46, %v6366_v34 }
 0x7c9   : > { %6462 = vst.msk [vmem:[%s10818_s9 + $0xc8] sm:$0xff] %vm342_vm0, %v6430_v52  ;;  %v6429_v8 = vmax.f32 %v6367_v2, 0.0 }
 0x7cb   : > { %6461 = vst.msk [vmem:[%s10818_s9 + $0xc0] sm:$0xff] %vm342_vm0, %v6429_v8 }
 0x7d8   : > { %v6857_v50 = vpop.f32.mrf.mxu0 }
 0x7d9   : > { %v6382_v43 = vadd.f32 %v6857_v50, %v10803_v46 }
 0x7da   : > { %v6376_v60 = vpop.f32.mrf.mxu0 }
 0x7db   : > { %v6432_v58 = vmax.f32 %v6382_v43, 0.0  ;;  %v6377_v61 = vadd.f32 %v10803_v46, %v6376_v60 }
 0x7dd   : > { %6464 = vst.msk [vmem:[%s10818_s9 + $0xd8] sm:$0xff] %vm342_vm0, %v6432_v58  ;;  %v6431_v63 = vmax.f32 %v6377_v61, 0.0 }
 0x7df   : > { %6463 = vst.msk [vmem:[%s10818_s9 + $0xd0] sm:$0xff] %vm342_vm0, %v6431_v63 }
 0x7f2   : > { %v6860_v36 = vpop.f32.mrf.mxu0 }
 0x7f3   : > { %v6392_v1 = vadd.f32 %v6860_v36, %v10803_v46 }
 0x7f4   : > { %v6386_v51 = vpop.f32.mrf.mxu0 }
 0x7f5   : > { %v6434_v45 = vmax.f32 %v6392_v1, 0.0  ;;  %v6387_v29 = vadd.f32 %v10803_v46, %v6386_v51 }
 0x7f7   : > { %6466 = vst.msk [vmem:[%s10818_s9 + $0xe8] sm:$0xff] %vm342_vm0, %v6434_v45  ;;  %v6433_v25 = vmax.f32 %v6387_v29, 0.0 }
 0x7f9   : > { %6465 = vst.msk [vmem:[%s10818_s9 + $0xe0] sm:$0xff] %vm342_vm0, %v6433_v25 }
 0x7ff   : > { %v6863_v27 = vpop.f32.mrf.mxu0 }
 0x800   : > { %v6402_v44 = vadd.f32 %v6863_v27, %v10803_v46 }
 0x801   : > { %v6396_v42 = vpop.f32.mrf.mxu0 }
 0x802   : > { %v6436_v6 = vmax.f32 %v6402_v44, 0.0  ;;  %v6397_v55 = vadd.f32 %v10803_v46, %v6396_v42 }
 0x804   : > { %6468 = vst.msk [vmem:[%s10818_s9 + $0xf8] sm:$0xff] %vm342_vm0, %v6436_v6  ;;  %v6435_v9 = vmax.f32 %v6397_v55, 0.0 }
 0x806   : > { %6467 = vst.msk [vmem:[%s10818_s9 + $0xf0] sm:$0xff] %vm342_vm0, %v6435_v9 }
 0x807 PF: > { %s18_s27 = sadd.s32 1, %s6939_s27  }
 0x808   : > { %p15_p4 = scmp.ge.s32.totalorder %s18_s27, 4  }
 0x80a   :  { %17 = sbr.rel (!%p15_p4) target bundleno = 1 (0x1), region = 89 }

</bundles_post_ra>
